<compile_context>
chip_gen: v7x
topology: tpu7x:2x2x1
jax: 0.10.0
libtpu: 0.0.40
codegen_flags: <defaults>
</compile_context>

<pallas_src>
import functools

import jax
import jax.numpy as jnp
from jax import lax
from jax.experimental import pallas as pl
from jax.experimental.pallas import tpu as pltpu


_VMEM_LIMIT = 32 * 1024 * 1024  # explicit scoped-VMEM budget (safe on v5e/v6e/v7x)


# ----------------------- fused conv + relu + pool kernel ---------------------


def _conv3x3_relu_pool_kernel(xq_ref, w_ref, b_ref, o_ref, *, ho, wo, cin, cout):
    """3x3 'same' conv + bias + relu + 2x2/2 maxpool for one image.

    xq_ref: (4, ho+1, wo+1, cin) bf16  phase-decomposed padded input:
            xq[2*pi + pj, i, j, c] == x_padded[2*i + pi, 2*j + pj, c]
    w_ref : (9, cin, cout)  bf16       taps ordered (dy, dx)
    b_ref : (1, cout)       f32
    o_ref : (ho, wo, cout)  bf16       pooled output
    """
    pooled = None
    for hi in range(2):            # pool-window row phase
        for wi in range(2):        # pool-window col phase
            acc = jnp.zeros((ho * wo, cout), jnp.float32)
            for dy in range(3):
                for dx in range(3):
                    qa, ra = divmod(hi + dy, 2)
                    qb, rb = divmod(wi + dx, 2)
                    win = xq_ref[2 * ra + rb, qa:qa + ho, qb:qb + wo, :]
                    xin = win.reshape(ho * wo, cin)              # bf16
                    acc = acc + jnp.dot(xin, w_ref[dy * 3 + dx],
                                        preferred_element_type=jnp.float32)
            pooled = acc if pooled is None else jnp.maximum(pooled, acc)
    # bias + relu after the max (equivalent: same per-channel bias, relu monotone)
    y = jnp.maximum(pooled + b_ref[...], 0.0)
    o_ref[...] = y.reshape(ho, wo, cout).astype(o_ref.dtype)


def _phase_decompose(x_nhwc):
    """Pad by 1 and pixel-unshuffle: (N,H,W,C) -> (N,4,(H+2)//2,(W+2)//2,C)."""
    n, h, w, c = x_nhwc.shape
    xp = jnp.pad(x_nhwc, ((0, 0), (1, 1), (1, 1), (0, 0)))
    hq, wq = (h + 2) // 2, (w + 2) // 2
    xq = xp.reshape(n, hq, 2, wq, 2, c).transpose(0, 2, 4, 1, 3, 5)
    return xq.reshape(n, 4, hq, wq, c)


def conv3x3_relu_pool(x_nhwc, w9, b, *, out_dtype=jnp.bfloat16):
    """Fused conv(3x3, padding=1) + bias + relu + maxpool(2,2) on NHWC input."""
    n, h, w, cin = x_nhwc.shape
    assert h % 2 == 0 and w % 2 == 0, "spatial dims must be even for 2x2 pool"
    ho, wo = h // 2, w // 2
    assert wo % 8 == 0, "pooled width must be a multiple of 8 (sublane tiling)"
    cout = w9.shape[-1]
    hq, wq = ho + 1, wo + 1

    # pad Cin to a multiple of 8 (zero channels contribute nothing)
    cin_p = ((cin + 7) // 8) * 8
    if cin_p != cin:
        x_nhwc = jnp.pad(x_nhwc, ((0, 0), (0, 0), (0, 0), (0, cin_p - cin)))
        w9 = jnp.pad(w9, ((0, 0), (0, cin_p - cin), (0, 0)))

    xq = _phase_decompose(x_nhwc.astype(jnp.bfloat16))

    kernel = functools.partial(_conv3x3_relu_pool_kernel,
                               ho=ho, wo=wo, cin=cin_p, cout=cout)
    return pl.pallas_call(
        kernel,
        out_shape=jax.ShapeDtypeStruct((n, ho, wo, cout), out_dtype),
        grid=(n,),
        in_specs=[
            pl.BlockSpec((None, 4, hq, wq, cin_p), lambda i: (i, 0, 0, 0, 0)),
            pl.BlockSpec((9, cin_p, cout), lambda i: (0, 0, 0)),
            pl.BlockSpec((1, cout), lambda i: (0, 0)),
        ],
        out_specs=pl.BlockSpec((None, ho, wo, cout), lambda i: (i, 0, 0, 0)),
        compiler_params=pltpu.CompilerParams(
            dimension_semantics=("parallel",),
            vmem_limit_bytes=_VMEM_LIMIT,
        ),
    )(xq, w9.astype(jnp.bfloat16), b.astype(jnp.float32))


# -------------------------- fused fc1+relu+fc2 kernel ------------------------


def _fc1_relu_fc2_kernel(x_ref, w1_ref, b1_ref, w2_ref, b2_ref, o_ref, acc_ref):
    j = pl.program_id(0)          # fc1 output-column half (parallel)
    k = pl.program_id(1)          # fc1 K chunk (arbitrary -> pipelined DMA)

    @pl.when(k == 0)
    def _init():
        acc_ref[...] = jnp.zeros_like(acc_ref)

    acc_ref[...] += jnp.dot(x_ref[...], w1_ref[...],
                            preferred_element_type=jnp.float32)

    @pl.when(k == pl.num_programs(1) - 1)
    def _finalize():
        h = jnp.maximum(acc_ref[...] + b1_ref[...], 0.0)          # (MB, 128) f32
        part = jnp.dot(h.astype(jnp.bfloat16), w2_ref[...],
                       preferred_element_type=jnp.float32)         # (MB, n_cls)
        part = part + jnp.where(j == 0, b2_ref[...], 0.0)          # add b2 once
        o_ref[...] = part


def fc1_relu_fc2(x, w1, b1, w2, b2, *, k_chunk=1024):
    n, kdim = x.shape
    half = w1.shape[1] // 2
    assert half % 128 == 0, "fc1 output split must be lane aligned"
    n_cls = w2.shape[1]
    mb = 8 * pl.cdiv(n, 8)                         # pad batch rows to 8 sublanes
    xpad = jnp.pad(x.astype(jnp.bfloat16), ((0, mb - n), (0, 0)))
    kc = k_chunk if kdim % k_chunk == 0 else kdim
    nk = kdim // kc

    out = pl.pallas_call(
        _fc1_relu_fc2_kernel,
        out_shape=jax.ShapeDtypeStruct((2, mb, n_cls), jnp.float32),
        grid=(2, nk),
        in_specs=[
            pl.BlockSpec((mb, kc), lambda j, k: (0, k)),
            pl.BlockSpec((kc, half), lambda j, k: (k, j)),
            pl.BlockSpec((1, half), lambda j, k: (0, j)),
            pl.BlockSpec((half, n_cls), lambda j, k: (j, 0)),
            pl.BlockSpec((1, n_cls), lambda j, k: (0, 0)),
        ],
        out_specs=pl.BlockSpec((None, mb, n_cls), lambda j, k: (j, 0, 0)),
        scratch_shapes=[pltpu.VMEM((mb, half), jnp.float32)],
        compiler_params=pltpu.CompilerParams(
            dimension_semantics=("parallel", "arbitrary"),
            vmem_limit_bytes=_VMEM_LIMIT,
        ),
    )(xpad, w1.astype(jnp.bfloat16), b1, w2.astype(jnp.bfloat16), b2)
    return (out[0] + out[1])[:n]


# ------------------------------- model glue ---------------------------------


def init_params(key):
    """Torch-layout parameters (values made bf16-representable)."""
    ks = jax.random.split(key, 8)

    def rnd(k, shape, scale):
        w = jax.random.normal(k, shape, jnp.float32) * scale
        return w.astype(jnp.bfloat16).astype(jnp.float32)

    return {
        "conv1_w": rnd(ks[0], (32, 3, 3, 3), 0.10),
        "conv1_b": rnd(ks[1], (32,), 0.01),
        "conv2_w": rnd(ks[2], (64, 32, 3, 3), 0.05),
        "conv2_b": rnd(ks[3], (64,), 0.01),
        "fc1_w": rnd(ks[4], (256, 64 * 8 * 8), 0.02),
        "fc1_b": rnd(ks[5], (256,), 0.01),
        "fc2_w": rnd(ks[6], (10, 256), 0.05),
        "fc2_b": rnd(ks[7], (10,), 0.01),
    }


def prepare_params(p):
    """One-time conversion to kernel layouts (bf16 weights, pre-permuted fc1)."""
    c1w = jnp.transpose(p["conv1_w"], (2, 3, 1, 0)).reshape(9, 3, 32)
    c2w = jnp.transpose(p["conv2_w"], (2, 3, 1, 0)).reshape(9, 32, 64)
    # fc1: torch consumes NCHW-flattened features; re-order its input rows to
    # the NHWC flatten order so no runtime activation transpose is needed.
    w1 = p["fc1_w"].reshape(256, 64, 8, 8).transpose(2, 3, 1, 0).reshape(4096, 256)
    w2 = p["fc2_w"].T
    f32 = jnp.float32
    return {
        "c1_w": c1w.astype(jnp.bfloat16), "c1_b": p["conv1_b"].reshape(1, -1).astype(f32),
        "c2_w": c2w.astype(jnp.bfloat16), "c2_b": p["conv2_b"].reshape(1, -1).astype(f32),
        "fc1_w": w1.astype(jnp.bfloat16), "fc1_b": p["fc1_b"].reshape(1, -1).astype(f32),
        "fc2_w": w2.astype(jnp.bfloat16), "fc2_b": p["fc2_b"].reshape(1, -1).astype(f32),
    }


@jax.jit
def cifarnet_forward(prep, x_nchw):
    x = jnp.transpose(x_nchw, (0, 2, 3, 1))                     # NHWC (N,32,32,3)
    y = conv3x3_relu_pool(x, prep["c1_w"], prep["c1_b"])        # (N,16,16,32) bf16
    y = conv3x3_relu_pool(y, prep["c2_w"], prep["c2_b"])        # (N, 8, 8,64) bf16
    n = y.shape[0]
    feats = y.reshape(n, -1)       # NHWC flatten; fc1_w rows already permuted
    return fc1_relu_fc2(feats, prep["fc1_w"], prep["fc1_b"],
                        prep["fc2_w"], prep["fc2_b"])           # (N, 10) f32


# --------------------------- pure-JAX reference ------------------------------


@jax.jit
def _ref_forward(params, x_nchw):
    x = jnp.transpose(x_nchw, (0, 2, 3, 1))

    def conv_relu_pool(x, w_oihw, b):
        w_hwio = jnp.transpose(w_oihw, (2, 3, 1, 0))
        y = lax.conv_general_dilated(x, w_hwio, (1, 1), "SAME",
                                     dimension_numbers=("NHWC", "HWIO", "NHWC"))
        y = jnp.maximum(y + b, 0.0)
        n, h, w, c = y.shape
        return y.reshape(n, h // 2, 2, w // 2, 2, c).max(axis=(2, 4))

    y = conv_relu_pool(x, params["conv1_w"], params["conv1_b"])
    y = conv_relu_pool(y, params["conv2_w"], params["conv2_b"])
    n = y.shape[0]
    feats = jnp.transpose(y, (0, 3, 1, 2)).reshape(n, -1)       # torch NCHW flatten
    h = jnp.maximum(feats @ params["fc1_w"].T + params["fc1_b"], 0.0)
    return h @ params["fc2_w"].T + params["fc2_b"]


# ---------------------------------- main -------------------------------------


if __name__ == "__main__":
    key = jax.random.PRNGKey(0)
    pkey, xkey = jax.random.split(key)
    params = init_params(pkey)
    prep = prepare_params(params)

    # fc1 expects 64*8*8 features => spatial must be 32x32 (CIFAR); batch = 2.
    x = jax.random.normal(xkey, (2, 3, 32, 32), jnp.float32)
    x = x.astype(jnp.bfloat16).astype(jnp.float32)  # bf16-representable input

    out = jax.block_until_ready(cifarnet_forward(prep, x))
    assert out.shape == (2, 10) and out.dtype == jnp.float32

    ref = jax.block_until_ready(_ref_forward(params, x))
    err = float(jnp.max(jnp.abs(out - ref)))
    assert err < 1e-1, f"kernel mismatch vs reference: max abs err = {err}"

    print("KERNEL_OK")
</pallas_src>

<mosaic_0001>
module attributes {stable_mosaic.version = 11 : i64} {
  func.func @_conv3x3_relu_pool_kernel(%arg0: i32, %arg1: memref<1x4x17x17x8xbf16, #tpu.memory_space<vmem>>, %arg2: memref<9x8x32xbf16, #tpu.memory_space<vmem>>, %arg3: memref<1x32xf32, #tpu.memory_space<vmem>>, %arg4: memref<1x16x16x32xbf16, #tpu.memory_space<vmem>>) attributes {dimension_semantics = [#tpu.dimension_semantics<parallel>], iteration_bounds = array<i64: 2>, scalar_prefetch = 0 : i64, scratch_operands = 0 : i64, tpu.core_type = #tpu.core_type<tc>, window_params = [{transform_indices = @transform_0, window_bounds = array<i64: 1, 4, 17, 17, 8>}, {pipeline_mode = #tpu.pipeline_mode<synchronous>, transform_indices = @transform_1, window_bounds = array<i64: 9, 8, 32>}, {pipeline_mode = #tpu.pipeline_mode<synchronous>, transform_indices = @transform_2, window_bounds = array<i64: 1, 32>}, {transform_indices = @transform_3, window_bounds = array<i64: 1, 16, 16, 32>}]} {
    %cst = arith.constant 0.000000e+00 : f32
    %0 = vector.broadcast %cst : f32 to vector<256x32xf32>
    %c0 = arith.constant 0 : index
    %c0_0 = arith.constant 0 : index
    %c0_1 = arith.constant 0 : index
    %c0_2 = arith.constant 0 : index
    %c0_3 = arith.constant 0 : index
    %1 = vector.load %arg1[%c0, %c0_0, %c0_1, %c0_2, %c0_3] : memref<1x4x17x17x8xbf16, #tpu.memory_space<vmem>>, vector<1x1x16x16x8xbf16>
    %2 = vector.shape_cast %1 : vector<1x1x16x16x8xbf16> to vector<16x16x8xbf16>
    %3 = vector.shape_cast %2 : vector<16x16x8xbf16> to vector<256x8xbf16>
    %c0_4 = arith.constant 0 : index
    %c0_5 = arith.constant 0 : index
    %c0_6 = arith.constant 0 : index
    %4 = vector.load %arg2[%c0_4, %c0_5, %c0_6] : memref<9x8x32xbf16, #tpu.memory_space<vmem>>, vector<1x8x32xbf16>
    %5 = vector.shape_cast %4 : vector<1x8x32xbf16> to vector<8x32xbf16>
    %cst_7 = arith.constant dense<0.000000e+00> : vector<256x32xf32>
    %6 = tpu.matmul %3, %5, %cst_7 {dimension_numbers = #tpu.dot_dimension_numbers<[1], [0], [0], [1], [0, 0, 1, 1], [], []>} : vector<256x8xbf16>, vector<8x32xbf16>, vector<256x32xf32> -> vector<256x32xf32>
    %7 = arith.addf %0, %6 : vector<256x32xf32>
    %c0_8 = arith.constant 0 : index
    %c1 = arith.constant 1 : index
    %c0_9 = arith.constant 0 : index
    %c0_10 = arith.constant 0 : index
    %c0_11 = arith.constant 0 : index
    %8 = vector.load %arg1[%c0_8, %c1, %c0_9, %c0_10, %c0_11] : memref<1x4x17x17x8xbf16, #tpu.memory_space<vmem>>, vector<1x1x16x16x8xbf16>
    %9 = vector.shape_cast %8 : vector<1x1x16x16x8xbf16> to vector<16x16x8xbf16>
    %10 = vector.shape_cast %9 : vector<16x16x8xbf16> to vector<256x8xbf16>
    %c1_12 = arith.constant 1 : index
    %c0_13 = arith.constant 0 : index
    %c0_14 = arith.constant 0 : index
    %11 = vector.load %arg2[%c1_12, %c0_13, %c0_14] : memref<9x8x32xbf16, #tpu.memory_space<vmem>>, vector<1x8x32xbf16>
    %12 = vector.shape_cast %11 : vector<1x8x32xbf16> to vector<8x32xbf16>
    %cst_15 = arith.constant dense<0.000000e+00> : vector<256x32xf32>
    %13 = tpu.matmul %10, %12, %cst_15 {dimension_numbers = #tpu.dot_dimension_numbers<[1], [0], [0], [1], [0, 0, 1, 1], [], []>} : vector<256x8xbf16>, vector<8x32xbf16>, vector<256x32xf32> -> vector<256x32xf32>
    %14 = arith.addf %7, %13 : vector<256x32xf32>
    %c0_16 = arith.constant 0 : index
    %c0_17 = arith.constant 0 : index
    %c0_18 = arith.constant 0 : index
    %c1_19 = arith.constant 1 : index
    %c0_20 = arith.constant 0 : index
    %15 = vector.load %arg1[%c0_16, %c0_17, %c0_18, %c1_19, %c0_20] : memref<1x4x17x17x8xbf16, #tpu.memory_space<vmem>>, vector<1x1x16x16x8xbf16>
    %16 = vector.shape_cast %15 : vector<1x1x16x16x8xbf16> to vector<16x16x8xbf16>
    %17 = vector.shape_cast %16 : vector<16x16x8xbf16> to vector<256x8xbf16>
    %c2 = arith.constant 2 : index
    %c0_21 = arith.constant 0 : index
    %c0_22 = arith.constant 0 : index
    %18 = vector.load %arg2[%c2, %c0_21, %c0_22] : memref<9x8x32xbf16, #tpu.memory_space<vmem>>, vector<1x8x32xbf16>
    %19 = vector.shape_cast %18 : vector<1x8x32xbf16> to vector<8x32xbf16>
    %cst_23 = arith.constant dense<0.000000e+00> : vector<256x32xf32>
    %20 = tpu.matmul %17, %19, %cst_23 {dimension_numbers = #tpu.dot_dimension_numbers<[1], [0], [0], [1], [0, 0, 1, 1], [], []>} : vector<256x8xbf16>, vector<8x32xbf16>, vector<256x32xf32> -> vector<256x32xf32>
    %21 = arith.addf %14, %20 : vector<256x32xf32>
    %c0_24 = arith.constant 0 : index
    %c2_25 = arith.constant 2 : index
    %c0_26 = arith.constant 0 : index
    %c0_27 = arith.constant 0 : index
    %c0_28 = arith.constant 0 : index
    %22 = vector.load %arg1[%c0_24, %c2_25, %c0_26, %c0_27, %c0_28] : memref<1x4x17x17x8xbf16, #tpu.memory_space<vmem>>, vector<1x1x16x16x8xbf16>
    %23 = vector.shape_cast %22 : vector<1x1x16x16x8xbf16> to vector<16x16x8xbf16>
    %24 = vector.shape_cast %23 : vector<16x16x8xbf16> to vector<256x8xbf16>
    %c3 = arith.constant 3 : index
    %c0_29 = arith.constant 0 : index
    %c0_30 = arith.constant 0 : index
    %25 = vector.load %arg2[%c3, %c0_29, %c0_30] : memref<9x8x32xbf16, #tpu.memory_space<vmem>>, vector<1x8x32xbf16>
    %26 = vector.shape_cast %25 : vector<1x8x32xbf16> to vector<8x32xbf16>
    %cst_31 = arith.constant dense<0.000000e+00> : vector<256x32xf32>
    %27 = tpu.matmul %24, %26, %cst_31 {dimension_numbers = #tpu.dot_dimension_numbers<[1], [0], [0], [1], [0, 0, 1, 1], [], []>} : vector<256x8xbf16>, vector<8x32xbf16>, vector<256x32xf32> -> vector<256x32xf32>
    %28 = arith.addf %21, %27 : vector<256x32xf32>
    %c0_32 = arith.constant 0 : index
    %c3_33 = arith.constant 3 : index
    %c0_34 = arith.constant 0 : index
    %c0_35 = arith.constant 0 : index
    %c0_36 = arith.constant 0 : index
    %29 = vector.load %arg1[%c0_32, %c3_33, %c0_34, %c0_35, %c0_36] : memref<1x4x17x17x8xbf16, #tpu.memory_space<vmem>>, vector<1x1x16x16x8xbf16>
    %30 = vector.shape_cast %29 : vector<1x1x16x16x8xbf16> to vector<16x16x8xbf16>
    %31 = vector.shape_cast %30 : vector<16x16x8xbf16> to vector<256x8xbf16>
    %c4 = arith.constant 4 : index
    %c0_37 = arith.constant 0 : index
    %c0_38 = arith.constant 0 : index
    %32 = vector.load %arg2[%c4, %c0_37, %c0_38] : memref<9x8x32xbf16, #tpu.memory_space<vmem>>, vector<1x8x32xbf16>
    %33 = vector.shape_cast %32 : vector<1x8x32xbf16> to vector<8x32xbf16>
    %cst_39 = arith.constant dense<0.000000e+00> : vector<256x32xf32>
    %34 = tpu.matmul %31, %33, %cst_39 {dimension_numbers = #tpu.dot_dimension_numbers<[1], [0], [0], [1], [0, 0, 1, 1], [], []>} : vector<256x8xbf16>, vector<8x32xbf16>, vector<256x32xf32> -> vector<256x32xf32>
    %35 = arith.addf %28, %34 : vector<256x32xf32>
    %c0_40 = arith.constant 0 : index
    %c2_41 = arith.constant 2 : index
    %c0_42 = arith.constant 0 : index
    %c1_43 = arith.constant 1 : index
    %c0_44 = arith.constant 0 : index
    %36 = vector.load %arg1[%c0_40, %c2_41, %c0_42, %c1_43, %c0_44] : memref<1x4x17x17x8xbf16, #tpu.memory_space<vmem>>, vector<1x1x16x16x8xbf16>
    %37 = vector.shape_cast %36 : vector<1x1x16x16x8xbf16> to vector<16x16x8xbf16>
    %38 = vector.shape_cast %37 : vector<16x16x8xbf16> to vector<256x8xbf16>
    %c5 = arith.constant 5 : index
    %c0_45 = arith.constant 0 : index
    %c0_46 = arith.constant 0 : index
    %39 = vector.load %arg2[%c5, %c0_45, %c0_46] : memref<9x8x32xbf16, #tpu.memory_space<vmem>>, vector<1x8x32xbf16>
    %40 = vector.shape_cast %39 : vector<1x8x32xbf16> to vector<8x32xbf16>
    %cst_47 = arith.constant dense<0.000000e+00> : vector<256x32xf32>
    %41 = tpu.matmul %38, %40, %cst_47 {dimension_numbers = #tpu.dot_dimension_numbers<[1], [0], [0], [1], [0, 0, 1, 1], [], []>} : vector<256x8xbf16>, vector<8x32xbf16>, vector<256x32xf32> -> vector<256x32xf32>
    %42 = arith.addf %35, %41 : vector<256x32xf32>
    %c0_48 = arith.constant 0 : index
    %c0_49 = arith.constant 0 : index
    %c1_50 = arith.constant 1 : index
    %c0_51 = arith.constant 0 : index
    %c0_52 = arith.constant 0 : index
    %43 = vector.load %arg1[%c0_48, %c0_49, %c1_50, %c0_51, %c0_52] : memref<1x4x17x17x8xbf16, #tpu.memory_space<vmem>>, vector<1x1x16x16x8xbf16>
    %44 = vector.shape_cast %43 : vector<1x1x16x16x8xbf16> to vector<16x16x8xbf16>
    %45 = vector.shape_cast %44 : vector<16x16x8xbf16> to vector<256x8xbf16>
    %c6 = arith.constant 6 : index
    %c0_53 = arith.constant 0 : index
    %c0_54 = arith.constant 0 : index
    %46 = vector.load %arg2[%c6, %c0_53, %c0_54] : memref<9x8x32xbf16, #tpu.memory_space<vmem>>, vector<1x8x32xbf16>
    %47 = vector.shape_cast %46 : vector<1x8x32xbf16> to vector<8x32xbf16>
    %cst_55 = arith.constant dense<0.000000e+00> : vector<256x32xf32>
    %48 = tpu.matmul %45, %47, %cst_55 {dimension_numbers = #tpu.dot_dimension_numbers<[1], [0], [0], [1], [0, 0, 1, 1], [], []>} : vector<256x8xbf16>, vector<8x32xbf16>, vector<256x32xf32> -> vector<256x32xf32>
    %49 = arith.addf %42, %48 : vector<256x32xf32>
    %c0_56 = arith.constant 0 : index
    %c1_57 = arith.constant 1 : index
    %c1_58 = arith.constant 1 : index
    %c0_59 = arith.constant 0 : index
    %c0_60 = arith.constant 0 : index
    %50 = vector.load %arg1[%c0_56, %c1_57, %c1_58, %c0_59, %c0_60] : memref<1x4x17x17x8xbf16, #tpu.memory_space<vmem>>, vector<1x1x16x16x8xbf16>
    %51 = vector.shape_cast %50 : vector<1x1x16x16x8xbf16> to vector<16x16x8xbf16>
    %52 = vector.shape_cast %51 : vector<16x16x8xbf16> to vector<256x8xbf16>
    %c7 = arith.constant 7 : index
    %c0_61 = arith.constant 0 : index
    %c0_62 = arith.constant 0 : index
    %53 = vector.load %arg2[%c7, %c0_61, %c0_62] : memref<9x8x32xbf16, #tpu.memory_space<vmem>>, vector<1x8x32xbf16>
    %54 = vector.shape_cast %53 : vector<1x8x32xbf16> to vector<8x32xbf16>
    %cst_63 = arith.constant dense<0.000000e+00> : vector<256x32xf32>
    %55 = tpu.matmul %52, %54, %cst_63 {dimension_numbers = #tpu.dot_dimension_numbers<[1], [0], [0], [1], [0, 0, 1, 1], [], []>} : vector<256x8xbf16>, vector<8x32xbf16>, vector<256x32xf32> -> vector<256x32xf32>
    %56 = arith.addf %49, %55 : vector<256x32xf32>
    %c0_64 = arith.constant 0 : index
    %c0_65 = arith.constant 0 : index
    %c1_66 = arith.constant 1 : index
    %c1_67 = arith.constant 1 : index
    %c0_68 = arith.constant 0 : index
    %57 = vector.load %arg1[%c0_64, %c0_65, %c1_66, %c1_67, %c0_68] : memref<1x4x17x17x8xbf16, #tpu.memory_space<vmem>>, vector<1x1x16x16x8xbf16>
    %58 = vector.shape_cast %57 : vector<1x1x16x16x8xbf16> to vector<16x16x8xbf16>
    %59 = vector.shape_cast %58 : vector<16x16x8xbf16> to vector<256x8xbf16>
    %c8 = arith.constant 8 : index
    %c0_69 = arith.constant 0 : index
    %c0_70 = arith.constant 0 : index
    %60 = vector.load %arg2[%c8, %c0_69, %c0_70] : memref<9x8x32xbf16, #tpu.memory_space<vmem>>, vector<1x8x32xbf16>
    %61 = vector.shape_cast %60 : vector<1x8x32xbf16> to vector<8x32xbf16>
    %cst_71 = arith.constant dense<0.000000e+00> : vector<256x32xf32>
    %62 = tpu.matmul %59, %61, %cst_71 {dimension_numbers = #tpu.dot_dimension_numbers<[1], [0], [0], [1], [0, 0, 1, 1], [], []>} : vector<256x8xbf16>, vector<8x32xbf16>, vector<256x32xf32> -> vector<256x32xf32>
    %63 = arith.addf %56, %62 : vector<256x32xf32>
    %cst_72 = arith.constant 0.000000e+00 : f32
    %64 = vector.broadcast %cst_72 : f32 to vector<256x32xf32>
    %c0_73 = arith.constant 0 : index
    %c1_74 = arith.constant 1 : index
    %c0_75 = arith.constant 0 : index
    %c0_76 = arith.constant 0 : index
    %c0_77 = arith.constant 0 : index
    %65 = vector.load %arg1[%c0_73, %c1_74, %c0_75, %c0_76, %c0_77] : memref<1x4x17x17x8xbf16, #tpu.memory_space<vmem>>, vector<1x1x16x16x8xbf16>
    %66 = vector.shape_cast %65 : vector<1x1x16x16x8xbf16> to vector<16x16x8xbf16>
    %67 = vector.shape_cast %66 : vector<16x16x8xbf16> to vector<256x8xbf16>
    %c0_78 = arith.constant 0 : index
    %c0_79 = arith.constant 0 : index
    %c0_80 = arith.constant 0 : index
    %68 = vector.load %arg2[%c0_78, %c0_79, %c0_80] : memref<9x8x32xbf16, #tpu.memory_space<vmem>>, vector<1x8x32xbf16>
    %69 = vector.shape_cast %68 : vector<1x8x32xbf16> to vector<8x32xbf16>
    %cst_81 = arith.constant dense<0.000000e+00> : vector<256x32xf32>
    %70 = tpu.matmul %67, %69, %cst_81 {dimension_numbers = #tpu.dot_dimension_numbers<[1], [0], [0], [1], [0, 0, 1, 1], [], []>} : vector<256x8xbf16>, vector<8x32xbf16>, vector<256x32xf32> -> vector<256x32xf32>
    %71 = arith.addf %64, %70 : vector<256x32xf32>
    %c0_82 = arith.constant 0 : index
    %c0_83 = arith.constant 0 : index
    %c0_84 = arith.constant 0 : index
    %c1_85 = arith.constant 1 : index
    %c0_86 = arith.constant 0 : index
    %72 = vector.load %arg1[%c0_82, %c0_83, %c0_84, %c1_85, %c0_86] : memref<1x4x17x17x8xbf16, #tpu.memory_space<vmem>>, vector<1x1x16x16x8xbf16>
    %73 = vector.shape_cast %72 : vector<1x1x16x16x8xbf16> to vector<16x16x8xbf16>
    %74 = vector.shape_cast %73 : vector<16x16x8xbf16> to vector<256x8xbf16>
    %c1_87 = arith.constant 1 : index
    %c0_88 = arith.constant 0 : index
    %c0_89 = arith.constant 0 : index
    %75 = vector.load %arg2[%c1_87, %c0_88, %c0_89] : memref<9x8x32xbf16, #tpu.memory_space<vmem>>, vector<1x8x32xbf16>
    %76 = vector.shape_cast %75 : vector<1x8x32xbf16> to vector<8x32xbf16>
    %cst_90 = arith.constant dense<0.000000e+00> : vector<256x32xf32>
    %77 = tpu.matmul %74, %76, %cst_90 {dimension_numbers = #tpu.dot_dimension_numbers<[1], [0], [0], [1], [0, 0, 1, 1], [], []>} : vector<256x8xbf16>, vector<8x32xbf16>, vector<256x32xf32> -> vector<256x32xf32>
    %78 = arith.addf %71, %77 : vector<256x32xf32>
    %c0_91 = arith.constant 0 : index
    %c1_92 = arith.constant 1 : index
    %c0_93 = arith.constant 0 : index
    %c1_94 = arith.constant 1 : index
    %c0_95 = arith.constant 0 : index
    %79 = vector.load %arg1[%c0_91, %c1_92, %c0_93, %c1_94, %c0_95] : memref<1x4x17x17x8xbf16, #tpu.memory_space<vmem>>, vector<1x1x16x16x8xbf16>
    %80 = vector.shape_cast %79 : vector<1x1x16x16x8xbf16> to vector<16x16x8xbf16>
    %81 = vector.shape_cast %80 : vector<16x16x8xbf16> to vector<256x8xbf16>
    %c2_96 = arith.constant 2 : index
    %c0_97 = arith.constant 0 : index
    %c0_98 = arith.constant 0 : index
    %82 = vector.load %arg2[%c2_96, %c0_97, %c0_98] : memref<9x8x32xbf16, #tpu.memory_space<vmem>>, vector<1x8x32xbf16>
    %83 = vector.shape_cast %82 : vector<1x8x32xbf16> to vector<8x32xbf16>
    %cst_99 = arith.constant dense<0.000000e+00> : vector<256x32xf32>
    %84 = tpu.matmul %81, %83, %cst_99 {dimension_numbers = #tpu.dot_dimension_numbers<[1], [0], [0], [1], [0, 0, 1, 1], [], []>} : vector<256x8xbf16>, vector<8x32xbf16>, vector<256x32xf32> -> vector<256x32xf32>
    %85 = arith.addf %78, %84 : vector<256x32xf32>
    %c0_100 = arith.constant 0 : index
    %c3_101 = arith.constant 3 : index
    %c0_102 = arith.constant 0 : index
    %c0_103 = arith.constant 0 : index
    %c0_104 = arith.constant 0 : index
    %86 = vector.load %arg1[%c0_100, %c3_101, %c0_102, %c0_103, %c0_104] : memref<1x4x17x17x8xbf16, #tpu.memory_space<vmem>>, vector<1x1x16x16x8xbf16>
    %87 = vector.shape_cast %86 : vector<1x1x16x16x8xbf16> to vector<16x16x8xbf16>
    %88 = vector.shape_cast %87 : vector<16x16x8xbf16> to vector<256x8xbf16>
    %c3_105 = arith.constant 3 : index
    %c0_106 = arith.constant 0 : index
    %c0_107 = arith.constant 0 : index
    %89 = vector.load %arg2[%c3_105, %c0_106, %c0_107] : memref<9x8x32xbf16, #tpu.memory_space<vmem>>, vector<1x8x32xbf16>
    %90 = vector.shape_cast %89 : vector<1x8x32xbf16> to vector<8x32xbf16>
    %cst_108 = arith.constant dense<0.000000e+00> : vector<256x32xf32>
    %91 = tpu.matmul %88, %90, %cst_108 {dimension_numbers = #tpu.dot_dimension_numbers<[1], [0], [0], [1], [0, 0, 1, 1], [], []>} : vector<256x8xbf16>, vector<8x32xbf16>, vector<256x32xf32> -> vector<256x32xf32>
    %92 = arith.addf %85, %91 : vector<256x32xf32>
    %c0_109 = arith.constant 0 : index
    %c2_110 = arith.constant 2 : index
    %c0_111 = arith.constant 0 : index
    %c1_112 = arith.constant 1 : index
    %c0_113 = arith.constant 0 : index
    %93 = vector.load %arg1[%c0_109, %c2_110, %c0_111, %c1_112, %c0_113] : memref<1x4x17x17x8xbf16, #tpu.memory_space<vmem>>, vector<1x1x16x16x8xbf16>
    %94 = vector.shape_cast %93 : vector<1x1x16x16x8xbf16> to vector<16x16x8xbf16>
    %95 = vector.shape_cast %94 : vector<16x16x8xbf16> to vector<256x8xbf16>
    %c4_114 = arith.constant 4 : index
    %c0_115 = arith.constant 0 : index
    %c0_116 = arith.constant 0 : index
    %96 = vector.load %arg2[%c4_114, %c0_115, %c0_116] : memref<9x8x32xbf16, #tpu.memory_space<vmem>>, vector<1x8x32xbf16>
    %97 = vector.shape_cast %96 : vector<1x8x32xbf16> to vector<8x32xbf16>
    %cst_117 = arith.constant dense<0.000000e+00> : vector<256x32xf32>
    %98 = tpu.matmul %95, %97, %cst_117 {dimension_numbers = #tpu.dot_dimension_numbers<[1], [0], [0], [1], [0, 0, 1, 1], [], []>} : vector<256x8xbf16>, vector<8x32xbf16>, vector<256x32xf32> -> vector<256x32xf32>
    %99 = arith.addf %92, %98 : vector<256x32xf32>
    %c0_118 = arith.constant 0 : index
    %c3_119 = arith.constant 3 : index
    %c0_120 = arith.constant 0 : index
    %c1_121 = arith.constant 1 : index
    %c0_122 = arith.constant 0 : index
    %100 = vector.load %arg1[%c0_118, %c3_119, %c0_120, %c1_121, %c0_122] : memref<1x4x17x17x8xbf16, #tpu.memory_space<vmem>>, vector<1x1x16x16x8xbf16>
    %101 = vector.shape_cast %100 : vector<1x1x16x16x8xbf16> to vector<16x16x8xbf16>
    %102 = vector.shape_cast %101 : vector<16x16x8xbf16> to vector<256x8xbf16>
    %c5_123 = arith.constant 5 : index
    %c0_124 = arith.constant 0 : index
    %c0_125 = arith.constant 0 : index
    %103 = vector.load %arg2[%c5_123, %c0_124, %c0_125] : memref<9x8x32xbf16, #tpu.memory_space<vmem>>, vector<1x8x32xbf16>
    %104 = vector.shape_cast %103 : vector<1x8x32xbf16> to vector<8x32xbf16>
    %cst_126 = arith.constant dense<0.000000e+00> : vector<256x32xf32>
    %105 = tpu.matmul %102, %104, %cst_126 {dimension_numbers = #tpu.dot_dimension_numbers<[1], [0], [0], [1], [0, 0, 1, 1], [], []>} : vector<256x8xbf16>, vector<8x32xbf16>, vector<256x32xf32> -> vector<256x32xf32>
    %106 = arith.addf %99, %105 : vector<256x32xf32>
    %c0_127 = arith.constant 0 : index
    %c1_128 = arith.constant 1 : index
    %c1_129 = arith.constant 1 : index
    %c0_130 = arith.constant 0 : index
    %c0_131 = arith.constant 0 : index
    %107 = vector.load %arg1[%c0_127, %c1_128, %c1_129, %c0_130, %c0_131] : memref<1x4x17x17x8xbf16, #tpu.memory_space<vmem>>, vector<1x1x16x16x8xbf16>
    %108 = vector.shape_cast %107 : vector<1x1x16x16x8xbf16> to vector<16x16x8xbf16>
    %109 = vector.shape_cast %108 : vector<16x16x8xbf16> to vector<256x8xbf16>
    %c6_132 = arith.constant 6 : index
    %c0_133 = arith.constant 0 : index
    %c0_134 = arith.constant 0 : index
    %110 = vector.load %arg2[%c6_132, %c0_133, %c0_134] : memref<9x8x32xbf16, #tpu.memory_space<vmem>>, vector<1x8x32xbf16>
    %111 = vector.shape_cast %110 : vector<1x8x32xbf16> to vector<8x32xbf16>
    %cst_135 = arith.constant dense<0.000000e+00> : vector<256x32xf32>
    %112 = tpu.matmul %109, %111, %cst_135 {dimension_numbers = #tpu.dot_dimension_numbers<[1], [0], [0], [1], [0, 0, 1, 1], [], []>} : vector<256x8xbf16>, vector<8x32xbf16>, vector<256x32xf32> -> vector<256x32xf32>
    %113 = arith.addf %106, %112 : vector<256x32xf32>
    %c0_136 = arith.constant 0 : index
    %c0_137 = arith.constant 0 : index
    %c1_138 = arith.constant 1 : index
    %c1_139 = arith.constant 1 : index
    %c0_140 = arith.constant 0 : index
    %114 = vector.load %arg1[%c0_136, %c0_137, %c1_138, %c1_139, %c0_140] : memref<1x4x17x17x8xbf16, #tpu.memory_space<vmem>>, vector<1x1x16x16x8xbf16>
    %115 = vector.shape_cast %114 : vector<1x1x16x16x8xbf16> to vector<16x16x8xbf16>
    %116 = vector.shape_cast %115 : vector<16x16x8xbf16> to vector<256x8xbf16>
    %c7_141 = arith.constant 7 : index
    %c0_142 = arith.constant 0 : index
    %c0_143 = arith.constant 0 : index
    %117 = vector.load %arg2[%c7_141, %c0_142, %c0_143] : memref<9x8x32xbf16, #tpu.memory_space<vmem>>, vector<1x8x32xbf16>
    %118 = vector.shape_cast %117 : vector<1x8x32xbf16> to vector<8x32xbf16>
    %cst_144 = arith.constant dense<0.000000e+00> : vector<256x32xf32>
    %119 = tpu.matmul %116, %118, %cst_144 {dimension_numbers = #tpu.dot_dimension_numbers<[1], [0], [0], [1], [0, 0, 1, 1], [], []>} : vector<256x8xbf16>, vector<8x32xbf16>, vector<256x32xf32> -> vector<256x32xf32>
    %120 = arith.addf %113, %119 : vector<256x32xf32>
    %c0_145 = arith.constant 0 : index
    %c1_146 = arith.constant 1 : index
    %c1_147 = arith.constant 1 : index
    %c1_148 = arith.constant 1 : index
    %c0_149 = arith.constant 0 : index
    %121 = vector.load %arg1[%c0_145, %c1_146, %c1_147, %c1_148, %c0_149] : memref<1x4x17x17x8xbf16, #tpu.memory_space<vmem>>, vector<1x1x16x16x8xbf16>
    %122 = vector.shape_cast %121 : vector<1x1x16x16x8xbf16> to vector<16x16x8xbf16>
    %123 = vector.shape_cast %122 : vector<16x16x8xbf16> to vector<256x8xbf16>
    %c8_150 = arith.constant 8 : index
    %c0_151 = arith.constant 0 : index
    %c0_152 = arith.constant 0 : index
    %124 = vector.load %arg2[%c8_150, %c0_151, %c0_152] : memref<9x8x32xbf16, #tpu.memory_space<vmem>>, vector<1x8x32xbf16>
    %125 = vector.shape_cast %124 : vector<1x8x32xbf16> to vector<8x32xbf16>
    %cst_153 = arith.constant dense<0.000000e+00> : vector<256x32xf32>
    %126 = tpu.matmul %123, %125, %cst_153 {dimension_numbers = #tpu.dot_dimension_numbers<[1], [0], [0], [1], [0, 0, 1, 1], [], []>} : vector<256x8xbf16>, vector<8x32xbf16>, vector<256x32xf32> -> vector<256x32xf32>
    %127 = arith.addf %120, %126 : vector<256x32xf32>
    %128 = arith.maximumf %63, %127 : vector<256x32xf32>
    %cst_154 = arith.constant 0.000000e+00 : f32
    %129 = vector.broadcast %cst_154 : f32 to vector<256x32xf32>
    %c0_155 = arith.constant 0 : index
    %c2_156 = arith.constant 2 : index
    %c0_157 = arith.constant 0 : index
    %c0_158 = arith.constant 0 : index
    %c0_159 = arith.constant 0 : index
    %130 = vector.load %arg1[%c0_155, %c2_156, %c0_157, %c0_158, %c0_159] : memref<1x4x17x17x8xbf16, #tpu.memory_space<vmem>>, vector<1x1x16x16x8xbf16>
    %131 = vector.shape_cast %130 : vector<1x1x16x16x8xbf16> to vector<16x16x8xbf16>
    %132 = vector.shape_cast %131 : vector<16x16x8xbf16> to vector<256x8xbf16>
    %c0_160 = arith.constant 0 : index
    %c0_161 = arith.constant 0 : index
    %c0_162 = arith.constant 0 : index
    %133 = vector.load %arg2[%c0_160, %c0_161, %c0_162] : memref<9x8x32xbf16, #tpu.memory_space<vmem>>, vector<1x8x32xbf16>
    %134 = vector.shape_cast %133 : vector<1x8x32xbf16> to vector<8x32xbf16>
    %cst_163 = arith.constant dense<0.000000e+00> : vector<256x32xf32>
    %135 = tpu.matmul %132, %134, %cst_163 {dimension_numbers = #tpu.dot_dimension_numbers<[1], [0], [0], [1], [0, 0, 1, 1], [], []>} : vector<256x8xbf16>, vector<8x32xbf16>, vector<256x32xf32> -> vector<256x32xf32>
    %136 = arith.addf %129, %135 : vector<256x32xf32>
    %c0_164 = arith.constant 0 : index
    %c3_165 = arith.constant 3 : index
    %c0_166 = arith.constant 0 : index
    %c0_167 = arith.constant 0 : index
    %c0_168 = arith.constant 0 : index
    %137 = vector.load %arg1[%c0_164, %c3_165, %c0_166, %c0_167, %c0_168] : memref<1x4x17x17x8xbf16, #tpu.memory_space<vmem>>, vector<1x1x16x16x8xbf16>
    %138 = vector.shape_cast %137 : vector<1x1x16x16x8xbf16> to vector<16x16x8xbf16>
    %139 = vector.shape_cast %138 : vector<16x16x8xbf16> to vector<256x8xbf16>
    %c1_169 = arith.constant 1 : index
    %c0_170 = arith.constant 0 : index
    %c0_171 = arith.constant 0 : index
    %140 = vector.load %arg2[%c1_169, %c0_170, %c0_171] : memref<9x8x32xbf16, #tpu.memory_space<vmem>>, vector<1x8x32xbf16>
    %141 = vector.shape_cast %140 : vector<1x8x32xbf16> to vector<8x32xbf16>
    %cst_172 = arith.constant dense<0.000000e+00> : vector<256x32xf32>
    %142 = tpu.matmul %139, %141, %cst_172 {dimension_numbers = #tpu.dot_dimension_numbers<[1], [0], [0], [1], [0, 0, 1, 1], [], []>} : vector<256x8xbf16>, vector<8x32xbf16>, vector<256x32xf32> -> vector<256x32xf32>
    %143 = arith.addf %136, %142 : vector<256x32xf32>
    %c0_173 = arith.constant 0 : index
    %c2_174 = arith.constant 2 : index
    %c0_175 = arith.constant 0 : index
    %c1_176 = arith.constant 1 : index
    %c0_177 = arith.constant 0 : index
    %144 = vector.load %arg1[%c0_173, %c2_174, %c0_175, %c1_176, %c0_177] : memref<1x4x17x17x8xbf16, #tpu.memory_space<vmem>>, vector<1x1x16x16x8xbf16>
    %145 = vector.shape_cast %144 : vector<1x1x16x16x8xbf16> to vector<16x16x8xbf16>
    %146 = vector.shape_cast %145 : vector<16x16x8xbf16> to vector<256x8xbf16>
    %c2_178 = arith.constant 2 : index
    %c0_179 = arith.constant 0 : index
    %c0_180 = arith.constant 0 : index
    %147 = vector.load %arg2[%c2_178, %c0_179, %c0_180] : memref<9x8x32xbf16, #tpu.memory_space<vmem>>, vector<1x8x32xbf16>
    %148 = vector.shape_cast %147 : vector<1x8x32xbf16> to vector<8x32xbf16>
    %cst_181 = arith.constant dense<0.000000e+00> : vector<256x32xf32>
    %149 = tpu.matmul %146, %148, %cst_181 {dimension_numbers = #tpu.dot_dimension_numbers<[1], [0], [0], [1], [0, 0, 1, 1], [], []>} : vector<256x8xbf16>, vector<8x32xbf16>, vector<256x32xf32> -> vector<256x32xf32>
    %150 = arith.addf %143, %149 : vector<256x32xf32>
    %c0_182 = arith.constant 0 : index
    %c0_183 = arith.constant 0 : index
    %c1_184 = arith.constant 1 : index
    %c0_185 = arith.constant 0 : index
    %c0_186 = arith.constant 0 : index
    %151 = vector.load %arg1[%c0_182, %c0_183, %c1_184, %c0_185, %c0_186] : memref<1x4x17x17x8xbf16, #tpu.memory_space<vmem>>, vector<1x1x16x16x8xbf16>
    %152 = vector.shape_cast %151 : vector<1x1x16x16x8xbf16> to vector<16x16x8xbf16>
    %153 = vector.shape_cast %152 : vector<16x16x8xbf16> to vector<256x8xbf16>
    %c3_187 = arith.constant 3 : index
    %c0_188 = arith.constant 0 : index
    %c0_189 = arith.constant 0 : index
    %154 = vector.load %arg2[%c3_187, %c0_188, %c0_189] : memref<9x8x32xbf16, #tpu.memory_space<vmem>>, vector<1x8x32xbf16>
    %155 = vector.shape_cast %154 : vector<1x8x32xbf16> to vector<8x32xbf16>
    %cst_190 = arith.constant dense<0.000000e+00> : vector<256x32xf32>
    %156 = tpu.matmul %153, %155, %cst_190 {dimension_numbers = #tpu.dot_dimension_numbers<[1], [0], [0], [1], [0, 0, 1, 1], [], []>} : vector<256x8xbf16>, vector<8x32xbf16>, vector<256x32xf32> -> vector<256x32xf32>
    %157 = arith.addf %150, %156 : vector<256x32xf32>
    %c0_191 = arith.constant 0 : index
    %c1_192 = arith.constant 1 : index
    %c1_193 = arith.constant 1 : index
    %c0_194 = arith.constant 0 : index
    %c0_195 = arith.constant 0 : index
    %158 = vector.load %arg1[%c0_191, %c1_192, %c1_193, %c0_194, %c0_195] : memref<1x4x17x17x8xbf16, #tpu.memory_space<vmem>>, vector<1x1x16x16x8xbf16>
    %159 = vector.shape_cast %158 : vector<1x1x16x16x8xbf16> to vector<16x16x8xbf16>
    %160 = vector.shape_cast %159 : vector<16x16x8xbf16> to vector<256x8xbf16>
    %c4_196 = arith.constant 4 : index
    %c0_197 = arith.constant 0 : index
    %c0_198 = arith.constant 0 : index
    %161 = vector.load %arg2[%c4_196, %c0_197, %c0_198] : memref<9x8x32xbf16, #tpu.memory_space<vmem>>, vector<1x8x32xbf16>
    %162 = vector.shape_cast %161 : vector<1x8x32xbf16> to vector<8x32xbf16>
    %cst_199 = arith.constant dense<0.000000e+00> : vector<256x32xf32>
    %163 = tpu.matmul %160, %162, %cst_199 {dimension_numbers = #tpu.dot_dimension_numbers<[1], [0], [0], [1], [0, 0, 1, 1], [], []>} : vector<256x8xbf16>, vector<8x32xbf16>, vector<256x32xf32> -> vector<256x32xf32>
    %164 = arith.addf %157, %163 : vector<256x32xf32>
    %c0_200 = arith.constant 0 : index
    %c0_201 = arith.constant 0 : index
    %c1_202 = arith.constant 1 : index
    %c1_203 = arith.constant 1 : index
    %c0_204 = arith.constant 0 : index
    %165 = vector.load %arg1[%c0_200, %c0_201, %c1_202, %c1_203, %c0_204] : memref<1x4x17x17x8xbf16, #tpu.memory_space<vmem>>, vector<1x1x16x16x8xbf16>
    %166 = vector.shape_cast %165 : vector<1x1x16x16x8xbf16> to vector<16x16x8xbf16>
    %167 = vector.shape_cast %166 : vector<16x16x8xbf16> to vector<256x8xbf16>
    %c5_205 = arith.constant 5 : index
    %c0_206 = arith.constant 0 : index
    %c0_207 = arith.constant 0 : index
    %168 = vector.load %arg2[%c5_205, %c0_206, %c0_207] : memref<9x8x32xbf16, #tpu.memory_space<vmem>>, vector<1x8x32xbf16>
    %169 = vector.shape_cast %168 : vector<1x8x32xbf16> to vector<8x32xbf16>
    %cst_208 = arith.constant dense<0.000000e+00> : vector<256x32xf32>
    %170 = tpu.matmul %167, %169, %cst_208 {dimension_numbers = #tpu.dot_dimension_numbers<[1], [0], [0], [1], [0, 0, 1, 1], [], []>} : vector<256x8xbf16>, vector<8x32xbf16>, vector<256x32xf32> -> vector<256x32xf32>
    %171 = arith.addf %164, %170 : vector<256x32xf32>
    %c0_209 = arith.constant 0 : index
    %c2_210 = arith.constant 2 : index
    %c1_211 = arith.constant 1 : index
    %c0_212 = arith.constant 0 : index
    %c0_213 = arith.constant 0 : index
    %172 = vector.load %arg1[%c0_209, %c2_210, %c1_211, %c0_212, %c0_213] : memref<1x4x17x17x8xbf16, #tpu.memory_space<vmem>>, vector<1x1x16x16x8xbf16>
    %173 = vector.shape_cast %172 : vector<1x1x16x16x8xbf16> to vector<16x16x8xbf16>
    %174 = vector.shape_cast %173 : vector<16x16x8xbf16> to vector<256x8xbf16>
    %c6_214 = arith.constant 6 : index
    %c0_215 = arith.constant 0 : index
    %c0_216 = arith.constant 0 : index
    %175 = vector.load %arg2[%c6_214, %c0_215, %c0_216] : memref<9x8x32xbf16, #tpu.memory_space<vmem>>, vector<1x8x32xbf16>
    %176 = vector.shape_cast %175 : vector<1x8x32xbf16> to vector<8x32xbf16>
    %cst_217 = arith.constant dense<0.000000e+00> : vector<256x32xf32>
    %177 = tpu.matmul %174, %176, %cst_217 {dimension_numbers = #tpu.dot_dimension_numbers<[1], [0], [0], [1], [0, 0, 1, 1], [], []>} : vector<256x8xbf16>, vector<8x32xbf16>, vector<256x32xf32> -> vector<256x32xf32>
    %178 = arith.addf %171, %177 : vector<256x32xf32>
    %c0_218 = arith.constant 0 : index
    %c3_219 = arith.constant 3 : index
    %c1_220 = arith.constant 1 : index
    %c0_221 = arith.constant 0 : index
    %c0_222 = arith.constant 0 : index
    %179 = vector.load %arg1[%c0_218, %c3_219, %c1_220, %c0_221, %c0_222] : memref<1x4x17x17x8xbf16, #tpu.memory_space<vmem>>, vector<1x1x16x16x8xbf16>
    %180 = vector.shape_cast %179 : vector<1x1x16x16x8xbf16> to vector<16x16x8xbf16>
    %181 = vector.shape_cast %180 : vector<16x16x8xbf16> to vector<256x8xbf16>
    %c7_223 = arith.constant 7 : index
    %c0_224 = arith.constant 0 : index
    %c0_225 = arith.constant 0 : index
    %182 = vector.load %arg2[%c7_223, %c0_224, %c0_225] : memref<9x8x32xbf16, #tpu.memory_space<vmem>>, vector<1x8x32xbf16>
    %183 = vector.shape_cast %182 : vector<1x8x32xbf16> to vector<8x32xbf16>
    %cst_226 = arith.constant dense<0.000000e+00> : vector<256x32xf32>
    %184 = tpu.matmul %181, %183, %cst_226 {dimension_numbers = #tpu.dot_dimension_numbers<[1], [0], [0], [1], [0, 0, 1, 1], [], []>} : vector<256x8xbf16>, vector<8x32xbf16>, vector<256x32xf32> -> vector<256x32xf32>
    %185 = arith.addf %178, %184 : vector<256x32xf32>
    %c0_227 = arith.constant 0 : index
    %c2_228 = arith.constant 2 : index
    %c1_229 = arith.constant 1 : index
    %c1_230 = arith.constant 1 : index
    %c0_231 = arith.constant 0 : index
    %186 = vector.load %arg1[%c0_227, %c2_228, %c1_229, %c1_230, %c0_231] : memref<1x4x17x17x8xbf16, #tpu.memory_space<vmem>>, vector<1x1x16x16x8xbf16>
    %187 = vector.shape_cast %186 : vector<1x1x16x16x8xbf16> to vector<16x16x8xbf16>
    %188 = vector.shape_cast %187 : vector<16x16x8xbf16> to vector<256x8xbf16>
    %c8_232 = arith.constant 8 : index
    %c0_233 = arith.constant 0 : index
    %c0_234 = arith.constant 0 : index
    %189 = vector.load %arg2[%c8_232, %c0_233, %c0_234] : memref<9x8x32xbf16, #tpu.memory_space<vmem>>, vector<1x8x32xbf16>
    %190 = vector.shape_cast %189 : vector<1x8x32xbf16> to vector<8x32xbf16>
    %cst_235 = arith.constant dense<0.000000e+00> : vector<256x32xf32>
    %191 = tpu.matmul %188, %190, %cst_235 {dimension_numbers = #tpu.dot_dimension_numbers<[1], [0], [0], [1], [0, 0, 1, 1], [], []>} : vector<256x8xbf16>, vector<8x32xbf16>, vector<256x32xf32> -> vector<256x32xf32>
    %192 = arith.addf %185, %191 : vector<256x32xf32>
    %193 = arith.maximumf %128, %192 : vector<256x32xf32>
    %cst_236 = arith.constant 0.000000e+00 : f32
    %194 = vector.broadcast %cst_236 : f32 to vector<256x32xf32>
    %c0_237 = arith.constant 0 : index
    %c3_238 = arith.constant 3 : index
    %c0_239 = arith.constant 0 : index
    %c0_240 = arith.constant 0 : index
    %c0_241 = arith.constant 0 : index
    %195 = vector.load %arg1[%c0_237, %c3_238, %c0_239, %c0_240, %c0_241] : memref<1x4x17x17x8xbf16, #tpu.memory_space<vmem>>, vector<1x1x16x16x8xbf16>
    %196 = vector.shape_cast %195 : vector<1x1x16x16x8xbf16> to vector<16x16x8xbf16>
    %197 = vector.shape_cast %196 : vector<16x16x8xbf16> to vector<256x8xbf16>
    %c0_242 = arith.constant 0 : index
    %c0_243 = arith.constant 0 : index
    %c0_244 = arith.constant 0 : index
    %198 = vector.load %arg2[%c0_242, %c0_243, %c0_244] : memref<9x8x32xbf16, #tpu.memory_space<vmem>>, vector<1x8x32xbf16>
    %199 = vector.shape_cast %198 : vector<1x8x32xbf16> to vector<8x32xbf16>
    %cst_245 = arith.constant dense<0.000000e+00> : vector<256x32xf32>
    %200 = tpu.matmul %197, %199, %cst_245 {dimension_numbers = #tpu.dot_dimension_numbers<[1], [0], [0], [1], [0, 0, 1, 1], [], []>} : vector<256x8xbf16>, vector<8x32xbf16>, vector<256x32xf32> -> vector<256x32xf32>
    %201 = arith.addf %194, %200 : vector<256x32xf32>
    %c0_246 = arith.constant 0 : index
    %c2_247 = arith.constant 2 : index
    %c0_248 = arith.constant 0 : index
    %c1_249 = arith.constant 1 : index
    %c0_250 = arith.constant 0 : index
    %202 = vector.load %arg1[%c0_246, %c2_247, %c0_248, %c1_249, %c0_250] : memref<1x4x17x17x8xbf16, #tpu.memory_space<vmem>>, vector<1x1x16x16x8xbf16>
    %203 = vector.shape_cast %202 : vector<1x1x16x16x8xbf16> to vector<16x16x8xbf16>
    %204 = vector.shape_cast %203 : vector<16x16x8xbf16> to vector<256x8xbf16>
    %c1_251 = arith.constant 1 : index
    %c0_252 = arith.constant 0 : index
    %c0_253 = arith.constant 0 : index
    %205 = vector.load %arg2[%c1_251, %c0_252, %c0_253] : memref<9x8x32xbf16, #tpu.memory_space<vmem>>, vector<1x8x32xbf16>
    %206 = vector.shape_cast %205 : vector<1x8x32xbf16> to vector<8x32xbf16>
    %cst_254 = arith.constant dense<0.000000e+00> : vector<256x32xf32>
    %207 = tpu.matmul %204, %206, %cst_254 {dimension_numbers = #tpu.dot_dimension_numbers<[1], [0], [0], [1], [0, 0, 1, 1], [], []>} : vector<256x8xbf16>, vector<8x32xbf16>, vector<256x32xf32> -> vector<256x32xf32>
    %208 = arith.addf %201, %207 : vector<256x32xf32>
    %c0_255 = arith.constant 0 : index
    %c3_256 = arith.constant 3 : index
    %c0_257 = arith.constant 0 : index
    %c1_258 = arith.constant 1 : index
    %c0_259 = arith.constant 0 : index
    %209 = vector.load %arg1[%c0_255, %c3_256, %c0_257, %c1_258, %c0_259] : memref<1x4x17x17x8xbf16, #tpu.memory_space<vmem>>, vector<1x1x16x16x8xbf16>
    %210 = vector.shape_cast %209 : vector<1x1x16x16x8xbf16> to vector<16x16x8xbf16>
    %211 = vector.shape_cast %210 : vector<16x16x8xbf16> to vector<256x8xbf16>
    %c2_260 = arith.constant 2 : index
    %c0_261 = arith.constant 0 : index
    %c0_262 = arith.constant 0 : index
    %212 = vector.load %arg2[%c2_260, %c0_261, %c0_262] : memref<9x8x32xbf16, #tpu.memory_space<vmem>>, vector<1x8x32xbf16>
    %213 = vector.shape_cast %212 : vector<1x8x32xbf16> to vector<8x32xbf16>
    %cst_263 = arith.constant dense<0.000000e+00> : vector<256x32xf32>
    %214 = tpu.matmul %211, %213, %cst_263 {dimension_numbers = #tpu.dot_dimension_numbers<[1], [0], [0], [1], [0, 0, 1, 1], [], []>} : vector<256x8xbf16>, vector<8x32xbf16>, vector<256x32xf32> -> vector<256x32xf32>
    %215 = arith.addf %208, %214 : vector<256x32xf32>
    %c0_264 = arith.constant 0 : index
    %c1_265 = arith.constant 1 : index
    %c1_266 = arith.constant 1 : index
    %c0_267 = arith.constant 0 : index
    %c0_268 = arith.constant 0 : index
    %216 = vector.load %arg1[%c0_264, %c1_265, %c1_266, %c0_267, %c0_268] : memref<1x4x17x17x8xbf16, #tpu.memory_space<vmem>>, vector<1x1x16x16x8xbf16>
    %217 = vector.shape_cast %216 : vector<1x1x16x16x8xbf16> to vector<16x16x8xbf16>
    %218 = vector.shape_cast %217 : vector<16x16x8xbf16> to vector<256x8xbf16>
    %c3_269 = arith.constant 3 : index
    %c0_270 = arith.constant 0 : index
    %c0_271 = arith.constant 0 : index
    %219 = vector.load %arg2[%c3_269, %c0_270, %c0_271] : memref<9x8x32xbf16, #tpu.memory_space<vmem>>, vector<1x8x32xbf16>
    %220 = vector.shape_cast %219 : vector<1x8x32xbf16> to vector<8x32xbf16>
    %cst_272 = arith.constant dense<0.000000e+00> : vector<256x32xf32>
    %221 = tpu.matmul %218, %220, %cst_272 {dimension_numbers = #tpu.dot_dimension_numbers<[1], [0], [0], [1], [0, 0, 1, 1], [], []>} : vector<256x8xbf16>, vector<8x32xbf16>, vector<256x32xf32> -> vector<256x32xf32>
    %222 = arith.addf %215, %221 : vector<256x32xf32>
    %c0_273 = arith.constant 0 : index
    %c0_274 = arith.constant 0 : index
    %c1_275 = arith.constant 1 : index
    %c1_276 = arith.constant 1 : index
    %c0_277 = arith.constant 0 : index
    %223 = vector.load %arg1[%c0_273, %c0_274, %c1_275, %c1_276, %c0_277] : memref<1x4x17x17x8xbf16, #tpu.memory_space<vmem>>, vector<1x1x16x16x8xbf16>
    %224 = vector.shape_cast %223 : vector<1x1x16x16x8xbf16> to vector<16x16x8xbf16>
    %225 = vector.shape_cast %224 : vector<16x16x8xbf16> to vector<256x8xbf16>
    %c4_278 = arith.constant 4 : index
    %c0_279 = arith.constant 0 : index
    %c0_280 = arith.constant 0 : index
    %226 = vector.load %arg2[%c4_278, %c0_279, %c0_280] : memref<9x8x32xbf16, #tpu.memory_space<vmem>>, vector<1x8x32xbf16>
    %227 = vector.shape_cast %226 : vector<1x8x32xbf16> to vector<8x32xbf16>
    %cst_281 = arith.constant dense<0.000000e+00> : vector<256x32xf32>
    %228 = tpu.matmul %225, %227, %cst_281 {dimension_numbers = #tpu.dot_dimension_numbers<[1], [0], [0], [1], [0, 0, 1, 1], [], []>} : vector<256x8xbf16>, vector<8x32xbf16>, vector<256x32xf32> -> vector<256x32xf32>
    %229 = arith.addf %222, %228 : vector<256x32xf32>
    %c0_282 = arith.constant 0 : index
    %c1_283 = arith.constant 1 : index
    %c1_284 = arith.constant 1 : index
    %c1_285 = arith.constant 1 : index
    %c0_286 = arith.constant 0 : index
    %230 = vector.load %arg1[%c0_282, %c1_283, %c1_284, %c1_285, %c0_286] : memref<1x4x17x17x8xbf16, #tpu.memory_space<vmem>>, vector<1x1x16x16x8xbf16>
    %231 = vector.shape_cast %230 : vector<1x1x16x16x8xbf16> to vector<16x16x8xbf16>
    %232 = vector.shape_cast %231 : vector<16x16x8xbf16> to vector<256x8xbf16>
    %c5_287 = arith.constant 5 : index
    %c0_288 = arith.constant 0 : index
    %c0_289 = arith.constant 0 : index
    %233 = vector.load %arg2[%c5_287, %c0_288, %c0_289] : memref<9x8x32xbf16, #tpu.memory_space<vmem>>, vector<1x8x32xbf16>
    %234 = vector.shape_cast %233 : vector<1x8x32xbf16> to vector<8x32xbf16>
    %cst_290 = arith.constant dense<0.000000e+00> : vector<256x32xf32>
    %235 = tpu.matmul %232, %234, %cst_290 {dimension_numbers = #tpu.dot_dimension_numbers<[1], [0], [0], [1], [0, 0, 1, 1], [], []>} : vector<256x8xbf16>, vector<8x32xbf16>, vector<256x32xf32> -> vector<256x32xf32>
    %236 = arith.addf %229, %235 : vector<256x32xf32>
    %c0_291 = arith.constant 0 : index
    %c3_292 = arith.constant 3 : index
    %c1_293 = arith.constant 1 : index
    %c0_294 = arith.constant 0 : index
    %c0_295 = arith.constant 0 : index
    %237 = vector.load %arg1[%c0_291, %c3_292, %c1_293, %c0_294, %c0_295] : memref<1x4x17x17x8xbf16, #tpu.memory_space<vmem>>, vector<1x1x16x16x8xbf16>
    %238 = vector.shape_cast %237 : vector<1x1x16x16x8xbf16> to vector<16x16x8xbf16>
    %239 = vector.shape_cast %238 : vector<16x16x8xbf16> to vector<256x8xbf16>
    %c6_296 = arith.constant 6 : index
    %c0_297 = arith.constant 0 : index
    %c0_298 = arith.constant 0 : index
    %240 = vector.load %arg2[%c6_296, %c0_297, %c0_298] : memref<9x8x32xbf16, #tpu.memory_space<vmem>>, vector<1x8x32xbf16>
    %241 = vector.shape_cast %240 : vector<1x8x32xbf16> to vector<8x32xbf16>
    %cst_299 = arith.constant dense<0.000000e+00> : vector<256x32xf32>
    %242 = tpu.matmul %239, %241, %cst_299 {dimension_numbers = #tpu.dot_dimension_numbers<[1], [0], [0], [1], [0, 0, 1, 1], [], []>} : vector<256x8xbf16>, vector<8x32xbf16>, vector<256x32xf32> -> vector<256x32xf32>
    %243 = arith.addf %236, %242 : vector<256x32xf32>
    %c0_300 = arith.constant 0 : index
    %c2_301 = arith.constant 2 : index
    %c1_302 = arith.constant 1 : index
    %c1_303 = arith.constant 1 : index
    %c0_304 = arith.constant 0 : index
    %244 = vector.load %arg1[%c0_300, %c2_301, %c1_302, %c1_303, %c0_304] : memref<1x4x17x17x8xbf16, #tpu.memory_space<vmem>>, vector<1x1x16x16x8xbf16>
    %245 = vector.shape_cast %244 : vector<1x1x16x16x8xbf16> to vector<16x16x8xbf16>
    %246 = vector.shape_cast %245 : vector<16x16x8xbf16> to vector<256x8xbf16>
    %c7_305 = arith.constant 7 : index
    %c0_306 = arith.constant 0 : index
    %c0_307 = arith.constant 0 : index
    %247 = vector.load %arg2[%c7_305, %c0_306, %c0_307] : memref<9x8x32xbf16, #tpu.memory_space<vmem>>, vector<1x8x32xbf16>
    %248 = vector.shape_cast %247 : vector<1x8x32xbf16> to vector<8x32xbf16>
    %cst_308 = arith.constant dense<0.000000e+00> : vector<256x32xf32>
    %249 = tpu.matmul %246, %248, %cst_308 {dimension_numbers = #tpu.dot_dimension_numbers<[1], [0], [0], [1], [0, 0, 1, 1], [], []>} : vector<256x8xbf16>, vector<8x32xbf16>, vector<256x32xf32> -> vector<256x32xf32>
    %250 = arith.addf %243, %249 : vector<256x32xf32>
    %c0_309 = arith.constant 0 : index
    %c3_310 = arith.constant 3 : index
    %c1_311 = arith.constant 1 : index
    %c1_312 = arith.constant 1 : index
    %c0_313 = arith.constant 0 : index
    %251 = vector.load %arg1[%c0_309, %c3_310, %c1_311, %c1_312, %c0_313] : memref<1x4x17x17x8xbf16, #tpu.memory_space<vmem>>, vector<1x1x16x16x8xbf16>
    %252 = vector.shape_cast %251 : vector<1x1x16x16x8xbf16> to vector<16x16x8xbf16>
    %253 = vector.shape_cast %252 : vector<16x16x8xbf16> to vector<256x8xbf16>
    %c8_314 = arith.constant 8 : index
    %c0_315 = arith.constant 0 : index
    %c0_316 = arith.constant 0 : index
    %254 = vector.load %arg2[%c8_314, %c0_315, %c0_316] : memref<9x8x32xbf16, #tpu.memory_space<vmem>>, vector<1x8x32xbf16>
    %255 = vector.shape_cast %254 : vector<1x8x32xbf16> to vector<8x32xbf16>
    %cst_317 = arith.constant dense<0.000000e+00> : vector<256x32xf32>
    %256 = tpu.matmul %253, %255, %cst_317 {dimension_numbers = #tpu.dot_dimension_numbers<[1], [0], [0], [1], [0, 0, 1, 1], [], []>} : vector<256x8xbf16>, vector<8x32xbf16>, vector<256x32xf32> -> vector<256x32xf32>
    %257 = arith.addf %250, %256 : vector<256x32xf32>
    %258 = arith.maximumf %193, %257 : vector<256x32xf32>
    %c0_318 = arith.constant 0 : index
    %c0_319 = arith.constant 0 : index
    %259 = vector.load %arg3[%c0_318, %c0_319] : memref<1x32xf32, #tpu.memory_space<vmem>>, vector<1x32xf32>
    %260 = vector.broadcast %259 : vector<1x32xf32> to vector<256x32xf32>
    %261 = arith.addf %258, %260 : vector<256x32xf32>
    %cst_320 = arith.constant 0.000000e+00 : f32
    %262 = vector.broadcast %cst_320 : f32 to vector<256x32xf32>
    %263 = arith.maximumf %261, %262 : vector<256x32xf32>
    %264 = vector.shape_cast %263 : vector<256x32xf32> to vector<16x16x32xf32>
    %265 = arith.truncf %264 : vector<16x16x32xf32> to vector<16x16x32xbf16>
    %c0_321 = arith.constant 0 : index
    %c0_322 = arith.constant 0 : index
    %c0_323 = arith.constant 0 : index
    %c0_324 = arith.constant 0 : index
    %266 = vector.load %arg4[%c0_321, %c0_322, %c0_323, %c0_324] : memref<1x16x16x32xbf16, #tpu.memory_space<vmem>>, vector<1x16x16x32xbf16>
    %267 = vector.shape_cast %266 : vector<1x16x16x32xbf16> to vector<16x16x32xbf16>
    %268 = vector.shape_cast %265 : vector<16x16x32xbf16> to vector<1x16x16x32xbf16>
    tpu.vector_store %arg4[%c0_321, %c0_322, %c0_323, %c0_324], %268 {strides = array<i32>} : memref<1x16x16x32xbf16, #tpu.memory_space<vmem>>, vector<1x16x16x32xbf16>,
    return
  }
  func.func @transform_0(%arg0: i32) -> (i32, i32, i32, i32, i32) {
    %c0_i32 = arith.constant 0 : i32
    %c0_i32_0 = arith.constant 0 : i32
    %c0_i32_1 = arith.constant 0 : i32
    %c0_i32_2 = arith.constant 0 : i32
    %c0_i32_3 = arith.constant 0 : i32
    return %arg0, %c0_i32, %c0_i32_0, %c0_i32_1, %c0_i32_2 : i32, i32, i32, i32, i32
  }
  func.func @transform_1(%arg0: i32) -> (i32, i32, i32) {
    %c0_i32 = arith.constant 0 : i32
    %c0_i32_0 = arith.constant 0 : i32
    %c0_i32_1 = arith.constant 0 : i32
    %c0_i32_2 = arith.constant 0 : i32
    return %c0_i32, %c0_i32_0, %c0_i32_1 : i32, i32, i32
  }
  func.func @transform_2(%arg0: i32) -> (i32, i32) {
    %c0_i32 = arith.constant 0 : i32
    %c0_i32_0 = arith.constant 0 : i32
    %c0_i32_1 = arith.constant 0 : i32
    return %c0_i32, %c0_i32_0 : i32, i32
  }
  func.func @transform_3(%arg0: i32) -> (i32, i32, i32, i32) {
    %c0_i32 = arith.constant 0 : i32
    %c0_i32_0 = arith.constant 0 : i32
    %c0_i32_1 = arith.constant 0 : i32
    %c0_i32_2 = arith.constant 0 : i32
    return %arg0, %c0_i32, %c0_i32_0, %c0_i32_1 : i32, i32, i32, i32
  }
}

module attributes {stable_mosaic.version = 11 : i64} {
  func.func @_conv3x3_relu_pool_kernel(%arg0: i32, %arg1: memref<1x4x9x9x32xbf16, #tpu.memory_space<vmem>>, %arg2: memref<9x32x64xbf16, #tpu.memory_space<vmem>>, %arg3: memref<1x64xf32, #tpu.memory_space<vmem>>, %arg4: memref<1x8x8x64xbf16, #tpu.memory_space<vmem>>) attributes {dimension_semantics = [#tpu.dimension_semantics<parallel>], iteration_bounds = array<i64: 2>, scalar_prefetch = 0 : i64, scratch_operands = 0 : i64, tpu.core_type = #tpu.core_type<tc>, window_params = [{transform_indices = @transform_0, window_bounds = array<i64: 1, 4, 9, 9, 32>}, {pipeline_mode = #tpu.pipeline_mode<synchronous>, transform_indices = @transform_1, window_bounds = array<i64: 9, 32, 64>}, {pipeline_mode = #tpu.pipeline_mode<synchronous>, transform_indices = @transform_2, window_bounds = array<i64: 1, 64>}, {transform_indices = @transform_3, window_bounds = array<i64: 1, 8, 8, 64>}]} {
    %cst = arith.constant 0.000000e+00 : f32
    %0 = vector.broadcast %cst : f32 to vector<64x64xf32>
    %c0 = arith.constant 0 : index
    %c0_0 = arith.constant 0 : index
    %c0_1 = arith.constant 0 : index
    %c0_2 = arith.constant 0 : index
    %c0_3 = arith.constant 0 : index
    %1 = vector.load %arg1[%c0, %c0_0, %c0_1, %c0_2, %c0_3] : memref<1x4x9x9x32xbf16, #tpu.memory_space<vmem>>, vector<1x1x8x8x32xbf16>
    %2 = vector.shape_cast %1 : vector<1x1x8x8x32xbf16> to vector<8x8x32xbf16>
    %3 = vector.shape_cast %2 : vector<8x8x32xbf16> to vector<64x32xbf16>
    %c0_4 = arith.constant 0 : index
    %c0_5 = arith.constant 0 : index
    %c0_6 = arith.constant 0 : index
    %4 = vector.load %arg2[%c0_4, %c0_5, %c0_6] : memref<9x32x64xbf16, #tpu.memory_space<vmem>>, vector<1x32x64xbf16>
    %5 = vector.shape_cast %4 : vector<1x32x64xbf16> to vector<32x64xbf16>
    %cst_7 = arith.constant dense<0.000000e+00> : vector<64x64xf32>
    %6 = tpu.matmul %3, %5, %cst_7 {dimension_numbers = #tpu.dot_dimension_numbers<[1], [0], [0], [1], [0, 0, 1, 1], [], []>} : vector<64x32xbf16>, vector<32x64xbf16>, vector<64x64xf32> -> vector<64x64xf32>
    %7 = arith.addf %0, %6 : vector<64x64xf32>
    %c0_8 = arith.constant 0 : index
    %c1 = arith.constant 1 : index
    %c0_9 = arith.constant 0 : index
    %c0_10 = arith.constant 0 : index
    %c0_11 = arith.constant 0 : index
    %8 = vector.load %arg1[%c0_8, %c1, %c0_9, %c0_10, %c0_11] : memref<1x4x9x9x32xbf16, #tpu.memory_space<vmem>>, vector<1x1x8x8x32xbf16>
    %9 = vector.shape_cast %8 : vector<1x1x8x8x32xbf16> to vector<8x8x32xbf16>
    %10 = vector.shape_cast %9 : vector<8x8x32xbf16> to vector<64x32xbf16>
    %c1_12 = arith.constant 1 : index
    %c0_13 = arith.constant 0 : index
    %c0_14 = arith.constant 0 : index
    %11 = vector.load %arg2[%c1_12, %c0_13, %c0_14] : memref<9x32x64xbf16, #tpu.memory_space<vmem>>, vector<1x32x64xbf16>
    %12 = vector.shape_cast %11 : vector<1x32x64xbf16> to vector<32x64xbf16>
    %cst_15 = arith.constant dense<0.000000e+00> : vector<64x64xf32>
    %13 = tpu.matmul %10, %12, %cst_15 {dimension_numbers = #tpu.dot_dimension_numbers<[1], [0], [0], [1], [0, 0, 1, 1], [], []>} : vector<64x32xbf16>, vector<32x64xbf16>, vector<64x64xf32> -> vector<64x64xf32>
    %14 = arith.addf %7, %13 : vector<64x64xf32>
    %c0_16 = arith.constant 0 : index
    %c0_17 = arith.constant 0 : index
    %c0_18 = arith.constant 0 : index
    %c1_19 = arith.constant 1 : index
    %c0_20 = arith.constant 0 : index
    %15 = vector.load %arg1[%c0_16, %c0_17, %c0_18, %c1_19, %c0_20] : memref<1x4x9x9x32xbf16, #tpu.memory_space<vmem>>, vector<1x1x8x8x32xbf16>
    %16 = vector.shape_cast %15 : vector<1x1x8x8x32xbf16> to vector<8x8x32xbf16>
    %17 = vector.shape_cast %16 : vector<8x8x32xbf16> to vector<64x32xbf16>
    %c2 = arith.constant 2 : index
    %c0_21 = arith.constant 0 : index
    %c0_22 = arith.constant 0 : index
    %18 = vector.load %arg2[%c2, %c0_21, %c0_22] : memref<9x32x64xbf16, #tpu.memory_space<vmem>>, vector<1x32x64xbf16>
    %19 = vector.shape_cast %18 : vector<1x32x64xbf16> to vector<32x64xbf16>
    %cst_23 = arith.constant dense<0.000000e+00> : vector<64x64xf32>
    %20 = tpu.matmul %17, %19, %cst_23 {dimension_numbers = #tpu.dot_dimension_numbers<[1], [0], [0], [1], [0, 0, 1, 1], [], []>} : vector<64x32xbf16>, vector<32x64xbf16>, vector<64x64xf32> -> vector<64x64xf32>
    %21 = arith.addf %14, %20 : vector<64x64xf32>
    %c0_24 = arith.constant 0 : index
    %c2_25 = arith.constant 2 : index
    %c0_26 = arith.constant 0 : index
    %c0_27 = arith.constant 0 : index
    %c0_28 = arith.constant 0 : index
    %22 = vector.load %arg1[%c0_24, %c2_25, %c0_26, %c0_27, %c0_28] : memref<1x4x9x9x32xbf16, #tpu.memory_space<vmem>>, vector<1x1x8x8x32xbf16>
    %23 = vector.shape_cast %22 : vector<1x1x8x8x32xbf16> to vector<8x8x32xbf16>
    %24 = vector.shape_cast %23 : vector<8x8x32xbf16> to vector<64x32xbf16>
    %c3 = arith.constant 3 : index
    %c0_29 = arith.constant 0 : index
    %c0_30 = arith.constant 0 : index
    %25 = vector.load %arg2[%c3, %c0_29, %c0_30] : memref<9x32x64xbf16, #tpu.memory_space<vmem>>, vector<1x32x64xbf16>
    %26 = vector.shape_cast %25 : vector<1x32x64xbf16> to vector<32x64xbf16>
    %cst_31 = arith.constant dense<0.000000e+00> : vector<64x64xf32>
    %27 = tpu.matmul %24, %26, %cst_31 {dimension_numbers = #tpu.dot_dimension_numbers<[1], [0], [0], [1], [0, 0, 1, 1], [], []>} : vector<64x32xbf16>, vector<32x64xbf16>, vector<64x64xf32> -> vector<64x64xf32>
    %28 = arith.addf %21, %27 : vector<64x64xf32>
    %c0_32 = arith.constant 0 : index
    %c3_33 = arith.constant 3 : index
    %c0_34 = arith.constant 0 : index
    %c0_35 = arith.constant 0 : index
    %c0_36 = arith.constant 0 : index
    %29 = vector.load %arg1[%c0_32, %c3_33, %c0_34, %c0_35, %c0_36] : memref<1x4x9x9x32xbf16, #tpu.memory_space<vmem>>, vector<1x1x8x8x32xbf16>
    %30 = vector.shape_cast %29 : vector<1x1x8x8x32xbf16> to vector<8x8x32xbf16>
    %31 = vector.shape_cast %30 : vector<8x8x32xbf16> to vector<64x32xbf16>
    %c4 = arith.constant 4 : index
    %c0_37 = arith.constant 0 : index
    %c0_38 = arith.constant 0 : index
    %32 = vector.load %arg2[%c4, %c0_37, %c0_38] : memref<9x32x64xbf16, #tpu.memory_space<vmem>>, vector<1x32x64xbf16>
    %33 = vector.shape_cast %32 : vector<1x32x64xbf16> to vector<32x64xbf16>
    %cst_39 = arith.constant dense<0.000000e+00> : vector<64x64xf32>
    %34 = tpu.matmul %31, %33, %cst_39 {dimension_numbers = #tpu.dot_dimension_numbers<[1], [0], [0], [1], [0, 0, 1, 1], [], []>} : vector<64x32xbf16>, vector<32x64xbf16>, vector<64x64xf32> -> vector<64x64xf32>
    %35 = arith.addf %28, %34 : vector<64x64xf32>
    %c0_40 = arith.constant 0 : index
    %c2_41 = arith.constant 2 : index
    %c0_42 = arith.constant 0 : index
    %c1_43 = arith.constant 1 : index
    %c0_44 = arith.constant 0 : index
    %36 = vector.load %arg1[%c0_40, %c2_41, %c0_42, %c1_43, %c0_44] : memref<1x4x9x9x32xbf16, #tpu.memory_space<vmem>>, vector<1x1x8x8x32xbf16>
    %37 = vector.shape_cast %36 : vector<1x1x8x8x32xbf16> to vector<8x8x32xbf16>
    %38 = vector.shape_cast %37 : vector<8x8x32xbf16> to vector<64x32xbf16>
    %c5 = arith.constant 5 : index
    %c0_45 = arith.constant 0 : index
    %c0_46 = arith.constant 0 : index
    %39 = vector.load %arg2[%c5, %c0_45, %c0_46] : memref<9x32x64xbf16, #tpu.memory_space<vmem>>, vector<1x32x64xbf16>
    %40 = vector.shape_cast %39 : vector<1x32x64xbf16> to vector<32x64xbf16>
    %cst_47 = arith.constant dense<0.000000e+00> : vector<64x64xf32>
    %41 = tpu.matmul %38, %40, %cst_47 {dimension_numbers = #tpu.dot_dimension_numbers<[1], [0], [0], [1], [0, 0, 1, 1], [], []>} : vector<64x32xbf16>, vector<32x64xbf16>, vector<64x64xf32> -> vector<64x64xf32>
    %42 = arith.addf %35, %41 : vector<64x64xf32>
    %c0_48 = arith.constant 0 : index
    %c0_49 = arith.constant 0 : index
    %c1_50 = arith.constant 1 : index
    %c0_51 = arith.constant 0 : index
    %c0_52 = arith.constant 0 : index
    %43 = vector.load %arg1[%c0_48, %c0_49, %c1_50, %c0_51, %c0_52] : memref<1x4x9x9x32xbf16, #tpu.memory_space<vmem>>, vector<1x1x8x8x32xbf16>
    %44 = vector.shape_cast %43 : vector<1x1x8x8x32xbf16> to vector<8x8x32xbf16>
    %45 = vector.shape_cast %44 : vector<8x8x32xbf16> to vector<64x32xbf16>
    %c6 = arith.constant 6 : index
    %c0_53 = arith.constant 0 : index
    %c0_54 = arith.constant 0 : index
    %46 = vector.load %arg2[%c6, %c0_53, %c0_54] : memref<9x32x64xbf16, #tpu.memory_space<vmem>>, vector<1x32x64xbf16>
    %47 = vector.shape_cast %46 : vector<1x32x64xbf16> to vector<32x64xbf16>
    %cst_55 = arith.constant dense<0.000000e+00> : vector<64x64xf32>
    %48 = tpu.matmul %45, %47, %cst_55 {dimension_numbers = #tpu.dot_dimension_numbers<[1], [0], [0], [1], [0, 0, 1, 1], [], []>} : vector<64x32xbf16>, vector<32x64xbf16>, vector<64x64xf32> -> vector<64x64xf32>
    %49 = arith.addf %42, %48 : vector<64x64xf32>
    %c0_56 = arith.constant 0 : index
    %c1_57 = arith.constant 1 : index
    %c1_58 = arith.constant 1 : index
    %c0_59 = arith.constant 0 : index
    %c0_60 = arith.constant 0 : index
    %50 = vector.load %arg1[%c0_56, %c1_57, %c1_58, %c0_59, %c0_60] : memref<1x4x9x9x32xbf16, #tpu.memory_space<vmem>>, vector<1x1x8x8x32xbf16>
    %51 = vector.shape_cast %50 : vector<1x1x8x8x32xbf16> to vector<8x8x32xbf16>
    %52 = vector.shape_cast %51 : vector<8x8x32xbf16> to vector<64x32xbf16>
    %c7 = arith.constant 7 : index
    %c0_61 = arith.constant 0 : index
    %c0_62 = arith.constant 0 : index
    %53 = vector.load %arg2[%c7, %c0_61, %c0_62] : memref<9x32x64xbf16, #tpu.memory_space<vmem>>, vector<1x32x64xbf16>
    %54 = vector.shape_cast %53 : vector<1x32x64xbf16> to vector<32x64xbf16>
    %cst_63 = arith.constant dense<0.000000e+00> : vector<64x64xf32>
    %55 = tpu.matmul %52, %54, %cst_63 {dimension_numbers = #tpu.dot_dimension_numbers<[1], [0], [0], [1], [0, 0, 1, 1], [], []>} : vector<64x32xbf16>, vector<32x64xbf16>, vector<64x64xf32> -> vector<64x64xf32>
    %56 = arith.addf %49, %55 : vector<64x64xf32>
    %c0_64 = arith.constant 0 : index
    %c0_65 = arith.constant 0 : index
    %c1_66 = arith.constant 1 : index
    %c1_67 = arith.constant 1 : index
    %c0_68 = arith.constant 0 : index
    %57 = vector.load %arg1[%c0_64, %c0_65, %c1_66, %c1_67, %c0_68] : memref<1x4x9x9x32xbf16, #tpu.memory_space<vmem>>, vector<1x1x8x8x32xbf16>
    %58 = vector.shape_cast %57 : vector<1x1x8x8x32xbf16> to vector<8x8x32xbf16>
    %59 = vector.shape_cast %58 : vector<8x8x32xbf16> to vector<64x32xbf16>
    %c8 = arith.constant 8 : index
    %c0_69 = arith.constant 0 : index
    %c0_70 = arith.constant 0 : index
    %60 = vector.load %arg2[%c8, %c0_69, %c0_70] : memref<9x32x64xbf16, #tpu.memory_space<vmem>>, vector<1x32x64xbf16>
    %61 = vector.shape_cast %60 : vector<1x32x64xbf16> to vector<32x64xbf16>
    %cst_71 = arith.constant dense<0.000000e+00> : vector<64x64xf32>
    %62 = tpu.matmul %59, %61, %cst_71 {dimension_numbers = #tpu.dot_dimension_numbers<[1], [0], [0], [1], [0, 0, 1, 1], [], []>} : vector<64x32xbf16>, vector<32x64xbf16>, vector<64x64xf32> -> vector<64x64xf32>
    %63 = arith.addf %56, %62 : vector<64x64xf32>
    %cst_72 = arith.constant 0.000000e+00 : f32
    %64 = vector.broadcast %cst_72 : f32 to vector<64x64xf32>
    %c0_73 = arith.constant 0 : index
    %c1_74 = arith.constant 1 : index
    %c0_75 = arith.constant 0 : index
    %c0_76 = arith.constant 0 : index
    %c0_77 = arith.constant 0 : index
    %65 = vector.load %arg1[%c0_73, %c1_74, %c0_75, %c0_76, %c0_77] : memref<1x4x9x9x32xbf16, #tpu.memory_space<vmem>>, vector<1x1x8x8x32xbf16>
    %66 = vector.shape_cast %65 : vector<1x1x8x8x32xbf16> to vector<8x8x32xbf16>
    %67 = vector.shape_cast %66 : vector<8x8x32xbf16> to vector<64x32xbf16>
    %c0_78 = arith.constant 0 : index
    %c0_79 = arith.constant 0 : index
    %c0_80 = arith.constant 0 : index
    %68 = vector.load %arg2[%c0_78, %c0_79, %c0_80] : memref<9x32x64xbf16, #tpu.memory_space<vmem>>, vector<1x32x64xbf16>
    %69 = vector.shape_cast %68 : vector<1x32x64xbf16> to vector<32x64xbf16>
    %cst_81 = arith.constant dense<0.000000e+00> : vector<64x64xf32>
    %70 = tpu.matmul %67, %69, %cst_81 {dimension_numbers = #tpu.dot_dimension_numbers<[1], [0], [0], [1], [0, 0, 1, 1], [], []>} : vector<64x32xbf16>, vector<32x64xbf16>, vector<64x64xf32> -> vector<64x64xf32>
    %71 = arith.addf %64, %70 : vector<64x64xf32>
    %c0_82 = arith.constant 0 : index
    %c0_83 = arith.constant 0 : index
    %c0_84 = arith.constant 0 : index
    %c1_85 = arith.constant 1 : index
    %c0_86 = arith.constant 0 : index
    %72 = vector.load %arg1[%c0_82, %c0_83, %c0_84, %c1_85, %c0_86] : memref<1x4x9x9x32xbf16, #tpu.memory_space<vmem>>, vector<1x1x8x8x32xbf16>
    %73 = vector.shape_cast %72 : vector<1x1x8x8x32xbf16> to vector<8x8x32xbf16>
    %74 = vector.shape_cast %73 : vector<8x8x32xbf16> to vector<64x32xbf16>
    %c1_87 = arith.constant 1 : index
    %c0_88 = arith.constant 0 : index
    %c0_89 = arith.constant 0 : index
    %75 = vector.load %arg2[%c1_87, %c0_88, %c0_89] : memref<9x32x64xbf16, #tpu.memory_space<vmem>>, vector<1x32x64xbf16>
    %76 = vector.shape_cast %75 : vector<1x32x64xbf16> to vector<32x64xbf16>
    %cst_90 = arith.constant dense<0.000000e+00> : vector<64x64xf32>
    %77 = tpu.matmul %74, %76, %cst_90 {dimension_numbers = #tpu.dot_dimension_numbers<[1], [0], [0], [1], [0, 0, 1, 1], [], []>} : vector<64x32xbf16>, vector<32x64xbf16>, vector<64x64xf32> -> vector<64x64xf32>
    %78 = arith.addf %71, %77 : vector<64x64xf32>
    %c0_91 = arith.constant 0 : index
    %c1_92 = arith.constant 1 : index
    %c0_93 = arith.constant 0 : index
    %c1_94 = arith.constant 1 : index
    %c0_95 = arith.constant 0 : index
    %79 = vector.load %arg1[%c0_91, %c1_92, %c0_93, %c1_94, %c0_95] : memref<1x4x9x9x32xbf16, #tpu.memory_space<vmem>>, vector<1x1x8x8x32xbf16>
    %80 = vector.shape_cast %79 : vector<1x1x8x8x32xbf16> to vector<8x8x32xbf16>
    %81 = vector.shape_cast %80 : vector<8x8x32xbf16> to vector<64x32xbf16>
    %c2_96 = arith.constant 2 : index
    %c0_97 = arith.constant 0 : index
    %c0_98 = arith.constant 0 : index
    %82 = vector.load %arg2[%c2_96, %c0_97, %c0_98] : memref<9x32x64xbf16, #tpu.memory_space<vmem>>, vector<1x32x64xbf16>
    %83 = vector.shape_cast %82 : vector<1x32x64xbf16> to vector<32x64xbf16>
    %cst_99 = arith.constant dense<0.000000e+00> : vector<64x64xf32>
    %84 = tpu.matmul %81, %83, %cst_99 {dimension_numbers = #tpu.dot_dimension_numbers<[1], [0], [0], [1], [0, 0, 1, 1], [], []>} : vector<64x32xbf16>, vector<32x64xbf16>, vector<64x64xf32> -> vector<64x64xf32>
    %85 = arith.addf %78, %84 : vector<64x64xf32>
    %c0_100 = arith.constant 0 : index
    %c3_101 = arith.constant 3 : index
    %c0_102 = arith.constant 0 : index
    %c0_103 = arith.constant 0 : index
    %c0_104 = arith.constant 0 : index
    %86 = vector.load %arg1[%c0_100, %c3_101, %c0_102, %c0_103, %c0_104] : memref<1x4x9x9x32xbf16, #tpu.memory_space<vmem>>, vector<1x1x8x8x32xbf16>
    %87 = vector.shape_cast %86 : vector<1x1x8x8x32xbf16> to vector<8x8x32xbf16>
    %88 = vector.shape_cast %87 : vector<8x8x32xbf16> to vector<64x32xbf16>
    %c3_105 = arith.constant 3 : index
    %c0_106 = arith.constant 0 : index
    %c0_107 = arith.constant 0 : index
    %89 = vector.load %arg2[%c3_105, %c0_106, %c0_107] : memref<9x32x64xbf16, #tpu.memory_space<vmem>>, vector<1x32x64xbf16>
    %90 = vector.shape_cast %89 : vector<1x32x64xbf16> to vector<32x64xbf16>
    %cst_108 = arith.constant dense<0.000000e+00> : vector<64x64xf32>
    %91 = tpu.matmul %88, %90, %cst_108 {dimension_numbers = #tpu.dot_dimension_numbers<[1], [0], [0], [1], [0, 0, 1, 1], [], []>} : vector<64x32xbf16>, vector<32x64xbf16>, vector<64x64xf32> -> vector<64x64xf32>
    %92 = arith.addf %85, %91 : vector<64x64xf32>
    %c0_109 = arith.constant 0 : index
    %c2_110 = arith.constant 2 : index
    %c0_111 = arith.constant 0 : index
    %c1_112 = arith.constant 1 : index
    %c0_113 = arith.constant 0 : index
    %93 = vector.load %arg1[%c0_109, %c2_110, %c0_111, %c1_112, %c0_113] : memref<1x4x9x9x32xbf16, #tpu.memory_space<vmem>>, vector<1x1x8x8x32xbf16>
    %94 = vector.shape_cast %93 : vector<1x1x8x8x32xbf16> to vector<8x8x32xbf16>
    %95 = vector.shape_cast %94 : vector<8x8x32xbf16> to vector<64x32xbf16>
    %c4_114 = arith.constant 4 : index
    %c0_115 = arith.constant 0 : index
    %c0_116 = arith.constant 0 : index
    %96 = vector.load %arg2[%c4_114, %c0_115, %c0_116] : memref<9x32x64xbf16, #tpu.memory_space<vmem>>, vector<1x32x64xbf16>
    %97 = vector.shape_cast %96 : vector<1x32x64xbf16> to vector<32x64xbf16>
    %cst_117 = arith.constant dense<0.000000e+00> : vector<64x64xf32>
    %98 = tpu.matmul %95, %97, %cst_117 {dimension_numbers = #tpu.dot_dimension_numbers<[1], [0], [0], [1], [0, 0, 1, 1], [], []>} : vector<64x32xbf16>, vector<32x64xbf16>, vector<64x64xf32> -> vector<64x64xf32>
    %99 = arith.addf %92, %98 : vector<64x64xf32>
    %c0_118 = arith.constant 0 : index
    %c3_119 = arith.constant 3 : index
    %c0_120 = arith.constant 0 : index
    %c1_121 = arith.constant 1 : index
    %c0_122 = arith.constant 0 : index
    %100 = vector.load %arg1[%c0_118, %c3_119, %c0_120, %c1_121, %c0_122] : memref<1x4x9x9x32xbf16, #tpu.memory_space<vmem>>, vector<1x1x8x8x32xbf16>
    %101 = vector.shape_cast %100 : vector<1x1x8x8x32xbf16> to vector<8x8x32xbf16>
    %102 = vector.shape_cast %101 : vector<8x8x32xbf16> to vector<64x32xbf16>
    %c5_123 = arith.constant 5 : index
    %c0_124 = arith.constant 0 : index
    %c0_125 = arith.constant 0 : index
    %103 = vector.load %arg2[%c5_123, %c0_124, %c0_125] : memref<9x32x64xbf16, #tpu.memory_space<vmem>>, vector<1x32x64xbf16>
    %104 = vector.shape_cast %103 : vector<1x32x64xbf16> to vector<32x64xbf16>
    %cst_126 = arith.constant dense<0.000000e+00> : vector<64x64xf32>
    %105 = tpu.matmul %102, %104, %cst_126 {dimension_numbers = #tpu.dot_dimension_numbers<[1], [0], [0], [1], [0, 0, 1, 1], [], []>} : vector<64x32xbf16>, vector<32x64xbf16>, vector<64x64xf32> -> vector<64x64xf32>
    %106 = arith.addf %99, %105 : vector<64x64xf32>
    %c0_127 = arith.constant 0 : index
    %c1_128 = arith.constant 1 : index
    %c1_129 = arith.constant 1 : index
    %c0_130 = arith.constant 0 : index
    %c0_131 = arith.constant 0 : index
    %107 = vector.load %arg1[%c0_127, %c1_128, %c1_129, %c0_130, %c0_131] : memref<1x4x9x9x32xbf16, #tpu.memory_space<vmem>>, vector<1x1x8x8x32xbf16>
    %108 = vector.shape_cast %107 : vector<1x1x8x8x32xbf16> to vector<8x8x32xbf16>
    %109 = vector.shape_cast %108 : vector<8x8x32xbf16> to vector<64x32xbf16>
    %c6_132 = arith.constant 6 : index
    %c0_133 = arith.constant 0 : index
    %c0_134 = arith.constant 0 : index
    %110 = vector.load %arg2[%c6_132, %c0_133, %c0_134] : memref<9x32x64xbf16, #tpu.memory_space<vmem>>, vector<1x32x64xbf16>
    %111 = vector.shape_cast %110 : vector<1x32x64xbf16> to vector<32x64xbf16>
    %cst_135 = arith.constant dense<0.000000e+00> : vector<64x64xf32>
    %112 = tpu.matmul %109, %111, %cst_135 {dimension_numbers = #tpu.dot_dimension_numbers<[1], [0], [0], [1], [0, 0, 1, 1], [], []>} : vector<64x32xbf16>, vector<32x64xbf16>, vector<64x64xf32> -> vector<64x64xf32>
    %113 = arith.addf %106, %112 : vector<64x64xf32>
    %c0_136 = arith.constant 0 : index
    %c0_137 = arith.constant 0 : index
    %c1_138 = arith.constant 1 : index
    %c1_139 = arith.constant 1 : index
    %c0_140 = arith.constant 0 : index
    %114 = vector.load %arg1[%c0_136, %c0_137, %c1_138, %c1_139, %c0_140] : memref<1x4x9x9x32xbf16, #tpu.memory_space<vmem>>, vector<1x1x8x8x32xbf16>
    %115 = vector.shape_cast %114 : vector<1x1x8x8x32xbf16> to vector<8x8x32xbf16>
    %116 = vector.shape_cast %115 : vector<8x8x32xbf16> to vector<64x32xbf16>
    %c7_141 = arith.constant 7 : index
    %c0_142 = arith.constant 0 : index
    %c0_143 = arith.constant 0 : index
    %117 = vector.load %arg2[%c7_141, %c0_142, %c0_143] : memref<9x32x64xbf16, #tpu.memory_space<vmem>>, vector<1x32x64xbf16>
    %118 = vector.shape_cast %117 : vector<1x32x64xbf16> to vector<32x64xbf16>
    %cst_144 = arith.constant dense<0.000000e+00> : vector<64x64xf32>
    %119 = tpu.matmul %116, %118, %cst_144 {dimension_numbers = #tpu.dot_dimension_numbers<[1], [0], [0], [1], [0, 0, 1, 1], [], []>} : vector<64x32xbf16>, vector<32x64xbf16>, vector<64x64xf32> -> vector<64x64xf32>
    %120 = arith.addf %113, %119 : vector<64x64xf32>
    %c0_145 = arith.constant 0 : index
    %c1_146 = arith.constant 1 : index
    %c1_147 = arith.constant 1 : index
    %c1_148 = arith.constant 1 : index
    %c0_149 = arith.constant 0 : index
    %121 = vector.load %arg1[%c0_145, %c1_146, %c1_147, %c1_148, %c0_149] : memref<1x4x9x9x32xbf16, #tpu.memory_space<vmem>>, vector<1x1x8x8x32xbf16>
    %122 = vector.shape_cast %121 : vector<1x1x8x8x32xbf16> to vector<8x8x32xbf16>
    %123 = vector.shape_cast %122 : vector<8x8x32xbf16> to vector<64x32xbf16>
    %c8_150 = arith.constant 8 : index
    %c0_151 = arith.constant 0 : index
    %c0_152 = arith.constant 0 : index
    %124 = vector.load %arg2[%c8_150, %c0_151, %c0_152] : memref<9x32x64xbf16, #tpu.memory_space<vmem>>, vector<1x32x64xbf16>
    %125 = vector.shape_cast %124 : vector<1x32x64xbf16> to vector<32x64xbf16>
    %cst_153 = arith.constant dense<0.000000e+00> : vector<64x64xf32>
    %126 = tpu.matmul %123, %125, %cst_153 {dimension_numbers = #tpu.dot_dimension_numbers<[1], [0], [0], [1], [0, 0, 1, 1], [], []>} : vector<64x32xbf16>, vector<32x64xbf16>, vector<64x64xf32> -> vector<64x64xf32>
    %127 = arith.addf %120, %126 : vector<64x64xf32>
    %128 = arith.maximumf %63, %127 : vector<64x64xf32>
    %cst_154 = arith.constant 0.000000e+00 : f32
    %129 = vector.broadcast %cst_154 : f32 to vector<64x64xf32>
    %c0_155 = arith.constant 0 : index
    %c2_156 = arith.constant 2 : index
    %c0_157 = arith.constant 0 : index
    %c0_158 = arith.constant 0 : index
    %c0_159 = arith.constant 0 : index
    %130 = vector.load %arg1[%c0_155, %c2_156, %c0_157, %c0_158, %c0_159] : memref<1x4x9x9x32xbf16, #tpu.memory_space<vmem>>, vector<1x1x8x8x32xbf16>
    %131 = vector.shape_cast %130 : vector<1x1x8x8x32xbf16> to vector<8x8x32xbf16>
    %132 = vector.shape_cast %131 : vector<8x8x32xbf16> to vector<64x32xbf16>
    %c0_160 = arith.constant 0 : index
    %c0_161 = arith.constant 0 : index
    %c0_162 = arith.constant 0 : index
    %133 = vector.load %arg2[%c0_160, %c0_161, %c0_162] : memref<9x32x64xbf16, #tpu.memory_space<vmem>>, vector<1x32x64xbf16>
    %134 = vector.shape_cast %133 : vector<1x32x64xbf16> to vector<32x64xbf16>
    %cst_163 = arith.constant dense<0.000000e+00> : vector<64x64xf32>
    %135 = tpu.matmul %132, %134, %cst_163 {dimension_numbers = #tpu.dot_dimension_numbers<[1], [0], [0], [1], [0, 0, 1, 1], [], []>} : vector<64x32xbf16>, vector<32x64xbf16>, vector<64x64xf32> -> vector<64x64xf32>
    %136 = arith.addf %129, %135 : vector<64x64xf32>
    %c0_164 = arith.constant 0 : index
    %c3_165 = arith.constant 3 : index
    %c0_166 = arith.constant 0 : index
    %c0_167 = arith.constant 0 : index
    %c0_168 = arith.constant 0 : index
    %137 = vector.load %arg1[%c0_164, %c3_165, %c0_166, %c0_167, %c0_168] : memref<1x4x9x9x32xbf16, #tpu.memory_space<vmem>>, vector<1x1x8x8x32xbf16>
    %138 = vector.shape_cast %137 : vector<1x1x8x8x32xbf16> to vector<8x8x32xbf16>
    %139 = vector.shape_cast %138 : vector<8x8x32xbf16> to vector<64x32xbf16>
    %c1_169 = arith.constant 1 : index
    %c0_170 = arith.constant 0 : index
    %c0_171 = arith.constant 0 : index
    %140 = vector.load %arg2[%c1_169, %c0_170, %c0_171] : memref<9x32x64xbf16, #tpu.memory_space<vmem>>, vector<1x32x64xbf16>
    %141 = vector.shape_cast %140 : vector<1x32x64xbf16> to vector<32x64xbf16>
    %cst_172 = arith.constant dense<0.000000e+00> : vector<64x64xf32>
    %142 = tpu.matmul %139, %141, %cst_172 {dimension_numbers = #tpu.dot_dimension_numbers<[1], [0], [0], [1], [0, 0, 1, 1], [], []>} : vector<64x32xbf16>, vector<32x64xbf16>, vector<64x64xf32> -> vector<64x64xf32>
    %143 = arith.addf %136, %142 : vector<64x64xf32>
    %c0_173 = arith.constant 0 : index
    %c2_174 = arith.constant 2 : index
    %c0_175 = arith.constant 0 : index
    %c1_176 = arith.constant 1 : index
    %c0_177 = arith.constant 0 : index
    %144 = vector.load %arg1[%c0_173, %c2_174, %c0_175, %c1_176, %c0_177] : memref<1x4x9x9x32xbf16, #tpu.memory_space<vmem>>, vector<1x1x8x8x32xbf16>
    %145 = vector.shape_cast %144 : vector<1x1x8x8x32xbf16> to vector<8x8x32xbf16>
    %146 = vector.shape_cast %145 : vector<8x8x32xbf16> to vector<64x32xbf16>
    %c2_178 = arith.constant 2 : index
    %c0_179 = arith.constant 0 : index
    %c0_180 = arith.constant 0 : index
    %147 = vector.load %arg2[%c2_178, %c0_179, %c0_180] : memref<9x32x64xbf16, #tpu.memory_space<vmem>>, vector<1x32x64xbf16>
    %148 = vector.shape_cast %147 : vector<1x32x64xbf16> to vector<32x64xbf16>
    %cst_181 = arith.constant dense<0.000000e+00> : vector<64x64xf32>
    %149 = tpu.matmul %146, %148, %cst_181 {dimension_numbers = #tpu.dot_dimension_numbers<[1], [0], [0], [1], [0, 0, 1, 1], [], []>} : vector<64x32xbf16>, vector<32x64xbf16>, vector<64x64xf32> -> vector<64x64xf32>
    %150 = arith.addf %143, %149 : vector<64x64xf32>
    %c0_182 = arith.constant 0 : index
    %c0_183 = arith.constant 0 : index
    %c1_184 = arith.constant 1 : index
    %c0_185 = arith.constant 0 : index
    %c0_186 = arith.constant 0 : index
    %151 = vector.load %arg1[%c0_182, %c0_183, %c1_184, %c0_185, %c0_186] : memref<1x4x9x9x32xbf16, #tpu.memory_space<vmem>>, vector<1x1x8x8x32xbf16>
    %152 = vector.shape_cast %151 : vector<1x1x8x8x32xbf16> to vector<8x8x32xbf16>
    %153 = vector.shape_cast %152 : vector<8x8x32xbf16> to vector<64x32xbf16>
    %c3_187 = arith.constant 3 : index
    %c0_188 = arith.constant 0 : index
    %c0_189 = arith.constant 0 : index
    %154 = vector.load %arg2[%c3_187, %c0_188, %c0_189] : memref<9x32x64xbf16, #tpu.memory_space<vmem>>, vector<1x32x64xbf16>
    %155 = vector.shape_cast %154 : vector<1x32x64xbf16> to vector<32x64xbf16>
    %cst_190 = arith.constant dense<0.000000e+00> : vector<64x64xf32>
    %156 = tpu.matmul %153, %155, %cst_190 {dimension_numbers = #tpu.dot_dimension_numbers<[1], [0], [0], [1], [0, 0, 1, 1], [], []>} : vector<64x32xbf16>, vector<32x64xbf16>, vector<64x64xf32> -> vector<64x64xf32>
    %157 = arith.addf %150, %156 : vector<64x64xf32>
    %c0_191 = arith.constant 0 : index
    %c1_192 = arith.constant 1 : index
    %c1_193 = arith.constant 1 : index
    %c0_194 = arith.constant 0 : index
    %c0_195 = arith.constant 0 : index
    %158 = vector.load %arg1[%c0_191, %c1_192, %c1_193, %c0_194, %c0_195] : memref<1x4x9x9x32xbf16, #tpu.memory_space<vmem>>, vector<1x1x8x8x32xbf16>
    %159 = vector.shape_cast %158 : vector<1x1x8x8x32xbf16> to vector<8x8x32xbf16>
    %160 = vector.shape_cast %159 : vector<8x8x32xbf16> to vector<64x32xbf16>
    %c4_196 = arith.constant 4 : index
    %c0_197 = arith.constant 0 : index
    %c0_198 = arith.constant 0 : index
    %161 = vector.load %arg2[%c4_196, %c0_197, %c0_198] : memref<9x32x64xbf16, #tpu.memory_space<vmem>>, vector<1x32x64xbf16>
    %162 = vector.shape_cast %161 : vector<1x32x64xbf16> to vector<32x64xbf16>
    %cst_199 = arith.constant dense<0.000000e+00> : vector<64x64xf32>
    %163 = tpu.matmul %160, %162, %cst_199 {dimension_numbers = #tpu.dot_dimension_numbers<[1], [0], [0], [1], [0, 0, 1, 1], [], []>} : vector<64x32xbf16>, vector<32x64xbf16>, vector<64x64xf32> -> vector<64x64xf32>
    %164 = arith.addf %157, %163 : vector<64x64xf32>
    %c0_200 = arith.constant 0 : index
    %c0_201 = arith.constant 0 : index
    %c1_202 = arith.constant 1 : index
    %c1_203 = arith.constant 1 : index
    %c0_204 = arith.constant 0 : index
    %165 = vector.load %arg1[%c0_200, %c0_201, %c1_202, %c1_203, %c0_204] : memref<1x4x9x9x32xbf16, #tpu.memory_space<vmem>>, vector<1x1x8x8x32xbf16>
    %166 = vector.shape_cast %165 : vector<1x1x8x8x32xbf16> to vector<8x8x32xbf16>
    %167 = vector.shape_cast %166 : vector<8x8x32xbf16> to vector<64x32xbf16>
    %c5_205 = arith.constant 5 : index
    %c0_206 = arith.constant 0 : index
    %c0_207 = arith.constant 0 : index
    %168 = vector.load %arg2[%c5_205, %c0_206, %c0_207] : memref<9x32x64xbf16, #tpu.memory_space<vmem>>, vector<1x32x64xbf16>
    %169 = vector.shape_cast %168 : vector<1x32x64xbf16> to vector<32x64xbf16>
    %cst_208 = arith.constant dense<0.000000e+00> : vector<64x64xf32>
    %170 = tpu.matmul %167, %169, %cst_208 {dimension_numbers = #tpu.dot_dimension_numbers<[1], [0], [0], [1], [0, 0, 1, 1], [], []>} : vector<64x32xbf16>, vector<32x64xbf16>, vector<64x64xf32> -> vector<64x64xf32>
    %171 = arith.addf %164, %170 : vector<64x64xf32>
    %c0_209 = arith.constant 0 : index
    %c2_210 = arith.constant 2 : index
    %c1_211 = arith.constant 1 : index
    %c0_212 = arith.constant 0 : index
    %c0_213 = arith.constant 0 : index
    %172 = vector.load %arg1[%c0_209, %c2_210, %c1_211, %c0_212, %c0_213] : memref<1x4x9x9x32xbf16, #tpu.memory_space<vmem>>, vector<1x1x8x8x32xbf16>
    %173 = vector.shape_cast %172 : vector<1x1x8x8x32xbf16> to vector<8x8x32xbf16>
    %174 = vector.shape_cast %173 : vector<8x8x32xbf16> to vector<64x32xbf16>
    %c6_214 = arith.constant 6 : index
    %c0_215 = arith.constant 0 : index
    %c0_216 = arith.constant 0 : index
    %175 = vector.load %arg2[%c6_214, %c0_215, %c0_216] : memref<9x32x64xbf16, #tpu.memory_space<vmem>>, vector<1x32x64xbf16>
    %176 = vector.shape_cast %175 : vector<1x32x64xbf16> to vector<32x64xbf16>
    %cst_217 = arith.constant dense<0.000000e+00> : vector<64x64xf32>
    %177 = tpu.matmul %174, %176, %cst_217 {dimension_numbers = #tpu.dot_dimension_numbers<[1], [0], [0], [1], [0, 0, 1, 1], [], []>} : vector<64x32xbf16>, vector<32x64xbf16>, vector<64x64xf32> -> vector<64x64xf32>
    %178 = arith.addf %171, %177 : vector<64x64xf32>
    %c0_218 = arith.constant 0 : index
    %c3_219 = arith.constant 3 : index
    %c1_220 = arith.constant 1 : index
    %c0_221 = arith.constant 0 : index
    %c0_222 = arith.constant 0 : index
    %179 = vector.load %arg1[%c0_218, %c3_219, %c1_220, %c0_221, %c0_222] : memref<1x4x9x9x32xbf16, #tpu.memory_space<vmem>>, vector<1x1x8x8x32xbf16>
    %180 = vector.shape_cast %179 : vector<1x1x8x8x32xbf16> to vector<8x8x32xbf16>
    %181 = vector.shape_cast %180 : vector<8x8x32xbf16> to vector<64x32xbf16>
    %c7_223 = arith.constant 7 : index
    %c0_224 = arith.constant 0 : index
    %c0_225 = arith.constant 0 : index
    %182 = vector.load %arg2[%c7_223, %c0_224, %c0_225] : memref<9x32x64xbf16, #tpu.memory_space<vmem>>, vector<1x32x64xbf16>
    %183 = vector.shape_cast %182 : vector<1x32x64xbf16> to vector<32x64xbf16>
    %cst_226 = arith.constant dense<0.000000e+00> : vector<64x64xf32>
    %184 = tpu.matmul %181, %183, %cst_226 {dimension_numbers = #tpu.dot_dimension_numbers<[1], [0], [0], [1], [0, 0, 1, 1], [], []>} : vector<64x32xbf16>, vector<32x64xbf16>, vector<64x64xf32> -> vector<64x64xf32>
    %185 = arith.addf %178, %184 : vector<64x64xf32>
    %c0_227 = arith.constant 0 : index
    %c2_228 = arith.constant 2 : index
    %c1_229 = arith.constant 1 : index
    %c1_230 = arith.constant 1 : index
    %c0_231 = arith.constant 0 : index
    %186 = vector.load %arg1[%c0_227, %c2_228, %c1_229, %c1_230, %c0_231] : memref<1x4x9x9x32xbf16, #tpu.memory_space<vmem>>, vector<1x1x8x8x32xbf16>
    %187 = vector.shape_cast %186 : vector<1x1x8x8x32xbf16> to vector<8x8x32xbf16>
    %188 = vector.shape_cast %187 : vector<8x8x32xbf16> to vector<64x32xbf16>
    %c8_232 = arith.constant 8 : index
    %c0_233 = arith.constant 0 : index
    %c0_234 = arith.constant 0 : index
    %189 = vector.load %arg2[%c8_232, %c0_233, %c0_234] : memref<9x32x64xbf16, #tpu.memory_space<vmem>>, vector<1x32x64xbf16>
    %190 = vector.shape_cast %189 : vector<1x32x64xbf16> to vector<32x64xbf16>
    %cst_235 = arith.constant dense<0.000000e+00> : vector<64x64xf32>
    %191 = tpu.matmul %188, %190, %cst_235 {dimension_numbers = #tpu.dot_dimension_numbers<[1], [0], [0], [1], [0, 0, 1, 1], [], []>} : vector<64x32xbf16>, vector<32x64xbf16>, vector<64x64xf32> -> vector<64x64xf32>
    %192 = arith.addf %185, %191 : vector<64x64xf32>
    %193 = arith.maximumf %128, %192 : vector<64x64xf32>
    %cst_236 = arith.constant 0.000000e+00 : f32
    %194 = vector.broadcast %cst_236 : f32 to vector<64x64xf32>
    %c0_237 = arith.constant 0 : index
    %c3_238 = arith.constant 3 : index
    %c0_239 = arith.constant 0 : index
    %c0_240 = arith.constant 0 : index
    %c0_241 = arith.constant 0 : index
    %195 = vector.load %arg1[%c0_237, %c3_238, %c0_239, %c0_240, %c0_241] : memref<1x4x9x9x32xbf16, #tpu.memory_space<vmem>>, vector<1x1x8x8x32xbf16>
    %196 = vector.shape_cast %195 : vector<1x1x8x8x32xbf16> to vector<8x8x32xbf16>
    %197 = vector.shape_cast %196 : vector<8x8x32xbf16> to vector<64x32xbf16>
    %c0_242 = arith.constant 0 : index
    %c0_243 = arith.constant 0 : index
    %c0_244 = arith.constant 0 : index
    %198 = vector.load %arg2[%c0_242, %c0_243, %c0_244] : memref<9x32x64xbf16, #tpu.memory_space<vmem>>, vector<1x32x64xbf16>
    %199 = vector.shape_cast %198 : vector<1x32x64xbf16> to vector<32x64xbf16>
    %cst_245 = arith.constant dense<0.000000e+00> : vector<64x64xf32>
    %200 = tpu.matmul %197, %199, %cst_245 {dimension_numbers = #tpu.dot_dimension_numbers<[1], [0], [0], [1], [0, 0, 1, 1], [], []>} : vector<64x32xbf16>, vector<32x64xbf16>, vector<64x64xf32> -> vector<64x64xf32>
    %201 = arith.addf %194, %200 : vector<64x64xf32>
    %c0_246 = arith.constant 0 : index
    %c2_247 = arith.constant 2 : index
    %c0_248 = arith.constant 0 : index
    %c1_249 = arith.constant 1 : index
    %c0_250 = arith.constant 0 : index
    %202 = vector.load %arg1[%c0_246, %c2_247, %c0_248, %c1_249, %c0_250] : memref<1x4x9x9x32xbf16, #tpu.memory_space<vmem>>, vector<1x1x8x8x32xbf16>
    %203 = vector.shape_cast %202 : vector<1x1x8x8x32xbf16> to vector<8x8x32xbf16>
    %204 = vector.shape_cast %203 : vector<8x8x32xbf16> to vector<64x32xbf16>
    %c1_251 = arith.constant 1 : index
    %c0_252 = arith.constant 0 : index
    %c0_253 = arith.constant 0 : index
    %205 = vector.load %arg2[%c1_251, %c0_252, %c0_253] : memref<9x32x64xbf16, #tpu.memory_space<vmem>>, vector<1x32x64xbf16>
    %206 = vector.shape_cast %205 : vector<1x32x64xbf16> to vector<32x64xbf16>
    %cst_254 = arith.constant dense<0.000000e+00> : vector<64x64xf32>
    %207 = tpu.matmul %204, %206, %cst_254 {dimension_numbers = #tpu.dot_dimension_numbers<[1], [0], [0], [1], [0, 0, 1, 1], [], []>} : vector<64x32xbf16>, vector<32x64xbf16>, vector<64x64xf32> -> vector<64x64xf32>
    %208 = arith.addf %201, %207 : vector<64x64xf32>
    %c0_255 = arith.constant 0 : index
    %c3_256 = arith.constant 3 : index
    %c0_257 = arith.constant 0 : index
    %c1_258 = arith.constant 1 : index
    %c0_259 = arith.constant 0 : index
    %209 = vector.load %arg1[%c0_255, %c3_256, %c0_257, %c1_258, %c0_259] : memref<1x4x9x9x32xbf16, #tpu.memory_space<vmem>>, vector<1x1x8x8x32xbf16>
    %210 = vector.shape_cast %209 : vector<1x1x8x8x32xbf16> to vector<8x8x32xbf16>
    %211 = vector.shape_cast %210 : vector<8x8x32xbf16> to vector<64x32xbf16>
    %c2_260 = arith.constant 2 : index
    %c0_261 = arith.constant 0 : index
    %c0_262 = arith.constant 0 : index
    %212 = vector.load %arg2[%c2_260, %c0_261, %c0_262] : memref<9x32x64xbf16, #tpu.memory_space<vmem>>, vector<1x32x64xbf16>
    %213 = vector.shape_cast %212 : vector<1x32x64xbf16> to vector<32x64xbf16>
    %cst_263 = arith.constant dense<0.000000e+00> : vector<64x64xf32>
    %214 = tpu.matmul %211, %213, %cst_263 {dimension_numbers = #tpu.dot_dimension_numbers<[1], [0], [0], [1], [0, 0, 1, 1], [], []>} : vector<64x32xbf16>, vector<32x64xbf16>, vector<64x64xf32> -> vector<64x64xf32>
    %215 = arith.addf %208, %214 : vector<64x64xf32>
    %c0_264 = arith.constant 0 : index
    %c1_265 = arith.constant 1 : index
    %c1_266 = arith.constant 1 : index
    %c0_267 = arith.constant 0 : index
    %c0_268 = arith.constant 0 : index
    %216 = vector.load %arg1[%c0_264, %c1_265, %c1_266, %c0_267, %c0_268] : memref<1x4x9x9x32xbf16, #tpu.memory_space<vmem>>, vector<1x1x8x8x32xbf16>
    %217 = vector.shape_cast %216 : vector<1x1x8x8x32xbf16> to vector<8x8x32xbf16>
    %218 = vector.shape_cast %217 : vector<8x8x32xbf16> to vector<64x32xbf16>
    %c3_269 = arith.constant 3 : index
    %c0_270 = arith.constant 0 : index
    %c0_271 = arith.constant 0 : index
    %219 = vector.load %arg2[%c3_269, %c0_270, %c0_271] : memref<9x32x64xbf16, #tpu.memory_space<vmem>>, vector<1x32x64xbf16>
    %220 = vector.shape_cast %219 : vector<1x32x64xbf16> to vector<32x64xbf16>
    %cst_272 = arith.constant dense<0.000000e+00> : vector<64x64xf32>
    %221 = tpu.matmul %218, %220, %cst_272 {dimension_numbers = #tpu.dot_dimension_numbers<[1], [0], [0], [1], [0, 0, 1, 1], [], []>} : vector<64x32xbf16>, vector<32x64xbf16>, vector<64x64xf32> -> vector<64x64xf32>
    %222 = arith.addf %215, %221 : vector<64x64xf32>
    %c0_273 = arith.constant 0 : index
    %c0_274 = arith.constant 0 : index
    %c1_275 = arith.constant 1 : index
    %c1_276 = arith.constant 1 : index
    %c0_277 = arith.constant 0 : index
    %223 = vector.load %arg1[%c0_273, %c0_274, %c1_275, %c1_276, %c0_277] : memref<1x4x9x9x32xbf16, #tpu.memory_space<vmem>>, vector<1x1x8x8x32xbf16>
    %224 = vector.shape_cast %223 : vector<1x1x8x8x32xbf16> to vector<8x8x32xbf16>
    %225 = vector.shape_cast %224 : vector<8x8x32xbf16> to vector<64x32xbf16>
    %c4_278 = arith.constant 4 : index
    %c0_279 = arith.constant 0 : index
    %c0_280 = arith.constant 0 : index
    %226 = vector.load %arg2[%c4_278, %c0_279, %c0_280] : memref<9x32x64xbf16, #tpu.memory_space<vmem>>, vector<1x32x64xbf16>
    %227 = vector.shape_cast %226 : vector<1x32x64xbf16> to vector<32x64xbf16>
    %cst_281 = arith.constant dense<0.000000e+00> : vector<64x64xf32>
    %228 = tpu.matmul %225, %227, %cst_281 {dimension_numbers = #tpu.dot_dimension_numbers<[1], [0], [0], [1], [0, 0, 1, 1], [], []>} : vector<64x32xbf16>, vector<32x64xbf16>, vector<64x64xf32> -> vector<64x64xf32>
    %229 = arith.addf %222, %228 : vector<64x64xf32>
    %c0_282 = arith.constant 0 : index
    %c1_283 = arith.constant 1 : index
    %c1_284 = arith.constant 1 : index
    %c1_285 = arith.constant 1 : index
    %c0_286 = arith.constant 0 : index
    %230 = vector.load %arg1[%c0_282, %c1_283, %c1_284, %c1_285, %c0_286] : memref<1x4x9x9x32xbf16, #tpu.memory_space<vmem>>, vector<1x1x8x8x32xbf16>
    %231 = vector.shape_cast %230 : vector<1x1x8x8x32xbf16> to vector<8x8x32xbf16>
    %232 = vector.shape_cast %231 : vector<8x8x32xbf16> to vector<64x32xbf16>
    %c5_287 = arith.constant 5 : index
    %c0_288 = arith.constant 0 : index
    %c0_289 = arith.constant 0 : index
    %233 = vector.load %arg2[%c5_287, %c0_288, %c0_289] : memref<9x32x64xbf16, #tpu.memory_space<vmem>>, vector<1x32x64xbf16>
    %234 = vector.shape_cast %233 : vector<1x32x64xbf16> to vector<32x64xbf16>
    %cst_290 = arith.constant dense<0.000000e+00> : vector<64x64xf32>
    %235 = tpu.matmul %232, %234, %cst_290 {dimension_numbers = #tpu.dot_dimension_numbers<[1], [0], [0], [1], [0, 0, 1, 1], [], []>} : vector<64x32xbf16>, vector<32x64xbf16>, vector<64x64xf32> -> vector<64x64xf32>
    %236 = arith.addf %229, %235 : vector<64x64xf32>
    %c0_291 = arith.constant 0 : index
    %c3_292 = arith.constant 3 : index
    %c1_293 = arith.constant 1 : index
    %c0_294 = arith.constant 0 : index
    %c0_295 = arith.constant 0 : index
    %237 = vector.load %arg1[%c0_291, %c3_292, %c1_293, %c0_294, %c0_295] : memref<1x4x9x9x32xbf16, #tpu.memory_space<vmem>>, vector<1x1x8x8x32xbf16>
    %238 = vector.shape_cast %237 : vector<1x1x8x8x32xbf16> to vector<8x8x32xbf16>
    %239 = vector.shape_cast %238 : vector<8x8x32xbf16> to vector<64x32xbf16>
    %c6_296 = arith.constant 6 : index
    %c0_297 = arith.constant 0 : index
    %c0_298 = arith.constant 0 : index
    %240 = vector.load %arg2[%c6_296, %c0_297, %c0_298] : memref<9x32x64xbf16, #tpu.memory_space<vmem>>, vector<1x32x64xbf16>
    %241 = vector.shape_cast %240 : vector<1x32x64xbf16> to vector<32x64xbf16>
    %cst_299 = arith.constant dense<0.000000e+00> : vector<64x64xf32>
    %242 = tpu.matmul %239, %241, %cst_299 {dimension_numbers = #tpu.dot_dimension_numbers<[1], [0], [0], [1], [0, 0, 1, 1], [], []>} : vector<64x32xbf16>, vector<32x64xbf16>, vector<64x64xf32> -> vector<64x64xf32>
    %243 = arith.addf %236, %242 : vector<64x64xf32>
    %c0_300 = arith.constant 0 : index
    %c2_301 = arith.constant 2 : index
    %c1_302 = arith.constant 1 : index
    %c1_303 = arith.constant 1 : index
    %c0_304 = arith.constant 0 : index
    %244 = vector.load %arg1[%c0_300, %c2_301, %c1_302, %c1_303, %c0_304] : memref<1x4x9x9x32xbf16, #tpu.memory_space<vmem>>, vector<1x1x8x8x32xbf16>
    %245 = vector.shape_cast %244 : vector<1x1x8x8x32xbf16> to vector<8x8x32xbf16>
    %246 = vector.shape_cast %245 : vector<8x8x32xbf16> to vector<64x32xbf16>
    %c7_305 = arith.constant 7 : index
    %c0_306 = arith.constant 0 : index
    %c0_307 = arith.constant 0 : index
    %247 = vector.load %arg2[%c7_305, %c0_306, %c0_307] : memref<9x32x64xbf16, #tpu.memory_space<vmem>>, vector<1x32x64xbf16>
    %248 = vector.shape_cast %247 : vector<1x32x64xbf16> to vector<32x64xbf16>
    %cst_308 = arith.constant dense<0.000000e+00> : vector<64x64xf32>
    %249 = tpu.matmul %246, %248, %cst_308 {dimension_numbers = #tpu.dot_dimension_numbers<[1], [0], [0], [1], [0, 0, 1, 1], [], []>} : vector<64x32xbf16>, vector<32x64xbf16>, vector<64x64xf32> -> vector<64x64xf32>
    %250 = arith.addf %243, %249 : vector<64x64xf32>
    %c0_309 = arith.constant 0 : index
    %c3_310 = arith.constant 3 : index
    %c1_311 = arith.constant 1 : index
    %c1_312 = arith.constant 1 : index
    %c0_313 = arith.constant 0 : index
    %251 = vector.load %arg1[%c0_309, %c3_310, %c1_311, %c1_312, %c0_313] : memref<1x4x9x9x32xbf16, #tpu.memory_space<vmem>>, vector<1x1x8x8x32xbf16>
    %252 = vector.shape_cast %251 : vector<1x1x8x8x32xbf16> to vector<8x8x32xbf16>
    %253 = vector.shape_cast %252 : vector<8x8x32xbf16> to vector<64x32xbf16>
    %c8_314 = arith.constant 8 : index
    %c0_315 = arith.constant 0 : index
    %c0_316 = arith.constant 0 : index
    %254 = vector.load %arg2[%c8_314, %c0_315, %c0_316] : memref<9x32x64xbf16, #tpu.memory_space<vmem>>, vector<1x32x64xbf16>
    %255 = vector.shape_cast %254 : vector<1x32x64xbf16> to vector<32x64xbf16>
    %cst_317 = arith.constant dense<0.000000e+00> : vector<64x64xf32>
    %256 = tpu.matmul %253, %255, %cst_317 {dimension_numbers = #tpu.dot_dimension_numbers<[1], [0], [0], [1], [0, 0, 1, 1], [], []>} : vector<64x32xbf16>, vector<32x64xbf16>, vector<64x64xf32> -> vector<64x64xf32>
    %257 = arith.addf %250, %256 : vector<64x64xf32>
    %258 = arith.maximumf %193, %257 : vector<64x64xf32>
    %c0_318 = arith.constant 0 : index
    %c0_319 = arith.constant 0 : index
    %259 = vector.load %arg3[%c0_318, %c0_319] : memref<1x64xf32, #tpu.memory_space<vmem>>, vector<1x64xf32>
    %260 = vector.broadcast %259 : vector<1x64xf32> to vector<64x64xf32>
    %261 = arith.addf %258, %260 : vector<64x64xf32>
    %cst_320 = arith.constant 0.000000e+00 : f32
    %262 = vector.broadcast %cst_320 : f32 to vector<64x64xf32>
    %263 = arith.maximumf %261, %262 : vector<64x64xf32>
    %264 = vector.shape_cast %263 : vector<64x64xf32> to vector<8x8x64xf32>
    %265 = arith.truncf %264 : vector<8x8x64xf32> to vector<8x8x64xbf16>
    %c0_321 = arith.constant 0 : index
    %c0_322 = arith.constant 0 : index
    %c0_323 = arith.constant 0 : index
    %c0_324 = arith.constant 0 : index
    %266 = vector.load %arg4[%c0_321, %c0_322, %c0_323, %c0_324] : memref<1x8x8x64xbf16, #tpu.memory_space<vmem>>, vector<1x8x8x64xbf16>
    %267 = vector.shape_cast %266 : vector<1x8x8x64xbf16> to vector<8x8x64xbf16>
    %268 = vector.shape_cast %265 : vector<8x8x64xbf16> to vector<1x8x8x64xbf16>
    tpu.vector_store %arg4[%c0_321, %c0_322, %c0_323, %c0_324], %268 {strides = array<i32>} : memref<1x8x8x64xbf16, #tpu.memory_space<vmem>>, vector<1x8x8x64xbf16>,
    return
  }
  func.func @transform_0(%arg0: i32) -> (i32, i32, i32, i32, i32) {
    %c0_i32 = arith.constant 0 : i32
    %c0_i32_0 = arith.constant 0 : i32
    %c0_i32_1 = arith.constant 0 : i32
    %c0_i32_2 = arith.constant 0 : i32
    %c0_i32_3 = arith.constant 0 : i32
    return %arg0, %c0_i32, %c0_i32_0, %c0_i32_1, %c0_i32_2 : i32, i32, i32, i32, i32
  }
  func.func @transform_1(%arg0: i32) -> (i32, i32, i32) {
    %c0_i32 = arith.constant 0 : i32
    %c0_i32_0 = arith.constant 0 : i32
    %c0_i32_1 = arith.constant 0 : i32
    %c0_i32_2 = arith.constant 0 : i32
    return %c0_i32, %c0_i32_0, %c0_i32_1 : i32, i32, i32
  }
  func.func @transform_2(%arg0: i32) -> (i32, i32) {
    %c0_i32 = arith.constant 0 : i32
    %c0_i32_0 = arith.constant 0 : i32
    %c0_i32_1 = arith.constant 0 : i32
    return %c0_i32, %c0_i32_0 : i32, i32
  }
  func.func @transform_3(%arg0: i32) -> (i32, i32, i32, i32) {
    %c0_i32 = arith.constant 0 : i32
    %c0_i32_0 = arith.constant 0 : i32
    %c0_i32_1 = arith.constant 0 : i32
    %c0_i32_2 = arith.constant 0 : i32
    return %arg0, %c0_i32, %c0_i32_0, %c0_i32_1 : i32, i32, i32, i32
  }
}

module attributes {stable_mosaic.version = 11 : i64} {
  func.func @_fc1_relu_fc2_kernel(%arg0: i32, %arg1: i32, %arg2: memref<8x1024xbf16, #tpu.memory_space<vmem>>, %arg3: memref<1024x128xbf16, #tpu.memory_space<vmem>>, %arg4: memref<1x128xf32, #tpu.memory_space<vmem>>, %arg5: memref<128x10xbf16, #tpu.memory_space<vmem>>, %arg6: memref<1x10xf32, #tpu.memory_space<vmem>>, %arg7: memref<1x8x10xf32, #tpu.memory_space<vmem>>, %arg8: memref<8x128xf32, #tpu.memory_space<vmem>>) attributes {dimension_semantics = [#tpu.dimension_semantics<parallel>, #tpu.dimension_semantics<arbitrary>], iteration_bounds = array<i64: 2, 4>, scalar_prefetch = 0 : i64, scratch_operands = 1 : i64, tpu.core_type = #tpu.core_type<tc>, window_params = [{transform_indices = @transform_0, window_bounds = array<i64: 8, 1024>}, {transform_indices = @transform_1, window_bounds = array<i64: 1024, 128>}, {transform_indices = @transform_2, window_bounds = array<i64: 1, 128>}, {transform_indices = @transform_3, window_bounds = array<i64: 128, 10>}, {pipeline_mode = #tpu.pipeline_mode<synchronous>, transform_indices = @transform_4, window_bounds = array<i64: 1, 10>}, {transform_indices = @transform_5, window_bounds = array<i64: 1, 8, 10>}]} {
    %c0_i32 = arith.constant 0 : i32
    %0 = arith.cmpi eq, %arg1, %c0_i32 : i32
    %1 = arith.extui %0 : i1 to i32
    %c0_i32_0 = arith.constant 0 : i32
    %2 = arith.cmpi ne, %1, %c0_i32_0 : i32
    scf.if %2 {
      %cst_9 = arith.constant 0.000000e+00 : f32
      %12 = vector.broadcast %cst_9 : f32 to vector<8x128xf32>
      %c0_10 = arith.constant 0 : index
      %c0_11 = arith.constant 0 : index
      %13 = vector.load %arg8[%c0_10, %c0_11] : memref<8x128xf32, #tpu.memory_space<vmem>>, vector<8x128xf32>
      tpu.vector_store %arg8[%c0_10, %c0_11], %12 {strides = array<i32>} : memref<8x128xf32, #tpu.memory_space<vmem>>, vector<8x128xf32>,
    } else {
    }
    %c0 = arith.constant 0 : index
    %c0_1 = arith.constant 0 : index
    %3 = vector.load %arg8[%c0, %c0_1] : memref<8x128xf32, #tpu.memory_space<vmem>>, vector<8x128xf32>
    %c0_2 = arith.constant 0 : index
    %c0_3 = arith.constant 0 : index
    %4 = vector.load %arg2[%c0_2, %c0_3] : memref<8x1024xbf16, #tpu.memory_space<vmem>>, vector<8x1024xbf16>
    %c0_4 = arith.constant 0 : index
    %c0_5 = arith.constant 0 : index
    %5 = vector.load %arg3[%c0_4, %c0_5] : memref<1024x128xbf16, #tpu.memory_space<vmem>>, vector<1024x128xbf16>
    %cst = arith.constant dense<0.000000e+00> : vector<8x128xf32>
    %6 = tpu.matmul %4, %5, %cst {dimension_numbers = #tpu.dot_dimension_numbers<[1], [0], [0], [1], [0, 0, 1, 1], [], []>} : vector<8x1024xbf16>, vector<1024x128xbf16>, vector<8x128xf32> -> vector<8x128xf32>
    %7 = arith.addf %3, %6 : vector<8x128xf32>
    %c0_6 = arith.constant 0 : index
    %c0_7 = arith.constant 0 : index
    %8 = vector.load %arg8[%c0_6, %c0_7] : memref<8x128xf32, #tpu.memory_space<vmem>>, vector<8x128xf32>
    tpu.vector_store %arg8[%c0_6, %c0_7], %7 {strides = array<i32>} : memref<8x128xf32, #tpu.memory_space<vmem>>, vector<8x128xf32>,
    %c3_i32 = arith.constant 3 : i32
    %9 = arith.cmpi eq, %arg1, %c3_i32 : i32
    %10 = arith.extui %9 : i1 to i32
    %c0_i32_8 = arith.constant 0 : i32
    %11 = arith.cmpi ne, %10, %c0_i32_8 : i32
    scf.if %11 {
      %c0_9 = arith.constant 0 : index
      %c0_10 = arith.constant 0 : index
      %12 = vector.load %arg8[%c0_9, %c0_10] : memref<8x128xf32, #tpu.memory_space<vmem>>, vector<8x128xf32>
      %c0_11 = arith.constant 0 : index
      %c0_12 = arith.constant 0 : index
      %13 = vector.load %arg4[%c0_11, %c0_12] : memref<1x128xf32, #tpu.memory_space<vmem>>, vector<1x128xf32>
      %14 = vector.broadcast %13 : vector<1x128xf32> to vector<8x128xf32>
      %15 = arith.addf %12, %14 : vector<8x128xf32>
      %cst_13 = arith.constant 0.000000e+00 : f32
      %16 = vector.broadcast %cst_13 : f32 to vector<8x128xf32>
      %17 = arith.maximumf %15, %16 : vector<8x128xf32>
      %18 = arith.truncf %17 : vector<8x128xf32> to vector<8x128xbf16>
      %c0_14 = arith.constant 0 : index
      %c0_15 = arith.constant 0 : index
      %19 = vector.load %arg5[%c0_14, %c0_15] : memref<128x10xbf16, #tpu.memory_space<vmem>>, vector<128x10xbf16>
      %cst_16 = arith.constant dense<0.000000e+00> : vector<8x10xf32>
      %20 = tpu.matmul %18, %19, %cst_16 {dimension_numbers = #tpu.dot_dimension_numbers<[1], [0], [0], [1], [0, 0, 1, 1], [], []>} : vector<8x128xbf16>, vector<128x10xbf16>, vector<8x10xf32> -> vector<8x10xf32>
      %c0_i32_17 = arith.constant 0 : i32
      %21 = arith.cmpi eq, %arg0, %c0_i32_17 : i32
      %c0_18 = arith.constant 0 : index
      %c0_19 = arith.constant 0 : index
      %22 = vector.load %arg6[%c0_18, %c0_19] : memref<1x10xf32, #tpu.memory_space<vmem>>, vector<1x10xf32>
      %cst_20 = arith.constant 0.000000e+00 : f32
      %23 = vector.broadcast %cst_20 : f32 to vector<1x10xf32>
      %24 = arith.select %21, %22, %23 : vector<1x10xf32>
      %25 = vector.broadcast %24 : vector<1x10xf32> to vector<8x10xf32>
      %26 = arith.addf %20, %25 : vector<8x10xf32>
      %c0_21 = arith.constant 0 : index
      %c0_22 = arith.constant 0 : index
      %c0_23 = arith.constant 0 : index
      %27 = vector.load %arg7[%c0_21, %c0_22, %c0_23] : memref<1x8x10xf32, #tpu.memory_space<vmem>>, vector<1x8x10xf32>
      %28 = vector.shape_cast %27 : vector<1x8x10xf32> to vector<8x10xf32>
      %29 = vector.shape_cast %26 : vector<8x10xf32> to vector<1x8x10xf32>
      tpu.vector_store %arg7[%c0_21, %c0_22, %c0_23], %29 {strides = array<i32>} : memref<1x8x10xf32, #tpu.memory_space<vmem>>, vector<1x8x10xf32>,
    } else {
    }
    return
  }
  func.func @transform_0(%arg0: i32, %arg1: i32) -> (i32, i32) {
    %c0_i32 = arith.constant 0 : i32
    %c0_i32_0 = arith.constant 0 : i32
    return %c0_i32, %arg1 : i32, i32
  }
  func.func @transform_1(%arg0: i32, %arg1: i32) -> (i32, i32) {
    %c0_i32 = arith.constant 0 : i32
    return %arg1, %arg0 : i32, i32
  }
  func.func @transform_2(%arg0: i32, %arg1: i32) -> (i32, i32) {
    %c0_i32 = arith.constant 0 : i32
    %c0_i32_0 = arith.constant 0 : i32
    return %c0_i32, %arg0 : i32, i32
  }
  func.func @transform_3(%arg0: i32, %arg1: i32) -> (i32, i32) {
    %c0_i32 = arith.constant 0 : i32
    %c0_i32_0 = arith.constant 0 : i32
    return %arg0, %c0_i32 : i32, i32
  }
  func.func @transform_4(%arg0: i32, %arg1: i32) -> (i32, i32) {
    %c0_i32 = arith.constant 0 : i32
    %c0_i32_0 = arith.constant 0 : i32
    %c0_i32_1 = arith.constant 0 : i32
    return %c0_i32, %c0_i32_0 : i32, i32
  }
  func.func @transform_5(%arg0: i32, %arg1: i32) -> (i32, i32, i32) {
    %c0_i32 = arith.constant 0 : i32
    %c0_i32_0 = arith.constant 0 : i32
    %c0_i32_1 = arith.constant 0 : i32
    return %arg0, %c0_i32, %c0_i32_0 : i32, i32, i32
  }
}

</mosaic_0001>

<bundles_post_ra>
// kernel: cifarnet_forward.5
= control target key start
LH: loop header
LB: loop body
LE: loop exit
PB: predicated region body
PF: predicated region fallthrough
CT: control target
= control target key end

     0   :  { %s2705_s0 = inlined_call_operand.vmem [shape: bf16[8,4096], index: 0, kind: input, shape index: {}]   ;;  %s2706_s1 = inlined_call_operand.vmem [shape: bf16[4096,256], index: 1, kind: input, shape index: {}]   ;;  %s2707_s2 = inlined_call_operand.vmem [shape: f32[1,256], index: 2, kind: input, shape index: {}]   ;;  %s2708_s3 = inlined_call_operand.vmem [shape: bf16[256,10], index: 3, kind: input, shape index: {}]   ;;  %s2709_s4 = inlined_call_operand.vmem [shape: f32[1,10], index: 4, kind: input, shape index: {}]   ;;  %s2710_s5 = inlined_call_operand.vmem [shape: f32[2,8,10], index: 5, kind: output, shape index: {}]  }
   0x1   :  { %2712 = sst [smem:[#allocation5_spill]] %s2706_s1 }
   0x2   :  { %s2245_s18 = smov 0   ;;  %s2247_s19 = smov 0  }
   0x3   :  { %s2249_s20 = smov 0   ;;  %s2251_s21 = smov 0  }
   0x4   :  { %s2253_s22 = smov 0   ;;  %s2255_s23 = smov 0  }
   0x5   :  { %s2257_s24 = smov 0  }
   0x6 LB: > { %s24_s25 = sadd.s32 1, %s2202_s22  ;;  %s27_s26 = sadd.s32 1, %s2206_s23  ;;  %s2210_s24 = sphi %s2257_s24, %s15_s24   ;;  %s2206_s23 = sphi %s2255_s23, %s2721_s23   ;;  %s2202_s22 = sphi %s2253_s22, %s2720_s22   ;;  %s2198_s21 = sphi %s2251_s21, %s2719_s21   ;;  %s2194_s20 = sphi %s2249_s20, %s2718_s20   ;;  %s2190_s19 = sphi %s2247_s19, %s2717_s19   ;;  %s2186_s18 = sphi %s2245_s18, %s2716_s18  }
   0x7   : > { %p25_p0 = scmp.ge.s32.totalorder %s24_s25, 4  ;;  %p69_p1 = scmp.ne.s32.totalorder %s2190_s19, %s2186_s18 }
   0x8   : > { %p70_p2 = scmp.eq.s32.totalorder %s2210_s24, 0  ;;  %s62_s30 = sadd.s32 1, %s2190_s19 }
   0x9   : > { %s2723_s25 = smov (%p25_p0, %s24_s25), 0  ;;  %s2725_s26 = smov (!%p25_p0, %s27_s26), %s2206_s23 }
   0xa   : > { %p71_p3 = por %p70_p2, %p69_p1  ;;  %p29_p4 = scmp.ge.s32.totalorder %s2725_s26, 2 }
   0xb   : > { %s57_s27 = ssub.s32 %s2202_s22, %s2723_s25  ;;  %p1802_p6 = scmp.ge.s32.totalorder %s2210_s24, 8 }
   0xc   : > { %s2727_s26 = smov (%p29_p4, %s2725_s26), 0 }
   0xd   : > { %2713 = sst [smem:[#allocation4_spill]] %s2727_s26  ;;  %s58_s28 = ssub.s32 %s2206_s23, %s2727_s26 }
   0xe   : > { %s59_s29 = sor.u32 %s58_s28, %s57_s27  ;;  %197 = sbr.rel (%p1802_p6) target bundleno = 116 (0x74), region = 20 }
   0xf   : > { %p60_p5 = scmp.eq.s32.totalorder %s59_s29, 0 }
  0x11   : > { %s2296_s6 = scalar_select %p60_p5, %s2190_s19, %s62_s30  }
  0x15   : > { %209 = sbr.rel (!%p71_p3) target bundleno = 116 (0x74), region = 28  ;;  %s211_s7 = sand.u32 (%p71_p3), 1, %s2190_s19  }
  0x16   : > { %s1899_s8 = sshll.u32 (%p71_p3), %s2202_s22, 8  ;;  %s1803_s9 = sshll.u32 (%p71_p3), %s211_s7, 9 }
  0x17   : > { %s216_s10 = sadd.s32 (%p71_p3), %s2206_s23, %s1899_s8  ;;  %s2714_s1 = sld [smem:[#allocation5_spill]] (%p71_p3) }
  0x18   : > { %s1806_s11 = sshll.u32 (%p71_p3), %s216_s10, 2  ;;  %s2310_s15 = scalar_lea.vmem (%p71_p3), [#allocation3], %s1803_s9 }
  0x1d   : > { %s2305_s14 = scalar_lea.vmem %s2714_s1, %s1806_s11 }
  0x1e   : > { %v234_v0 = vld [vmem:[%s2305_s14] sm:$0xf]  ;;  %v236_v1 = vld [vmem:[%s2305_s14 + $0x8] sm:$0xf]  ;;  %v238_v2 = vld [vmem:[%s2305_s14 + $0x10] sm:$0xf] }
  0x1f   : > { %235 = vst [vmem:[%s2310_s15] sm:$0xf] %v234_v0  ;;  %237 = vst [vmem:[%s2310_s15 + $0x4] sm:$0xf] %v236_v1  ;;  %v240_v3 = vld [vmem:[%s2305_s14 + $0x18] sm:$0xf] }
  0x20   : > { %239 = vst [vmem:[%s2310_s15 + $0x8] sm:$0xf] %v238_v2  ;;  %v242_v4 = vld [vmem:[%s2305_s14 + $0x20] sm:$0xf]  ;;  %v244_v5 = vld [vmem:[%s2305_s14 + $0x28] sm:$0xf] }
  0x21   : > { %241 = vst [vmem:[%s2310_s15 + $0xc] sm:$0xf] %v240_v3  ;;  %243 = vst [vmem:[%s2310_s15 + $0x10] sm:$0xf] %v242_v4  ;;  %v246_v6 = vld [vmem:[%s2305_s14 + $0x30] sm:$0xf] }
  0x22   : > { %245 = vst [vmem:[%s2310_s15 + $0x14] sm:$0xf] %v244_v5  ;;  %v248_v7 = vld [vmem:[%s2305_s14 + $0x38] sm:$0xf]  ;;  %v250_v8 = vld [vmem:[%s2305_s14 + $0x40] sm:$0xf] }
  0x23   : > { %247 = vst [vmem:[%s2310_s15 + $0x18] sm:$0xf] %v246_v6  ;;  %249 = vst [vmem:[%s2310_s15 + $0x1c] sm:$0xf] %v248_v7  ;;  %v252_v9 = vld [vmem:[%s2305_s14 + $0x48] sm:$0xf] }
  0x24   : > { %251 = vst [vmem:[%s2310_s15 + $0x20] sm:$0xf] %v250_v8  ;;  %v254_v10 = vld [vmem:[%s2305_s14 + $0x50] sm:$0xf]  ;;  %v256_v11 = vld [vmem:[%s2305_s14 + $0x58] sm:$0xf] }
  0x25   : > { %253 = vst [vmem:[%s2310_s15 + $0x24] sm:$0xf] %v252_v9  ;;  %255 = vst [vmem:[%s2310_s15 + $0x28] sm:$0xf] %v254_v10  ;;  %v258_v12 = vld [vmem:[%s2305_s14 + $0x60] sm:$0xf] }
  0x26   : > { %257 = vst [vmem:[%s2310_s15 + $0x2c] sm:$0xf] %v256_v11  ;;  %v260_v13 = vld [vmem:[%s2305_s14 + $0x68] sm:$0xf]  ;;  %v262_v14 = vld [vmem:[%s2305_s14 + $0x70] sm:$0xf] }
  0x27   : > { %259 = vst [vmem:[%s2310_s15 + $0x30] sm:$0xf] %v258_v12  ;;  %261 = vst [vmem:[%s2310_s15 + $0x34] sm:$0xf] %v260_v13  ;;  %v264_v15 = vld [vmem:[%s2305_s14 + $0x78] sm:$0xf] }
  0x28   : > { %263 = vst [vmem:[%s2310_s15 + $0x38] sm:$0xf] %v262_v14  ;;  %v266_v16 = vld [vmem:[%s2305_s14 + $0x80] sm:$0xf]  ;;  %v268_v17 = vld [vmem:[%s2305_s14 + $0x88] sm:$0xf] }
  0x29   : > { %265 = vst [vmem:[%s2310_s15 + $0x3c] sm:$0xf] %v264_v15  ;;  %267 = vst [vmem:[%s2310_s15 + $0x40] sm:$0xf] %v266_v16  ;;  %v270_v18 = vld [vmem:[%s2305_s14 + $0x90] sm:$0xf] }
  0x2a   : > { %269 = vst [vmem:[%s2310_s15 + $0x44] sm:$0xf] %v268_v17  ;;  %v272_v19 = vld [vmem:[%s2305_s14 + $0x98] sm:$0xf]  ;;  %v274_v20 = vld [vmem:[%s2305_s14 + $0xa0] sm:$0xf] }
  0x2b   : > { %271 = vst [vmem:[%s2310_s15 + $0x48] sm:$0xf] %v270_v18  ;;  %273 = vst [vmem:[%s2310_s15 + $0x4c] sm:$0xf] %v272_v19  ;;  %v276_v21 = vld [vmem:[%s2305_s14 + $0xa8] sm:$0xf] }
  0x2c   : > { %275 = vst [vmem:[%s2310_s15 + $0x50] sm:$0xf] %v274_v20  ;;  %v278_v22 = vld [vmem:[%s2305_s14 + $0xb0] sm:$0xf]  ;;  %v280_v23 = vld [vmem:[%s2305_s14 + $0xb8] sm:$0xf] }
  0x2d   : > { %277 = vst [vmem:[%s2310_s15 + $0x54] sm:$0xf] %v276_v21  ;;  %279 = vst [vmem:[%s2310_s15 + $0x58] sm:$0xf] %v278_v22  ;;  %v282_v24 = vld [vmem:[%s2305_s14 + $0xc0] sm:$0xf] }
  0x2e   : > { %281 = vst [vmem:[%s2310_s15 + $0x5c] sm:$0xf] %v280_v23  ;;  %v284_v25 = vld [vmem:[%s2305_s14 + $0xc8] sm:$0xf]  ;;  %v286_v26 = vld [vmem:[%s2305_s14 + $0xd0] sm:$0xf] }
  0x2f   : > { %283 = vst [vmem:[%s2310_s15 + $0x60] sm:$0xf] %v282_v24  ;;  %285 = vst [vmem:[%s2310_s15 + $0x64] sm:$0xf] %v284_v25  ;;  %v288_v27 = vld [vmem:[%s2305_s14 + $0xd8] sm:$0xf] }
  0x30   : > { %287 = vst [vmem:[%s2310_s15 + $0x68] sm:$0xf] %v286_v26  ;;  %v290_v28 = vld [vmem:[%s2305_s14 + $0xe0] sm:$0xf]  ;;  %v292_v29 = vld [vmem:[%s2305_s14 + $0xe8] sm:$0xf] }
  0x31   : > { %289 = vst [vmem:[%s2310_s15 + $0x6c] sm:$0xf] %v288_v27  ;;  %291 = vst [vmem:[%s2310_s15 + $0x70] sm:$0xf] %v290_v28  ;;  %v294_v30 = vld [vmem:[%s2305_s14 + $0xf0] sm:$0xf] }
  0x32   : > { %293 = vst [vmem:[%s2310_s15 + $0x74] sm:$0xf] %v292_v29  ;;  %v296_v31 = vld [vmem:[%s2305_s14 + $0xf8] sm:$0xf]  ;;  %v298_v32 = vld [vmem:[%s2305_s14 + $0x100] sm:$0xf] }
  0x33   : > { %295 = vst [vmem:[%s2310_s15 + $0x78] sm:$0xf] %v294_v30  ;;  %297 = vst [vmem:[%s2310_s15 + $0x7c] sm:$0xf] %v296_v31  ;;  %v300_v33 = vld [vmem:[%s2305_s14 + $0x108] sm:$0xf] }
  0x34   : > { %299 = vst [vmem:[%s2310_s15 + $0x80] sm:$0xf] %v298_v32  ;;  %v302_v34 = vld [vmem:[%s2305_s14 + $0x110] sm:$0xf]  ;;  %v304_v35 = vld [vmem:[%s2305_s14 + $0x118] sm:$0xf] }
  0x35   : > { %301 = vst [vmem:[%s2310_s15 + $0x84] sm:$0xf] %v300_v33  ;;  %303 = vst [vmem:[%s2310_s15 + $0x88] sm:$0xf] %v302_v34  ;;  %v306_v36 = vld [vmem:[%s2305_s14 + $0x120] sm:$0xf] }
  0x36   : > { %305 = vst [vmem:[%s2310_s15 + $0x8c] sm:$0xf] %v304_v35  ;;  %v308_v37 = vld [vmem:[%s2305_s14 + $0x128] sm:$0xf]  ;;  %v310_v38 = vld [vmem:[%s2305_s14 + $0x130] sm:$0xf] }
  0x37   : > { %307 = vst [vmem:[%s2310_s15 + $0x90] sm:$0xf] %v306_v36  ;;  %309 = vst [vmem:[%s2310_s15 + $0x94] sm:$0xf] %v308_v37  ;;  %v312_v39 = vld [vmem:[%s2305_s14 + $0x138] sm:$0xf] }
  0x38   : > { %311 = vst [vmem:[%s2310_s15 + $0x98] sm:$0xf] %v310_v38  ;;  %v314_v40 = vld [vmem:[%s2305_s14 + $0x140] sm:$0xf]  ;;  %v316_v41 = vld [vmem:[%s2305_s14 + $0x148] sm:$0xf] }
  0x39   : > { %313 = vst [vmem:[%s2310_s15 + $0x9c] sm:$0xf] %v312_v39  ;;  %315 = vst [vmem:[%s2310_s15 + $0xa0] sm:$0xf] %v314_v40  ;;  %v318_v42 = vld [vmem:[%s2305_s14 + $0x150] sm:$0xf] }
  0x3a   : > { %317 = vst [vmem:[%s2310_s15 + $0xa4] sm:$0xf] %v316_v41  ;;  %v320_v43 = vld [vmem:[%s2305_s14 + $0x158] sm:$0xf]  ;;  %v322_v44 = vld [vmem:[%s2305_s14 + $0x160] sm:$0xf] }
  0x3b   : > { %319 = vst [vmem:[%s2310_s15 + $0xa8] sm:$0xf] %v318_v42  ;;  %321 = vst [vmem:[%s2310_s15 + $0xac] sm:$0xf] %v320_v43  ;;  %v324_v45 = vld [vmem:[%s2305_s14 + $0x168] sm:$0xf] }
  0x3c   : > { %323 = vst [vmem:[%s2310_s15 + $0xb0] sm:$0xf] %v322_v44  ;;  %v326_v46 = vld [vmem:[%s2305_s14 + $0x170] sm:$0xf]  ;;  %v328_v47 = vld [vmem:[%s2305_s14 + $0x178] sm:$0xf] }
  0x3d   : > { %325 = vst [vmem:[%s2310_s15 + $0xb4] sm:$0xf] %v324_v45  ;;  %327 = vst [vmem:[%s2310_s15 + $0xb8] sm:$0xf] %v326_v46  ;;  %v330_v48 = vld [vmem:[%s2305_s14 + $0x180] sm:$0xf] }
  0x3e   : > { %329 = vst [vmem:[%s2310_s15 + $0xbc] sm:$0xf] %v328_v47  ;;  %v332_v49 = vld [vmem:[%s2305_s14 + $0x188] sm:$0xf]  ;;  %v334_v50 = vld [vmem:[%s2305_s14 + $0x190] sm:$0xf] }
  0x3f   : > { %331 = vst [vmem:[%s2310_s15 + $0xc0] sm:$0xf] %v330_v48  ;;  %333 = vst [vmem:[%s2310_s15 + $0xc4] sm:$0xf] %v332_v49  ;;  %v336_v51 = vld [vmem:[%s2305_s14 + $0x198] sm:$0xf] }
  0x40   : > { %335 = vst [vmem:[%s2310_s15 + $0xc8] sm:$0xf] %v334_v50  ;;  %v338_v52 = vld [vmem:[%s2305_s14 + $0x1a0] sm:$0xf]  ;;  %v340_v53 = vld [vmem:[%s2305_s14 + $0x1a8] sm:$0xf] }
  0x41   : > { %337 = vst [vmem:[%s2310_s15 + $0xcc] sm:$0xf] %v336_v51  ;;  %339 = vst [vmem:[%s2310_s15 + $0xd0] sm:$0xf] %v338_v52  ;;  %v342_v54 = vld [vmem:[%s2305_s14 + $0x1b0] sm:$0xf] }
  0x42   : > { %341 = vst [vmem:[%s2310_s15 + $0xd4] sm:$0xf] %v340_v53  ;;  %v344_v55 = vld [vmem:[%s2305_s14 + $0x1b8] sm:$0xf]  ;;  %v346_v56 = vld [vmem:[%s2305_s14 + $0x1c0] sm:$0xf] }
  0x43   : > { %343 = vst [vmem:[%s2310_s15 + $0xd8] sm:$0xf] %v342_v54  ;;  %345 = vst [vmem:[%s2310_s15 + $0xdc] sm:$0xf] %v344_v55  ;;  %v348_v57 = vld [vmem:[%s2305_s14 + $0x1c8] sm:$0xf] }
  0x44   : > { %347 = vst [vmem:[%s2310_s15 + $0xe0] sm:$0xf] %v346_v56  ;;  %v350_v58 = vld [vmem:[%s2305_s14 + $0x1d0] sm:$0xf]  ;;  %v352_v59 = vld [vmem:[%s2305_s14 + $0x1d8] sm:$0xf] }
  0x45   : > { %349 = vst [vmem:[%s2310_s15 + $0xe4] sm:$0xf] %v348_v57  ;;  %351 = vst [vmem:[%s2310_s15 + $0xe8] sm:$0xf] %v350_v58  ;;  %v354_v60 = vld [vmem:[%s2305_s14 + $0x1e0] sm:$0xf] }
  0x46   : > { %353 = vst [vmem:[%s2310_s15 + $0xec] sm:$0xf] %v352_v59  ;;  %v356_v61 = vld [vmem:[%s2305_s14 + $0x1e8] sm:$0xf]  ;;  %v358_v62 = vld [vmem:[%s2305_s14 + $0x1f0] sm:$0xf] }
  0x47   : > { %355 = vst [vmem:[%s2310_s15 + $0xf0] sm:$0xf] %v354_v60  ;;  %357 = vst [vmem:[%s2310_s15 + $0xf4] sm:$0xf] %v356_v61  ;;  %v360_v63 = vld [vmem:[%s2305_s14 + $0x1f8] sm:$0xf] }
  0x48   : > { %359 = vst [vmem:[%s2310_s15 + $0xf8] sm:$0xf] %v358_v62  ;;  %v362_v0 = vld [vmem:[%s2305_s14 + $0x200] sm:$0xf]  ;;  %v364_v1 = vld [vmem:[%s2305_s14 + $0x208] sm:$0xf] }
  0x49   : > { %361 = vst [vmem:[%s2310_s15 + $0xfc] sm:$0xf] %v360_v63  ;;  %363 = vst [vmem:[%s2310_s15 + $0x100] sm:$0xf] %v362_v0  ;;  %v366_v2 = vld [vmem:[%s2305_s14 + $0x210] sm:$0xf] }
  0x4a   : > { %365 = vst [vmem:[%s2310_s15 + $0x104] sm:$0xf] %v364_v1  ;;  %v368_v3 = vld [vmem:[%s2305_s14 + $0x218] sm:$0xf]  ;;  %v370_v4 = vld [vmem:[%s2305_s14 + $0x220] sm:$0xf] }
  0x4b   : > { %367 = vst [vmem:[%s2310_s15 + $0x108] sm:$0xf] %v366_v2  ;;  %369 = vst [vmem:[%s2310_s15 + $0x10c] sm:$0xf] %v368_v3  ;;  %v372_v5 = vld [vmem:[%s2305_s14 + $0x228] sm:$0xf] }
  0x4c   : > { %371 = vst [vmem:[%s2310_s15 + $0x110] sm:$0xf] %v370_v4  ;;  %v374_v6 = vld [vmem:[%s2305_s14 + $0x230] sm:$0xf]  ;;  %v376_v7 = vld [vmem:[%s2305_s14 + $0x238] sm:$0xf] }
  0x4d   : > { %373 = vst [vmem:[%s2310_s15 + $0x114] sm:$0xf] %v372_v5  ;;  %375 = vst [vmem:[%s2310_s15 + $0x118] sm:$0xf] %v374_v6  ;;  %v378_v8 = vld [vmem:[%s2305_s14 + $0x240] sm:$0xf] }
  0x4e   : > { %377 = vst [vmem:[%s2310_s15 + $0x11c] sm:$0xf] %v376_v7  ;;  %v380_v9 = vld [vmem:[%s2305_s14 + $0x248] sm:$0xf]  ;;  %v382_v10 = vld [vmem:[%s2305_s14 + $0x250] sm:$0xf] }
  0x4f   : > { %379 = vst [vmem:[%s2310_s15 + $0x120] sm:$0xf] %v378_v8  ;;  %381 = vst [vmem:[%s2310_s15 + $0x124] sm:$0xf] %v380_v9  ;;  %v384_v11 = vld [vmem:[%s2305_s14 + $0x258] sm:$0xf] }
  0x50   : > { %383 = vst [vmem:[%s2310_s15 + $0x128] sm:$0xf] %v382_v10  ;;  %v386_v12 = vld [vmem:[%s2305_s14 + $0x260] sm:$0xf]  ;;  %v388_v13 = vld [vmem:[%s2305_s14 + $0x268] sm:$0xf] }
  0x51   : > { %385 = vst [vmem:[%s2310_s15 + $0x12c] sm:$0xf] %v384_v11  ;;  %387 = vst [vmem:[%s2310_s15 + $0x130] sm:$0xf] %v386_v12  ;;  %v390_v14 = vld [vmem:[%s2305_s14 + $0x270] sm:$0xf] }
  0x52   : > { %389 = vst [vmem:[%s2310_s15 + $0x134] sm:$0xf] %v388_v13  ;;  %v392_v15 = vld [vmem:[%s2305_s14 + $0x278] sm:$0xf]  ;;  %v394_v16 = vld [vmem:[%s2305_s14 + $0x280] sm:$0xf] }
  0x53   : > { %391 = vst [vmem:[%s2310_s15 + $0x138] sm:$0xf] %v390_v14  ;;  %393 = vst [vmem:[%s2310_s15 + $0x13c] sm:$0xf] %v392_v15  ;;  %v396_v17 = vld [vmem:[%s2305_s14 + $0x288] sm:$0xf] }
  0x54   : > { %395 = vst [vmem:[%s2310_s15 + $0x140] sm:$0xf] %v394_v16  ;;  %v398_v18 = vld [vmem:[%s2305_s14 + $0x290] sm:$0xf]  ;;  %v400_v19 = vld [vmem:[%s2305_s14 + $0x298] sm:$0xf] }
  0x55   : > { %397 = vst [vmem:[%s2310_s15 + $0x144] sm:$0xf] %v396_v17  ;;  %399 = vst [vmem:[%s2310_s15 + $0x148] sm:$0xf] %v398_v18  ;;  %v402_v20 = vld [vmem:[%s2305_s14 + $0x2a0] sm:$0xf] }
  0x56   : > { %401 = vst [vmem:[%s2310_s15 + $0x14c] sm:$0xf] %v400_v19  ;;  %v404_v21 = vld [vmem:[%s2305_s14 + $0x2a8] sm:$0xf]  ;;  %v406_v22 = vld [vmem:[%s2305_s14 + $0x2b0] sm:$0xf] }
  0x57   : > { %403 = vst [vmem:[%s2310_s15 + $0x150] sm:$0xf] %v402_v20  ;;  %405 = vst [vmem:[%s2310_s15 + $0x154] sm:$0xf] %v404_v21  ;;  %v408_v23 = vld [vmem:[%s2305_s14 + $0x2b8] sm:$0xf] }
  0x58   : > { %407 = vst [vmem:[%s2310_s15 + $0x158] sm:$0xf] %v406_v22  ;;  %v410_v24 = vld [vmem:[%s2305_s14 + $0x2c0] sm:$0xf]  ;;  %v412_v25 = vld [vmem:[%s2305_s14 + $0x2c8] sm:$0xf] }
  0x59   : > { %409 = vst [vmem:[%s2310_s15 + $0x15c] sm:$0xf] %v408_v23  ;;  %411 = vst [vmem:[%s2310_s15 + $0x160] sm:$0xf] %v410_v24  ;;  %v414_v26 = vld [vmem:[%s2305_s14 + $0x2d0] sm:$0xf] }
  0x5a   : > { %413 = vst [vmem:[%s2310_s15 + $0x164] sm:$0xf] %v412_v25  ;;  %v416_v27 = vld [vmem:[%s2305_s14 + $0x2d8] sm:$0xf]  ;;  %v418_v28 = vld [vmem:[%s2305_s14 + $0x2e0] sm:$0xf] }
  0x5b   : > { %415 = vst [vmem:[%s2310_s15 + $0x168] sm:$0xf] %v414_v26  ;;  %417 = vst [vmem:[%s2310_s15 + $0x16c] sm:$0xf] %v416_v27  ;;  %v420_v29 = vld [vmem:[%s2305_s14 + $0x2e8] sm:$0xf] }
  0x5c   : > { %419 = vst [vmem:[%s2310_s15 + $0x170] sm:$0xf] %v418_v28  ;;  %v422_v30 = vld [vmem:[%s2305_s14 + $0x2f0] sm:$0xf]  ;;  %v424_v31 = vld [vmem:[%s2305_s14 + $0x2f8] sm:$0xf] }
  0x5d   : > { %421 = vst [vmem:[%s2310_s15 + $0x174] sm:$0xf] %v420_v29  ;;  %423 = vst [vmem:[%s2310_s15 + $0x178] sm:$0xf] %v422_v30  ;;  %v426_v32 = vld [vmem:[%s2305_s14 + $0x300] sm:$0xf] }
  0x5e   : > { %425 = vst [vmem:[%s2310_s15 + $0x17c] sm:$0xf] %v424_v31  ;;  %v428_v33 = vld [vmem:[%s2305_s14 + $0x308] sm:$0xf]  ;;  %v430_v34 = vld [vmem:[%s2305_s14 + $0x310] sm:$0xf] }
  0x5f   : > { %427 = vst [vmem:[%s2310_s15 + $0x180] sm:$0xf] %v426_v32  ;;  %429 = vst [vmem:[%s2310_s15 + $0x184] sm:$0xf] %v428_v33  ;;  %v432_v35 = vld [vmem:[%s2305_s14 + $0x318] sm:$0xf] }
  0x60   : > { %431 = vst [vmem:[%s2310_s15 + $0x188] sm:$0xf] %v430_v34  ;;  %v434_v36 = vld [vmem:[%s2305_s14 + $0x320] sm:$0xf]  ;;  %v436_v37 = vld [vmem:[%s2305_s14 + $0x328] sm:$0xf] }
  0x61   : > { %433 = vst [vmem:[%s2310_s15 + $0x18c] sm:$0xf] %v432_v35  ;;  %435 = vst [vmem:[%s2310_s15 + $0x190] sm:$0xf] %v434_v36  ;;  %v438_v38 = vld [vmem:[%s2305_s14 + $0x330] sm:$0xf] }
  0x62   : > { %437 = vst [vmem:[%s2310_s15 + $0x194] sm:$0xf] %v436_v37  ;;  %v440_v39 = vld [vmem:[%s2305_s14 + $0x338] sm:$0xf]  ;;  %v442_v40 = vld [vmem:[%s2305_s14 + $0x340] sm:$0xf] }
  0x63   : > { %439 = vst [vmem:[%s2310_s15 + $0x198] sm:$0xf] %v438_v38  ;;  %441 = vst [vmem:[%s2310_s15 + $0x19c] sm:$0xf] %v440_v39  ;;  %v444_v41 = vld [vmem:[%s2305_s14 + $0x348] sm:$0xf] }
  0x64   : > { %443 = vst [vmem:[%s2310_s15 + $0x1a0] sm:$0xf] %v442_v40  ;;  %v446_v42 = vld [vmem:[%s2305_s14 + $0x350] sm:$0xf]  ;;  %v448_v43 = vld [vmem:[%s2305_s14 + $0x358] sm:$0xf] }
  0x65   : > { %445 = vst [vmem:[%s2310_s15 + $0x1a4] sm:$0xf] %v444_v41  ;;  %447 = vst [vmem:[%s2310_s15 + $0x1a8] sm:$0xf] %v446_v42  ;;  %v450_v44 = vld [vmem:[%s2305_s14 + $0x360] sm:$0xf] }
  0x66   : > { %449 = vst [vmem:[%s2310_s15 + $0x1ac] sm:$0xf] %v448_v43  ;;  %v452_v45 = vld [vmem:[%s2305_s14 + $0x368] sm:$0xf]  ;;  %v454_v46 = vld [vmem:[%s2305_s14 + $0x370] sm:$0xf] }
  0x67   : > { %451 = vst [vmem:[%s2310_s15 + $0x1b0] sm:$0xf] %v450_v44  ;;  %453 = vst [vmem:[%s2310_s15 + $0x1b4] sm:$0xf] %v452_v45  ;;  %v456_v47 = vld [vmem:[%s2305_s14 + $0x378] sm:$0xf] }
  0x68   : > { %455 = vst [vmem:[%s2310_s15 + $0x1b8] sm:$0xf] %v454_v46  ;;  %v458_v48 = vld [vmem:[%s2305_s14 + $0x380] sm:$0xf]  ;;  %v460_v49 = vld [vmem:[%s2305_s14 + $0x388] sm:$0xf] }
  0x69   : > { %457 = vst [vmem:[%s2310_s15 + $0x1bc] sm:$0xf] %v456_v47  ;;  %459 = vst [vmem:[%s2310_s15 + $0x1c0] sm:$0xf] %v458_v48  ;;  %v462_v50 = vld [vmem:[%s2305_s14 + $0x390] sm:$0xf] }
  0x6a   : > { %461 = vst [vmem:[%s2310_s15 + $0x1c4] sm:$0xf] %v460_v49  ;;  %v464_v51 = vld [vmem:[%s2305_s14 + $0x398] sm:$0xf]  ;;  %v466_v52 = vld [vmem:[%s2305_s14 + $0x3a0] sm:$0xf] }
  0x6b   : > { %463 = vst [vmem:[%s2310_s15 + $0x1c8] sm:$0xf] %v462_v50  ;;  %465 = vst [vmem:[%s2310_s15 + $0x1cc] sm:$0xf] %v464_v51  ;;  %v468_v53 = vld [vmem:[%s2305_s14 + $0x3a8] sm:$0xf] }
  0x6c   : > { %467 = vst [vmem:[%s2310_s15 + $0x1d0] sm:$0xf] %v466_v52  ;;  %v470_v54 = vld [vmem:[%s2305_s14 + $0x3b0] sm:$0xf]  ;;  %v472_v55 = vld [vmem:[%s2305_s14 + $0x3b8] sm:$0xf] }
  0x6d   : > { %469 = vst [vmem:[%s2310_s15 + $0x1d4] sm:$0xf] %v468_v53  ;;  %471 = vst [vmem:[%s2310_s15 + $0x1d8] sm:$0xf] %v470_v54  ;;  %v474_v56 = vld [vmem:[%s2305_s14 + $0x3c0] sm:$0xf] }
  0x6e   : > { %473 = vst [vmem:[%s2310_s15 + $0x1dc] sm:$0xf] %v472_v55  ;;  %v476_v57 = vld [vmem:[%s2305_s14 + $0x3c8] sm:$0xf]  ;;  %v478_v58 = vld [vmem:[%s2305_s14 + $0x3d0] sm:$0xf] }
  0x6f   : > { %475 = vst [vmem:[%s2310_s15 + $0x1e0] sm:$0xf] %v474_v56  ;;  %477 = vst [vmem:[%s2310_s15 + $0x1e4] sm:$0xf] %v476_v57  ;;  %v480_v59 = vld [vmem:[%s2305_s14 + $0x3d8] sm:$0xf] }
  0x70   : > { %479 = vst [vmem:[%s2310_s15 + $0x1e8] sm:$0xf] %v478_v58  ;;  %v482_v60 = vld [vmem:[%s2305_s14 + $0x3e0] sm:$0xf]  ;;  %v484_v61 = vld [vmem:[%s2305_s14 + $0x3e8] sm:$0xf] }
  0x71   : > { %481 = vst [vmem:[%s2310_s15 + $0x1ec] sm:$0xf] %v480_v59  ;;  %483 = vst [vmem:[%s2310_s15 + $0x1f0] sm:$0xf] %v482_v60  ;;  %v486_v62 = vld [vmem:[%s2305_s14 + $0x3f0] sm:$0xf] }
  0x72   : > { %485 = vst [vmem:[%s2310_s15 + $0x1f4] sm:$0xf] %v484_v61  ;;  %v488_v63 = vld [vmem:[%s2305_s14 + $0x3f8] sm:$0xf]  ;;  %487 = vst [vmem:[%s2310_s15 + $0x1f8] sm:$0xf] %v486_v62 }
  0x73   : > { %489 = vst [vmem:[%s2310_s15 + $0x1fc] sm:$0xf] %v488_v63 }
  0x74 PF: > { %p1807_p7 = scmp.ge.s32.totalorder %s2210_s24, 1  ;;  %p782_p8 = scmp.lt.s32.totalorder %s2210_s24, 9 }
  0x76   : > { %p783_p9 = pnand %p1807_p7, %p782_p8 }
  0x77   : > { %s789_s16 = sand.u32 (!%p783_p9), 1, %s2186_s18   ;;  %s1809_s17 = sshll.u32 (!%p783_p9), %s2194_s20, 3 }
  0x78   : > { %786 = sbr.rel (%p783_p9) target bundleno = 656 (0x290), region = 77  ;;  %s1808_s27 = sshll.u32 (!%p783_p9), %s789_s16, 9 }
  0x79   : > { %p829_p10 = scmp.lt.s32.totalorder (!%p783_p9), %s1809_s17, 31  ;;  %p835_p11 = scmp.lt.s32.totalorder (!%p783_p9), %s2198_s21, 1 }
  0x7a   : > { %s1811_s30 = sshll.u32 (!%p783_p9), %s2198_s21, 4  ;;  %p1814_p13 = scmp.ne.s32.totalorder (!%p783_p9), %s2194_s20, 0 }
  0x7b   : > { %p839_p12 = scmp.lt.s32.totalorder (!%p783_p9), %s1811_s30, 31 }
  0x7f   : > { %s2729_s17 = smov (!%p829_p10, %s1809_s17), 31  ;;  %s2731_s30 = smov (!%p839_p12, %s1811_s30), 31 }
  0x80   : > { %s2571_s28 = scalar_select %p835_p11, %s2198_s21, 1 }
  0x81   : > { %s1810_s29 = sshll.u32 %s2729_s17, 2  ;;  %s1812_s16 = sshll.u32 %s2731_s30, 2  ;;  %v2212_v0 = vmov (!%p1814_p13), 0.0  }
  0x82   : > { %s2577_s9 = scalar_lea.vmem %s2705_s0, %s1810_s29  ;;  %s837_s18 = scalar_lea.vmem %s2707_s2, %s2571_s28  ;;  %853 = vst [vmem:[#allocation2] sm:$0xff] (!%p1814_p13), %v2212_v0 }
  0x83   : > { %s1813_s12 = sshll.u32 %s2571_s28, 3  ;;  %s2592_s26 = scalar_lea.vmem %s2708_s3, %s1812_s16 }
  0x84   : > { %s2587_s15 = scalar_lea.vmem %s2710_s5, %s1813_s12  ;;  %s2594_s29 = scalar_lea.vmem [#allocation3], %s1808_s27 }
  0x85   : > { %852 = sbr.rel (%p1814_p13) target bundleno = 140 (0x8c), region = 85 }
  0x8c PF: > { %v2076_v1 = vld [vmem:[%s2594_s29 + $0x40] sm:$0xff]   ;;  %v2080_v5 = vld [vmem:[%s2594_s29 + $0x48] sm:$0xff]   ;;  %v2084_v9 = vld [vmem:[%s2594_s29 + $0x50] sm:$0xff]   ;;  %p1887_p0 = scmp.ne.s32.totalorder %s2194_s20, 3 }
  0x8d   : > { %v2077_v2 = vld [vmem:[%s2594_s29 + $0xc0] sm:$0xff]   ;;  %1900 = vmatprep.subr.bf16.mxu0 %v2076_v1  ;;  %v2081_v6 = vld [vmem:[%s2594_s29 + $0xc8] sm:$0xff]   ;;  %v2085_v10 = vld [vmem:[%s2594_s29 + $0xd0] sm:$0xff]   ;;  %vm2214_vm0 = vmmov (!%p1887_p0), 0   ;;  %p1592_p1 = scmp.eq.s32.totalorder (!%p1887_p0), %s2198_s21, 0  ;;  %vm1692_vm2 = vcmask (!%p1887_p0), 80896  }
  0x8e   : > { %v2078_v3 = vld [vmem:[%s2594_s29] sm:$0xff]   ;;  %1922 = vmatprep.subr.bf16.mxu1 %v2077_v2  ;;  %v2082_v7 = vld [vmem:[%s2594_s29 + $0x8] sm:$0xff]   ;;  %v2086_v11 = vld [vmem:[%s2594_s29 + $0x10] sm:$0xff]  }
  0x8f   : > { %v2079_v4 = vld [vmem:[%s2594_s29 + $0x80] sm:$0xff]   ;;  %1901 = vmatpush3.bf16.msra.mxu0 %v2078_v3  ;;  %v2083_v8 = vld [vmem:[%s2594_s29 + $0x88] sm:$0xff]   ;;  %v2087_v12 = vld [vmem:[%s2594_s29 + $0x90] sm:$0xff]  }
  0x90   : > { %1923 = vmatpush3.bf16.msra.mxu1 %v2079_v4  ;;  %1902 = vmatprep.subr.bf16.mxu0 %v2080_v5  ;;  %v2088_v13 = vld [vmem:[%s2594_s29 + $0x58] sm:$0xff]   ;;  %v2092_v17 = vld [vmem:[%s2594_s29 + $0x60] sm:$0xff]   ;;  %v2096_v21 = vld [vmem:[%s2594_s29 + $0x68] sm:$0xff]  }
  0x91   : > { %1924 = vmatprep.subr.bf16.mxu1 %v2081_v6  ;;  %v2089_v14 = vld [vmem:[%s2594_s29 + $0xd8] sm:$0xff]   ;;  %v2093_v18 = vld [vmem:[%s2594_s29 + $0xe0] sm:$0xff]   ;;  %v2097_v22 = vld [vmem:[%s2594_s29 + $0xe8] sm:$0xff]  }
  0x92   : > { %v2090_v15 = vld [vmem:[%s2594_s29 + $0x18] sm:$0xff]   ;;  %v2094_v19 = vld [vmem:[%s2594_s29 + $0x20] sm:$0xff]   ;;  %v2098_v23 = vld [vmem:[%s2594_s29 + $0x28] sm:$0xff]  }
  0x93   : > { %1903 = vmatpush3.bf16.msra.mxu0 %v2082_v7  ;;  %v2091_v16 = vld [vmem:[%s2594_s29 + $0x98] sm:$0xff]   ;;  %v2095_v20 = vld [vmem:[%s2594_s29 + $0xa0] sm:$0xff]   ;;  %v2099_v24 = vld [vmem:[%s2594_s29 + $0xa8] sm:$0xff]  }
  0x94   : > { %1925 = vmatpush3.bf16.msra.mxu1 %v2083_v8  ;;  %1904 = vmatprep.subr.bf16.mxu0 %v2084_v9  ;;  %v2100_v25 = vld [vmem:[%s2594_s29 + $0x70] sm:$0xff]   ;;  %v2104_v29 = vld [vmem:[%s2594_s29 + $0x78] sm:$0xff]   ;;  %v856_v34 = vld [vmem:[%s2577_s9 + $0x8] sm:$0xff] }
  0x95   : > { %1926 = vmatprep.subr.bf16.mxu1 %v2085_v10  ;;  %v2101_v26 = vld [vmem:[%s2594_s29 + $0xf0] sm:$0xff]   ;;  %v2105_v30 = vld [vmem:[%s2594_s29 + $0xf8] sm:$0xff]   ;;  %v1817_v37 = vcombine.low %v856_v34, %v856_v34  ;;  %v1818_v38 = vcombine.high %v856_v34, %v856_v34  ;;  %v2112_v39 = vld [vmem:[%s2594_s29 + $0x140] sm:$0xff]  }
  0x96   : > { %v2102_v27 = vld [vmem:[%s2594_s29 + $0x30] sm:$0xff]   ;;  %v2106_v31 = vld [vmem:[%s2594_s29 + $0x38] sm:$0xff]   ;;  %v2113_v40 = vld [vmem:[%s2594_s29 + $0x1c0] sm:$0xff]  }
  0x97   : > { %1905 = vmatpush3.bf16.msra.mxu0 %v2086_v11  ;;  %v2103_v28 = vld [vmem:[%s2594_s29 + $0xb0] sm:$0xff]   ;;  %v2107_v32 = vld [vmem:[%s2594_s29 + $0xb8] sm:$0xff]   ;;  %1471 = vmatprep.mubr.bf16.mxu1 %v1818_v38  ;;  %v2114_v41 = vld [vmem:[%s2594_s29 + $0x100] sm:$0xff]  }
  0x98   : > { %1927 = vmatpush3.bf16.msra.mxu1 %v2087_v12  ;;  %1906 = vmatprep.subr.bf16.mxu0 %v2088_v13  ;;  %v855_v33 = vld [vmem:[%s2577_s9] sm:$0xff]  ;;  %v2115_v42 = vld [vmem:[%s2594_s29 + $0x180] sm:$0xff]   ;;  %v2116_v43 = vld [vmem:[%s2594_s29 + $0x148] sm:$0xff]  }
  0x99   : > { %1928 = vmatprep.subr.bf16.mxu1 %v2089_v14  ;;  %v1815_v35 = vcombine.low %v855_v33, %v855_v33  ;;  %v1816_v36 = vcombine.high %v855_v33, %v855_v33  ;;  %v2117_v44 = vld [vmem:[%s2594_s29 + $0x1c8] sm:$0xff]   ;;  %v2120_v47 = vld [vmem:[%s2594_s29 + $0x150] sm:$0xff]   ;;  %v2124_v51 = vld [vmem:[%s2594_s29 + $0x158] sm:$0xff]  }
  0x9a   : > { %v2118_v45 = vld [vmem:[%s2594_s29 + $0x108] sm:$0xff]   ;;  %v2121_v48 = vld [vmem:[%s2594_s29 + $0x1d0] sm:$0xff]   ;;  %v2125_v52 = vld [vmem:[%s2594_s29 + $0x1d8] sm:$0xff]  }
  0x9b   : > { %1907 = vmatpush3.bf16.msra.mxu0 %v2090_v15  ;;  %1431 = vmatprep.mubr.bf16.mxu0 %v1816_v36  ;;  %v2119_v46 = vld [vmem:[%s2594_s29 + $0x188] sm:$0xff]   ;;  %v2122_v49 = vld [vmem:[%s2594_s29 + $0x110] sm:$0xff]   ;;  %v2126_v53 = vld [vmem:[%s2594_s29 + $0x118] sm:$0xff]  }
  0x9c   : > { %1929 = vmatpush3.bf16.msra.mxu1 %v2091_v16  ;;  %1908 = vmatprep.subr.bf16.mxu0 %v2092_v17  ;;  %v2123_v50 = vld [vmem:[%s2594_s29 + $0x190] sm:$0xff]   ;;  %v2127_v54 = vld [vmem:[%s2594_s29 + $0x198] sm:$0xff]   ;;  %v2128_v55 = vld [vmem:[%s2594_s29 + $0x160] sm:$0xff]  }
  0x9d   : > { %1930 = vmatprep.subr.bf16.mxu1 %v2093_v18  ;;  %v2129_v56 = vld [vmem:[%s2594_s29 + $0x1e0] sm:$0xff]   ;;  %v2132_v59 = vld [vmem:[%s2594_s29 + $0x168] sm:$0xff]   ;;  %v2136_v63 = vld [vmem:[%s2594_s29 + $0x170] sm:$0xff]  }
  0x9e   : > { %v2130_v57 = vld [vmem:[%s2594_s29 + $0x120] sm:$0xff]   ;;  %v2133_v60 = vld [vmem:[%s2594_s29 + $0x1e8] sm:$0xff]   ;;  %v2137_v0 = vld [vmem:[%s2594_s29 + $0x1f0] sm:$0xff]  }
  0x9f   : > { %1909 = vmatpush3.bf16.msra.mxu0 %v2094_v19  ;;  %v2131_v58 = vld [vmem:[%s2594_s29 + $0x1a0] sm:$0xff]   ;;  %v2134_v61 = vld [vmem:[%s2594_s29 + $0x128] sm:$0xff]   ;;  %v2138_v1 = vld [vmem:[%s2594_s29 + $0x130] sm:$0xff]  }
  0xa0   : > { %1931 = vmatpush3.bf16.msra.mxu1 %v2095_v20  ;;  %1910 = vmatprep.subr.bf16.mxu0 %v2096_v21  ;;  %v2135_v62 = vld [vmem:[%s2594_s29 + $0x1a8] sm:$0xff]   ;;  %v2139_v2 = vld [vmem:[%s2594_s29 + $0x1b0] sm:$0xff]   ;;  %v2140_v3 = vld [vmem:[%s2594_s29 + $0x178] sm:$0xff]  }
  0xa1   : > { %1932 = vmatprep.subr.bf16.mxu1 %v2097_v22  ;;  %v2141_v4 = vld [vmem:[%s2594_s29 + $0x1f8] sm:$0xff]   ;;  %v857_v7 = vld [vmem:[%s2577_s9 + $0x10] sm:$0xff]  ;;  %v858_v10 = vld [vmem:[%s2577_s9 + $0x18] sm:$0xff] }
  0xa2   : > { %v2142_v5 = vld [vmem:[%s2594_s29 + $0x138] sm:$0xff]   ;;  %v1819_v8 = vcombine.low %v857_v7, %v857_v7  ;;  %v1820_v9 = vcombine.high %v857_v7, %v857_v7  ;;  %v1821_v11 = vcombine.low %v858_v10, %v858_v10  ;;  %v1822_v12 = vcombine.high %v858_v10, %v858_v10 }
  0xa3   : > { %1911 = vmatpush3.bf16.msra.mxu0 %v2098_v23  ;;  %v2143_v6 = vld [vmem:[%s2594_s29 + $0x1b8] sm:$0xff]  }
  0xa4   : > { %1933 = vmatpush3.bf16.msra.mxu1 %v2099_v24  ;;  %1912 = vmatprep.subr.bf16.mxu0 %v2100_v25  ;;  %v2148_v38 = vld [vmem:[%s2592_s26] sm:$0xff] (!%p1887_p0)  }
  0xa5   : > { %1934 = vmatprep.subr.bf16.mxu1 %v2101_v26 }
  0xa7   : > { %1913 = vmatpush3.bf16.msra.mxu0 %v2102_v27 }
  0xa8   : > { %1935 = vmatpush3.bf16.msra.mxu1 %v2103_v28  ;;  %1914 = vmatprep.subr.bf16.mxu0 %v2104_v29 }
  0xa9   : > { %1936 = vmatprep.subr.bf16.mxu1 %v2105_v30 }
  0xab   : > { %1915 = vmatpush3.bf16.msra.mxu0 %v2106_v31 }
  0xac   : > { %1937 = vmatpush3.bf16.msra.mxu1 %v2107_v32  ;;  %1944 = vmatprep.subr.bf16.mxu0 %v2112_v39  ;;  %v2213_v39 = vmov (!%p1887_p0), 0.0  }
  0xad   : > { %1966 = vmatprep.subr.bf16.mxu1 %v2113_v40  ;;  %v2149_v40 = vld [vmem:[%s2592_s26 + $0x8] sm:$0xff] (!%p1887_p0)  }
  0xae   : > { %1432 = vmatmul.mubr.bf16.vlgmr.msra.gmra.mrb[0].mxu0 %v1815_v35  ;;  %v854_v35 = vld [vmem:[#allocation2] sm:$0xff] }
  0xaf   : > { %1472 = vmatmul.mubr.bf16.vlgmr.msra.gmra.mrb[0].mxu1 %v1817_v37  ;;  %1945 = vmatpush3.bf16.msra.mxu0 %v2114_v41  ;;  %v2150_v41 = vld [vmem:[%s2592_s26 + $0x10] sm:$0xff] (!%p1887_p0)  }
  0xb0   : > { %1967 = vmatpush3.bf16.msra.mxu1 %v2115_v42  ;;  %1946 = vmatprep.subr.bf16.mxu0 %v2116_v43  ;;  %v2151_v42 = vld [vmem:[%s2592_s26 + $0x18] sm:$0xff] (!%p1887_p0)   ;;  %v2152_v43 = vld [vmem:[%s2592_s26 + $0x20] sm:$0xff] (!%p1887_p0)  }
  0xb1   : > { %1968 = vmatprep.subr.bf16.mxu1 %v2117_v44  ;;  %1511 = vmatprep.mubr.bf16.mxu0 %v1820_v9  ;;  %v2153_v44 = vld [vmem:[%s2592_s26 + $0x28] sm:$0xff] (!%p1887_p0)  }
  0xb2   : > { %1551 = vmatprep.mubr.bf16.mxu1 %v1822_v12 }
  0xb3   : > { %1947 = vmatpush3.bf16.msra.mxu0 %v2118_v45 }
  0xb4   : > { %1969 = vmatpush3.bf16.msra.mxu1 %v2119_v46  ;;  %1948 = vmatprep.subr.bf16.mxu0 %v2120_v47  ;;  %v1888_v46 = vld [vmem:[%s837_s18] ss:$0 sm:$0xff] (!%p1887_p0) }
  0xb5   : > { %1970 = vmatprep.subr.bf16.mxu1 %v2121_v48  ;;  %v2154_v48 = vld [vmem:[%s2592_s26 + $0x30] sm:$0xff] (!%p1887_p0)  }
  0xb7   : > { %1949 = vmatpush3.bf16.msra.mxu0 %v2122_v49 }
  0xb8   : > { %1971 = vmatpush3.bf16.msra.mxu1 %v2123_v50  ;;  %1950 = vmatprep.subr.bf16.mxu0 %v2124_v51  ;;  %v2155_v50 = vld [vmem:[%s2592_s26 + $0x38] sm:$0xff] (!%p1887_p0)  }
  0xb9   : > { %1972 = vmatprep.subr.bf16.mxu1 %v2125_v52  ;;  %v1599_v52 = vlaneseq (!%p1887_p0) }
  0xbb   : > { %1951 = vmatpush3.bf16.msra.mxu0 %v2126_v53 }
  0xbc   : > { %1973 = vmatpush3.bf16.msra.mxu1 %v2127_v54  ;;  %1952 = vmatprep.subr.bf16.mxu0 %v2128_v55  ;;  %v1600_v54 = vshrl.u32 (!%p1887_p0), %v1599_v52, 7  ;;  %v1593_v55 = vld [vmem:[%s2709_s4] sm:$0x1] (!%p1887_p0) }
  0xbd   : > { %1974 = vmatprep.subr.bf16.mxu1 %v2129_v56 }
  0xbe   : > { %v1601_v56 = vsub.s32 (!%p1887_p0), 0, %v1600_v54 }
  0xbf   : > { %1953 = vmatpush3.bf16.msra.mxu0 %v2130_v57 }
  0xc0   : > { %1975 = vmatpush3.bf16.msra.mxu1 %v2131_v58  ;;  %1954 = vmatprep.subr.bf16.mxu0 %v2132_v59 }
  0xc1   : > { %1976 = vmatprep.subr.bf16.mxu1 %v2133_v60 }
  0xc3   : > { %1955 = vmatpush3.bf16.msra.mxu0 %v2134_v61 }
  0xc4   : > { %1977 = vmatpush3.bf16.msra.mxu1 %v2135_v62  ;;  %1956 = vmatprep.subr.bf16.mxu0 %v2136_v63 }
  0xc5   : > { %1978 = vmatprep.subr.bf16.mxu1 %v2137_v0 }
  0xc7   : > { %1957 = vmatpush3.bf16.msra.mxu0 %v2138_v1 }
  0xc8   : > { %1979 = vmatpush3.bf16.msra.mxu1 %v2139_v2  ;;  %1958 = vmatprep.subr.bf16.mxu0 %v2140_v3 }
  0xc9   : > { %1980 = vmatprep.subr.bf16.mxu1 %v2141_v4 }
  0xcb   : > { %1959 = vmatpush3.bf16.msra.mxu0 %v2142_v5 }
  0xcc   : > { %1981 = vmatpush3.bf16.msra.mxu1 %v2143_v6  ;;  %1997 = vmatprep.subr.bf16.mxu0 (!%p1887_p0), %v2213_v39 }
  0xce   : > { %1512 = vmatmul.mubr.bf16.vlgmr.msra.gmra.mrb[4].mxu0 %v1819_v8 }
  0xcf   : > { %1552 = vmatmul.mubr.bf16.vlgmr.msra.gmra.mrb[4].mxu1 %v1821_v11  ;;  %1998 = vmatpush3.bf16.msra.mxu0 (!%p1887_p0), %v2148_v38 }
  0xd0   : > { %2013 = vmatprep.mubr.msk.bf16.mxu0 (!%p1887_p0), %vm2214_vm0, %v2213_v39  ;;  %1999 = vmatprep.subr.bf16.mxu0 (!%p1887_p0), %v2213_v39 }
  0xd3   : > { %2000 = vmatpush3.bf16.msra.mxu0 (!%p1887_p0), %v2149_v40 }
  0xd4   : > { %2001 = vmatprep.subr.bf16.mxu0 (!%p1887_p0), %v2213_v39 }
  0xd7   : > { %2002 = vmatpush3.bf16.msra.mxu0 (!%p1887_p0), %v2150_v41 }
  0xd8   : > { %2003 = vmatprep.subr.bf16.mxu0 (!%p1887_p0), %v2213_v39 }
  0xdb   : > { %2004 = vmatpush3.bf16.msra.mxu0 (!%p1887_p0), %v2151_v42 }
  0xdc   : > { %2005 = vmatprep.subr.bf16.mxu0 (!%p1887_p0), %v2213_v39 }
  0xdf   : > { %2006 = vmatpush3.bf16.msra.mxu0 (!%p1887_p0), %v2152_v43 }
  0xe0   : > { %2007 = vmatprep.subr.bf16.mxu0 (!%p1887_p0), %v2213_v39 }
  0xe3   : > { %2008 = vmatpush3.bf16.msra.mxu0 (!%p1887_p0), %v2153_v44 }
  0xe4   : > { %2009 = vmatprep.subr.bf16.mxu0 (!%p1887_p0), %v2213_v39 }
  0xe7   : > { %2010 = vmatpush3.bf16.msra.mxu0 (!%p1887_p0), %v2154_v48 }
  0xe8   : > { %2011 = vmatprep.subr.bf16.mxu0 (!%p1887_p0), %v2213_v39 }
  0xeb   : > { %2012 = vmatpush3.bf16.msra.mxu0 (!%p1887_p0), %v2155_v50 }
 0x181   : > { %v1916_v13 = vpop.f32.mrb[0].mxu0 }
 0x182   : > { %v1938_v14 = vpop.f32.mrb[0].mxu1  ;;  %v1917_v15 = vpop.f32.mrb[1].mxu0 }
 0x183   : > { %v1939_v16 = vpop.f32.mrb[1].mxu1  ;;  %v1918_v17 = vadd.f32 %v1917_v15, %v1916_v13  ;;  %v1919_v19 = vpop.f32.mrb[2].mxu0 }
 0x184   : > { %v1940_v18 = vadd.f32 %v1939_v16, %v1938_v14  ;;  %v1941_v20 = vpop.f32.mrb[2].mxu1  ;;  %v1920_v21 = vpop.f32.mrb[3].mxu0 }
 0x185   : > { %v1942_v22 = vpop.f32.mrb[3].mxu1 }
 0x186   : > { %v1474_v23 = vadd.f32 %v1940_v18, %v1918_v17 }
 0x1a1   : > { %v1960_v24 = vpop.f32.mrb[4].mxu0 }
 0x1a2   : > { %v1982_v25 = vpop.f32.mrb[4].mxu1  ;;  %v1961_v26 = vpop.f32.mrb[5].mxu0 }
 0x1a3   : > { %v1983_v27 = vpop.f32.mrb[5].mxu1  ;;  %v1962_v28 = vadd.f32 %v1961_v26, %v1960_v24  ;;  %v1963_v30 = vpop.f32.mrb[6].mxu0 }
 0x1a4   : > { %v1984_v29 = vadd.f32 %v1983_v27, %v1982_v25  ;;  %v1985_v31 = vpop.f32.mrb[6].mxu1  ;;  %v1964_v32 = vpop.f32.mrb[7].mxu0 }
 0x1a5   : > { %v1986_v33 = vpop.f32.mrb[7].mxu1  ;;  %v1514_v34 = vadd.f32 %v1962_v28, %v1474_v23  ;;  %1564 = sbr.rel (%p1887_p0) target bundleno = 656 (0x290), region = 89 }
 0x1a7   : > { %v1554_v36 = vadd.f32 %v1984_v29, %v1514_v34 }
 0x1a9   : > { %v1559_v37 = vadd.f32 %v1554_v36, %v854_v35 }
 0x1ab   : > { %1560 = vst [vmem:[#allocation2] sm:$0xff] %v1559_v37 }
 0x1ac   : > { %s1594_s27 = scalar_select %p1592_p1, 1, 0 }
 0x1ae   : > { %v1595_v53 = vstv %s1594_s27 }
 0x1af   : > { %vm1596_vm1 = vcmp.eq.s32.totalorder %v1595_v53, 1 }
 0x1b0   : > { %v1597_v57 = vsel %vm1596_vm1, %v1593_v55, 0.0 }
 0x1b1   : > { %v1602_v58 = vrot.slane %v1597_v57, %v1601_v56 }
 0x1b2   : > { %v1565_v45 = vld [vmem:[#allocation2] sm:$0xff] }
 0x1b3   : > { %v1573_v47 = vadd.f32 %v1888_v46, %v1565_v45 }
 0x1b5   : > { %v1574_v49 = vmax.f32 %v1573_v47, 0.0 }
 0x1b7   : > { %v1575_v51 = vpack.c.bf16 %v1574_v49, %v1574_v49 }
 0x1b9   : > { %2014 = vmatmul.mubr.bf16.vlgmr.msra.gmra.mrb[0].mxu0 %v1575_v51 }
 0x28c   : > { %v1686_v59 = vpop.f32.mrb[0].mxu0 }
 0x28d   : > { %v1687_v60 = vadd.f32 %v1686_v59, %v1602_v58  ;;  %v2015_v61 = vpop.f32.mrb[1].mxu0 }
 0x28e   : > { %v1689_v62 = vpop.f32.mrb[2].mxu0 }
 0x28f   : > { %1693 = vst.msk [vmem:[%s2587_s15] sm:$0xff] %vm1692_vm2, %v1687_v60  ;;  %v2016_v63 = vpop.f32.mrb[3].mxu0 }
 0x290 PF: > { %s15_s24 = sadd.s32 1, %s2210_s24   ;;  %s2715_s26 = sld [smem:[#allocation4_spill]] }
 0x291   : > { %p12_p2 = scmp.ge.s32.totalorder %s15_s24, 10   ;;  %s2716_s18 = smov %s2190_s19 }
 0x292   : > { %s2717_s19 = smov %s2296_s6  ;;  %s2718_s20 = smov %s2202_s22 }
 0x293   : > { %s2719_s21 = smov %s2206_s23  ;;  %s2720_s22 = smov %s2723_s25 }
 0x294   :  { %14 = sbr.rel (!%p12_p2) target bundleno = 6 (0x6), region = 133 }
 0x296   : > { %s2721_s23 = smov %s2715_s26 }

// kernel: cifarnet_forward.4
= control target key start
LH: loop header
LB: loop body
LE: loop exit
PB: predicated region body
PF: predicated region fallthrough
CT: control target
= control target key end

     0   :  { %s6003_s12 = smov 0   ;;  %s6926_s0 = inlined_call_operand.vmem [shape: bf16[2,4,9,9,32], index: 0, kind: input, shape index: {}]   ;;  %s6927_s1 = inlined_call_operand.vmem [shape: bf16[9,32,64], index: 1, kind: input, shape index: {}]   ;;  %s6928_s2 = inlined_call_operand.vmem [shape: f32[1,64], index: 2, kind: input, shape index: {}]   ;;  %s6929_s3 = inlined_call_operand.vmem [shape: bf16[2,8,8,64], index: 3, kind: output, shape index: {}]  }
   0x1 LB: > { %s4554_s13 = sadd.s32 4294967295, %s5981_s12   ;;  %p4558_p0 = scmp.ge.s32.totalorder %s5981_s12, 1  ;;  %s5981_s12 = sphi %s6003_s12, %s13_s12  }
   0x2   : > { %p137_p1 = scmp.lt.s32.totalorder %s5981_s12, 3 }
   0x4   : > { %p138_p2 = pnand %p4558_p0, %p137_p1 }
   0x5   : > { %v5905_v0 = vld [vmem:[%s6927_s1 + $0x10] sm:$0xff] (!%p138_p2)   ;;  %p161_p3 = scmp.lt.s32.totalorder (!%p138_p2), %s4554_s13, 1  ;;  %v5906_v1 = vld [vmem:[%s6927_s1 + $0x18] sm:$0xff] (!%p138_p2)   ;;  %v6023_v2 = vld [vmem:[%s6927_s1] sm:$0xff] (!%p138_p2)   ;;  %vm230_vm0 = vcmask (!%p138_p2), 261120   ;;  %vm4490_vm4 = vcmask (!%p138_p2), 519168  }
   0x6   : > { %141 = sbr.rel (%p138_p2) target bundleno = 541 (0x21d), region = 32  ;;  %5208 = vmatprep.subr.bf16.mxu0 (!%p138_p2), %v5905_v0  ;;  %5316 = vmatprep.subr.bf16.mxu1 (!%p138_p2), %v5905_v0  ;;  %vm433_vm1 = vsmask.f32 (!%p138_p2), 3328  ;;  %vm434_vm2 = vsmask.f32 (!%p138_p2), 7440  ;;  %v6033_v3 = vld [vmem:[%s6927_s1 + $0x8] sm:$0xff] (!%p138_p2)  }
   0x7   : > { %5209 = vmatpush3.bf16.msra.mxu0 (!%p138_p2), %v5905_v0  ;;  %5317 = vmatpush3.bf16.msra.mxu1 (!%p138_p2), %v5905_v0  ;;  %v6053_v7 = vld [vmem:[%s6927_s1 + $0x20] sm:$0xff] (!%p138_p2)   ;;  %vm6074_vm3 = vmor (!%p138_p2), %vm433_vm1, %vm434_vm2 }
   0x8   : > { %5210 = vmatprep.subr.bf16.mxu0 (!%p138_p2), %v5906_v1  ;;  %5318 = vmatprep.subr.bf16.mxu1 (!%p138_p2), %v5906_v1 }
   0xb   : > { %5211 = vmatpush3.bf16.msra.mxu0 (!%p138_p2), %v5906_v1  ;;  %5319 = vmatpush3.bf16.msra.mxu1 (!%p138_p2), %v5906_v1 }
   0xc   : > { %5220 = vmatprep.subr.bf16.mxu0 (!%p138_p2), %v6023_v2  ;;  %5328 = vmatprep.subr.bf16.mxu1 (!%p138_p2), %v6023_v2 }
   0xd   : > { %s6933_s13 = smov (!%p161_p3, %s4554_s13), 1 }
   0xe   : > { %s5896_s18 = smul.u32 288, %s6933_s13  ;;  %s4991_s10 = sshll.u32 %s6933_s13, 5 }
   0xf   : > { %s6905_s15 = scalar_lea.vmem %s6929_s3, %s4991_s10 }
  0x10   : > { %s6028_s23 = scalar_lea.vmem %s6926_s0, %s5896_s18 }
  0x11   : > { %v6036_v4 = vld [vmem:[%s6028_s23 + $0x48] ss:$8 sps:$4 sm:$0xff]   ;;  %v6039_v5 = vld [vmem:[%s6028_s23 + $0x58] ss:$8 sps:$4 sm:$0xff]   ;;  %v418_v9 = vld [vmem:[%s6028_s23 + $0x4] sm:$0x1] }
  0x12   : > { %5212 = vmatprep.mubr.msk.bf16.mxu0 %vm230_vm0, %v6036_v4  ;;  %v6046_v6 = vld [vmem:[%s6028_s23 + $0x68] ss:$8 sps:$4 sm:$0xff]   ;;  %v417_v8 = vld [vmem:[%s6028_s23] sm:$0xf]  ;;  %v420_v12 = vld [vmem:[%s6028_s23 + $0xc] sm:$0x1] }
  0x13   : > { %5213 = vmatmul.mubr.msk.bf16.vlgmr.msra.gmra.mrb[0].mxu0 %vm230_vm0, %v6039_v5  ;;  %v419_v10 = vld [vmem:[%s6028_s23 + $0x8] sm:$0xf]  ;;  %v6062_v11 = vld [vmem:[%s6028_s23 + $0x78] ss:$8 sps:$4 sm:$0xff]   ;;  %v437_v13 = vshrl.u32 %v417_v8, 16  ;;  %v440_v14 = vshll.u32 %v417_v8, 16 }
  0x14   : > { %5216 = vmatprep.mubr.msk.bf16.mxu0 %vm230_vm0, %v6046_v6  ;;  %5221 = vmatpush3.bf16.msra.mxu0 %v6023_v2  ;;  %v446_v15 = vshll.u32 %v418_v9, 16  ;;  %v451_v16 = vshrl.u32 %v419_v10, 16  ;;  %v454_v17 = vshll.u32 %v419_v10, 16  ;;  %v460_v18 = vshll.u32 %v420_v12, 16  ;;  %v421_v19 = vld [vmem:[%s6028_s23 + $0x10] sm:$0xf] }
  0x15   : > { %5222 = vmatprep.subr.bf16.mxu0 %v6033_v3  ;;  %v422_v20 = vld [vmem:[%s6028_s23 + $0x14] sm:$0x1]  ;;  %v439_v21 = vrot.slane %v437_v13, 4  ;;  %v442_v22 = vrot.slane %v440_v14, 5  ;;  %v423_v25 = vld [vmem:[%s6028_s23 + $0x18] sm:$0xf] }
  0x16   : > { %v448_v23 = vrot.slane %v446_v15, 5  ;;  %v453_v24 = vrot.slane %v451_v16, 4  ;;  %v456_v26 = vrot.slane %v454_v17, 5  ;;  %v462_v27 = vrot.slane %v460_v18, 5  ;;  %v424_v28 = vld [vmem:[%s6028_s23 + $0x1c] sm:$0x1] }
  0x17   : > { %v465_v29 = vshrl.u32 %v421_v19, 16  ;;  %v468_v30 = vshll.u32 %v421_v19, 16  ;;  %v443_v31 = vor.u32 %v442_v22, %v439_v21  ;;  %v474_v32 = vshll.u32 %v422_v20, 16  ;;  %v5913_v44 = vld [vmem:[%s6028_s23] ss:$8 sps:$4 sm:$0xff]  }
  0x18   : > { %5223 = vmatpush3.bf16.msra.mxu0 %v6033_v3  ;;  %v479_v33 = vshrl.u32 %v423_v25, 16  ;;  %v482_v34 = vshll.u32 %v423_v25, 16  ;;  %v457_v36 = vor.u32 %v456_v26, %v453_v24  ;;  %v488_v39 = vshll.u32 %v424_v28, 16  ;;  %v5914_v50 = vld [vmem:[%s6028_s23 + $0x10] ss:$8 sps:$4 sm:$0xff]   ;;  %v6105_v16 = vld [vmem:[%s6927_s1 + $0x28] sm:$0xff]  }
  0x19   : > { %5232 = vmatprep.subr.bf16.mxu0 %v6053_v7  ;;  %v467_v37 = vrot.slane %v465_v29, 4  ;;  %v470_v38 = vrot.slane %v468_v30, 5  ;;  %v444_v40 = vrot.slane %v443_v31, 4  ;;  %v476_v41 = vrot.slane %v474_v32, 5  ;;  %v425_v51 = vld [vmem:[%s6028_s23 + $0x20] sm:$0xf] }
  0x1a   : > { %v481_v42 = vrot.slane %v479_v33, 4  ;;  %v484_v43 = vrot.slane %v482_v34, 5  ;;  %v458_v45 = vrot.slane %v457_v36, 4  ;;  %v490_v47 = vrot.slane %v488_v39, 5  ;;  %v426_v52 = vld [vmem:[%s6028_s23 + $0x24] sm:$0x1] }
  0x1b   : > { %5217 = vmatmul.mubr.msk.bf16.gmra.mrb[4].mxu0 %vm230_vm0, %v6062_v11  ;;  %v471_v46 = vor.u32 %v470_v38, %v467_v37  ;;  %v449_v48 = vsel %vm6074_vm3, %v444_v40, %v448_v23  ;;  %v427_v55 = vld [vmem:[%s6028_s23 + $0x28] sm:$0xf]  ;;  %v428_v56 = vld [vmem:[%s6028_s23 + $0x2c] sm:$0x1]  ;;  %v493_v57 = vshrl.u32 %v425_v51, 16  ;;  %v496_v60 = vshll.u32 %v425_v51, 16 }
  0x1c   : > { %v485_v49 = vor.u32 %v484_v43, %v481_v42  ;;  %5224 = vmatprep.mubr.msk.bf16.mxu0 %vm230_vm0, %v5913_v44  ;;  %v463_v53 = vsel %vm6074_vm3, %v458_v45, %v462_v27  ;;  %v502_v61 = vshll.u32 %v426_v52, 16  ;;  %v429_v62 = vld [vmem:[%s6028_s23 + $0x30] sm:$0xf]  ;;  %v507_v1 = vshrl.u32 %v427_v55, 16  ;;  %v430_v9 = vld [vmem:[%s6028_s23 + $0x34] sm:$0x1] }
  0x1d   : > { %v472_v54 = vrot.slane %v471_v46, 4  ;;  %v6091_v58 = vcombine.low %v449_v48, %v463_v53  ;;  %v495_v0 = vrot.slane %v493_v57, 4  ;;  %v510_v8 = vshll.u32 %v427_v55, 16  ;;  %v431_v15 = vld [vmem:[%s6028_s23 + $0x38] sm:$0xf]  ;;  %v6120_v34 = vld [vmem:[%s6927_s1 + $0x30] sm:$0xff]  }
  0x1e   : > { %v486_v59 = vrot.slane %v485_v49, 4  ;;  %v498_v12 = vrot.slane %v496_v60, 5  ;;  %v504_v13 = vrot.slane %v502_v61, 5  ;;  %v516_v14 = vshll.u32 %v428_v56, 16  ;;  %v432_v20 = vld [vmem:[%s6028_s23 + $0x3c] sm:$0x1] }
  0x1f   : > { %v477_v63 = vsel %vm6074_vm3, %v472_v54, %v476_v41  ;;  %5320 = vmatprep.mubr.msk.bf16.mxu1 %vm230_vm0, %v6091_v58  ;;  %v509_v18 = vrot.slane %v507_v1, 4  ;;  %v512_v19 = vrot.slane %v510_v8, 5  ;;  %v521_v21 = vshrl.u32 %v429_v62, 16  ;;  %v5916_v33 = vld [vmem:[%s6028_s23 + $0x20] ss:$8 sps:$4 sm:$0xff]  }
  0x20   : > { %v491_v10 = vsel %vm6074_vm3, %v486_v59, %v490_v47  ;;  %v499_v22 = vor.u32 %v498_v12, %v495_v0  ;;  %v518_v23 = vrot.slane %v516_v14, 5  ;;  %v524_v24 = vshll.u32 %v429_v62, 16  ;;  %v5917_v42 = vld [vmem:[%s6028_s23 + $0x30] ss:$8 sps:$4 sm:$0xff]   ;;  %v4764_v45 = vld [vmem:[%s6028_s23 + $0x48] sm:$0xf] }
  0x21   : > { %v6107_v17 = vcombine.low %v477_v63, %v491_v10  ;;  %v530_v25 = vshll.u32 %v430_v9, 16  ;;  %v513_v26 = vor.u32 %v512_v19, %v509_v18  ;;  %v523_v27 = vrot.slane %v521_v21, 4  ;;  %v4765_v48 = vld [vmem:[%s6028_s23 + $0x4c] sm:$0x1]  ;;  %v4766_v49 = vld [vmem:[%s6028_s23 + $0x50] sm:$0xf] }
  0x22   : > { %v535_v28 = vshrl.u32 %v431_v15, 16  ;;  %v538_v29 = vshll.u32 %v431_v15, 16  ;;  %v500_v30 = vrot.slane %v499_v22, 4  ;;  %v526_v31 = vrot.slane %v524_v24, 5  ;;  %v4768_v56 = vld [vmem:[%s6028_s23 + $0x58] sm:$0xf] }
  0x23   : > { %5225 = vmatmul.mubr.msk.bf16.vlgmr.msra.gmra.mrb[0].mxu0 %vm230_vm0, %v5914_v50  ;;  %5321 = vmatmul.mubr.msk.bf16.vlgmr.msra.gmra.mrb[0].mxu1 %vm230_vm0, %v6107_v17  ;;  %v544_v32 = vshll.u32 %v432_v20, 16  ;;  %v514_v36 = vrot.slane %v513_v26, 4  ;;  %v532_v40 = vrot.slane %v530_v25, 5  ;;  %v1817_v50 = vshrl.u32 %v4764_v45, 16  ;;  %v4767_v59 = vld [vmem:[%s6028_s23 + $0x54] sm:$0x1] }
  0x24   : > { %5233 = vmatpush3.bf16.msra.mxu0 %v6053_v7  ;;  %5329 = vmatpush3.bf16.msra.mxu1 %v6023_v2  ;;  %v537_v37 = vrot.slane %v535_v28, 4  ;;  %v540_v38 = vrot.slane %v538_v29, 5  ;;  %v505_v2 = vsel %vm6074_vm3, %v500_v30, %v504_v13  ;;  %v527_v39 = vor.u32 %v526_v31, %v523_v27  ;;  %v4769_v1 = vld [vmem:[%s6028_s23 + $0x5c] sm:$0x1]  ;;  %v4770_v8 = vld [vmem:[%s6028_s23 + $0x60] sm:$0xf] }
  0x25   : > { %5234 = vmatprep.subr.bf16.mxu0 %v6105_v16  ;;  %5330 = vmatprep.subr.bf16.mxu1 %v6033_v3  ;;  %v546_v41 = vrot.slane %v544_v32, 5  ;;  %v519_v43 = vsel %vm6074_vm3, %v514_v36, %v518_v23  ;;  %v1820_v52 = vshll.u32 %v4764_v45, 16  ;;  %v1831_v53 = vshrl.u32 %v4766_v49, 16  ;;  %v4771_v9 = vld [vmem:[%s6028_s23 + $0x64] sm:$0x1]  ;;  %v6158_v20 = vld [vmem:[%s6927_s1 + $0x38] sm:$0xff]  }
  0x26   : > { %5228 = vmatprep.mubr.msk.bf16.mxu0 %vm230_vm0, %v5916_v33  ;;  %v541_v44 = vor.u32 %v540_v38, %v537_v37  ;;  %v4600_v46 = vcombine.low %v505_v2, %v519_v43  ;;  %v528_v47 = vrot.slane %v527_v39, 4  ;;  %v1834_v55 = vshll.u32 %v4766_v49, 16  ;;  %v4772_v28 = vld [vmem:[%s6028_s23 + $0x68] sm:$0xf]  ;;  %v4773_v29 = vld [vmem:[%s6028_s23 + $0x6c] sm:$0x1] }
  0x27   : > { %v1822_v60 = vrot.slane %v1820_v52, 5  ;;  %v1826_v61 = vshll.u32 %v4765_v48, 16  ;;  %v1833_v62 = vrot.slane %v1831_v53, 4  ;;  %v1845_v10 = vshrl.u32 %v4768_v56, 16  ;;  %v4774_v31 = vld [vmem:[%s6028_s23 + $0x70] sm:$0xf] }
  0x28   : > { %5235 = vmatpush3.bf16.msra.mxu0 %v6105_v16  ;;  %5331 = vmatpush3.bf16.msra.mxu1 %v6033_v3  ;;  %v542_v51 = vrot.slane %v541_v44, 4  ;;  %v533_v54 = vsel %vm6074_vm3, %v528_v47, %v532_v40  ;;  %v1819_v3 = vrot.slane %v1817_v50, 4  ;;  %v1836_v0 = vrot.slane %v1834_v55, 5  ;;  %v4775_v32 = vld [vmem:[%s6028_s23 + $0x74] sm:$0x1]  ;;  %v6173_v43 = vld [vmem:[%s6927_s1 + $0x40] sm:$0xff]  }
  0x29   : > { %5244 = vmatprep.subr.bf16.mxu0 %v6120_v34  ;;  %5340 = vmatprep.subr.bf16.mxu1 %v6053_v7  ;;  %v1848_v12 = vshll.u32 %v4768_v56, 16  ;;  %v1840_v14 = vshll.u32 %v4767_v59, 16  ;;  %v1859_v15 = vshrl.u32 %v4770_v8, 16  ;;  %v1828_v18 = vrot.slane %v1826_v61, 5  ;;  %v4776_v2 = vld [vmem:[%s6028_s23 + $0x78] sm:$0xf] }
  0x2a   : > { %5324 = vmatprep.mubr.msk.bf16.mxu1 %vm230_vm0, %v4600_v46  ;;  %v547_v57 = vsel %vm6074_vm3, %v542_v51, %v546_v41  ;;  %v1823_v13 = vor.u32 %v1822_v60, %v1819_v3  ;;  %v1837_v19 = vor.u32 %v1836_v0, %v1833_v62  ;;  %v1847_v21 = vrot.slane %v1845_v10, 4  ;;  %v4778_v48 = vld [vmem:[%s6028_s23 + $0x80] sm:$0xf]  ;;  %v5921_v51 = vld [vmem:[%s6028_s23 + $0x90] ss:$8 sps:$4 sm:$0xff]  }
  0x2b   : > { %5229 = vmatmul.mubr.msk.bf16.gmra.mrb[4].mxu0 %vm230_vm0, %v5917_v42  ;;  %v6146_v63 = vcombine.low %v533_v54, %v547_v57  ;;  %v1850_v22 = vrot.slane %v1848_v12, 5  ;;  %v1854_v23 = vshll.u32 %v4769_v1, 16  ;;  %v1868_v24 = vshll.u32 %v4771_v9, 16  ;;  %v4777_v56 = vld [vmem:[%s6028_s23 + $0x7c] sm:$0x1] }
  0x2c   : > { %5236 = vmatprep.mubr.msk.bf16.mxu0 %vm230_vm0, %v6091_v58  ;;  %v1862_v58 = vshll.u32 %v4770_v8, 16  ;;  %v1861_v25 = vrot.slane %v1859_v15, 4  ;;  %v1842_v27 = vrot.slane %v1840_v14, 5  ;;  %v1838_v30 = vrot.slane %v1837_v19, 4  ;;  %v4779_v1 = vld [vmem:[%s6028_s23 + $0x84] sm:$0x1] }
  0x2d   : > { %5325 = vmatmul.mubr.msk.bf16.gmra.mrb[4].mxu1 %vm230_vm0, %v6146_v63  ;;  %v1873_v33 = vshrl.u32 %v4772_v28, 16  ;;  %v1851_v36 = vor.u32 %v1850_v22, %v1847_v21  ;;  %v1856_v37 = vrot.slane %v1854_v23, 5  ;;  %v1876_v38 = vshll.u32 %v4772_v28, 16  ;;  %v5924_v19 = vld [vmem:[%s6028_s23 + $0xb0] ss:$8 sps:$4 sm:$0xff]  }
  0x2e   : > { %5332 = vmatprep.mubr.msk.bf16.mxu1 %vm230_vm0, %v6036_v4  ;;  %v1864_v26 = vrot.slane %v1862_v58, 5  ;;  %v1824_v4 = vrot.slane %v1823_v13, 4  ;;  %v1870_v40 = vrot.slane %v1868_v24, 5  ;;  %v1890_v42 = vshll.u32 %v4774_v31, 16  ;;  %v6220_v28 = vld [vmem:[%s6927_s1 + $0x50] sm:$0xff]  }
  0x2f   : > { %v1875_v41 = vrot.slane %v1873_v33, 4  ;;  %v1878_v44 = vrot.slane %v1876_v38, 5  ;;  %v1882_v45 = vshll.u32 %v4773_v29, 16  ;;  %v1896_v47 = vshll.u32 %v4775_v32, 16  ;;  %v4652_v29 = vld [vmem:[%s6028_s23 + $0x90] sm:$0xf] }
  0x30   : > { %v1865_v39 = vor.u32 %v1864_v26, %v1861_v25  ;;  %v1829_v49 = vsel %vm6074_vm3, %v1824_v4, %v1828_v18  ;;  %v1843_v50 = vsel %vm6074_vm3, %v1838_v30, %v1842_v27  ;;  %v1892_v52 = vrot.slane %v1890_v42, 5  ;;  %v4653_v30 = vld [vmem:[%s6028_s23 + $0x94] sm:$0x1]  ;;  %v4658_v42 = vld [vmem:[%s6028_s23 + $0xa8] sm:$0xf] }
  0x31   : > { %v1852_v53 = vrot.slane %v1851_v36, 4  ;;  %v1879_v54 = vor.u32 %v1878_v44, %v1875_v41  ;;  %v1915_v3 = vshrl.u32 %v4778_v48, 16  ;;  %v1918_v57 = vshll.u32 %v4778_v48, 16  ;;  %v5925_v36 = vld [vmem:[%s6028_s23 + $0xc0] ss:$8 sps:$4 sm:$0xff]  }
  0x32   : > { %v1866_v55 = vrot.slane %v1865_v39, 4  ;;  %v1884_v59 = vrot.slane %v1882_v45, 5  ;;  %v1898_v60 = vrot.slane %v1896_v47, 5  ;;  %v4780_v0 = vcombine.low %v1829_v49, %v1843_v50  ;;  %v4655_v39 = vld [vmem:[%s6028_s23 + $0x9c] sm:$0x1] }
  0x33   : > { %5237 = vmatmul.mubr.msk.bf16.vlgmr.msra.gmra.mrb[0].mxu0 %vm230_vm0, %v6107_v17  ;;  %v1887_v17 = vshrl.u32 %v4774_v31, 16  ;;  %v1917_v8 = vrot.slane %v1915_v3, 4  ;;  %v1920_v9 = vrot.slane %v1918_v57, 5  ;;  %v1880_v10 = vrot.slane %v1879_v54, 4  ;;  %v4654_v31 = vld [vmem:[%s6028_s23 + $0x98] sm:$0xf] }
  0x34   : > { %5240 = vmatprep.mubr.msk.bf16.mxu0 %vm230_vm0, %v4600_v46  ;;  %5245 = vmatpush3.bf16.msra.mxu0 %v6120_v34  ;;  %v1910_v14 = vshll.u32 %v4777_v56, 16  ;;  %v1871_v15 = vsel %vm6074_vm3, %v1866_v55, %v1870_v40  ;;  %v1924_v18 = vshll.u32 %v4779_v1, 16  ;;  %v941_v32 = vshrl.u32 %v4652_v29, 16  ;;  %v6239_v48 = vld [vmem:[%s6028_s23 + $0xd8] ss:$8 sps:$4 sm:$0xff]  }
  0x35   : > { %5246 = vmatprep.subr.bf16.mxu0 %v6158_v20  ;;  %5333 = vmatmul.mubr.msk.bf16.vlgmr.msra.gmra.mrb[0].mxu1 %vm230_vm0, %v6039_v5  ;;  %v1889_v46 = vrot.slane %v1887_v17, 4  ;;  %v1901_v5 = vshrl.u32 %v4776_v2, 16  ;;  %v1921_v58 = vor.u32 %v1920_v9, %v1917_v8  ;;  %v1885_v21 = vsel %vm6074_vm3, %v1880_v10, %v1884_v59  ;;  %v4656_v17 = vld [vmem:[%s6028_s23 + $0xa0] sm:$0xf]  ;;  %v4659_v3 = vld [vmem:[%s6028_s23 + $0xac] sm:$0x1] }
  0x36   : > { %5341 = vmatpush3.bf16.msra.mxu1 %v6053_v7  ;;  %5336 = vmatprep.mubr.msk.bf16.mxu1 %vm230_vm0, %v6046_v6  ;;  %v1904_v7 = vshll.u32 %v4776_v2, 16  ;;  %v1912_v25 = vrot.slane %v1910_v14, 5  ;;  %v1926_v27 = vrot.slane %v1924_v18, 5  ;;  %v944_v33 = vshll.u32 %v4652_v29, 16  ;;  %v4660_v55 = vld [vmem:[%s6028_s23 + $0xb0] sm:$0xf] }
  0x37   : > { %5342 = vmatprep.subr.bf16.mxu1 %v6105_v16  ;;  %v1893_v6 = vor.u32 %v1892_v52, %v1889_v46  ;;  %v1903_v61 = vrot.slane %v1901_v5, 4  ;;  %v1922_v4 = vrot.slane %v1921_v58, 4  ;;  %v958_v38 = vshll.u32 %v4654_v31, 16  ;;  %v4664_v10 = vld [vmem:[%s6028_s23 + $0xc0] sm:$0xf] }
  0x38   : > { %5247 = vmatpush3.bf16.msra.mxu0 %v6158_v20  ;;  %v1906_v62 = vrot.slane %v1904_v7, 5  ;;  %v943_v40 = vrot.slane %v941_v32, 4  ;;  %v946_v41 = vrot.slane %v944_v33, 5  ;;  %v950_v45 = vshll.u32 %v4653_v30, 16  ;;  %v4657_v7 = vld [vmem:[%s6028_s23 + $0xa4] sm:$0x1] }
  0x39   : > { %5256 = vmatprep.subr.bf16.mxu0 %v6173_v43  ;;  %v1894_v12 = vrot.slane %v1893_v6, 4  ;;  %v1927_v44 = vsel %vm6074_vm3, %v1922_v4, %v1926_v27  ;;  %v960_v47 = vrot.slane %v958_v38, 5  ;;  %v969_v49 = vshrl.u32 %v4656_v17, 16  ;;  %v4661_v14 = vld [vmem:[%s6028_s23 + $0xb4] sm:$0x1] }
  0x3a   : > { %5343 = vmatpush3.bf16.msra.mxu1 %v6105_v16  ;;  %v1907_v13 = vor.u32 %v1906_v62, %v1903_v61  ;;  %v1857_v16 = vsel %vm6074_vm3, %v1852_v53, %v1856_v37  ;;  %v955_v37 = vshrl.u32 %v4654_v31, 16  ;;  %v972_v50 = vshll.u32 %v4656_v17, 16  ;;  %v4662_v61 = vld [vmem:[%s6028_s23 + $0xb8] sm:$0xf] }
  0x3b   : > { %5241 = vmatmul.mubr.msk.bf16.gmra.mrb[4].mxu0 %vm230_vm0, %v6146_v63  ;;  %5352 = vmatprep.subr.bf16.mxu1 %v6120_v34  ;;  %v5922_v63 = vld [vmem:[%s6028_s23 + $0xa0] ss:$8 sps:$4 sm:$0xff]   ;;  %v1899_v22 = vsel %vm6074_vm3, %v1894_v12, %v1898_v60  ;;  %v4781_v23 = vcombine.low %v1857_v16, %v1871_v15  ;;  %v986_v52 = vshll.u32 %v4658_v42, 16  ;;  %v947_v53 = vor.u32 %v946_v41, %v943_v40  ;;  %v4796_v31 = vld [vmem:[%s6028_s23 + $0xd8] sm:$0xf] }
  0x3c   : > { %5248 = vmatprep.mubr.msk.bf16.mxu0 %vm230_vm0, %v5921_v51  ;;  %v1908_v24 = vrot.slane %v1907_v13, 4  ;;  %v4782_v26 = vcombine.low %v1885_v21, %v1899_v22  ;;  %v957_v46 = vrot.slane %v955_v37, 4  ;;  %v983_v51 = vshrl.u32 %v4658_v42, 16  ;;  %v6257_v12 = vld [vmem:[%s6028_s23 + $0xe8] ss:$8 sps:$4 sm:$0xff]   ;;  %v6291_v41 = vld [vmem:[%s6927_s1 + $0x60] sm:$0xff]  }
  0x3d   : > { %5337 = vmatmul.mubr.msk.bf16.gmra.mrb[4].mxu1 %vm230_vm0, %v6062_v11  ;;  %v6208_v11 = vld [vmem:[%s6927_s1 + $0x48] sm:$0xff]   ;;  %v6250_v6 = vrot.slane %v950_v45, 5  ;;  %v971_v56 = vrot.slane %v969_v49, 4  ;;  %v974_v57 = vrot.slane %v972_v50, 5  ;;  %v988_v60 = vrot.slane %v986_v52, 5 }
  0x3e   : > { %5344 = vmatprep.mubr.msk.bf16.mxu1 %vm230_vm0, %v4780_v0  ;;  %v1913_v2 = vsel %vm6074_vm3, %v1908_v24, %v1912_v25  ;;  %v961_v54 = vor.u32 %v960_v47, %v957_v46  ;;  %v985_v59 = vrot.slane %v983_v51, 4  ;;  %v997_v62 = vshrl.u32 %v4660_v55, 16  ;;  %v6263_v58 = vld [vmem:[%s6028_s23 + $0xf8] ss:$8 sps:$4 sm:$0xff]   ;;  %v4667_v51 = vld [vmem:[%s6028_s23 + $0xcc] sm:$0x1] }
  0x3f   : > { %v4783_v5 = vcombine.low %v1913_v2, %v1927_v44  ;;  %v1000_v0 = vshll.u32 %v4660_v55, 16  ;;  %v992_v8 = vshll.u32 %v4659_v3, 16  ;;  %v1011_v9 = vshrl.u32 %v4662_v61, 16  ;;  %v6270_v25 = vld [vmem:[%s6927_s1 + $0x58] sm:$0xff]   ;;  %v4798_v46 = vld [vmem:[%s6028_s23 + $0xe0] sm:$0xf] }
  0x40   : > { %v962_v13 = vrot.slane %v961_v54, 4  ;;  %v999_v16 = vrot.slane %v997_v62, 4  ;;  %v975_v18 = vor.u32 %v974_v57, %v971_v56  ;;  %v1014_v22 = vshll.u32 %v4662_v61, 16  ;;  %v4797_v55 = vld [vmem:[%s6028_s23 + $0xdc] sm:$0x1] }
  0x41   : > { %v1002_v15 = vrot.slane %v1000_v0, 5  ;;  %v1013_v21 = vrot.slane %v1011_v9, 4  ;;  %v989_v24 = vor.u32 %v988_v60, %v985_v59  ;;  %v1006_v27 = vshll.u32 %v4661_v14, 16  ;;  %v4799_v59 = vld [vmem:[%s6028_s23 + $0xe4] sm:$0x1] }
  0x42   : > { %v1016_v29 = vrot.slane %v1014_v22, 5  ;;  %v1028_v30 = vshll.u32 %v4664_v10, 16  ;;  %v976_v17 = vrot.slane %v975_v18, 4  ;;  %v2188_v47 = vshrl.u32 %v4796_v31, 16  ;;  %v4800_v61 = vld [vmem:[%s6028_s23 + $0xe8] sm:$0xf] }
  0x43   : > { %5249 = vmatmul.mubr.msk.bf16.vlgmr.msra.gmra.mrb[0].mxu0 %vm230_vm0, %v5922_v63  ;;  %v948_v63 = vrot.slane %v947_v53, 4  ;;  %v1003_v4 = vor.u32 %v1002_v15, %v999_v16  ;;  %v990_v49 = vrot.slane %v989_v24, 4  ;;  %v2191_v52 = vshll.u32 %v4796_v31, 16  ;;  %v4802_v15 = vld [vmem:[%s6028_s23 + $0xf0] sm:$0xf] }
  0x44   : > { %5252 = vmatprep.mubr.msk.bf16.mxu0 %vm230_vm0, %v5924_v19  ;;  %5257 = vmatpush3.bf16.msra.mxu0 %v6173_v43  ;;  %v4663_v19 = vld [vmem:[%s6028_s23 + $0xbc] sm:$0x1]  ;;  %v1017_v2 = vor.u32 %v1016_v29, %v1013_v21  ;;  %v1030_v44 = vrot.slane %v1028_v30, 5  ;;  %v2202_v60 = vshrl.u32 %v4798_v46, 16  ;;  %v1048_v9 = vshll.u32 %v4667_v51, 16 }
  0x45   : > { %5258 = vmatprep.subr.bf16.mxu0 %v6208_v11  ;;  %5345 = vmatmul.mubr.msk.bf16.vlgmr.msra.gmra.mrb[0].mxu1 %vm230_vm0, %v4781_v23  ;;  %v4666_v23 = vld [vmem:[%s6028_s23 + $0xc8] sm:$0xf]  ;;  %v953_v32 = vsel %vm6074_vm3, %v948_v63, %v6250_v6  ;;  %v1020_v37 = vshll.u32 %v4663_v19, 16  ;;  %v1004_v50 = vrot.slane %v1003_v4, 4  ;;  %v2193_v0 = vrot.slane %v2191_v52, 5 }
  0x46   : > { %5353 = vmatpush3.bf16.msra.mxu1 %v6120_v34  ;;  %5348 = vmatprep.mubr.msk.bf16.mxu1 %vm230_vm0, %v4782_v26  ;;  %v964_v34 = vshll.u32 %v4655_v39, 16  ;;  %v1025_v26 = vshrl.u32 %v4664_v10, 16  ;;  %v4665_v39 = vld [vmem:[%s6028_s23 + $0xc4] sm:$0x1]  ;;  %v1039_v40 = vshrl.u32 %v4666_v23, 16  ;;  %v1042_v45 = vshll.u32 %v4666_v23, 16 }
  0x47   : > { %5354 = vmatprep.subr.bf16.mxu1 %v6158_v20  ;;  %v1018_v53 = vrot.slane %v1017_v2, 4  ;;  %v1022_v54 = vrot.slane %v1020_v37, 5  ;;  %v1034_v57 = vshll.u32 %v4665_v39, 16  ;;  %v2197_v10 = vshll.u32 %v4797_v55, 16  ;;  %v4801_v29 = vld [vmem:[%s6028_s23 + $0xec] sm:$0x1] }
  0x48   : > { %5259 = vmatpush3.bf16.msra.mxu0 %v6208_v11  ;;  %v966_v1 = vrot.slane %v964_v34, 5  ;;  %v1027_v42 = vrot.slane %v1025_v26, 4  ;;  %v1008_v34 = vrot.slane %v1006_v27, 5  ;;  %v1044_v3 = vrot.slane %v1042_v45, 5  ;;  %v4803_v45 = vld [vmem:[%s6028_s23 + $0xf4] sm:$0x1] }
  0x49   : > { %5268 = vmatprep.subr.bf16.mxu0 %v6220_v28  ;;  %v1023_v63 = vsel %vm6074_vm3, %v1018_v53, %v1022_v54  ;;  %v2204_v14 = vrot.slane %v2202_v60, 4  ;;  %v1036_v18 = vrot.slane %v1034_v57, 5  ;;  %v2216_v19 = vshrl.u32 %v4800_v61, 16  ;;  %v4808_v57 = vld [vmem:[%s6028_s23 + $0x108] sm:$0xf] }
  0x4a   : > { %5355 = vmatpush3.bf16.msra.mxu1 %v6158_v20  ;;  %v978_v20 = vshll.u32 %v4657_v7, 16  ;;  %v967_v38 = vsel %vm6074_vm3, %v962_v13, %v966_v1  ;;  %v1041_v7 = vrot.slane %v1039_v40, 4  ;;  %v1031_v62 = vor.u32 %v1030_v44, %v1027_v42 }
  0x4b   : > { %5253 = vmatmul.mubr.msk.bf16.gmra.mrb[4].mxu0 %vm230_vm0, %v5925_v36  ;;  %5364 = vmatprep.subr.bf16.mxu1 %v6173_v43  ;;  %v6280_v36 = vrot.slane %v992_v8, 5  ;;  %v6305_v6 = vcombine.low %v953_v32, %v967_v38  ;;  %v2205_v1 = vshll.u32 %v4798_v46, 16  ;;  %v1009_v8 = vsel %vm6074_vm3, %v1004_v50, %v1008_v34  ;;  %v4805_v34 = vld [vmem:[%s6028_s23 + $0xfc] sm:$0x1] }
  0x4c   : > { %5260 = vmatprep.mubr.msk.bf16.mxu0 %vm230_vm0, %v6239_v48  ;;  %v6278_v33 = vrot.slane %v978_v20, 5  ;;  %v1045_v13 = vor.u32 %v1044_v3, %v1041_v7  ;;  %v2219_v21 = vshll.u32 %v4800_v61, 16  ;;  %v1032_v22 = vrot.slane %v1031_v62, 4  ;;  %v4807_v7 = vld [vmem:[%s6028_s23 + $0x104] sm:$0x1] }
  0x4d   : > { %5349 = vmatmul.mubr.msk.bf16.gmra.mrb[4].mxu1 %vm230_vm0, %v4783_v5  ;;  %v6299_v5 = vld [vmem:[%s6028_s23 + $0x108] ss:$8 sps:$4 sm:$0xff]   ;;  %v995_v20 = vsel %vm6074_vm3, %v990_v49, %v6280_v36  ;;  %v2207_v16 = vrot.slane %v2205_v1, 5  ;;  %v2211_v24 = vshll.u32 %v4799_v59, 16  ;;  %v6331_v4 = vcombine.low %v1009_v8, %v1023_v63 }
  0x4e   : > { %5356 = vmatprep.mubr.msk.bf16.mxu1 %vm230_vm0, %v6239_v48  ;;  %v981_v56 = vsel %vm6074_vm3, %v976_v17, %v6278_v33  ;;  %v1050_v27 = vrot.slane %v1048_v9, 5  ;;  %v2230_v30 = vshrl.u32 %v4802_v15, 16  ;;  %v1046_v31 = vrot.slane %v1045_v13, 4  ;;  %v4806_v17 = vld [vmem:[%s6028_s23 + $0x100] sm:$0xf]  ;;  %v6370_v9 = vld [vmem:[%s6927_s1 + $0x70] sm:$0xff]  }
  0x4f   : > { %v6329_v26 = vcombine.low %v981_v56, %v995_v20  ;;  %v6337_v32 = vrot.slane %v2197_v10, 5  ;;  %v2208_v33 = vor.u32 %v2207_v16, %v2204_v14  ;;  %v2233_v36 = vshll.u32 %v4802_v15, 16  ;;  %v4810_v59 = vld [vmem:[%s6028_s23 + $0x110] sm:$0xf] }
  0x50   : > { %v2218_v37 = vrot.slane %v2216_v19, 4  ;;  %v2221_v38 = vrot.slane %v2219_v21, 5  ;;  %v1037_v40 = vsel %vm6074_vm3, %v1032_v22, %v1036_v18  ;;  %v2213_v44 = vrot.slane %v2211_v24, 5  ;;  %v6365_v20 = vld [vmem:[%s6028_s23 + $0x8] ss:$8 sps:$4 sm:$0xff]  }
  0x51   : > { %v2225_v46 = vshll.u32 %v4801_v29, 16  ;;  %v2232_v49 = vrot.slane %v2230_v30, 4  ;;  %v2235_v50 = vrot.slane %v2233_v36, 5  ;;  %v1051_v53 = vsel %vm6074_vm3, %v1046_v31, %v1050_v27  ;;  %v4809_v24 = vld [vmem:[%s6028_s23 + $0x10c] sm:$0x1] }
  0x52   : > { %v2209_v54 = vrot.slane %v2208_v33, 4  ;;  %v2258_v3 = vshrl.u32 %v4806_v17, 16  ;;  %v2261_v55 = vshll.u32 %v4806_v17, 16  ;;  %v2222_v56 = vor.u32 %v2221_v38, %v2218_v37  ;;  %v4811_v30 = vld [vmem:[%s6028_s23 + $0x114] sm:$0x1] }
  0x53   : > { %5261 = vmatmul.mubr.msk.bf16.vlgmr.msra.gmra.mrb[0].mxu0 %vm230_vm0, %v6257_v12  ;;  %v2239_v60 = vshll.u32 %v4803_v45, 16  ;;  %v2253_v61 = vshll.u32 %v4805_v34, 16  ;;  %v2236_v1 = vor.u32 %v2235_v50, %v2232_v49  ;;  %v2227_v10 = vrot.slane %v2225_v46, 5  ;;  %v6411_v49 = vld [vmem:[%s6028_s23 + $0x28] ss:$8 sps:$4 sm:$0xff]   ;;  %v6416_v50 = vld [vmem:[%s6927_s1 + $0x78] sm:$0xff]  }
  0x54   : > { %5264 = vmatprep.mubr.msk.bf16.mxu0 %vm230_vm0, %v6263_v58  ;;  %5269 = vmatpush3.bf16.msra.mxu0 %v6220_v28  ;;  %v2260_v62 = vrot.slane %v2258_v3, 4  ;;  %v2272_v63 = vshrl.u32 %v4808_v57, 16  ;;  %v2275_v13 = vshll.u32 %v4808_v57, 16  ;;  %v2286_v14 = vshrl.u32 %v4810_v59, 16  ;;  %v4726_v34 = vld [vmem:[%s6028_s23 + $0x8] sm:$0xf] }
  0x55   : > { %5270 = vmatprep.subr.bf16.mxu0 %v6270_v25  ;;  %5357 = vmatmul.mubr.msk.bf16.vlgmr.msra.gmra.mrb[0].mxu1 %vm230_vm0, %v6257_v12  ;;  %v2267_v18 = vshll.u32 %v4807_v7, 16  ;;  %v2289_v19 = vshll.u32 %v4810_v59, 16  ;;  %v2214_v21 = vsel %vm6074_vm3, %v2209_v54, %v2213_v44  ;;  %v2223_v22 = vrot.slane %v2222_v56, 4 }
  0x56   : > { %5365 = vmatpush3.bf16.msra.mxu1 %v6173_v43  ;;  %5360 = vmatprep.mubr.msk.bf16.mxu1 %vm230_vm0, %v6263_v58  ;;  %v2190_v43 = vrot.slane %v2188_v47, 4  ;;  %v6348_v47 = vld [vmem:[%s6927_s1 + $0x68] sm:$0xff]   ;;  %v2237_v27 = vrot.slane %v2236_v1, 4  ;;  %v2277_v31 = vrot.slane %v2275_v13, 5  ;;  %v2295_v44 = vshll.u32 %v4811_v30, 16 }
  0x57   : > { %5366 = vmatprep.subr.bf16.mxu1 %v6208_v11  ;;  %v2291_v33 = vrot.slane %v2289_v19, 5  ;;  %v2269_v38 = vrot.slane %v2267_v18, 5  ;;  %v2228_v17 = vsel %vm6074_vm3, %v2223_v22, %v2227_v10  ;;  %v1445_v56 = vshrl.u32 %v4726_v34, 16  ;;  %v4727_v10 = vld [vmem:[%s6028_s23 + $0xc] sm:$0x1] }
  0x58   : > { %5271 = vmatpush3.bf16.msra.mxu0 %v6270_v25  ;;  %v2194_v23 = vor.u32 %v2193_v0, %v2190_v43  ;;  %v2263_v43 = vrot.slane %v2261_v55, 5  ;;  %v6362_v0 = vcombine.low %v1037_v40, %v1051_v53  ;;  %v2297_v55 = vrot.slane %v2295_v44, 5  ;;  %v4729_v13 = vld [vmem:[%s6028_s23 + $0x14] sm:$0x1]  ;;  %v6453_v19 = vld [vmem:[%s6028_s23 + $0x50] ss:$8 sps:$4 sm:$0xff]  }
  0x59   : > { %5280 = vmatprep.subr.bf16.mxu0 %v6291_v41  ;;  %v1448_v57 = vshll.u32 %v4726_v34, 16  ;;  %v1454_v30 = vshll.u32 %v4727_v10, 16 }
  0x5a   : > { %5367 = vmatpush3.bf16.msra.mxu1 %v6208_v11  ;;  %v4804_v11 = vld [vmem:[%s6028_s23 + $0xf8] sm:$0xf]  ;;  %v2195_v42 = vrot.slane %v2194_v23, 4  ;;  %v2264_v15 = vor.u32 %v2263_v43, %v2260_v62  ;;  %v2241_v23 = vrot.slane %v2239_v60, 5 }
  0x5b   : > { %5265 = vmatmul.mubr.msk.bf16.gmra.mrb[4].mxu0 %vm230_vm0, %v6299_v5  ;;  %5376 = vmatprep.subr.bf16.mxu1 %v6220_v28  ;;  %v2244_v2 = vshrl.u32 %v4804_v11, 16  ;;  %v2247_v39 = vshll.u32 %v4804_v11, 16  ;;  %v2274_v11 = vrot.slane %v2272_v63, 4  ;;  %v4730_v62 = vld [vmem:[%s6028_s23 + $0x18] sm:$0xf]  ;;  %v6474_v34 = vrot.slane %v1454_v30, 5 }
  0x5c   : > { %5272 = vmatprep.mubr.msk.bf16.mxu0 %vm230_vm0, %v6305_v6  ;;  %v2200_v16 = vsel %vm6074_vm3, %v2195_v42, %v6337_v32  ;;  %v2288_v32 = vrot.slane %v2286_v14, 4  ;;  %v2265_v37 = vrot.slane %v2264_v15, 4  ;;  %v4732_v63 = vld [vmem:[%s6028_s23 + $0x20] sm:$0xf]  ;;  %v1447_v14 = vrot.slane %v1445_v56, 4 }
  0x5d   : > { %5361 = vmatmul.mubr.msk.bf16.gmra.mrb[4].mxu1 %vm230_vm0, %v6299_v5  ;;  %v2246_v51 = vrot.slane %v2244_v2, 4  ;;  %v2249_v52 = vrot.slane %v2247_v39, 5  ;;  %v6390_v36 = vcombine.low %v2200_v16, %v2214_v21  ;;  %v6398_v2 = vld [vmem:[%s6028_s23 + $0x18] ss:$8 sps:$4 sm:$0xff]   ;;  %v2281_v39 = vshll.u32 %v4809_v24, 16 }
  0x5e   : > { %5368 = vmatprep.mubr.msk.bf16.mxu1 %vm230_vm0, %v6305_v6  ;;  %v2278_v40 = vor.u32 %v2277_v31, %v2274_v11  ;;  %v2292_v42 = vor.u32 %v2291_v33, %v2288_v32  ;;  %v2270_v46 = vsel %vm6074_vm3, %v2265_v37, %v2269_v38  ;;  %v1450_v16 = vrot.slane %v1448_v57, 5  ;;  %v4734_v24 = vld [vmem:[%s6028_s23 + $0x28] sm:$0xf]  ;;  %v4731_v33 = vld [vmem:[%s6028_s23 + $0x1c] sm:$0x1] }
  0x5f   : > { %v2250_v8 = vor.u32 %v2249_v52, %v2246_v51  ;;  %v4728_v51 = vld [vmem:[%s6028_s23 + $0x10] sm:$0xf]  ;;  %v2283_v53 = vrot.slane %v2281_v39, 5  ;;  %v1473_v21 = vshrl.u32 %v4730_v62, 16  ;;  %v1476_v22 = vshll.u32 %v4730_v62, 16 }
  0x60   : > { %v2279_v7 = vrot.slane %v2278_v40, 4  ;;  %v2293_v3 = vrot.slane %v2292_v42, 4  ;;  %v1459_v59 = vshrl.u32 %v4728_v51, 16  ;;  %v1462_v60 = vshll.u32 %v4728_v51, 16  ;;  %v4733_v37 = vld [vmem:[%s6028_s23 + $0x24] sm:$0x1] }
  0x61   : > { %v2251_v29 = vrot.slane %v2250_v8, 4  ;;  %v6443_v8 = vld [vmem:[%s6028_s23 + $0x38] ss:$8 sps:$4 sm:$0xff]   ;;  %v1468_v11 = vshll.u32 %v4729_v13, 16  ;;  %v1451_v31 = vor.u32 %v1450_v16, %v1447_v14  ;;  %v1501_v38 = vshrl.u32 %v4734_v24, 16 }
  0x62   : > { %v2284_v43 = vsel %vm6074_vm3, %v2279_v7, %v2283_v53  ;;  %v2298_v1 = vsel %vm6074_vm3, %v2293_v3, %v2297_v55  ;;  %v1461_v15 = vrot.slane %v1459_v59, 4  ;;  %v1464_v18 = vrot.slane %v1462_v60, 5  ;;  %v6481_v3 = vld [vmem:[%s6927_s1 + $0x88] sm:$0xff]   ;;  %v4738_v55 = vld [vmem:[%s6028_s23 + $0x38] sm:$0xf] }
  0x63   : > { %5273 = vmatmul.mubr.msk.bf16.vlgmr.msra.gmra.mrb[0].mxu0 %vm230_vm0, %v6329_v26  ;;  %v1475_v40 = vrot.slane %v1473_v21, 4  ;;  %v1478_v42 = vrot.slane %v1476_v22, 5  ;;  %v6476_v51 = vrot.slane %v1468_v11, 5  ;;  %v1482_v53 = vshll.u32 %v4731_v33, 16  ;;  %v4735_v59 = vld [vmem:[%s6028_s23 + $0x2c] sm:$0x1] }
  0x64   : > { %5276 = vmatprep.mubr.msk.bf16.mxu0 %vm230_vm0, %v6331_v4  ;;  %5281 = vmatpush3.bf16.msra.mxu0 %v6291_v41  ;;  %v1465_v32 = vor.u32 %v1464_v18, %v1461_v15  ;;  %v1496_v7 = vshll.u32 %v4733_v37, 16  ;;  %v1452_v56 = vrot.slane %v1451_v31, 4  ;;  %v4740_v60 = vld [vmem:[%s6028_s23 + $0x40] sm:$0xf]  ;;  %v1503_v62 = vrot.slane %v1501_v38, 4 }
  0x65   : > { %5282 = vmatprep.subr.bf16.mxu0 %v6348_v47  ;;  %5369 = vmatmul.mubr.msk.bf16.vlgmr.msra.gmra.mrb[0].mxu1 %vm230_vm0, %v6329_v26  ;;  %v6490_v13 = vld [vmem:[%s6028_s23 + $0x70] ss:$8 sps:$4 sm:$0xff]   ;;  %v1479_v14 = vor.u32 %v1478_v42, %v1475_v40  ;;  %v4737_v15 = vld [vmem:[%s6028_s23 + $0x34] sm:$0x1]  ;;  %v1529_v18 = vshrl.u32 %v4738_v55, 16  ;;  %v1532_v21 = vshll.u32 %v4738_v55, 16 }
  0x66   : > { %5377 = vmatpush3.bf16.msra.mxu1 %v6220_v28  ;;  %5372 = vmatprep.mubr.msk.bf16.mxu1 %vm230_vm0, %v6331_v4  ;;  %v2255_v28 = vrot.slane %v2253_v61, 5  ;;  %v6433_v61 = vld [vmem:[%s6927_s1 + $0x80] sm:$0xff]   ;;  %v1466_v57 = vrot.slane %v1465_v32, 4  ;;  %v6495_v22 = vrot.slane %v1482_v53, 5  ;;  %v1510_v30 = vshll.u32 %v4735_v59, 16 }
  0x67   : > { %5378 = vmatprep.subr.bf16.mxu1 %v6270_v25  ;;  %v4830_v11 = vld [vmem:[%s6028_s23 + $0x58] sm:$0xf]  ;;  %v4741_v42 = vld [vmem:[%s6028_s23 + $0x44] sm:$0x1]  ;;  %v4829_v59 = vld [vmem:[%s6028_s23 + $0x54] sm:$0x1] }
  0x68   : > { %5283 = vmatpush3.bf16.msra.mxu0 %v6348_v47  ;;  %v2256_v45 = vsel %vm6074_vm3, %v2251_v29, %v2255_v28  ;;  %v1490_v28 = vshll.u32 %v4732_v63, 16  ;;  %v6459_v29 = vcombine.low %v2284_v43, %v2298_v1  ;;  %v1471_v33 = vsel %vm6074_vm3, %v1466_v57, %v6476_v51 }
  0x69   : > { %5292 = vmatprep.subr.bf16.mxu0 %v6370_v9  ;;  %v6424_v54 = vcombine.low %v2256_v45, %v2270_v46  ;;  %v6472_v46 = vld [vmem:[%s6028_s23 + $0x60] ss:$8 sps:$4 sm:$0xff]   ;;  %v2573_v51 = vshrl.u32 %v4830_v11, 16  ;;  %v2576_v55 = vshll.u32 %v4830_v11, 16 }
  0x6a   : > { %5379 = vmatpush3.bf16.msra.mxu1 %v6270_v25  ;;  %v2242_v25 = vsel %vm6074_vm3, %v2237_v27, %v2241_v23  ;;  %v1487_v23 = vshrl.u32 %v4732_v63, 16  ;;  %v4736_v27 = vld [vmem:[%s6028_s23 + $0x30] sm:$0xf]  ;;  %v1492_v45 = vrot.slane %v1490_v28, 5  ;;  %v1543_v28 = vshrl.u32 %v4740_v60, 16 }
  0x6b   : > { %5277 = vmatmul.mubr.msk.bf16.gmra.mrb[4].mxu0 %vm230_vm0, %v6362_v0  ;;  %5388 = vmatprep.subr.bf16.mxu1 %v6291_v41  ;;  %v6420_v52 = vcombine.low %v2228_v17, %v2242_v25  ;;  %v1504_v17 = vshll.u32 %v4734_v24, 16  ;;  %v1515_v39 = vshrl.u32 %v4736_v27, 16  ;;  %v1518_v25 = vshll.u32 %v4736_v27, 16  ;;  %v4828_v63 = vld [vmem:[%s6028_s23 + $0x50] sm:$0xf] }
  0x6c   : > { %5284 = vmatprep.mubr.msk.bf16.mxu0 %vm230_vm0, %v6365_v20  ;;  %v1489_v44 = vrot.slane %v1487_v23, 4  ;;  %v6497_v23 = vrot.slane %v1496_v7, 5  ;;  %v1546_v24 = vshll.u32 %v4740_v60, 16  ;;  %v1457_v27 = vsel %vm6074_vm3, %v1452_v56, %v6474_v34  ;;  %v6515_v34 = vld [vmem:[%s6028_s23 + $0x80] ss:$8 sps:$4 sm:$0xff]  }
  0x6d   : > { %5373 = vmatmul.mubr.msk.bf16.gmra.mrb[4].mxu1 %vm230_vm0, %v6362_v0  ;;  %v1506_v43 = vrot.slane %v1504_v17, 5  ;;  %v1517_v1 = vrot.slane %v1515_v39, 4  ;;  %v1520_v10 = vrot.slane %v1518_v25, 5  ;;  %v2559_v31 = vshrl.u32 %v4828_v63, 16  ;;  %v4739_v39 = vld [vmem:[%s6028_s23 + $0x3c] sm:$0x1] }
  0x6e   : > { %5380 = vmatprep.mubr.msk.bf16.mxu1 %vm230_vm0, %v6390_v36  ;;  %v1493_v16 = vor.u32 %v1492_v45, %v1489_v44  ;;  %v2562_v32 = vshll.u32 %v4828_v63, 16  ;;  %v1524_v17 = vshll.u32 %v4737_v15, 16  ;;  %v1480_v25 = vrot.slane %v1479_v14, 4  ;;  %v4831_v15 = vld [vmem:[%s6028_s23 + $0x5c] sm:$0x1] }
  0x6f   : > { %v1507_v37 = vor.u32 %v1506_v43, %v1503_v62  ;;  %v1521_v38 = vor.u32 %v1520_v10, %v1517_v1  ;;  %v1531_v44 = vrot.slane %v1529_v18, 4  ;;  %v1534_v45 = vrot.slane %v1532_v21, 5  ;;  %v4832_v18 = vld [vmem:[%s6028_s23 + $0x60] sm:$0xf] }
  0x70   : > { %v1494_v40 = vrot.slane %v1493_v16, 4  ;;  %v1545_v53 = vrot.slane %v1543_v28, 4  ;;  %v1548_v7 = vrot.slane %v1546_v24, 5  ;;  %v1512_v56 = vrot.slane %v1510_v30, 5  ;;  %v6528_v16 = vld [vmem:[%s6927_s1 + $0x10] sm:$0xff]  }
  0x71   : > { %v1538_v57 = vshll.u32 %v4739_v39, 16  ;;  %v2561_v60 = vrot.slane %v2559_v31, 4  ;;  %v2564_v62 = vrot.slane %v2562_v32, 5  ;;  %v1508_v43 = vrot.slane %v1507_v37, 4 }
  0x72   : > { %v1522_v1 = vrot.slane %v1521_v38, 4  ;;  %v1526_v10 = vrot.slane %v1524_v17, 5  ;;  %v1552_v63 = vshll.u32 %v4741_v42, 16  ;;  %v6523_v14 = vcombine.low %v1457_v27, %v1471_v33  ;;  %v4834_v27 = vld [vmem:[%s6028_s23 + $0x68] sm:$0xf] }
  0x73   : > { %5285 = vmatmul.mubr.msk.bf16.vlgmr.msra.gmra.mrb[0].mxu0 %vm230_vm0, %v6398_v2  ;;  %v1535_v21 = vor.u32 %v1534_v45, %v1531_v44  ;;  %v1549_v28 = vor.u32 %v1548_v7, %v1545_v53  ;;  %v2575_v24 = vrot.slane %v2573_v51, 4  ;;  %v2578_v30 = vrot.slane %v2576_v55, 5 }
  0x74   : > { %5288 = vmatprep.mubr.msk.bf16.mxu0 %vm230_vm0, %v6411_v49  ;;  %5293 = vmatpush3.bf16.msra.mxu0 %v6370_v9  ;;  %v1485_v11 = vsel %vm6074_vm3, %v1480_v25, %v6495_v22  ;;  %v1499_v31 = vsel %vm6074_vm3, %v1494_v40, %v6497_v23  ;;  %v2565_v32 = vor.u32 %v2564_v62, %v2561_v60  ;;  %v2568_v33 = vshll.u32 %v4829_v59, 16  ;;  %v4836_v22 = vld [vmem:[%s6028_s23 + $0x70] sm:$0xf]  ;;  %v4838_v25 = vld [vmem:[%s6028_s23 + $0x78] sm:$0xf] }
  0x75   : > { %5294 = vmatprep.subr.bf16.mxu0 %v6416_v50  ;;  %5381 = vmatmul.mubr.msk.bf16.vlgmr.msra.gmra.mrb[0].mxu1 %vm230_vm0, %v6420_v52  ;;  %v1513_v37 = vsel %vm6074_vm3, %v1508_v43, %v1512_v56  ;;  %v1527_v38 = vsel %vm6074_vm3, %v1522_v1, %v1526_v10  ;;  %v1540_v17 = vrot.slane %v1538_v57, 5  ;;  %v1554_v39 = vrot.slane %v1552_v63, 5  ;;  %v4833_v60 = vld [vmem:[%s6028_s23 + $0x64] sm:$0x1] }
  0x76   : > { %5389 = vmatpush3.bf16.msra.mxu1 %v6291_v41  ;;  %5384 = vmatprep.mubr.msk.bf16.mxu1 %vm230_vm0, %v6424_v54  ;;  %v2582_v42 = vshll.u32 %v4831_v15, 16  ;;  %v2587_v23 = vshrl.u32 %v4832_v18, 16  ;;  %v2590_v40 = vshll.u32 %v4832_v18, 16  ;;  %v2601_v44 = vshrl.u32 %v4834_v27, 16  ;;  %v4835_v15 = vld [vmem:[%s6028_s23 + $0x6c] sm:$0x1] }
  0x77   : > { %5390 = vmatprep.subr.bf16.mxu1 %v6348_v47  ;;  %v1536_v45 = vrot.slane %v1535_v21, 4  ;;  %v1550_v53 = vrot.slane %v1549_v28, 4  ;;  %v2579_v7 = vor.u32 %v2578_v30, %v2575_v24  ;;  %v2604_v51 = vshll.u32 %v4834_v27, 16 }
  0x78   : > { %5295 = vmatpush3.bf16.msra.mxu0 %v6416_v50  ;;  %v6556_v55 = vcombine.low %v1485_v11, %v1499_v31  ;;  %v6558_v56 = vcombine.low %v1513_v37, %v1527_v38  ;;  %v2566_v57 = vrot.slane %v2565_v32, 4  ;;  %v2570_v59 = vrot.slane %v2568_v33, 5  ;;  %v4837_v31 = vld [vmem:[%s6028_s23 + $0x74] sm:$0x1]  ;;  %v4839_v32 = vld [vmem:[%s6028_s23 + $0x7c] sm:$0x1] }
  0x79   : > { %5304 = vmatprep.subr.bf16.mxu0 %v6433_v61  ;;  %v2615_v62 = vshrl.u32 %v4836_v22, 16  ;;  %v2618_v43 = vshll.u32 %v4836_v22, 16  ;;  %v2629_v1 = vshrl.u32 %v4838_v25, 16  ;;  %v2632_v10 = vshll.u32 %v4838_v25, 16  ;;  %v4840_v33 = vld [vmem:[%s6028_s23 + $0x80] sm:$0xf] }
  0x7a   : > { %5391 = vmatpush3.bf16.msra.mxu1 %v6348_v47  ;;  %v2584_v63 = vrot.slane %v2582_v42, 5  ;;  %v2589_v18 = vrot.slane %v2587_v23, 4  ;;  %v2592_v21 = vrot.slane %v2590_v40, 5  ;;  %v2603_v28 = vrot.slane %v2601_v44, 4  ;;  %v4842_v37 = vld [vmem:[%s6028_s23 + $0x88] sm:$0xf] }
  0x7b   : > { %5289 = vmatmul.mubr.msk.bf16.gmra.mrb[4].mxu0 %vm230_vm0, %v6443_v8  ;;  %5400 = vmatprep.subr.bf16.mxu1 %v6370_v9  ;;  %v1541_v24 = vsel %vm6074_vm3, %v1536_v45, %v1540_v17  ;;  %v1555_v30 = vsel %vm6074_vm3, %v1550_v53, %v1554_v39  ;;  %v2580_v27 = vrot.slane %v2579_v7, 4  ;;  %v2606_v11 = vrot.slane %v2604_v51, 5  ;;  %v6578_v38 = vld [vmem:[%s6927_s1 + $0x18] sm:$0xff]  }
  0x7c   : > { %5296 = vmatprep.mubr.msk.bf16.mxu0 %vm230_vm0, %v6453_v19  ;;  %v2617_v17 = vrot.slane %v2615_v62, 4  ;;  %v2620_v39 = vrot.slane %v2618_v43, 5  ;;  %v2631_v22 = vrot.slane %v2629_v1, 4  ;;  %v2634_v25 = vrot.slane %v2632_v10, 5 }
  0x7d   : > { %5385 = vmatmul.mubr.msk.bf16.gmra.mrb[4].mxu1 %vm230_vm0, %v6459_v29  ;;  %v6581_v42 = vcombine.low %v1541_v24, %v1555_v30  ;;  %v2571_v23 = vsel %vm6074_vm3, %v2566_v57, %v2570_v59  ;;  %v2596_v40 = vshll.u32 %v4833_v60, 16  ;;  %v2585_v44 = vsel %vm6074_vm3, %v2580_v27, %v2584_v63  ;;  %v4841_v30 = vld [vmem:[%s6028_s23 + $0x84] sm:$0x1] }
  0x7e   : > { %5392 = vmatprep.mubr.msk.bf16.mxu1 %vm230_vm0, %v6453_v19  ;;  %v2593_v45 = vor.u32 %v2592_v21, %v2589_v18  ;;  %v2607_v53 = vor.u32 %v2606_v11, %v2603_v28  ;;  %v2610_v7 = vshll.u32 %v4835_v15, 16  ;;  %v2643_v51 = vshrl.u32 %v4840_v33, 16  ;;  %v6597_v15 = vld [vmem:[%s6927_s1] sm:$0xff]  }
  0x7f   : > { %v2646_v62 = vshll.u32 %v4840_v33, 16  ;;  %v2657_v43 = vshrl.u32 %v4842_v37, 16  ;;  %v2660_v1 = vshll.u32 %v4842_v37, 16  ;;  %v2621_v57 = vor.u32 %v2620_v39, %v2617_v17 }
  0x80   : > { %v2624_v59 = vshll.u32 %v4837_v31, 16  ;;  %v2635_v60 = vor.u32 %v2634_v25, %v2631_v22  ;;  %v2638_v10 = vshll.u32 %v4839_v32, 16  ;;  %v2598_v63 = vrot.slane %v2596_v40, 5  ;;  %v4843_v22 = vld [vmem:[%s6028_s23 + $0x8c] sm:$0x1] }
  0x81   : > { %v6602_v18 = vcombine.low %v2571_v23, %v2585_v44  ;;  %v2594_v21 = vrot.slane %v2593_v45, 4  ;;  %v2608_v28 = vrot.slane %v2607_v53, 4  ;;  %v2612_v24 = vrot.slane %v2610_v7, 5 }
  0x82   : > { %v2645_v27 = vrot.slane %v2643_v51, 4  ;;  %v2648_v11 = vrot.slane %v2646_v62, 5  ;;  %v2659_v31 = vrot.slane %v2657_v43, 4  ;;  %v2662_v32 = vrot.slane %v2660_v1, 5 }
  0x83   : > { %5297 = vmatmul.mubr.msk.bf16.vlgmr.msra.gmra.mrb[0].mxu0 %vm230_vm0, %v6472_v46  ;;  %v2622_v33 = vrot.slane %v2621_v57, 4  ;;  %v2626_v37 = vrot.slane %v2624_v59, 5  ;;  %v2636_v17 = vrot.slane %v2635_v60, 4  ;;  %v2640_v39 = vrot.slane %v2638_v10, 5  ;;  %v5958_v60 = vld [vmem:[%s6927_s1 + $0x8] sm:$0xff]  }
  0x84   : > { %5300 = vmatprep.mubr.msk.bf16.mxu0 %vm230_vm0, %v6490_v13  ;;  %5305 = vmatpush3.bf16.msra.mxu0 %v6433_v61  ;;  %v2599_v25 = vsel %vm6074_vm3, %v2594_v21, %v2598_v63  ;;  %v2652_v23 = vshll.u32 %v4841_v30, 16  ;;  %v2649_v40 = vor.u32 %v2648_v11, %v2645_v27  ;;  %v2663_v44 = vor.u32 %v2662_v32, %v2659_v31  ;;  %v5959_v21 = vld [vmem:[%s6927_s1 + $0x20] sm:$0xff]   ;;  %v5962_v30 = vld [vmem:[%s6028_s23 + $0xb0] ss:$8 sps:$4 sm:$0xff]  }
  0x85   : > { %5306 = vmatprep.subr.bf16.mxu0 %v6481_v3  ;;  %5393 = vmatmul.mubr.msk.bf16.vlgmr.msra.gmra.mrb[0].mxu1 %vm230_vm0, %v6472_v46  ;;  %v2666_v45 = vshll.u32 %v4843_v22, 16  ;;  %v2627_v53 = vsel %vm6074_vm3, %v2622_v33, %v2626_v37  ;;  %v2641_v7 = vsel %vm6074_vm3, %v2636_v17, %v2640_v39  ;;  %v5964_v27 = vld [vmem:[%s6927_s1 + $0x30] sm:$0xff]   ;;  %v5965_v11 = vld [vmem:[%s6028_s23 + $0xc0] ss:$8 sps:$4 sm:$0xff]   ;;  %v5967_v31 = vld [vmem:[%s6927_s1 + $0x38] sm:$0xff]  }
  0x86   : > { %5401 = vmatpush3.bf16.msra.mxu1 %v6370_v9  ;;  %5396 = vmatprep.mubr.msk.bf16.mxu1 %vm230_vm0, %v6490_v13  ;;  %v2654_v62 = vrot.slane %v2652_v23, 5  ;;  %v6626_v43 = vcombine.low %v2627_v53, %v2641_v7  ;;  %v2650_v1 = vrot.slane %v2649_v40, 4  ;;  %v2664_v57 = vrot.slane %v2663_v44, 4  ;;  %v4918_v37 = vld [vmem:[%s6028_s23 + $0xc0] sm:$0xf] }
  0x87   : > { %5402 = vmatprep.subr.bf16.mxu1 %v6416_v50  ;;  %v2668_v59 = vrot.slane %v2666_v45, 5  ;;  %v4913_v22 = vld [vmem:[%s6028_s23 + $0xac] sm:$0x1]  ;;  %v3512_v45 = vshrl.u32 %v4918_v37, 16  ;;  %v3515_v53 = vshll.u32 %v4918_v37, 16 }
  0x88   : > { %5307 = vmatpush3.bf16.msra.mxu0 %v6481_v3  ;;  %v2655_v10 = vsel %vm6074_vm3, %v2650_v1, %v2654_v62  ;;  %v4920_v7 = vld [vmem:[%s6028_s23 + $0xc8] sm:$0xf]  ;;  %v3479_v1 = vshll.u32 %v4913_v22, 16 }
  0x89   : > { %5424 = vmatprep.subr.bf16.mxu0 %v6528_v16  ;;  %v2669_v63 = vsel %vm6074_vm3, %v2664_v57, %v2668_v59  ;;  %v4922_v57 = vld [vmem:[%s6028_s23 + $0xd0] sm:$0xf] }
  0x8a   : > { %5403 = vmatpush3.bf16.msra.mxu1 %v6416_v50 }
  0x8b   : > { %5301 = vmatmul.mubr.msk.bf16.gmra.mrb[4].mxu0 %vm230_vm0, %v6515_v34  ;;  %5412 = vmatprep.subr.bf16.mxu1 %v6433_v61 }
  0x8c   : > { %5308 = vmatprep.mubr.msk.bf16.mxu0 %vm230_vm0, %v6523_v14 }
  0x8d   : > { %5397 = vmatmul.mubr.msk.bf16.gmra.mrb[4].mxu1 %vm230_vm0, %v6515_v34 }
  0x8e   : > { %5404 = vmatprep.mubr.msk.bf16.mxu1 %vm230_vm0, %v6523_v14 }
  0x93   : > { %5309 = vmatmul.mubr.msk.bf16.vlgmr.msra.gmra.mrb[0].mxu0 %vm230_vm0, %v6556_v55 }
  0x94   : > { %5312 = vmatprep.mubr.msk.bf16.mxu0 %vm230_vm0, %v6558_v56  ;;  %5425 = vmatpush3.bf16.msra.mxu0 %v6528_v16 }
  0x95   : > { %5426 = vmatprep.subr.bf16.mxu0 %v6578_v38  ;;  %5405 = vmatmul.mubr.msk.bf16.vlgmr.msra.gmra.mrb[0].mxu1 %vm230_vm0, %v6556_v55 }
  0x96   : > { %5413 = vmatpush3.bf16.msra.mxu1 %v6433_v61  ;;  %5408 = vmatprep.mubr.msk.bf16.mxu1 %vm230_vm0, %v6558_v56 }
  0x97   : > { %5414 = vmatprep.subr.bf16.mxu1 %v6481_v3 }
  0x98   : > { %5427 = vmatpush3.bf16.msra.mxu0 %v6578_v38 }
  0x99   : > { %5436 = vmatprep.subr.bf16.mxu0 %v6597_v15 }
  0x9a   : > { %5415 = vmatpush3.bf16.msra.mxu1 %v6481_v3 }
  0x9b   : > { %5313 = vmatmul.mubr.msk.bf16.gmra.mrb[4].mxu0 %vm230_vm0, %v6581_v42  ;;  %5532 = vmatprep.subr.bf16.mxu1 %v6528_v16 }
  0x9c   : > { %5428 = vmatprep.mubr.msk.bf16.mxu0 %vm230_vm0, %v6239_v48  ;;  %v2613_v48 = vsel %vm6074_vm3, %v2608_v28, %v2612_v24  ;;  %v5960_v28 = vld [vmem:[%s6028_s23 + $0x90] ss:$8 sps:$4 sm:$0xff]   ;;  %v5961_v24 = vld [vmem:[%s6028_s23 + $0xa0] ss:$8 sps:$4 sm:$0xff]  }
  0x9d   : > { %5409 = vmatmul.mubr.msk.bf16.gmra.mrb[4].mxu1 %vm230_vm0, %v6581_v42  ;;  %v6622_v51 = vcombine.low %v2599_v25, %v2613_v48 }
  0x9e   : > { %5416 = vmatprep.mubr.msk.bf16.mxu1 %vm230_vm0, %v6602_v18 }
  0xa3   : > { %5429 = vmatmul.mubr.msk.bf16.vlgmr.msra.gmra.mrb[8].mxu0 %vm230_vm0, %v6257_v12 }
  0xa4   : > { %5432 = vmatprep.mubr.msk.bf16.mxu0 %vm230_vm0, %v6263_v58  ;;  %5437 = vmatpush3.bf16.msra.mxu0 %v6597_v15 }
  0xa5   : > { %5438 = vmatprep.subr.bf16.mxu0 %v5958_v60  ;;  %5417 = vmatmul.mubr.msk.bf16.vlgmr.msra.gmra.mrb[0].mxu1 %vm230_vm0, %v6622_v51 }
  0xa6   : > { %5533 = vmatpush3.bf16.msra.mxu1 %v6528_v16  ;;  %5420 = vmatprep.mubr.msk.bf16.mxu1 %vm230_vm0, %v6626_v43  ;;  %v6647_v16 = vcombine.low %v2655_v10, %v2669_v63 }
  0xa7   : > { %5534 = vmatprep.subr.bf16.mxu1 %v6578_v38 }
  0xa8   : > { %5439 = vmatpush3.bf16.msra.mxu0 %v5958_v60 }
  0xa9   : > { %5448 = vmatprep.subr.bf16.mxu0 %v5959_v21 }
  0xaa   : > { %5535 = vmatpush3.bf16.msra.mxu1 %v6578_v38  ;;  %v5963_v38 = vld [vmem:[%s6927_s1 + $0x28] sm:$0xff]  }
  0xab   : > { %5433 = vmatmul.mubr.msk.bf16.gmra.mrb[12].mxu0 %vm230_vm0, %v6299_v5  ;;  %5544 = vmatprep.subr.bf16.mxu1 %v6597_v15 }
  0xac   : > { %5440 = vmatprep.mubr.msk.bf16.mxu0 %vm230_vm0, %v5960_v28 }
  0xad   : > { %5421 = vmatmul.mubr.msk.bf16.gmra.mrb[4].mxu1 %vm230_vm0, %v6647_v16 }
  0xae   : > { %5536 = vmatprep.mubr.msk.bf16.mxu1 %vm230_vm0, %v6305_v6 }
  0xb3   : > { %5441 = vmatmul.mubr.msk.bf16.vlgmr.msra.gmra.mrb[8].mxu0 %vm230_vm0, %v5961_v24 }
  0xb4   : > { %5444 = vmatprep.mubr.msk.bf16.mxu0 %vm230_vm0, %v5962_v30  ;;  %5449 = vmatpush3.bf16.msra.mxu0 %v5959_v21  ;;  %v3526_v30 = vshrl.u32 %v4920_v7, 16 }
  0xb5   : > { %5450 = vmatprep.subr.bf16.mxu0 %v5963_v38  ;;  %5537 = vmatmul.mubr.msk.bf16.vlgmr.msra.gmra.mrb[8].mxu1 %vm230_vm0, %v6329_v26 }
  0xb6   : > { %5545 = vmatpush3.bf16.msra.mxu1 %v6597_v15  ;;  %5540 = vmatprep.mubr.msk.bf16.mxu1 %vm230_vm0, %v6331_v4  ;;  %v5966_v15 = vld [vmem:[%s6028_s23 + $0xd8] ss:$8 sps:$4 sm:$0xff]  }
  0xb7   : > { %5546 = vmatprep.subr.bf16.mxu1 %v5958_v60 }
  0xb8   : > { %5451 = vmatpush3.bf16.msra.mxu0 %v5963_v38 }
  0xb9   : > { %5460 = vmatprep.subr.bf16.mxu0 %v5964_v27 }
  0xba   : > { %5547 = vmatpush3.bf16.msra.mxu1 %v5958_v60 }
  0xbb   : > { %5445 = vmatmul.mubr.msk.bf16.gmra.mrb[12].mxu0 %vm230_vm0, %v5965_v11  ;;  %5556 = vmatprep.subr.bf16.mxu1 %v5959_v21  ;;  %v3514_v11 = vrot.slane %v3512_v45, 4 }
  0xbc   : > { %5452 = vmatprep.mubr.msk.bf16.mxu0 %vm230_vm0, %v6305_v6  ;;  %v5968_v6 = vld [vmem:[%s6927_s1 + $0x40] sm:$0xff]  }
  0xbd   : > { %5541 = vmatmul.mubr.msk.bf16.gmra.mrb[12].mxu1 %vm230_vm0, %v6362_v0 }
  0xbe   : > { %5548 = vmatprep.mubr.msk.bf16.mxu1 %vm230_vm0, %v5966_v15  ;;  %v3540_v15 = vshrl.u32 %v4922_v57, 16 }
  0xc3   : > { %5453 = vmatmul.mubr.msk.bf16.vlgmr.msra.gmra.mrb[8].mxu0 %vm230_vm0, %v6329_v26  ;;  %v5947_v26 = vld [vmem:[%s6028_s23 + $0x98] ss:$8 sps:$4 sm:$0xff]  }
  0xc4   : > { %5456 = vmatprep.mubr.msk.bf16.mxu0 %vm230_vm0, %v6331_v4  ;;  %5461 = vmatpush3.bf16.msra.mxu0 %v5964_v27  ;;  %v5948_v4 = vld [vmem:[%s6028_s23 + $0xa8] ss:$8 sps:$4 sm:$0xff]  }
  0xc5   : > { %5462 = vmatprep.subr.bf16.mxu0 %v5967_v31  ;;  %5549 = vmatmul.mubr.msk.bf16.vlgmr.msra.gmra.mrb[8].mxu1 %vm230_vm0, %v6257_v12  ;;  %v5969_v12 = vld [vmem:[%s6927_s1 + $0x48] sm:$0xff]  }
  0xc6   : > { %5557 = vmatpush3.bf16.msra.mxu1 %v5959_v21  ;;  %5552 = vmatprep.mubr.msk.bf16.mxu1 %vm230_vm0, %v6263_v58  ;;  %v5970_v58 = vld [vmem:[%s6927_s1 + $0x50] sm:$0xff]   ;;  %v4917_v21 = vld [vmem:[%s6028_s23 + $0xbc] sm:$0x1] }
  0xc7   : > { %5558 = vmatprep.subr.bf16.mxu1 %v5963_v38 }
  0xc8   : > { %5463 = vmatpush3.bf16.msra.mxu0 %v5967_v31 }
  0xc9   : > { %5472 = vmatprep.subr.bf16.mxu0 %v5968_v6 }
  0xca   : > { %5559 = vmatpush3.bf16.msra.mxu1 %v5963_v38  ;;  %v3529_v38 = vshll.u32 %v4920_v7, 16  ;;  %v4965_v7 = vld [vmem:[%s6028_s23 + $0xe4] sm:$0x1] }
  0xcb   : > { %5457 = vmatmul.mubr.msk.bf16.gmra.mrb[12].mxu0 %vm230_vm0, %v6362_v0  ;;  %5568 = vmatprep.subr.bf16.mxu1 %v5964_v27  ;;  %v5949_v0 = vld [vmem:[%s6028_s23 + $0xb8] ss:$8 sps:$4 sm:$0xff]  }
  0xcc   : > { %5464 = vmatprep.mubr.msk.bf16.mxu0 %vm230_vm0, %v6365_v20  ;;  %v4908_v20 = vld [vmem:[%s6028_s23 + $0x98] sm:$0xf] }
  0xcd   : > { %5553 = vmatmul.mubr.msk.bf16.gmra.mrb[12].mxu1 %vm230_vm0, %v6299_v5  ;;  %v5971_v5 = vld [vmem:[%s6927_s1 + $0x58] sm:$0xff]  }
  0xce   : > { %5560 = vmatprep.mubr.msk.bf16.mxu1 %vm230_vm0, %v6390_v36  ;;  %v4910_v36 = vld [vmem:[%s6028_s23 + $0xa0] sm:$0xf] }
  0xd3   : > { %5465 = vmatmul.mubr.msk.bf16.vlgmr.msra.gmra.mrb[8].mxu0 %vm230_vm0, %v6398_v2  ;;  %v3442_v2 = vshrl.u32 %v4908_v20, 16 }
  0xd4   : > { %5468 = vmatprep.mubr.msk.bf16.mxu0 %vm230_vm0, %v6411_v49  ;;  %5473 = vmatpush3.bf16.msra.mxu0 %v5968_v6  ;;  %v3445_v49 = vshll.u32 %v4908_v20, 16  ;;  %v4964_v20 = vld [vmem:[%s6028_s23 + $0xe0] sm:$0xf] }
  0xd5   : > { %5474 = vmatprep.subr.bf16.mxu0 %v5969_v12  ;;  %5561 = vmatmul.mubr.msk.bf16.vlgmr.msra.gmra.mrb[8].mxu1 %vm230_vm0, %v6420_v52  ;;  %v3456_v52 = vshrl.u32 %v4910_v36, 16 }
  0xd6   : > { %5569 = vmatpush3.bf16.msra.mxu1 %v5964_v27  ;;  %5564 = vmatprep.mubr.msk.bf16.mxu1 %vm230_vm0, %v6424_v54  ;;  %v3459_v54 = vshll.u32 %v4910_v36, 16  ;;  %v4919_v27 = vld [vmem:[%s6028_s23 + $0xc4] sm:$0x1]  ;;  %v3507_v36 = vshll.u32 %v4917_v21, 16  ;;  %v4252_v21 = vshll.u32 %v4965_v7, 16 }
  0xd7   : > { %5570 = vmatprep.subr.bf16.mxu1 %v5967_v31  ;;  %v3458_v32 = vrot.slane %v3456_v52, 4  ;;  %v3531_v52 = vrot.slane %v3529_v38, 5 }
  0xd8   : > { %5475 = vmatpush3.bf16.msra.mxu0 %v5969_v12  ;;  %v3461_v33 = vrot.slane %v3459_v54, 5  ;;  %v4966_v54 = vld [vmem:[%s6028_s23 + $0xe8] sm:$0xf]  ;;  %v3509_v22 = vrot.slane %v3507_v36, 5 }
  0xd9   : > { %5484 = vmatprep.subr.bf16.mxu0 %v5970_v58  ;;  %v4260_v37 = vshll.u32 %v4966_v54, 16 }
  0xda   : > { %5571 = vmatpush3.bf16.msra.mxu1 %v5967_v31  ;;  %v3543_v31 = vshll.u32 %v4922_v57, 16  ;;  %v4967_v57 = vld [vmem:[%s6028_s23 + $0xec] sm:$0x1] }
  0xdb   : > { %5469 = vmatmul.mubr.msk.bf16.gmra.mrb[12].mxu0 %vm230_vm0, %v6443_v8  ;;  %5580 = vmatprep.subr.bf16.mxu1 %v5968_v6  ;;  %v4912_v8 = vld [vmem:[%s6028_s23 + $0xa8] sm:$0xf] }
  0xdc   : > { %5476 = vmatprep.mubr.msk.bf16.mxu0 %vm230_vm0, %v6453_v19 }
  0xdd   : > { %5565 = vmatmul.mubr.msk.bf16.gmra.mrb[12].mxu1 %vm230_vm0, %v6459_v29  ;;  %v3444_v29 = vrot.slane %v3442_v2, 4  ;;  %v3521_v2 = vshll.u32 %v4919_v27, 16 }
  0xde   : > { %5572 = vmatprep.mubr.msk.bf16.mxu1 %vm230_vm0, %v6453_v19  ;;  %v5950_v19 = vld [vmem:[%s6028_s23 + $0xc8] ss:$8 sps:$4 sm:$0xff]  }
  0xe3   : > { %5477 = vmatmul.mubr.msk.bf16.vlgmr.msra.gmra.mrb[8].mxu0 %vm230_vm0, %v6472_v46 }
  0xe4   : > { %5480 = vmatprep.mubr.msk.bf16.mxu0 %vm230_vm0, %v6490_v13  ;;  %5485 = vmatpush3.bf16.msra.mxu0 %v5970_v58 }
  0xe5   : > { %5486 = vmatprep.subr.bf16.mxu0 %v5971_v5  ;;  %5573 = vmatmul.mubr.msk.bf16.vlgmr.msra.gmra.mrb[8].mxu1 %vm230_vm0, %v6472_v46  ;;  %v3447_v46 = vrot.slane %v3445_v49, 5  ;;  %v3528_v49 = vrot.slane %v3526_v30, 4 }
  0xe6   : > { %5581 = vmatpush3.bf16.msra.mxu1 %v5968_v6  ;;  %5576 = vmatprep.mubr.msk.bf16.mxu1 %vm230_vm0, %v6490_v13  ;;  %v4909_v13 = vld [vmem:[%s6028_s23 + $0x9c] sm:$0x1]  ;;  %v5953_v6 = vld [vmem:[%s6028_s23 + $0x100] ss:$8 sps:$4 sm:$0xff]  }
  0xe7   : > { %5582 = vmatprep.subr.bf16.mxu1 %v5969_v12  ;;  %v3448_v17 = vor.u32 %v3447_v46, %v3444_v29  ;;  %v3451_v39 = vshll.u32 %v4909_v13, 16  ;;  %v4921_v29 = vld [vmem:[%s6028_s23 + $0xcc] sm:$0x1]  ;;  %v3542_v46 = vrot.slane %v3540_v15, 4  ;;  %v3545_v13 = vrot.slane %v3543_v31, 5 }
  0xe8   : > { %5487 = vmatpush3.bf16.msra.mxu0 %v5971_v5  ;;  %v4972_v15 = vld [vmem:[%s6028_s23 + $0x100] sm:$0xf]  ;;  %v4974_v31 = vld [vmem:[%s6028_s23 + $0x108] sm:$0xf] }
  0xe9   : > { %5496 = vmatprep.subr.bf16.mxu0 %v6291_v41  ;;  %v5972_v41 = vld [vmem:[%s6927_s1 + $0x60] sm:$0xff]   ;;  %v6801_v59 = vrot.slane %v3448_v17, 4  ;;  %v6803_v60 = vrot.slane %v3451_v39, 5  ;;  %v5973_v17 = vld [vmem:[%s6927_s1 + $0x70] sm:$0xff]   ;;  %v3546_v45 = vor.u32 %v3545_v13, %v3542_v46  ;;  %v4313_v36 = vshrl.u32 %v4974_v31, 16 }
  0xea   : > { %5583 = vmatpush3.bf16.msra.mxu1 %v5969_v12  ;;  %v5954_v39 = vld [vmem:[%s6028_s23 + $0x110] ss:$8 sps:$4 sm:$0xff]  }
  0xeb   : > { %5481 = vmatmul.mubr.msk.bf16.gmra.mrb[12].mxu0 %vm230_vm0, %v6515_v34  ;;  %5592 = vmatprep.subr.bf16.mxu1 %v5970_v58  ;;  %v3547_v38 = vrot.slane %v3546_v45, 4  ;;  %v5974_v45 = vld [vmem:[%s6927_s1 + $0x80] sm:$0xff]  }
  0xec   : > { %5488 = vmatprep.mubr.msk.bf16.mxu0 %vm230_vm0, %v6523_v14 }
  0xed   : > { %5577 = vmatmul.mubr.msk.bf16.gmra.mrb[12].mxu1 %vm230_vm0, %v6515_v34  ;;  %v4914_v34 = vld [vmem:[%s6028_s23 + $0xb0] sm:$0xf] }
  0xee   : > { %5584 = vmatprep.mubr.msk.bf16.mxu1 %vm230_vm0, %v6523_v14  ;;  %v5951_v14 = vld [vmem:[%s6028_s23 + $0xe0] ss:$8 sps:$4 sm:$0xff]   ;;  %v3484_v25 = vshrl.u32 %v4914_v34, 16  ;;  %v3487_v23 = vshll.u32 %v4914_v34, 16 }
  0xf0   : > { %v3486_v10 = vrot.slane %v3484_v25, 4  ;;  %v3489_v63 = vrot.slane %v3487_v23, 5  ;;  %v3523_v25 = vrot.slane %v3521_v2, 5  ;;  %v3532_v23 = vor.u32 %v3531_v52, %v3528_v49 }
  0xf1   : > { %v4316_v2 = vshll.u32 %v4974_v31, 16 }
  0xf3   : > { %5489 = vmatmul.mubr.msk.bf16.vlgmr.msra.gmra.mrb[8].mxu0 %vm230_vm0, %v6556_v55 }
  0xf4   : > { %5492 = vmatprep.mubr.msk.bf16.mxu0 %vm230_vm0, %v6558_v56  ;;  %5497 = vmatpush3.bf16.msra.mxu0 %v5972_v41 }
  0xf5   : > { %5498 = vmatprep.subr.bf16.mxu0 %v6348_v47  ;;  %5585 = vmatmul.mubr.msk.bf16.vlgmr.msra.gmra.mrb[8].mxu1 %vm230_vm0, %v6556_v55  ;;  %v3470_v55 = vshrl.u32 %v4912_v8, 16 }
  0xf6   : > { %5593 = vmatpush3.bf16.msra.mxu1 %v5970_v58  ;;  %5588 = vmatprep.mubr.msk.bf16.mxu1 %vm230_vm0, %v6558_v56  ;;  %v3473_v56 = vshll.u32 %v4912_v8, 16 }
  0xf7   : > { %5594 = vmatprep.subr.bf16.mxu1 %v5971_v5  ;;  %v3472_v44 = vrot.slane %v3470_v55, 4  ;;  %v4923_v55 = vld [vmem:[%s6028_s23 + $0xd4] sm:$0x1] }
  0xf8   : > { %5499 = vmatpush3.bf16.msra.mxu0 %v6348_v47 }
  0xf9   : > { %5508 = vmatprep.subr.bf16.mxu0 %v6370_v9 }
  0xfa   : > { %5595 = vmatpush3.bf16.msra.mxu1 %v5971_v5 }
  0xfb   : > { %5493 = vmatmul.mubr.msk.bf16.gmra.mrb[12].mxu0 %vm230_vm0, %v6581_v42  ;;  %5604 = vmatprep.subr.bf16.mxu1 %v5972_v41 }
  0xfc   : > { %5500 = vmatprep.mubr.msk.bf16.mxu0 %vm230_vm0, %v5947_v26  ;;  %v6815_v26 = vrot.slane %v3479_v1, 5 }
  0xfd   : > { %5589 = vmatmul.mubr.msk.bf16.gmra.mrb[12].mxu1 %vm230_vm0, %v6581_v42  ;;  %v4916_v42 = vld [vmem:[%s6028_s23 + $0xb8] sm:$0xf] }
  0xfe   : > { %5596 = vmatprep.mubr.msk.bf16.mxu1 %vm230_vm0, %v6602_v18  ;;  %v4911_v18 = vld [vmem:[%s6028_s23 + $0xa4] sm:$0x1]  ;;  %v3498_v48 = vshrl.u32 %v4916_v42, 16  ;;  %v3501_v40 = vshll.u32 %v4916_v42, 16  ;;  %v4246_v42 = vshll.u32 %v4964_v20, 16 }
  0xff   : > { %v3465_v62 = vshll.u32 %v4911_v18, 16 }
 0x100   : > { %v3500_v28 = vrot.slane %v3498_v48, 4  ;;  %v3503_v24 = vrot.slane %v3501_v40, 5  ;;  %v3535_v48 = vshll.u32 %v4921_v29, 16  ;;  %v4969_v29 = vld [vmem:[%s6028_s23 + $0xf4] sm:$0x1] }
 0x101   : > { %v3467_v58 = vrot.slane %v3465_v62, 5 }
 0x102   : > { %v3504_v8 = vor.u32 %v3503_v24, %v3500_v28  ;;  %v4970_v28 = vld [vmem:[%s6028_s23 + $0xf8] sm:$0xf] }
 0x103   : > { %5501 = vmatmul.mubr.msk.bf16.vlgmr.msra.gmra.mrb[8].mxu0 %vm230_vm0, %v5948_v4  ;;  %v3490_v4 = vor.u32 %v3489_v63, %v3486_v10  ;;  %v3533_v10 = vrot.slane %v3532_v23, 4  ;;  %v3537_v63 = vrot.slane %v3535_v48, 5 }
 0x104   : > { %5504 = vmatprep.mubr.msk.bf16.mxu0 %vm230_vm0, %v5949_v0  ;;  %5509 = vmatpush3.bf16.msra.mxu0 %v6370_v9  ;;  %v3505_v40 = vrot.slane %v3504_v8, 4 }
 0x105   : > { %5510 = vmatprep.subr.bf16.mxu0 %v6416_v50  ;;  %5597 = vmatmul.mubr.msk.bf16.vlgmr.msra.gmra.mrb[8].mxu1 %vm230_vm0, %v6622_v51  ;;  %v3462_v51 = vor.u32 %v3461_v33, %v3458_v32  ;;  %v3491_v18 = vrot.slane %v3490_v4, 4  ;;  %v4257_v33 = vshrl.u32 %v4966_v54, 16  ;;  %v4254_v4 = vrot.slane %v4252_v21, 5  ;;  %v4977_v21 = vld [vmem:[%s6028_s23 + $0x114] sm:$0x1] }
 0x106   : > { %5605 = vmatpush3.bf16.msra.mxu1 %v5972_v41  ;;  %5600 = vmatprep.mubr.msk.bf16.mxu1 %vm230_vm0, %v6626_v43  ;;  %v3475_v43 = vrot.slane %v3473_v56, 5  ;;  %v3454_v41 = vsel %vm6074_vm3, %v6801_v59, %v6803_v60  ;;  %v4243_v56 = vshrl.u32 %v4964_v20, 16  ;;  %v4262_v59 = vrot.slane %v4260_v37, 5  ;;  %v4968_v60 = vld [vmem:[%s6028_s23 + $0xf0] sm:$0xf] }
 0x107   : > { %5606 = vmatprep.subr.bf16.mxu1 %v6348_v47  ;;  %v3463_v12 = vrot.slane %v3462_v51, 4  ;;  %v3510_v24 = vsel %vm6074_vm3, %v3505_v40, %v3509_v22  ;;  %v4302_v20 = vshll.u32 %v4972_v15, 16  ;;  %v4973_v22 = vld [vmem:[%s6028_s23 + $0x104] sm:$0x1] }
 0x108   : > { %5511 = vmatpush3.bf16.msra.mxu0 %v6416_v50  ;;  %v3476_v5 = vor.u32 %v3475_v43, %v3472_v44  ;;  %v4245_v62 = vrot.slane %v4243_v56, 4  ;;  %v4248_v43 = vrot.slane %v4246_v42, 5 }
 0x109   : > { %5520 = vmatprep.subr.bf16.mxu0 %v6433_v61  ;;  %v3468_v34 = vsel %vm6074_vm3, %v3463_v12, %v3467_v58  ;;  %v4274_v12 = vshll.u32 %v4968_v60, 16  ;;  %v4285_v58 = vshrl.u32 %v4970_v28, 16  ;;  %v4304_v42 = vrot.slane %v4302_v20, 5 }
 0x10a   : > { %5607 = vmatpush3.bf16.msra.mxu1 %v6348_v47  ;;  %v5952_v47 = vld [vmem:[%s6028_s23 + $0xf0] ss:$8 sps:$4 sm:$0xff]   ;;  %v4924_v51 = vcombine.low %v3454_v41, %v3468_v34  ;;  %v4249_v27 = vor.u32 %v4248_v43, %v4245_v62 }
 0x10b   : > { %5505 = vmatmul.mubr.msk.bf16.gmra.mrb[12].mxu0 %vm230_vm0, %v5950_v19  ;;  %5616 = vmatprep.subr.bf16.mxu1 %v6370_v9  ;;  %v4915_v9 = vld [vmem:[%s6028_s23 + $0xb4] sm:$0x1]  ;;  %v4276_v46 = vrot.slane %v4274_v12, 5  ;;  %v4287_v13 = vrot.slane %v4285_v58, 4 }
 0x10c   : > { %5512 = vmatprep.mubr.msk.bf16.mxu0 %vm230_vm0, %v5951_v14  ;;  %v3493_v0 = vshll.u32 %v4915_v9, 16  ;;  %v4250_v52 = vrot.slane %v4249_v27, 4 }
 0x10d   : > { %5601 = vmatmul.mubr.msk.bf16.gmra.mrb[12].mxu1 %vm230_vm0, %v6647_v16  ;;  %v3517_v16 = vrot.slane %v3515_v53, 5  ;;  %v3549_v53 = vshll.u32 %v4923_v55, 16  ;;  %v4976_v55 = vld [vmem:[%s6028_s23 + $0x110] sm:$0xf] }
 0x10e   : > { %5608 = vmatprep.mubr.msk.bf16.mxu1 %vm230_vm0, %v5951_v14  ;;  %v3477_v14 = vrot.slane %v3476_v5, 4  ;;  %v3495_v32 = vrot.slane %v3493_v0, 5  ;;  %v4288_v5 = vshll.u32 %v4970_v28, 16  ;;  %v4299_v0 = vshrl.u32 %v4972_v15, 16  ;;  %v4979_v15 = vld [vmem:[%s6028_s23 + $0x11c] sm:$0x1] }
 0x10f   : > { %v3518_v19 = vor.u32 %v3517_v16, %v3514_v11  ;;  %v4266_v11 = vshll.u32 %v4967_v57, 16  ;;  %v4271_v16 = vshrl.u32 %v4968_v60, 16  ;;  %v4330_v7 = vshll.u32 %v4976_v55, 16 }
 0x110   : > { %v3482_v1 = vsel %vm6074_vm3, %v3477_v14, %v6815_v26  ;;  %v3496_v9 = vsel %vm6074_vm3, %v3491_v18, %v3495_v32  ;;  %v3538_v26 = vsel %vm6074_vm3, %v3533_v10, %v3537_v63  ;;  %v4290_v34 = vrot.slane %v4288_v5, 5  ;;  %v4971_v14 = vld [vmem:[%s6028_s23 + $0xfc] sm:$0x1] }
 0x111   : > { %v3519_v44 = vrot.slane %v3518_v19, 4  ;;  %v4268_v54 = vrot.slane %v4266_v11, 5  ;;  %v4273_v8 = vrot.slane %v4271_v16, 4  ;;  %v4301_v56 = vrot.slane %v4299_v0, 4 }
 0x112   : > { %v4315_v18 = vrot.slane %v4313_v36, 4  ;;  %v4318_v32 = vrot.slane %v4316_v2, 5  ;;  %v4291_v40 = vor.u32 %v4290_v34, %v4287_v13  ;;  %v4350_v5 = vshll.u32 %v4979_v15, 16 }
 0x113   : > { %5513 = vmatmul.mubr.msk.bf16.vlgmr.msra.gmra.mrb[8].mxu0 %vm230_vm0, %v5952_v47  ;;  %v3524_v30 = vsel %vm6074_vm3, %v3519_v44, %v3523_v25  ;;  %v4975_v25 = vld [vmem:[%s6028_s23 + $0x10c] sm:$0x1]  ;;  %v4277_v48 = vor.u32 %v4276_v46, %v4273_v8  ;;  %v4294_v44 = vshll.u32 %v4971_v14, 16  ;;  %v4305_v43 = vor.u32 %v4304_v42, %v4301_v56 }
 0x114   : > { %5516 = vmatprep.mubr.msk.bf16.mxu0 %vm230_vm0, %v5953_v6  ;;  %5521 = vmatpush3.bf16.msra.mxu0 %v6433_v61  ;;  %v4926_v41 = vcombine.low %v3510_v24, %v3524_v30  ;;  %v4319_v57 = vor.u32 %v4318_v32, %v4315_v18  ;;  %v4292_v10 = vrot.slane %v4291_v40, 4  ;;  %v4332_v24 = vrot.slane %v4330_v7, 5 }
 0x115   : > { %5522 = vmatprep.subr.bf16.mxu0 %v6481_v3  ;;  %5609 = vmatmul.mubr.msk.bf16.vlgmr.msra.gmra.mrb[8].mxu1 %vm230_vm0, %v5952_v47  ;;  %v4259_v47 = vrot.slane %v4257_v33, 4  ;;  %v4978_v33 = vld [vmem:[%s6028_s23 + $0x118] sm:$0xf]  ;;  %v4296_v63 = vrot.slane %v4294_v44, 5  ;;  %v4352_v2 = vrot.slane %v4350_v5, 5 }
 0x116   : > { %5617 = vmatpush3.bf16.msra.mxu1 %v5973_v17  ;;  %5612 = vmatprep.mubr.msk.bf16.mxu1 %vm230_vm0, %v5953_v6  ;;  %v4255_v17 = vsel %vm6074_vm3, %v4250_v52, %v4254_v4  ;;  %v4344_v62 = vshll.u32 %v4978_v33, 16  ;;  %v4320_v11 = vrot.slane %v4319_v57, 4 }
 0x117   : > { %5618 = vmatprep.subr.bf16.mxu1 %v6416_v50  ;;  %v4263_v6 = vor.u32 %v4262_v59, %v4259_v47  ;;  %v4322_v47 = vshll.u32 %v4975_v25, 16 }
 0x118   : > { %5523 = vmatpush3.bf16.msra.mxu0 %v6481_v3 }
 0x119   : > { %v4264_v19 = vrot.slane %v4263_v6, 4  ;;  %v4324_v16 = vrot.slane %v4322_v47, 5  ;;  %v4336_v6 = vshll.u32 %v4977_v21, 16 }
 0x11a   : > { %5619 = vmatpush3.bf16.msra.mxu1 %v6416_v50  ;;  %v3551_v50 = vrot.slane %v3549_v53, 5  ;;  %v4327_v53 = vshrl.u32 %v4976_v55, 16 }
 0x11b   : > { %5517 = vmatmul.mubr.msk.bf16.gmra.mrb[12].mxu0 %vm230_vm0, %v5954_v39  ;;  %5628 = vmatprep.subr.bf16.mxu1 %v6433_v61  ;;  %v4925_v61 = vcombine.low %v3482_v1, %v3496_v9  ;;  %v4269_v23 = vsel %vm6074_vm3, %v4264_v19, %v4268_v54  ;;  %v4308_v1 = vshll.u32 %v4973_v22, 16  ;;  %v4278_v9 = vrot.slane %v4277_v48, 4 }
 0x11c   : > { %5524 = vmatprep.mubr.msk.bf16.mxu0 %vm230_vm0, %v4924_v51  ;;  %v3552_v49 = vsel %vm6074_vm3, %v3547_v38, %v3551_v50  ;;  %v4980_v60 = vcombine.low %v4255_v17, %v4269_v23  ;;  %v4329_v28 = vrot.slane %v4327_v53, 4  ;;  %v4346_v38 = vrot.slane %v4344_v62, 5 }
 0x11d   : > { %5613 = vmatmul.mubr.msk.bf16.gmra.mrb[12].mxu1 %vm230_vm0, %v5954_v39  ;;  %v4927_v37 = vcombine.low %v3538_v26, %v3552_v49  ;;  %v4280_v39 = vshll.u32 %v4969_v29, 16  ;;  %v4306_v50 = vrot.slane %v4305_v43, 4  ;;  %v4310_v27 = vrot.slane %v4308_v1, 5 }
 0x11e   : > { %5620 = vmatprep.mubr.msk.bf16.mxu1 %vm230_vm0, %v4924_v51  ;;  %v4341_v51 = vshrl.u32 %v4978_v33, 16  ;;  %v4333_v12 = vor.u32 %v4332_v24, %v4329_v28  ;;  %v4338_v4 = vrot.slane %v4336_v6, 5 }
 0x11f   : > { %v4282_v59 = vrot.slane %v4280_v39, 5 }
 0x120   : > { %v4343_v30 = vrot.slane %v4341_v51, 4  ;;  %v4334_v20 = vrot.slane %v4333_v12, 4 }
 0x121   : > { %v4283_v31 = vsel %vm6074_vm3, %v4278_v9, %v4282_v59 }
 0x122   : > { %v4347_v58 = vor.u32 %v4346_v38, %v4343_v30  ;;  %v4339_v49 = vsel %vm6074_vm3, %v4334_v20, %v4338_v4  ;;  %v4988_v38 = vld [vmem:[%s6928_s2] ss:$0 sm:$0xff] }
 0x123   : > { %5525 = vmatmul.mubr.msk.bf16.vlgmr.msra.gmra.mrb[8].mxu0 %vm230_vm0, %v4925_v61 }
 0x124   : > { %5528 = vmatprep.mubr.msk.bf16.mxu0 %vm230_vm0, %v4926_v41  ;;  %v4348_v36 = vrot.slane %v4347_v58, 4 }
 0x125   : > { %5621 = vmatmul.mubr.msk.bf16.vlgmr.msra.gmra.mrb[8].mxu1 %vm230_vm0, %v4925_v61  ;;  %v4311_v61 = vsel %vm6074_vm3, %v4306_v50, %v4310_v27 }
 0x126   : > { %5629 = vmatpush3.bf16.msra.mxu1 %v5974_v45  ;;  %5624 = vmatprep.mubr.msk.bf16.mxu1 %vm230_vm0, %v4926_v41  ;;  %v4325_v41 = vsel %vm6074_vm3, %v4320_v11, %v4324_v16  ;;  %v4353_v52 = vsel %vm6074_vm3, %v4348_v36, %v4352_v2 }
 0x127   : > { %5630 = vmatprep.subr.bf16.mxu1 %v6481_v3  ;;  %v4982_v0 = vcombine.low %v4311_v61, %v4325_v41  ;;  %v4983_v54 = vcombine.low %v4339_v49, %v4353_v52 }
 0x12a   : > { %5631 = vmatpush3.bf16.msra.mxu1 %v6481_v3  ;;  %v4297_v3 = vsel %vm6074_vm3, %v4292_v10, %v4296_v63 }
 0x12b   : > { %5529 = vmatmul.mubr.msk.bf16.gmra.mrb[12].mxu0 %vm230_vm0, %v4927_v37  ;;  %v4981_v26 = vcombine.low %v4283_v31, %v4297_v3 }
 0x12d   : > { %5625 = vmatmul.mubr.msk.bf16.gmra.mrb[12].mxu1 %vm230_vm0, %v4927_v37 }
 0x12e   : > { %5632 = vmatprep.mubr.msk.bf16.mxu1 %vm230_vm0, %v4980_v60 }
 0x135   : > { %5633 = vmatmul.mubr.msk.bf16.vlgmr.msra.gmra.mrb[8].mxu1 %vm230_vm0, %v4981_v26 }
 0x136   : > { %5636 = vmatprep.mubr.msk.bf16.mxu1 %vm230_vm0, %v4982_v0 }
 0x13d   : > { %5637 = vmatmul.mubr.msk.bf16.gmra.mrb[12].mxu1 %vm230_vm0, %v4983_v54 }
 0x166   : > { %v5310_v8 = vpop.f32.mrb[0].mxu0 }
 0x167   : > { %v1631_v19 = vpop.f32.mrb[1].mxu0 }
 0x168   : > { %v5311_v29 = vpop.f32.mrb[2].mxu0 }
 0x169   : > { %v1634_v46 = vpop.f32.mrb[3].mxu0 }
 0x16e   : > { %v5314_v13 = vpop.f32.mrb[4].mxu0 }
 0x16f   : > { %v1647_v34 = vpop.f32.mrb[5].mxu0 }
 0x170   : > { %v5315_v14 = vpop.f32.mrb[6].mxu0 }
 0x171   : > { %v1650_v55 = vpop.f32.mrb[7].mxu0 }
 0x178   : > { %v5418_v56 = vpop.f32.mrb[0].mxu1 }
 0x179   : > { %v2769_v42 = vmax.f32 %v5310_v8, %v5418_v56  ;;  %v2728_v18 = vpop.f32.mrb[1].mxu1 }
 0x17a   : > { %v2767_v32 = vmax.f32 %v1631_v19, %v2728_v18  ;;  %v5419_v33 = vpop.f32.mrb[2].mxu1 }
 0x17b   : > { %v2770_v37 = vmax.f32 %v5311_v29, %v5419_v33  ;;  %v2731_v17 = vpop.f32.mrb[3].mxu1 }
 0x17c   : > { %v2768_v35 = vmax.f32 %v1634_v46, %v2731_v17 }
 0x180   : > { %v5422_v39 = vpop.f32.mrb[4].mxu1 }
 0x181   : > { %v2773_v22 = vmax.f32 %v5314_v13, %v5422_v39  ;;  %v2744_v25 = vpop.f32.mrb[5].mxu1 }
 0x182   : > { %v2771_v23 = vmax.f32 %v1647_v34, %v2744_v25  ;;  %v5423_v48 = vpop.f32.mrb[6].mxu1 }
 0x183   : > { %v2774_v40 = vmax.f32 %v5315_v14, %v5423_v48  ;;  %v2747_v44 = vpop.f32.mrb[7].mxu1 }
 0x184   : > { %v2772_v45 = vmax.f32 %v1650_v55, %v2747_v44 }
 0x1f6   : > { %v5526_v53 = vpop.f32.mrb[8].mxu0 }
 0x1f7   : > { %v3652_v7 = vmax.f32 %v2769_v42, %v5526_v53  ;;  %v3611_v51 = vpop.f32.mrb[9].mxu0 }
 0x1f8   : > { %v3650_v62 = vmax.f32 %v2767_v32, %v3611_v51  ;;  %v5527_v43 = vpop.f32.mrb[10].mxu0 }
 0x1f9   : > { %v3653_v1 = vmax.f32 %v2770_v37, %v5527_v43  ;;  %v3614_v57 = vpop.f32.mrb[11].mxu0 }
 0x1fa   : > { %v3651_v47 = vmax.f32 %v2768_v35, %v3614_v57 }
 0x1fe   : > { %v5530_v59 = vpop.f32.mrb[12].mxu0 }
 0x1ff   : > { %v3656_v60 = vmax.f32 %v2773_v22, %v5530_v59  ;;  %v3627_v9 = vpop.f32.mrb[13].mxu0 }
 0x200   : > { %v3654_v10 = vmax.f32 %v2771_v23, %v3627_v9  ;;  %v5531_v63 = vpop.f32.mrb[14].mxu0 }
 0x201   : > { %v3657_v21 = vmax.f32 %v2774_v40, %v5531_v63  ;;  %v3630_v28 = vpop.f32.mrb[15].mxu0 }
 0x202   : > { %v3655_v24 = vmax.f32 %v2772_v45, %v3630_v28 }
 0x208   : > { %v5634_v30 = vpop.f32.mrb[8].mxu1 }
 0x209   : > { %v4453_v50 = vmax.f32 %v3652_v7, %v5634_v30  ;;  %v4412_v27 = vpop.f32.mrb[9].mxu1 }
 0x20a   : > { %v4451_v11 = vmax.f32 %v3650_v62, %v4412_v27  ;;  %v5635_v16 = vpop.f32.mrb[10].mxu1 }
 0x20b   : > { %v4468_v15 = vadd.f32 %v4988_v38, %v4453_v50  ;;  %v4454_v31 = vmax.f32 %v3653_v1, %v5635_v16  ;;  %v4415_v6 = vpop.f32.mrb[11].mxu1 }
 0x20c   : > { %v4466_v3 = vadd.f32 %v4988_v38, %v4451_v11  ;;  %v4452_v12 = vmax.f32 %v3651_v47, %v4415_v6 }
 0x20d   : > { %v4476_v58 = vmax.f32 %v4468_v15, 0.0  ;;  %v4469_v5 = vadd.f32 %v4988_v38, %v4454_v31 }
 0x20e   : > { %v4474_v61 = vmax.f32 %v4466_v3, 0.0  ;;  %v4467_v41 = vadd.f32 %v4988_v38, %v4452_v12 }
 0x20f   : > { %v4484_v26 = vpack.c.bf16 %v4476_v58, %v4476_v58  ;;  %v4477_v4 = vmax.f32 %v4469_v5, 0.0 }
 0x210   : > { %v4482_v0 = vpack.c.bf16 %v4474_v61, %v4474_v61  ;;  %v4475_v20 = vmax.f32 %v4467_v41, 0.0  ;;  %v5638_v36 = vpop.f32.mrb[12].mxu1 }
 0x211   : > { %4493 = vst.msk [vmem:[%s6905_s15 + $0x8] sm:$0xf] %vm4490_vm4, %v4484_v26  ;;  %v4485_v2 = vpack.c.bf16 %v4477_v4, %v4477_v4  ;;  %v4457_v49 = vmax.f32 %v3656_v60, %v5638_v36  ;;  %v4428_v52 = vpop.f32.mrb[13].mxu1 }
 0x212   : > { %4491 = vst.msk [vmem:[%s6905_s15] sm:$0xf] %vm4490_vm4, %v4482_v0  ;;  %v4483_v54 = vpack.c.bf16 %v4475_v20, %v4475_v20  ;;  %v4455_v8 = vmax.f32 %v3654_v10, %v4428_v52  ;;  %v5639_v19 = vpop.f32.mrb[14].mxu1 }
 0x213   : > { %4494 = vst.msk [vmem:[%s6905_s15 + $0xc] sm:$0xf] %vm4490_vm4, %v4485_v2  ;;  %v4472_v29 = vadd.f32 %v4988_v38, %v4457_v49  ;;  %v4458_v46 = vmax.f32 %v3657_v21, %v5639_v19  ;;  %v4431_v13 = vpop.f32.mrb[15].mxu1 }
 0x214   : > { %4492 = vst.msk [vmem:[%s6905_s15 + $0x4] sm:$0xf] %vm4490_vm4, %v4483_v54  ;;  %v4470_v34 = vadd.f32 %v4988_v38, %v4455_v8  ;;  %v4456_v14 = vmax.f32 %v3655_v24, %v4431_v13 }
 0x215   : > { %v4480_v55 = vmax.f32 %v4472_v29, 0.0  ;;  %v4473_v56 = vadd.f32 %v4988_v38, %v4458_v46 }
 0x216   : > { %v4478_v42 = vmax.f32 %v4470_v34, 0.0  ;;  %v4471_v18 = vadd.f32 %v4988_v38, %v4456_v14 }
 0x217   : > { %v4488_v32 = vpack.c.bf16 %v4480_v55, %v4480_v55  ;;  %v4481_v33 = vmax.f32 %v4473_v56, 0.0 }
 0x218   : > { %v4486_v37 = vpack.c.bf16 %v4478_v42, %v4478_v42  ;;  %v4479_v17 = vmax.f32 %v4471_v18, 0.0 }
 0x219   : > { %4497 = vst.msk [vmem:[%s6905_s15 + $0x18] sm:$0xf] %vm4490_vm4, %v4488_v32  ;;  %v4489_v35 = vpack.c.bf16 %v4481_v33, %v4481_v33 }
 0x21a   : > { %4495 = vst.msk [vmem:[%s6905_s15 + $0x10] sm:$0xf] %vm4490_vm4, %v4486_v37  ;;  %v4487_v39 = vpack.c.bf16 %v4479_v17, %v4479_v17 }
 0x21b   : > { %4498 = vst.msk [vmem:[%s6905_s15 + $0x1c] sm:$0xf] %vm4490_vm4, %v4489_v35 }
 0x21c   : > { %4496 = vst.msk [vmem:[%s6905_s15 + $0x14] sm:$0xf] %vm4490_vm4, %v4487_v39 }
 0x21d PF: > { %s13_s12 = sadd.s32 1, %s5981_s12  }
 0x21e   : > { %p10_p4 = scmp.ge.s32.totalorder %s13_s12, 4  }
 0x220   :  { %12 = sbr.rel (!%p10_p4) target bundleno = 1 (0x1), region = 77 }

// kernel: cifarnet_forward.3
= control target key start
LH: loop header
LB: loop body
LE: loop exit
PB: predicated region body
PF: predicated region fallthrough
CT: control target
= control target key end

     0   :  { %s17417_s12 = smov 0   ;;  %s21222_s0 = inlined_call_operand.vmem [shape: bf16[2,4,17,17,8], index: 0, kind: input, shape index: {}]   ;;  %s21223_s1 = inlined_call_operand.vmem [shape: bf16[9,8,32], index: 1, kind: input, shape index: {}]   ;;  %s21224_s2 = inlined_call_operand.vmem [shape: f32[1,32], index: 2, kind: input, shape index: {}]   ;;  %s21225_s3 = inlined_call_operand.vmem [shape: bf16[2,16,16,32], index: 3, kind: output, shape index: {}]  }
   0x1 LB: > { %s12807_s13 = sadd.s32 4294967295, %s17395_s12   ;;  %p12811_p0 = scmp.ge.s32.totalorder %s17395_s12, 1  ;;  %s17395_s12 = sphi %s17417_s12, %s13_s12  }
   0x2   : > { %p137_p1 = scmp.lt.s32.totalorder %s17395_s12, 3 }
   0x4   : > { %p138_p2 = pnand %p12811_p0, %p137_p1 }
   0x6   : > { %141 = sbr.rel (%p138_p2) target bundleno = 1407 (0x57f), region = 32 }
   0xd   : > { %v12847_v0 = vld [vmem:[%s21223_s1 + $0x4] sm:$0xf]  ;;  %vm369_vm0 = vcmask 1043456   ;;  %p161_p3 = scmp.lt.s32.totalorder %s12807_s13, 1  ;;  %v204_v2 = vld [vmem:[%s21223_s1] sm:$0xf] }
   0xe   : > { %17143 = vmatprep.subr.msk.bf16.mxu0 %vm369_vm0, %v12847_v0  ;;  %v17430_v1 = vsel %vm369_vm0, %v12847_v0, 0  ;;  %17152 = vmatprep.subr.msk.bf16.mxu1 %vm369_vm0, %v12847_v0  ;;  %vm320_vm1 = vcmask 64512   ;;  %vm874_vm2 = vsmask.f32 3328  ;;  %vm875_vm3 = vsmask.f32 7440 }
   0xf   : > { %21342 = vst [vmem:[#allocation2_spill] sm:$0xff] %v17430_v1  ;;  %14896 = vmatpush3.bf16.msra.mxu0 %v17430_v1  ;;  %s21574_s13 = smov (!%p161_p3, %s12807_s13), 1  ;;  %15202 = vmatpush3.bf16.msra.mxu1 %v17430_v1  ;;  %v17451_v3 = vld [vmem:[%s21223_s1 + $0x8] sm:$0xf]  ;;  %v17460_v6 = vsel %vm369_vm0, %v204_v2, 0  ;;  %vm17492_vm4 = vmor %vm874_vm2, %vm875_vm3  ;;  %v21345_v35 = vmov 0 }
  0x10   : > { %17144 = vmatprep.subr.msk.bf16.mxu0 %vm369_vm0, %v204_v2  ;;  %17153 = vmatprep.subr.msk.bf16.mxu1 %vm369_vm0, %v204_v2  ;;  %s17179_s18 = smul.u32 816, %s21574_s13  ;;  %21343 = vst [vmem:[#allocation3_spill] sm:$0xff] %v17460_v6  ;;  %v17471_v8 = vsel %vm369_vm0, %v17451_v3, 0  ;;  %v21346_v35 = vsel %vm17492_vm4, 4294967295, %v21345_v35  ;;  %s14250_s4 = sshll.u32 %s21574_s13, 7  ;;  %vm12719_vm5 = vcmask 257024  }
  0x11   : > { %21344 = vst [vmem:[#allocation4_spill] sm:$0xff] %v17471_v8  ;;  %21347 = vst [vmem:[#allocation5_spill] sm:$0xff] %v21346_v35  ;;  %s21005_s13 = scalar_lea.vmem %s21225_s3, %s14250_s4 }
  0x12   : > { %s17446_s21 = scalar_lea.vmem %s21222_s0, %s17179_s18 }
  0x13   : > { %v17454_v4 = vld [vmem:[%s17446_s21 + $0xcc] sm:$0xff]   ;;  %v17457_v5 = vld [vmem:[%s17446_s21 + $0xd8] sm:$0xff]   ;;  %v17465_v7 = vld [vmem:[%s17446_s21 + $0xe4] sm:$0xff]  }
  0x14   : > { %14897 = vmatprep.mubr.msk.bf16.mxu0 %vm320_vm1, %v17454_v4  ;;  %v826_v9 = vld [vmem:[%s17446_s21] sm:$0xf]  ;;  %v827_v10 = vld [vmem:[%s17446_s21 + $0x4] sm:$0xf]  ;;  %v828_v11 = vld [vmem:[%s17446_s21 + $0x8] sm:$0x1] }
  0x15   : > { %14898 = vmatmul.mubr.msk.bf16.vlgmr.msra.gmra.mrb[0].mxu0 %vm320_vm1, %v17457_v5  ;;  %v17480_v12 = vld [vmem:[%s17446_s21 + $0xf0] sm:$0xff]   ;;  %v878_v13 = vshrl.u32 %v826_v9, 16  ;;  %v881_v14 = vshll.u32 %v826_v9, 16  ;;  %v887_v15 = vshll.u32 %v827_v10, 16  ;;  %v891_v16 = vshrl.u32 %v827_v10, 16  ;;  %v17488_v34 = vld [vmem:[%s17446_s21 + $0xfc] sm:$0xff]  }
  0x16   : > { %14901 = vmatprep.mubr.msk.bf16.mxu0 %vm320_vm1, %v17465_v7  ;;  %14930 = vmatpush3.bf16.msra.mxu0 %v17460_v6  ;;  %v829_v17 = vld [vmem:[%s17446_s21 + $0xc] sm:$0xf]  ;;  %v897_v18 = vshll.u32 %v828_v11, 16  ;;  %v830_v19 = vld [vmem:[%s17446_s21 + $0x10] sm:$0xf]  ;;  %v17516_v61 = vld [vmem:[%s17446_s21 + $0x114] sm:$0xff]  }
  0x17   : > { %17145 = vmatprep.subr.msk.bf16.mxu0 %vm369_vm0, %v17451_v3  ;;  %v831_v20 = vld [vmem:[%s17446_s21 + $0x14] sm:$0x1]  ;;  %v902_v21 = vshrl.u32 %v829_v17, 16  ;;  %v880_v22 = vrot.slane %v878_v13, 4  ;;  %v883_v23 = vrot.slane %v881_v14, 5  ;;  %v889_v24 = vrot.slane %v887_v15, 5 }
  0x18   : > { %v893_v25 = vrot.slane %v891_v16, 4  ;;  %v899_v26 = vrot.slane %v897_v18, 5  ;;  %v905_v28 = vshll.u32 %v829_v17, 16  ;;  %v911_v29 = vshll.u32 %v830_v19, 16  ;;  %v832_v38 = vld [vmem:[%s17446_s21 + $0x18] sm:$0xf] }
  0x19   : > { %v904_v27 = vrot.slane %v902_v21, 4  ;;  %v884_v30 = vor.u32 %v883_v23, %v880_v22  ;;  %v915_v32 = vshrl.u32 %v830_v19, 16  ;;  %v921_v33 = vshll.u32 %v831_v20, 16  ;;  %v833_v43 = vld [vmem:[%s17446_s21 + $0x1c] sm:$0xf]  ;;  %v17508_v52 = vld [vmem:[%s17446_s21 + $0x108] sm:$0xff]  }
  0x1a   : > { %v894_v31 = vor.u32 %v893_v25, %v889_v24  ;;  %v907_v36 = vrot.slane %v905_v28, 5  ;;  %v913_v37 = vrot.slane %v911_v29, 5  ;;  %v834_v45 = vld [vmem:[%s17446_s21 + $0x20] sm:$0x1]  ;;  %v926_v46 = vshrl.u32 %v832_v38, 16 }
  0x1b   : > { %v885_v39 = vrot.slane %v884_v30, 4  ;;  %v917_v41 = vrot.slane %v915_v32, 4  ;;  %v923_v42 = vrot.slane %v921_v33, 5  ;;  %v929_v47 = vshll.u32 %v832_v38, 16  ;;  %v835_v54 = vld [vmem:[%s17446_s21 + $0x24] sm:$0xf] }
  0x1c   : > { %v895_v40 = vrot.slane %v894_v31, 4  ;;  %v908_v44 = vor.u32 %v907_v36, %v904_v27  ;;  %v935_v48 = vshll.u32 %v833_v43, 16  ;;  %v939_v53 = vshrl.u32 %v833_v43, 16  ;;  %v836_v55 = vld [vmem:[%s17446_s21 + $0x28] sm:$0xf]  ;;  %v17545_v43 = vld [vmem:[%s17446_s21 + $0x120] sm:$0xff]  }
  0x1d   : > { %14902 = vmatmul.mubr.msk.bf16.gmra.mrb[4].mxu0 %vm320_vm1, %v17480_v12  ;;  %v890_v49 = vsel %vm17492_vm4, %v885_v39, %v889_v24  ;;  %v918_v51 = vor.u32 %v917_v41, %v913_v37  ;;  %v928_v58 = vrot.slane %v926_v46, 4  ;;  %v931_v59 = vrot.slane %v929_v47, 5  ;;  %v837_v60 = vld [vmem:[%s17446_s21 + $0x2c] sm:$0x1]  ;;  %v838_v18 = vld [vmem:[%s17446_s21 + $0x30] sm:$0xf] }
  0x1e   : > { %14905 = vmatprep.mubr.msk.bf16.mxu0 %vm320_vm1, %v17488_v34  ;;  %v900_v50 = vsel %vm17492_vm4, %v895_v40, %v899_v26  ;;  %v909_v57 = vrot.slane %v908_v44, 4  ;;  %v937_v63 = vrot.slane %v935_v48, 5  ;;  %v941_v0 = vrot.slane %v939_v53, 4  ;;  %v839_v23 = vld [vmem:[%s17446_s21 + $0x34] sm:$0xf] }
  0x1f   : > { %v17512_v56 = vcombine.low %v890_v49, %v900_v50  ;;  %v919_v62 = vrot.slane %v918_v51, 4  ;;  %v945_v2 = vshll.u32 %v834_v45, 16  ;;  %v932_v10 = vor.u32 %v931_v59, %v928_v58  ;;  %v840_v30 = vld [vmem:[%s17446_s21 + $0x38] sm:$0x1]  ;;  %v841_v33 = vld [vmem:[%s17446_s21 + $0x3c] sm:$0xf] }
  0x20   : > { %v914_v9 = vsel %vm17492_vm4, %v909_v57, %v913_v37  ;;  %v950_v11 = vshrl.u32 %v835_v54, 16  ;;  %v953_v13 = vshll.u32 %v835_v54, 16  ;;  %v942_v15 = vor.u32 %v941_v0, %v937_v63  ;;  %v842_v40 = vld [vmem:[%s17446_s21 + $0x40] sm:$0xf]  ;;  %v843_v46 = vld [vmem:[%s17446_s21 + $0x44] sm:$0x1] }
  0x21   : > { %15203 = vmatprep.mubr.msk.bf16.mxu1 %vm320_vm1, %v17512_v56  ;;  %v924_v14 = vsel %vm17492_vm4, %v919_v62, %v923_v42  ;;  %v947_v16 = vrot.slane %v945_v2, 5  ;;  %v959_v17 = vshll.u32 %v836_v55, 16  ;;  %v933_v20 = vrot.slane %v932_v10, 4  ;;  %v17551_v51 = vld [vmem:[%s17446_s21 + $0x12c] sm:$0xff]  }
  0x22   : > { %v17525_v19 = vcombine.low %v914_v9, %v924_v14  ;;  %v952_v21 = vrot.slane %v950_v11, 4  ;;  %v955_v22 = vrot.slane %v953_v13, 5  ;;  %v943_v24 = vrot.slane %v942_v15, 4  ;;  %v844_v9 = vld [vmem:[%s17446_s21 + $0x48] sm:$0xf] }
  0x23   : > { %v961_v25 = vrot.slane %v959_v17, 5  ;;  %v963_v26 = vshrl.u32 %v836_v55, 16  ;;  %v969_v27 = vshll.u32 %v837_v60, 16  ;;  %v938_v28 = vsel %vm17492_vm4, %v933_v20, %v937_v63  ;;  %v845_v15 = vld [vmem:[%s17446_s21 + $0x4c] sm:$0xf] }
  0x24   : > { %15204 = vmatmul.mubr.msk.bf16.vlgmr.msra.gmra.mrb[0].mxu1 %vm320_vm1, %v17525_v19  ;;  %v956_v29 = vor.u32 %v955_v22, %v952_v21  ;;  %v974_v31 = vshrl.u32 %v838_v18, 16  ;;  %v977_v32 = vshll.u32 %v838_v18, 16  ;;  %v948_v36 = vsel %vm17492_vm4, %v943_v24, %v947_v16  ;;  %v846_v21 = vld [vmem:[%s17446_s21 + $0x50] sm:$0x1]  ;;  %v847_v22 = vld [vmem:[%s17446_s21 + $0x54] sm:$0xf] }
  0x25   : > { %14906 = vmatmul.mubr.msk.bf16.gmra.mrb[8].mxu0 %vm320_vm1, %v17508_v52  ;;  %15236 = vmatpush3.bf16.msra.mxu1 %v17460_v6  ;;  %v965_v37 = vrot.slane %v963_v26, 4  ;;  %v971_v38 = vrot.slane %v969_v27, 5  ;;  %v983_v39 = vshll.u32 %v839_v23, 16  ;;  %v17542_v41 = vcombine.low %v938_v28, %v948_v36  ;;  %v848_v27 = vld [vmem:[%s17446_s21 + $0x58] sm:$0xf] }
  0x26   : > { %14909 = vmatprep.mubr.msk.bf16.mxu0 %vm320_vm1, %v17516_v61  ;;  %v957_v42 = vrot.slane %v956_v29, 4  ;;  %v976_v44 = vrot.slane %v974_v31, 4  ;;  %v979_v45 = vrot.slane %v977_v32, 5  ;;  %17154 = vmatprep.subr.msk.bf16.mxu1 %vm369_vm0, %v17451_v3  ;;  %v987_v49 = vshrl.u32 %v839_v23, 16 }
  0x27   : > { %v966_v47 = vor.u32 %v965_v37, %v961_v25  ;;  %v985_v48 = vrot.slane %v983_v39, 5  ;;  %v993_v50 = vshll.u32 %v840_v30, 16  ;;  %15207 = vmatprep.mubr.msk.bf16.mxu1 %vm320_vm1, %v17542_v41  ;;  %v998_v55 = vshrl.u32 %v841_v33, 16 }
  0x28   : > { %v962_v53 = vsel %vm17492_vm4, %v957_v42, %v961_v25  ;;  %v980_v54 = vor.u32 %v979_v45, %v976_v44  ;;  %v1001_v57 = vshll.u32 %v841_v33, 16  ;;  %v989_v59 = vrot.slane %v987_v49, 4  ;;  %v17577_v33 = vld [vmem:[%s17446_s21 + $0x138] sm:$0xff]   ;;  %v17584_v45 = vld [vmem:[%s17446_s21 + $0x144] sm:$0xff]  }
  0x29   : > { %v967_v58 = vrot.slane %v966_v47, 4  ;;  %v995_v3 = vrot.slane %v993_v50, 5  ;;  %v1007_v60 = vshll.u32 %v842_v40, 16  ;;  %v1000_v63 = vrot.slane %v998_v55, 4  ;;  %v849_v49 = vld [vmem:[%s17446_s21 + $0x5c] sm:$0x1] }
  0x2a   : > { %v981_v62 = vrot.slane %v980_v54, 4  ;;  %v1003_v0 = vrot.slane %v1001_v57, 5  ;;  %v1011_v2 = vshrl.u32 %v842_v40, 16  ;;  %v990_v11 = vor.u32 %v989_v59, %v985_v48 }
  0x2b   : > { %v972_v10 = vsel %vm17492_vm4, %v967_v58, %v971_v38  ;;  %v1009_v13 = vrot.slane %v1007_v60, 5  ;;  %v1017_v14 = vshll.u32 %v843_v46, 16  ;;  %v1022_v25 = vshrl.u32 %v844_v9, 16  ;;  %v850_v58 = vld [vmem:[%s17446_s21 + $0x60] sm:$0xf] }
  0x2c   : > { %v17563_v16 = vcombine.low %v962_v53, %v972_v10  ;;  %v986_v17 = vsel %vm17492_vm4, %v981_v62, %v985_v48  ;;  %v1004_v18 = vor.u32 %v1003_v0, %v1000_v63  ;;  %v1013_v20 = vrot.slane %v1011_v2, 4  ;;  %v851_v63 = vld [vmem:[%s17446_s21 + $0x64] sm:$0xf] }
  0x2d   : > { %14910 = vmatmul.mubr.msk.bf16.gmra.mrb[12].mxu0 %vm320_vm1, %v17545_v43  ;;  %v991_v23 = vrot.slane %v990_v11, 4  ;;  %v1019_v24 = vrot.slane %v1017_v14, 5  ;;  %v1025_v26 = vshll.u32 %v844_v9, 16  ;;  %v1031_v30 = vshll.u32 %v845_v15, 16  ;;  %v852_v11 = vld [vmem:[%s17446_s21 + $0x68] sm:$0x1] }
  0x2e   : > { %14913 = vmatprep.mubr.msk.bf16.mxu0 %vm320_vm1, %v17551_v51  ;;  %15208 = vmatmul.mubr.msk.bf16.gmra.mrb[4].mxu1 %vm320_vm1, %v17563_v16  ;;  %v1005_v28 = vrot.slane %v1004_v18, 4  ;;  %v1014_v29 = vor.u32 %v1013_v20, %v1009_v13  ;;  %v1035_v31 = vshrl.u32 %v845_v15, 16  ;;  %v1024_v36 = vrot.slane %v1022_v25, 4  ;;  %v854_v20 = vld [vmem:[%s17446_s21 + $0x70] sm:$0xf] }
  0x2f   : > { %v996_v32 = vsel %vm17492_vm4, %v991_v23, %v995_v3  ;;  %v1027_v37 = vrot.slane %v1025_v26, 5  ;;  %v1041_v38 = vshll.u32 %v846_v21, 16  ;;  %v1033_v44 = vrot.slane %v1031_v30, 5  ;;  %v17609_v26 = vld [vmem:[%s17446_s21 + $0x150] sm:$0xff]  }
  0x30   : > { %v17579_v39 = vcombine.low %v986_v17, %v996_v32  ;;  %v1010_v40 = vsel %vm17492_vm4, %v1005_v28, %v1009_v13  ;;  %v1015_v42 = vrot.slane %v1014_v29, 4  ;;  %v1037_v47 = vrot.slane %v1035_v31, 4  ;;  %v853_v13 = vld [vmem:[%s17446_s21 + $0x6c] sm:$0xf] }
  0x31   : > { %v1028_v46 = vor.u32 %v1027_v37, %v1024_v36  ;;  %v1043_v48 = vrot.slane %v1041_v38, 5  ;;  %v1046_v50 = vshrl.u32 %v847_v22, 16  ;;  %v1049_v54 = vshll.u32 %v847_v22, 16  ;;  %v17614_v37 = vld [vmem:[%s17446_s21 + $0x15c] sm:$0xff]  }
  0x32   : > { %15211 = vmatprep.mubr.msk.bf16.mxu1 %vm320_vm1, %v17579_v39  ;;  %v1020_v53 = vsel %vm17492_vm4, %v1015_v42, %v1019_v24  ;;  %v1055_v55 = vshll.u32 %v848_v27, 16  ;;  %v1059_v57 = vshrl.u32 %v848_v27, 16  ;;  %v1038_v60 = vor.u32 %v1037_v47, %v1033_v44 }
  0x33   : > { %v17592_v59 = vcombine.low %v1010_v40, %v1020_v53  ;;  %v1029_v3 = vrot.slane %v1028_v46, 4  ;;  %v1048_v62 = vrot.slane %v1046_v50, 4  ;;  %v1051_v0 = vrot.slane %v1049_v54, 5  ;;  %v856_v53 = vld [vmem:[%s17446_s21 + $0x78] sm:$0xf] }
  0x34   : > { %v1057_v2 = vrot.slane %v1055_v55, 5  ;;  %v1061_v9 = vrot.slane %v1059_v57, 4  ;;  %v1065_v10 = vshll.u32 %v849_v49, 16  ;;  %v1039_v15 = vrot.slane %v1038_v60, 4 }
  0x35   : > { %14914 = vmatmul.mubr.msk.bf16.gmra.mrb[16].mxu0 %vm320_vm1, %v17577_v33  ;;  %v1034_v14 = vsel %vm17492_vm4, %v1029_v3, %v1033_v44  ;;  %v1070_v17 = vshrl.u32 %v850_v58, 16  ;;  %v1073_v18 = vshll.u32 %v850_v58, 16  ;;  %v1052_v21 = vor.u32 %v1051_v0, %v1048_v62  ;;  %v857_v3 = vld [vmem:[%s17446_s21 + $0x7c] sm:$0xf] }
  0x36   : > { %14917 = vmatprep.mubr.msk.bf16.mxu0 %vm320_vm1, %v17584_v45  ;;  %15212 = vmatmul.mubr.msk.bf16.gmra.mrb[8].mxu1 %vm320_vm1, %v17592_v59  ;;  %v1062_v22 = vor.u32 %v1061_v9, %v1057_v2  ;;  %v1067_v23 = vrot.slane %v1065_v10, 5  ;;  %v1079_v24 = vshll.u32 %v851_v63, 16  ;;  %v1044_v25 = vsel %vm17492_vm4, %v1039_v15, %v1043_v48  ;;  %v855_v48 = vld [vmem:[%s17446_s21 + $0x74] sm:$0x1]  ;;  %v859_v9 = vld [vmem:[%s17446_s21 + $0x84] sm:$0xf] }
  0x37   : > { %v1072_v27 = vrot.slane %v1070_v17, 4  ;;  %v1075_v28 = vrot.slane %v1073_v18, 5  ;;  %v1083_v29 = vshrl.u32 %v851_v63, 16  ;;  %v17611_v30 = vcombine.low %v1034_v14, %v1044_v25 }
  0x38   : > { %v1053_v31 = vrot.slane %v1052_v21, 4  ;;  %v1063_v32 = vrot.slane %v1062_v22, 4  ;;  %v1081_v36 = vrot.slane %v1079_v24, 5  ;;  %v1089_v42 = vshll.u32 %v852_v11, 16 }
  0x39   : > { %v1076_v38 = vor.u32 %v1075_v28, %v1072_v27  ;;  %v1085_v40 = vrot.slane %v1083_v29, 4  ;;  %v1094_v44 = vshrl.u32 %v853_v13, 16  ;;  %15215 = vmatprep.mubr.msk.bf16.mxu1 %vm320_vm1, %v17611_v30  ;;  %v1097_v49 = vshll.u32 %v853_v13, 16 }
  0x3a   : > { %v1058_v46 = vsel %vm17492_vm4, %v1053_v31, %v1057_v2  ;;  %v1068_v47 = vsel %vm17492_vm4, %v1063_v32, %v1067_v23  ;;  %v1103_v50 = vshll.u32 %v854_v20, 16  ;;  %v1091_v58 = vrot.slane %v1089_v42, 5  ;;  %v858_v2 = vld [vmem:[%s17446_s21 + $0x80] sm:$0x1]  ;;  %v17640_v23 = vld [vmem:[%s17446_s21 + $0x168] sm:$0xff]  }
  0x3b   : > { %v17624_v54 = vcombine.low %v1058_v46, %v1068_v47  ;;  %v1077_v55 = vrot.slane %v1076_v38, 4  ;;  %v1086_v57 = vor.u32 %v1085_v40, %v1081_v36  ;;  %v1096_v60 = vrot.slane %v1094_v44, 4  ;;  %v860_v32 = vld [vmem:[%s17446_s21 + $0x88] sm:$0xf] }
  0x3c   : > { %v1099_v62 = vrot.slane %v1097_v49, 5  ;;  %v1105_v63 = vrot.slane %v1103_v50, 5  ;;  %v1107_v0 = vshrl.u32 %v854_v20, 16  ;;  %v1113_v13 = vshll.u32 %v855_v48, 16  ;;  %v861_v49 = vld [vmem:[%s17446_s21 + $0x8c] sm:$0x1] }
  0x3d   : > { %14918 = vmatmul.mubr.msk.bf16.gmra.mrb[20].mxu0 %vm320_vm1, %v17609_v26  ;;  %v1082_v10 = vsel %vm17492_vm4, %v1077_v55, %v1081_v36  ;;  %v1087_v11 = vrot.slane %v1086_v57, 4  ;;  %v1118_v14 = vshrl.u32 %v856_v53, 16  ;;  %v1121_v18 = vshll.u32 %v856_v53, 16  ;;  %v17646_v36 = vld [vmem:[%s17446_s21 + $0x174] sm:$0xff]   ;;  %v862_v53 = vld [vmem:[%s17446_s21 + $0x90] sm:$0xf] }
  0x3e   : > { %14921 = vmatprep.mubr.msk.bf16.mxu0 %vm320_vm1, %v17614_v37  ;;  %15216 = vmatmul.mubr.msk.bf16.gmra.mrb[12].mxu1 %vm320_vm1, %v17624_v54  ;;  %v1100_v15 = vor.u32 %v1099_v62, %v1096_v60  ;;  %v1109_v17 = vrot.slane %v1107_v0, 4  ;;  %v1127_v20 = vshll.u32 %v857_v3, 16  ;;  %v1115_v22 = vrot.slane %v1113_v13, 5  ;;  %v863_v60 = vld [vmem:[%s17446_s21 + $0x94] sm:$0xf] }
  0x3f   : > { %v1092_v21 = vsel %vm17492_vm4, %v1087_v11, %v1091_v58  ;;  %v1120_v24 = vrot.slane %v1118_v14, 4  ;;  %v1131_v25 = vshrl.u32 %v857_v3, 16  ;;  %v1123_v31 = vrot.slane %v1121_v18, 5 }
  0x40   : > { %v17642_v27 = vcombine.low %v1082_v10, %v1092_v21  ;;  %v1101_v28 = vrot.slane %v1100_v15, 4  ;;  %v1110_v29 = vor.u32 %v1109_v17, %v1105_v63  ;;  %v1129_v38 = vrot.slane %v1127_v20, 5 }
  0x41   : > { %v1133_v40 = vrot.slane %v1131_v25, 4  ;;  %v1137_v42 = vshll.u32 %v858_v2, 16  ;;  %v1142_v44 = vshrl.u32 %v859_v9, 16  ;;  %v1124_v48 = vor.u32 %v1123_v31, %v1120_v24  ;;  %v17671_v24 = vld [vmem:[%s17446_s21 + $0x180] sm:$0xff]  }
  0x42   : > { %15219 = vmatprep.mubr.msk.bf16.mxu1 %vm320_vm1, %v17642_v27  ;;  %v1106_v46 = vsel %vm17492_vm4, %v1101_v28, %v1105_v63  ;;  %v1111_v47 = vrot.slane %v1110_v29, 4  ;;  %v1145_v50 = vshll.u32 %v859_v9, 16  ;;  %v1151_v3 = vshll.u32 %v860_v32, 16  ;;  %v864_v9 = vld [vmem:[%s17446_s21 + $0x98] sm:$0x1] }
  0x43   : > { %v1134_v55 = vor.u32 %v1133_v40, %v1129_v38  ;;  %v1139_v57 = vrot.slane %v1137_v42, 5  ;;  %v1144_v58 = vrot.slane %v1142_v44, 4  ;;  %v1125_v0 = vrot.slane %v1124_v48, 4  ;;  %v865_v29 = vld [vmem:[%s17446_s21 + $0x9c] sm:$0xf]  ;;  %v17204_v44 = vld [vmem:[%s17446_s21] sm:$0xff]  }
  0x44   : > { %v1116_v62 = vsel %vm17492_vm4, %v1111_v47, %v1115_v22  ;;  %v1147_v63 = vrot.slane %v1145_v50, 5  ;;  %v1155_v2 = vshrl.u32 %v860_v32, 16  ;;  %v1153_v13 = vrot.slane %v1151_v3, 5  ;;  %v866_v42 = vld [vmem:[%s17446_s21 + $0xa0] sm:$0xf] }
  0x45   : > { %14922 = vmatmul.mubr.msk.bf16.gmra.mrb[24].mxu0 %vm320_vm1, %v17640_v23  ;;  %v17662_v10 = vcombine.low %v1106_v46, %v1116_v62  ;;  %v1135_v11 = vrot.slane %v1134_v55, 4  ;;  %v1161_v14 = vshll.u32 %v861_v49, 16  ;;  %v1130_v15 = vsel %vm17492_vm4, %v1125_v0, %v1129_v38  ;;  %v867_v50 = vld [vmem:[%s17446_s21 + $0xa4] sm:$0x1]  ;;  %v868_v3 = vld [vmem:[%s17446_s21 + $0xa8] sm:$0xf] }
  0x46   : > { %14925 = vmatprep.mubr.msk.bf16.mxu0 %vm320_vm1, %v17646_v36  ;;  %v1148_v17 = vor.u32 %v1147_v63, %v1144_v58  ;;  %v1157_v18 = vrot.slane %v1155_v2, 4  ;;  %v1166_v20 = vshrl.u32 %v862_v53, 16  ;;  %v1169_v25 = vshll.u32 %v862_v53, 16  ;;  %v869_v2 = vld [vmem:[%s17446_s21 + $0xac] sm:$0xf] }
  0x47   : > { %15220 = vmatmul.mubr.msk.bf16.gmra.mrb[16].mxu1 %vm320_vm1, %v17662_v10  ;;  %v1140_v21 = vsel %vm17492_vm4, %v1135_v11, %v1139_v57  ;;  %v1163_v22 = vrot.slane %v1161_v14, 5  ;;  %v1175_v28 = vshll.u32 %v863_v60, 16  ;;  %v1179_v48 = vshrl.u32 %v863_v60, 16 }
  0x48   : > { %v17674_v31 = vcombine.low %v1130_v15, %v1140_v21  ;;  %v1149_v32 = vrot.slane %v1148_v17, 4  ;;  %v1158_v38 = vor.u32 %v1157_v18, %v1153_v13  ;;  %v1168_v40 = vrot.slane %v1166_v20, 4  ;;  %v870_v21 = vld [vmem:[%s17446_s21 + $0xb0] sm:$0x1] }
  0x49   : > { %v1171_v46 = vrot.slane %v1169_v25, 5  ;;  %v1177_v47 = vrot.slane %v1175_v28, 5  ;;  %v1185_v49 = vshll.u32 %v864_v9, 16  ;;  %v1190_v57 = vshrl.u32 %v865_v29, 16 }
  0x4a   : > { %15223 = vmatprep.mubr.msk.bf16.mxu1 %vm320_vm1, %v17674_v31  ;;  %v1154_v53 = vsel %vm17492_vm4, %v1149_v32, %v1153_v13  ;;  %v1159_v55 = vrot.slane %v1158_v38, 4  ;;  %v1193_v58 = vshll.u32 %v865_v29, 16  ;;  %v1181_v0 = vrot.slane %v1179_v48, 4  ;;  %v871_v38 = vld [vmem:[%s17446_s21 + $0xb4] sm:$0xf] }
  0x4b   : > { %v1172_v62 = vor.u32 %v1171_v46, %v1168_v40  ;;  %v1187_v63 = vrot.slane %v1185_v49, 5  ;;  %v1199_v60 = vshll.u32 %v866_v42, 16  ;;  %v1192_v11 = vrot.slane %v1190_v57, 4  ;;  %v872_v48 = vld [vmem:[%s17446_s21 + $0xb8] sm:$0xf] }
  0x4c   : > { %v1164_v9 = vsel %vm17492_vm4, %v1159_v55, %v1163_v22  ;;  %v1195_v14 = vrot.slane %v1193_v58, 5  ;;  %v1203_v13 = vshrl.u32 %v866_v42, 16  ;;  %v1182_v18 = vor.u32 %v1181_v0, %v1177_v47  ;;  %v17205_v42 = vld [vmem:[%s17446_s21 + $0xc] sm:$0xff]   ;;  %v17206_v58 = vld [vmem:[%s17446_s21 + $0x18] sm:$0xff]  }
  0x4d   : > { %14926 = vmatmul.mubr.msk.bf16.gmra.mrb[28].mxu0 %vm320_vm1, %v17671_v24  ;;  %v17690_v15 = vcombine.low %v1154_v53, %v1164_v9  ;;  %v1173_v17 = vrot.slane %v1172_v62, 4  ;;  %v1201_v20 = vrot.slane %v1199_v60, 5  ;;  %v1209_v29 = vshll.u32 %v867_v50, 16  ;;  %v873_v9 = vld [vmem:[%s17446_s21 + $0xbc] sm:$0x1] }
  0x4e   : > { %14931 = vmatprep.mubr.msk.bf16.mxu0 %vm320_vm1, %v17204_v44  ;;  %v1196_v25 = vor.u32 %v1195_v14, %v1192_v11  ;;  %v1205_v28 = vrot.slane %v1203_v13, 4  ;;  %v1214_v32 = vshrl.u32 %v868_v3, 16  ;;  %v1183_v40 = vrot.slane %v1182_v18, 4 }
  0x4f   : > { %15224 = vmatmul.mubr.msk.bf16.gmra.mrb[20].mxu1 %vm320_vm1, %v17690_v15  ;;  %v1178_v22 = vsel %vm17492_vm4, %v1173_v17, %v1177_v47  ;;  %v1217_v44 = vshll.u32 %v868_v3, 16  ;;  %v1223_v46 = vshll.u32 %v869_v2, 16  ;;  %v1211_v55 = vrot.slane %v1209_v29, 5 }
  0x50   : > { %v1197_v49 = vrot.slane %v1196_v25, 4  ;;  %v1206_v53 = vor.u32 %v1205_v28, %v1201_v20  ;;  %v1216_v57 = vrot.slane %v1214_v32, 4  ;;  %v1188_v50 = vsel %vm17492_vm4, %v1183_v40, %v1187_v63 }
  0x51   : > { %v1219_v62 = vrot.slane %v1217_v44, 5  ;;  %v1225_v0 = vrot.slane %v1223_v46, 5  ;;  %v1227_v60 = vshrl.u32 %v869_v2, 16  ;;  %v17704_v11 = vcombine.low %v1178_v22, %v1188_v50 }
  0x52   : > { %v1202_v47 = vsel %vm17492_vm4, %v1197_v49, %v1201_v20  ;;  %v1207_v3 = vrot.slane %v1206_v53, 4  ;;  %v1233_v14 = vshll.u32 %v870_v21, 16  ;;  %v1238_v18 = vshrl.u32 %v871_v38, 16  ;;  %v17207_v49 = vld [vmem:[%s17446_s21 + $0x24] sm:$0xff]  }
  0x53   : > { %v1220_v13 = vor.u32 %v1219_v62, %v1216_v57  ;;  %v1229_v17 = vrot.slane %v1227_v60, 4  ;;  %v1241_v25 = vshll.u32 %v871_v38, 16  ;;  %15227 = vmatprep.mubr.msk.bf16.mxu1 %vm320_vm1, %v17704_v11  ;;  %v1247_v28 = vshll.u32 %v872_v48, 16 }
  0x54   : > { %v1212_v63 = vsel %vm17492_vm4, %v1207_v3, %v1211_v55  ;;  %v1235_v2 = vrot.slane %v1233_v14, 5  ;;  %v1251_v29 = vshrl.u32 %v872_v48, 16  ;;  %v1240_v22 = vrot.slane %v1238_v18, 4  ;;  %v12977_v3 = vld [vmem:[%s21223_s1 + $0xc] sm:$0xf]  ;;  %v17211_v18 = vld [vmem:[%s17446_s21 + $0x54] sm:$0xff]  }
  0x55   : > { %14932 = vmatmul.mubr.msk.bf16.vlgmr.msra.gmra.mrb[0].mxu0 %vm320_vm1, %v17205_v42  ;;  %v17714_v20 = vcombine.low %v1202_v47, %v1212_v63  ;;  %v1221_v21 = vrot.slane %v1220_v13, 4  ;;  %v1230_v32 = vor.u32 %v1229_v17, %v1225_v0  ;;  %v1243_v38 = vrot.slane %v1241_v25, 5  ;;  %v17209_v13 = vld [vmem:[%s17446_s21 + $0x3c] sm:$0xff]   ;;  %v17210_v17 = vld [vmem:[%s17446_s21 + $0x48] sm:$0xff]  }
  0x56   : > { %14935 = vmatprep.mubr.msk.bf16.mxu0 %vm320_vm1, %v17206_v58  ;;  %14964 = vmatpush3.bf16.msra.mxu0 %v17471_v8  ;;  %v1249_v40 = vrot.slane %v1247_v28, 5  ;;  %v1253_v42 = vrot.slane %v1251_v29, 4  ;;  %v1257_v44 = vshll.u32 %v873_v9, 16  ;;  %v17208_v58 = vld [vmem:[%s17446_s21 + $0x30] sm:$0xff]   ;;  %v17212_v25 = vld [vmem:[%s17446_s21 + $0x60] sm:$0xff]  }
  0x57   : > { %15228 = vmatmul.mubr.msk.bf16.gmra.mrb[24].mxu1 %vm320_vm1, %v17714_v20  ;;  %v1226_v46 = vsel %vm17492_vm4, %v1221_v21, %v1225_v0  ;;  %v1231_v48 = vrot.slane %v1230_v32, 4  ;;  %v1244_v53 = vor.u32 %v1243_v38, %v1240_v22  ;;  %17146 = vmatprep.subr.msk.bf16.mxu0 %vm369_vm0, %v12977_v3  ;;  %v13399_v63 = vld [vmem:[%s17446_s21 + $0xcc] sm:$0xf]  ;;  %v13402_v32 = vld [vmem:[%s17446_s21 + $0xd8] sm:$0xf]  ;;  %v17217_v22 = vld [vmem:[%s17446_s21 + $0x9c] sm:$0xff]  }
  0x58   : > { %v1254_v55 = vor.u32 %v1253_v42, %v1249_v40  ;;  %v1259_v57 = vrot.slane %v1257_v44, 5  ;;  %v4817_v28 = vshll.u32 %v13399_v63, 16  ;;  %v13403_v44 = vld [vmem:[%s17446_s21 + $0xdc] sm:$0xf] }
  0x59   : > { %v1236_v50 = vsel %vm17492_vm4, %v1231_v48, %v1235_v2  ;;  %v1245_v60 = vrot.slane %v1244_v53, 4  ;;  %v13400_v2 = vld [vmem:[%s17446_s21 + $0xd0] sm:$0xf]  ;;  %v4841_v48 = vshll.u32 %v13402_v32, 16 }
  0x5a   : > { %v17725_v62 = vcombine.low %v1226_v46, %v1236_v50  ;;  %v1255_v9 = vrot.slane %v1254_v55, 4  ;;  %v4823_v29 = vshll.u32 %v13400_v2, 16  ;;  %v4827_v21 = vshrl.u32 %v13400_v2, 16 }
  0x5b   : > { %v1250_v0 = vsel %vm17492_vm4, %v1245_v60, %v1249_v40  ;;  %v4819_v40 = vrot.slane %v4817_v28, 5  ;;  %v4838_v46 = vshrl.u32 %v13402_v32, 16  ;;  %v4847_v55 = vshll.u32 %v13403_v44, 16 }
  0x5c   : > { %15231 = vmatprep.mubr.msk.bf16.mxu1 %vm320_vm1, %v17725_v62  ;;  %v1260_v47 = vsel %vm17492_vm4, %v1255_v9, %v1259_v57  ;;  %v4829_v42 = vrot.slane %v4827_v21, 4  ;;  %v4843_v60 = vrot.slane %v4841_v48, 5  ;;  %v13405_v9 = vld [vmem:[%s17446_s21 + $0xe4] sm:$0xf] }
  0x5d   : > { %14936 = vmatmul.mubr.msk.bf16.gmra.mrb[4].mxu0 %vm320_vm1, %v17207_v49  ;;  %v17738_v14 = vcombine.low %v1250_v0, %v1260_v47  ;;  %v17218_v49 = vld [vmem:[%s17446_s21 + $0xa8] sm:$0xff]   ;;  %v4840_v50 = vrot.slane %v4838_v46, 4  ;;  %v17219_v0 = vld [vmem:[%s17446_s21 + $0xb4] sm:$0xff]   ;;  %v17795_v47 = vsel %vm369_vm0, %v12977_v3, 0 }
  0x5e   : > { %14939 = vmatprep.mubr.msk.bf16.mxu0 %vm320_vm1, %v17208_v58  ;;  %v13404_v58 = vld [vmem:[%s17446_s21 + $0xe0] sm:$0x1]  ;;  %21348 = vst [vmem:[#allocation6_spill] sm:$0xff] %v17795_v47 }
  0x5f   : > { %15232 = vmatmul.mubr.msk.bf16.gmra.mrb[28].mxu1 %vm320_vm1, %v17738_v14 }
  0x60   : > { %15237 = vmatprep.mubr.msk.bf16.mxu1 %vm320_vm1, %v17454_v4  ;;  %v17213_v4 = vld [vmem:[%s17446_s21 + $0x6c] sm:$0xff]  }
  0x65   : > { %14940 = vmatmul.mubr.msk.bf16.gmra.mrb[8].mxu0 %vm320_vm1, %v17209_v13  ;;  %v13406_v13 = vld [vmem:[%s17446_s21 + $0xe8] sm:$0xf] }
  0x66   : > { %14943 = vmatprep.mubr.msk.bf16.mxu0 %vm320_vm1, %v17210_v17  ;;  %v4871_v2 = vshll.u32 %v13406_v13, 16 }
  0x67   : > { %15238 = vmatmul.mubr.msk.bf16.vlgmr.msra.gmra.mrb[0].mxu1 %vm320_vm1, %v17457_v5  ;;  %v17214_v5 = vld [vmem:[%s17446_s21 + $0x78] sm:$0xff]  }
  0x68   : > { %15270 = vmatpush3.bf16.msra.mxu1 %v17471_v8  ;;  %15241 = vmatprep.mubr.msk.bf16.mxu1 %vm320_vm1, %v17465_v7  ;;  %v17215_v7 = vld [vmem:[%s17446_s21 + $0x84] sm:$0xff]   ;;  %v13107_v8 = vld [vmem:[%s17446_s21 + $0x218] sm:$0x1] }
  0x69   : > { %17155 = vmatprep.subr.msk.bf16.mxu1 %vm369_vm0, %v12977_v3  ;;  %v4844_v3 = vor.u32 %v4843_v60, %v4840_v50 }
  0x6d   : > { %14944 = vmatmul.mubr.msk.bf16.gmra.mrb[12].mxu0 %vm320_vm1, %v17211_v18  ;;  %v17800_v18 = vrot.slane %v4847_v55, 5  ;;  %v13414_v55 = vld [vmem:[%s17446_s21 + $0x108] sm:$0xf] }
  0x6e   : > { %14947 = vmatprep.mubr.msk.bf16.mxu0 %vm320_vm1, %v17212_v25  ;;  %v4857_v25 = vshll.u32 %v13404_v58, 16 }
  0x6f   : > { %15242 = vmatmul.mubr.msk.bf16.gmra.mrb[4].mxu1 %vm320_vm1, %v17480_v12  ;;  %v17216_v12 = vld [vmem:[%s17446_s21 + $0x90] sm:$0xff]  }
  0x70   : > { %15245 = vmatprep.mubr.msk.bf16.mxu1 %vm320_vm1, %v17488_v34  ;;  %v4814_v34 = vshrl.u32 %v13399_v63, 16  ;;  %v13408_v63 = vld [vmem:[%s17446_s21 + $0xf0] sm:$0xf]  ;;  %v17812_v21 = vrot.slane %v4857_v25, 5 }
  0x71   : > { %v4889_v46 = vshll.u32 %v13408_v63, 16 }
  0x72   : > { %v4816_v38 = vrot.slane %v4814_v34, 4  ;;  %v13409_v34 = vld [vmem:[%s17446_s21 + $0xf4] sm:$0xf] }
  0x73   : > { %v4895_v48 = vshll.u32 %v13409_v34, 16 }
  0x74   : > { %v4820_v57 = vor.u32 %v4819_v40, %v4816_v38  ;;  %v4886_v38 = vshrl.u32 %v13408_v63, 16  ;;  %v13412_v40 = vld [vmem:[%s17446_s21 + $0x100] sm:$0xf]  ;;  %v13413_v63 = vld [vmem:[%s17446_s21 + $0x104] sm:$0x1] }
  0x75   : > { %14948 = vmatmul.mubr.msk.bf16.gmra.mrb[16].mxu0 %vm320_vm1, %v17213_v4  ;;  %v4862_v4 = vshrl.u32 %v13405_v9, 16 }
  0x76   : > { %14951 = vmatprep.mubr.msk.bf16.mxu0 %vm320_vm1, %v17214_v5  ;;  %v17804_v5 = vrot.slane %v4820_v57, 4  ;;  %v13415_v57 = vld [vmem:[%s17446_s21 + $0x10c] sm:$0xf]  ;;  %v4888_v58 = vrot.slane %v4886_v38, 4  ;;  %v13416_v38 = vld [vmem:[%s17446_s21 + $0x110] sm:$0x1] }
  0x77   : > { %15246 = vmatmul.mubr.msk.bf16.gmra.mrb[8].mxu1 %vm320_vm1, %v17508_v52  ;;  %v13401_v52 = vld [vmem:[%s17446_s21 + $0xd4] sm:$0x1]  ;;  %v4864_v32 = vrot.slane %v4862_v4, 4 }
  0x78   : > { %15249 = vmatprep.mubr.msk.bf16.mxu1 %vm320_vm1, %v17516_v61  ;;  %v17782_v61 = vrot.slane %v4823_v29, 5  ;;  %v4833_v53 = vshll.u32 %v13401_v52, 16  ;;  %v4875_v29 = vshrl.u32 %v13406_v13, 16  ;;  %v17817_v52 = vrot.slane %v4844_v3, 4 }
  0x7a   : > { %v17798_v17 = vrot.slane %v4833_v53, 5  ;;  %v4899_v53 = vshrl.u32 %v13409_v34, 16 }
  0x7c   : > { %v4901_v25 = vrot.slane %v4899_v53, 4 }
  0x7d   : > { %14952 = vmatmul.mubr.msk.bf16.gmra.mrb[20].mxu0 %vm320_vm1, %v17215_v7 }
  0x7e   : > { %14955 = vmatprep.mubr.msk.bf16.mxu0 %vm320_vm1, %v17216_v12  ;;  %v4865_v12 = vshll.u32 %v13405_v9, 16  ;;  %v17831_v9 = vrot.slane %v4895_v48, 5 }
  0x7f   : > { %15250 = vmatmul.mubr.msk.bf16.gmra.mrb[12].mxu1 %vm320_vm1, %v17545_v43  ;;  %v4830_v43 = vor.u32 %v4829_v42, %v17782_v61  ;;  %v17822_v42 = vrot.slane %v4871_v2, 5  ;;  %v17838_v2 = vld [vmem:[%s21223_s1 + $0x10] sm:$0xf] }
  0x80   : > { %15253 = vmatprep.mubr.msk.bf16.mxu1 %vm320_vm1, %v17551_v51  ;;  %v4851_v51 = vshrl.u32 %v13403_v44, 16  ;;  %v13410_v44 = vld [vmem:[%s17446_s21 + $0xf8] sm:$0x1]  ;;  %v4902_v48 = vor.u32 %v4901_v25, %v17831_v9 }
  0x81   : > { %v17806_v7 = vrot.slane %v4830_v43, 4  ;;  %v4905_v4 = vshll.u32 %v13410_v44, 16  ;;  %v13417_v44 = vld [vmem:[%s17446_s21 + $0x114] sm:$0xf] }
  0x82   : > { %v4853_v28 = vrot.slane %v4851_v51, 4  ;;  %v4923_v51 = vshrl.u32 %v13412_v40, 16  ;;  %v4903_v25 = vrot.slane %v4902_v48, 4  ;;  %v13424_v48 = vld [vmem:[%s17446_s21 + $0x130] sm:$0xf] }
  0x84   : > { %v4854_v13 = vor.u32 %v4853_v28, %v17800_v18  ;;  %v4947_v28 = vshrl.u32 %v13415_v57, 16 }
  0x85   : > { %14956 = vmatmul.mubr.msk.bf16.gmra.mrb[24].mxu0 %vm320_vm1, %v17217_v22  ;;  %v13411_v22 = vld [vmem:[%s17446_s21 + $0xfc] sm:$0xf] }
  0x86   : > { %14959 = vmatprep.mubr.msk.bf16.mxu0 %vm320_vm1, %v17218_v49  ;;  %v4877_v49 = vrot.slane %v4875_v29, 4  ;;  %v4910_v50 = vshrl.u32 %v13411_v22, 16  ;;  %v4913_v60 = vshll.u32 %v13411_v22, 16  ;;  %v4943_v29 = vshll.u32 %v13415_v57, 16  ;;  %v13420_v57 = vld [vmem:[%s17446_s21 + $0x120] sm:$0xf] }
  0x87   : > { %15254 = vmatmul.mubr.msk.bf16.gmra.mrb[16].mxu1 %vm320_vm1, %v17577_v33  ;;  %v13407_v33 = vld [vmem:[%s17446_s21 + $0xec] sm:$0x1]  ;;  %v4925_v22 = vrot.slane %v4923_v51, 4  ;;  %v4953_v51 = vshll.u32 %v13416_v38, 16 }
  0x88   : > { %15257 = vmatprep.mubr.msk.bf16.mxu1 %vm320_vm1, %v17584_v45  ;;  %v4867_v45 = vrot.slane %v4865_v12, 5  ;;  %v4881_v43 = vshll.u32 %v13407_v33, 16  ;;  %v4937_v12 = vshll.u32 %v13414_v55, 16  ;;  %v4915_v34 = vrot.slane %v4913_v60, 5 }
  0x89   : > { %v4878_v33 = vor.u32 %v4877_v49, %v17822_v42 }
  0x8a   : > { %v4868_v3 = vor.u32 %v4867_v45, %v4864_v32  ;;  %v17859_v45 = vrot.slane %v4881_v43, 5 }
  0x8b   : > { %v4879_v43 = vrot.slane %v4878_v33, 4  ;;  %v4985_v33 = vshll.u32 %v13420_v57, 16 }
  0x8c   : > { %v4869_v53 = vrot.slane %v4868_v3, 4 }
  0x8d   : > { %14960 = vmatmul.mubr.msk.bf16.gmra.mrb[28].mxu0 %vm320_vm1, %v17219_v0  ;;  %v4919_v0 = vshll.u32 %v13412_v40, 16  ;;  %v17857_v40 = vrot.slane %v4854_v13, 4 }
  0x8e   : > { %14965 = vmatprep.mubr.msk.bf16.mxu0 %vm320_vm1, %v17512_v56  ;;  %v4891_v56 = vrot.slane %v4889_v46, 5 }
  0x8f   : > { %15258 = vmatmul.mubr.msk.bf16.gmra.mrb[20].mxu1 %vm320_vm1, %v17609_v26  ;;  %v4934_v26 = vshrl.u32 %v13414_v55, 16  ;;  %v17846_v32 = vrot.slane %v4919_v0, 5  ;;  %v4949_v55 = vrot.slane %v4947_v28, 4  ;;  %v4982_v28 = vshrl.u32 %v13420_v57, 16 }
  0x90   : > { %15261 = vmatprep.mubr.msk.bf16.mxu1 %vm320_vm1, %v17614_v37  ;;  %v4912_v37 = vrot.slane %v4910_v50, 4  ;;  %v4892_v46 = vor.u32 %v4891_v56, %v4888_v58  ;;  %v17873_v58 = vrot.slane %v4905_v4, 5  ;;  %v13421_v56 = vld [vmem:[%s17446_s21 + $0x124] sm:$0xf]  ;;  %v4987_v57 = vrot.slane %v4985_v33, 5 }
  0x91   : > { %v4936_v49 = vrot.slane %v4934_v26, 4  ;;  %v4926_v60 = vor.u32 %v4925_v22, %v17846_v32  ;;  %v4961_v26 = vshll.u32 %v13417_v44, 16  ;;  %v17885_v22 = vrot.slane %v4953_v51, 5 }
  0x92   : > { %v4916_v50 = vor.u32 %v4915_v34, %v4912_v37  ;;  %v4893_v13 = vrot.slane %v4892_v46, 4 }
  0x93   : > { %v4963_v46 = vrot.slane %v4961_v26, 5 }
  0x94   : > { %v4917_v34 = vrot.slane %v4916_v50, 4  ;;  %v4874_v50 = vsel %vm17492_vm4, %v4869_v53, %v17822_v42  ;;  %v13422_v42 = vld [vmem:[%s17446_s21 + $0x128] sm:$0x1]  ;;  %v4908_v53 = vsel %vm17492_vm4, %v4903_v25, %v17873_v58 }
  0x95   : > { %14966 = vmatmul.mubr.msk.bf16.vlgmr.msra.gmra.mrb[0].mxu0 %vm320_vm1, %v17525_v19  ;;  %v4826_v19 = vsel %vm17492_vm4, %v17804_v5, %v17782_v61  ;;  %v4939_v61 = vrot.slane %v4937_v12, 5  ;;  %v13418_v5 = vld [vmem:[%s17446_s21 + $0x118] sm:$0xf] }
  0x96   : > { %14969 = vmatprep.mubr.msk.bf16.mxu0 %vm320_vm1, %v17542_v41  ;;  %14998 = vmatpush3.bf16.msra.mxu0 %v17795_v47  ;;  %v4836_v41 = vsel %vm17492_vm4, %v17806_v7, %v17798_v17  ;;  %v4929_v17 = vshll.u32 %v13413_v63, 16  ;;  %v17868_v7 = vrot.slane %v4943_v29, 5  ;;  %v13419_v63 = vld [vmem:[%s17446_s21 + $0x11c] sm:$0x1]  ;;  %v4967_v12 = vshll.u32 %v13418_v5, 16 }
  0x97   : > { %17147 = vmatprep.subr.msk.bf16.mxu0 %vm369_vm0, %v17838_v2  ;;  %15262 = vmatmul.mubr.msk.bf16.gmra.mrb[24].mxu1 %vm320_vm1, %v17640_v23  ;;  %v13447_v0 = vcombine.low %v4826_v19, %v4836_v41  ;;  %v4958_v23 = vshrl.u32 %v13417_v44, 16  ;;  %v4940_v3 = vor.u32 %v4939_v61, %v4936_v49  ;;  %v4971_v37 = vshrl.u32 %v13418_v5, 16 }
  0x98   : > { %15265 = vmatprep.mubr.msk.bf16.mxu1 %vm320_vm1, %v17646_v36  ;;  %v17880_v36 = vrot.slane %v4929_v17, 5  ;;  %v4950_v4 = vor.u32 %v4949_v55, %v17868_v7  ;;  %v4927_v29 = vrot.slane %v4926_v60, 4  ;;  %v4991_v19 = vshll.u32 %v13421_v56, 16 }
  0x99   : > { %v4960_v38 = vrot.slane %v4958_v23, 4  ;;  %v4995_v41 = vshrl.u32 %v13421_v56, 16  ;;  %v17888_v44 = vrot.slane %v4940_v3, 4  ;;  %v4973_v61 = vrot.slane %v4971_v37, 4 }
  0x9a   : > { %v17893_v49 = vrot.slane %v4950_v4, 4  ;;  %v4977_v5 = vshll.u32 %v13419_v63, 16  ;;  %v4850_v17 = vsel %vm17492_vm4, %v17817_v52, %v17800_v18  ;;  %v4860_v55 = vsel %vm17492_vm4, %v17857_v40, %v17812_v21  ;;  %v13426_v63 = vld [vmem:[%s17446_s21 + $0x138] sm:$0xf] }
  0x9b   : > { %v4884_v60 = vsel %vm17492_vm4, %v4879_v43, %v17859_v45  ;;  %v17912_v56 = vrot.slane %v4991_v19, 5  ;;  %v4997_v18 = vrot.slane %v4995_v41, 4  ;;  %v13448_v51 = vcombine.low %v4850_v17, %v4860_v55  ;;  %v13425_v41 = vld [vmem:[%s17446_s21 + $0x134] sm:$0x1] }
  0x9c   : > { %v5015_v21 = vshll.u32 %v13424_v48, 16  ;;  %v5019_v40 = vshrl.u32 %v13424_v48, 16  ;;  %v13449_v23 = vcombine.low %v4874_v50, %v4884_v60  ;;  %v4898_v45 = vsel %vm17492_vm4, %v4893_v13, %v17831_v9 }
  0x9d   : > { %14970 = vmatmul.mubr.msk.bf16.gmra.mrb[4].mxu0 %vm320_vm1, %v17563_v16  ;;  %v13423_v16 = vld [vmem:[%s17446_s21 + $0x12c] sm:$0xf]  ;;  %v4964_v43 = vor.u32 %v4963_v46, %v4960_v38  ;;  %v4922_v9 = vsel %vm17492_vm4, %v4917_v34, %v17846_v32  ;;  %v4932_v58 = vsel %vm17492_vm4, %v4927_v29, %v17880_v36  ;;  %v4979_v26 = vrot.slane %v4977_v5, 5  ;;  %v13429_v5 = vld [vmem:[%s17446_s21 + $0x144] sm:$0xf] }
  0x9e   : > { %14973 = vmatprep.mubr.msk.bf16.mxu0 %vm320_vm1, %v17579_v39  ;;  %v17895_v39 = vrot.slane %v4967_v12, 5  ;;  %v5006_v52 = vshrl.u32 %v13423_v16, 16  ;;  %v5001_v4 = vshll.u32 %v13422_v42, 16  ;;  %v5030_v12 = vshrl.u32 %v13426_v63, 16 }
  0x9f   : > { %15266 = vmatmul.mubr.msk.bf16.gmra.mrb[28].mxu1 %vm320_vm1, %v17671_v24  ;;  %v4984_v24 = vrot.slane %v4982_v28, 4  ;;  %v4965_v13 = vrot.slane %v4964_v43, 4  ;;  %v5033_v37 = vshll.u32 %v13426_v63, 16  ;;  %v4998_v36 = vor.u32 %v4997_v18, %v17912_v56 }
  0xa0   : > { %15271 = vmatprep.mubr.msk.bf16.mxu1 %vm320_vm1, %v13447_v0  ;;  %v5009_v0 = vshll.u32 %v13423_v16, 16  ;;  %v4974_v3 = vor.u32 %v4973_v61, %v17895_v39  ;;  %v5008_v34 = vrot.slane %v5006_v52, 4  ;;  %v13451_v38 = vcombine.low %v4922_v9, %v4932_v58  ;;  %v13435_v9 = vld [vmem:[%s17446_s21 + $0x15c] sm:$0xf] }
  0xa1   : > { %v4988_v32 = vor.u32 %v4987_v57, %v4984_v24  ;;  %v4946_v19 = vsel %vm17492_vm4, %v17888_v44, %v17868_v7  ;;  %v17949_v16 = vrot.slane %v5015_v21, 5  ;;  %v4956_v46 = vsel %vm17492_vm4, %v17893_v49, %v17885_v22  ;;  %v13428_v44 = vld [vmem:[%s17446_s21 + $0x140] sm:$0x1]  ;;  %v13430_v57 = vld [vmem:[%s17446_s21 + $0x148] sm:$0xf] }
  0xa2   : > { %v4975_v25 = vrot.slane %v4974_v3, 4  ;;  %v5011_v29 = vrot.slane %v5009_v0, 5  ;;  %v4970_v48 = vsel %vm17492_vm4, %v4965_v13, %v17895_v39  ;;  %v5003_v7 = vrot.slane %v5001_v4, 5 }
  0xa3   : > { %v5035_v17 = vrot.slane %v5033_v37, 5  ;;  %v4989_v22 = vrot.slane %v4988_v32, 4  ;;  %v4999_v49 = vrot.slane %v4998_v36, 4  ;;  %v5025_v60 = vshll.u32 %v13425_v41, 16  ;;  %v13431_v32 = vld [vmem:[%s17446_s21 + $0x14c] sm:$0x1] }
  0xa4   : > { %v4980_v61 = vsel %vm17492_vm4, %v4975_v25, %v4979_v26  ;;  %v5012_v50 = vor.u32 %v5011_v29, %v5008_v34  ;;  %v5049_v18 = vshll.u32 %v13428_v44, 16  ;;  %v5054_v52 = vshrl.u32 %v13429_v5, 16 }
  0xa5   : > { %14974 = vmatmul.mubr.msk.bf16.gmra.mrb[8].mxu0 %vm320_vm1, %v17592_v59  ;;  %v13427_v59 = vld [vmem:[%s17446_s21 + $0x13c] sm:$0xf]  ;;  %v5057_v0 = vshll.u32 %v13429_v5, 16  ;;  %v5067_v21 = vshrl.u32 %v13430_v57, 16  ;;  %v13453_v42 = vcombine.low %v4970_v48, %v4980_v61  ;;  %v4994_v43 = vsel %vm17492_vm4, %v4989_v22, %v17912_v56  ;;  %v13437_v22 = vld [vmem:[%s17446_s21 + $0x164] sm:$0x1] }
  0xa6   : > { %14977 = vmatprep.mubr.msk.bf16.mxu0 %vm320_vm1, %v17611_v30  ;;  %v13450_v30 = vcombine.low %v4898_v45, %v4908_v53  ;;  %v5039_v28 = vshll.u32 %v13427_v59, 16  ;;  %v5043_v33 = vshrl.u32 %v13427_v59, 16  ;;  %v5004_v3 = vsel %vm17492_vm4, %v4999_v49, %v5003_v7 }
  0xa7   : > { %15272 = vmatmul.mubr.msk.bf16.vlgmr.msra.gmra.mrb[0].mxu1 %vm320_vm1, %v13448_v51  ;;  %v5063_v51 = vshll.u32 %v13430_v57, 16  ;;  %v5013_v63 = vrot.slane %v5012_v50, 4  ;;  %v5027_v59 = vrot.slane %v5025_v60, 5  ;;  %v5051_v13 = vrot.slane %v5049_v18, 5  ;;  %v13438_v18 = vld [vmem:[%s17446_s21 + $0x168] sm:$0xf] }
  0xa8   : > { %15304 = vmatpush3.bf16.msra.mxu1 %v17795_v47  ;;  %15275 = vmatprep.mubr.msk.bf16.mxu1 %vm320_vm1, %v13449_v23  ;;  %v17962_v55 = vrot.slane %v5039_v28, 5  ;;  %v5045_v24 = vrot.slane %v5043_v33, 4  ;;  %v13452_v23 = vcombine.low %v4946_v19, %v4956_v46  ;;  %v5056_v4 = vrot.slane %v5054_v52, 4 }
  0xa9   : > { %17156 = vmatprep.subr.msk.bf16.mxu1 %vm369_vm0, %v17838_v2  ;;  %v17982_v37 = vrot.slane %v5063_v51, 5  ;;  %v5069_v56 = vrot.slane %v5067_v21, 4  ;;  %v5102_v29 = vshrl.u32 %v13435_v9, 16  ;;  %v13454_v41 = vcombine.low %v4994_v43, %v5004_v3  ;;  %v13439_v51 = vld [vmem:[%s17446_s21 + $0x16c] sm:$0xf] }
  0xaa   : > { %v5046_v53 = vor.u32 %v5045_v24, %v17962_v55  ;;  %v5073_v5 = vshll.u32 %v13431_v32, 16  ;;  %v13441_v21 = vld [vmem:[%s17446_s21 + $0x174] sm:$0xf]  ;;  %v5126_v43 = vshrl.u32 %v13438_v18, 16  ;;  %v5129_v3 = vshll.u32 %v13438_v18, 16 }
  0xab   : > { %v5070_v44 = vor.u32 %v5069_v56, %v17982_v37  ;;  %v5104_v49 = vrot.slane %v5102_v29, 4 }
  0xac   : > { %v5047_v33 = vrot.slane %v5046_v53, 4  ;;  %v5121_v53 = vshll.u32 %v13437_v22, 16  ;;  %v5128_v32 = vrot.slane %v5126_v43, 4  ;;  %v17220_v22 = vld [vmem:[%s17446_s21 + $0x198] sm:$0xff]  }
  0xad   : > { %14978 = vmatmul.mubr.msk.bf16.gmra.mrb[12].mxu0 %vm320_vm1, %v17624_v54  ;;  %v5021_v54 = vrot.slane %v5019_v40, 4  ;;  %v13432_v40 = vld [vmem:[%s17446_s21 + $0x150] sm:$0xf] }
  0xae   : > { %14981 = vmatprep.mubr.msk.bf16.mxu0 %vm320_vm1, %v17642_v27  ;;  %v5032_v27 = vrot.slane %v5030_v12, 4  ;;  %v5078_v25 = vshrl.u32 %v13432_v40, 16  ;;  %v5081_v26 = vshll.u32 %v13432_v40, 16  ;;  %v5059_v12 = vrot.slane %v5057_v0, 5 }
  0xaf   : > { %15276 = vmatmul.mubr.msk.bf16.gmra.mrb[4].mxu1 %vm320_vm1, %v13450_v30  ;;  %v5022_v39 = vor.u32 %v5021_v54, %v17949_v16  ;;  %v13433_v30 = vld [vmem:[%s17446_s21 + $0x154] sm:$0xf]  ;;  %v5018_v54 = vsel %vm17492_vm4, %v5013_v63, %v17949_v16  ;;  %v5052_v16 = vsel %vm17492_vm4, %v5047_v33, %v5051_v13  ;;  %v13442_v63 = vld [vmem:[%s17446_s21 + $0x178] sm:$0xf]  ;;  %v5123_v33 = vrot.slane %v5121_v53, 5 }
  0xb0   : > { %15279 = vmatprep.mubr.msk.bf16.mxu1 %vm320_vm1, %v13451_v38  ;;  %v5036_v45 = vor.u32 %v5035_v17, %v5032_v27  ;;  %v5087_v36 = vshll.u32 %v13433_v30, 16  ;;  %v5091_v34 = vshrl.u32 %v13433_v30, 16  ;;  %v5080_v46 = vrot.slane %v5078_v25, 4  ;;  %v13434_v27 = vld [vmem:[%s17446_s21 + $0x158] sm:$0x1] }
  0xb1   : > { %v5023_v58 = vrot.slane %v5022_v39, 4  ;;  %v5083_v48 = vrot.slane %v5081_v26, 5  ;;  %v5060_v7 = vor.u32 %v5059_v12, %v5056_v4  ;;  %v5097_v0 = vshll.u32 %v13434_v27, 16  ;;  %v13443_v27 = vld [vmem:[%s17446_s21 + $0x17c] sm:$0x1] }
  0xb2   : > { %v5037_v28 = vrot.slane %v5036_v45, 4  ;;  %v17999_v24 = vrot.slane %v5087_v36, 5  ;;  %v5093_v57 = vrot.slane %v5091_v34, 4  ;;  %v5075_v45 = vrot.slane %v5073_v5, 5 }
  0xb3   : > { %v5028_v61 = vsel %vm17492_vm4, %v5023_v58, %v5027_v59  ;;  %v5099_v13 = vrot.slane %v5097_v0, 5  ;;  %v5150_v25 = vshrl.u32 %v13441_v21, 16  ;;  %v5153_v26 = vshll.u32 %v13441_v21, 16 }
  0xb4   : > { %v5042_v17 = vsel %vm17492_vm4, %v5037_v28, %v17962_v55  ;;  %v13455_v52 = vcombine.low %v5018_v54, %v5028_v61  ;;  %v5084_v55 = vor.u32 %v5083_v48, %v5080_v46  ;;  %v5159_v12 = vshll.u32 %v13442_v63, 16  ;;  %v13445_v54 = vld [vmem:[%s17446_s21 + $0x184] sm:$0xf] }
  0xb5   : > { %14982 = vmatmul.mubr.msk.bf16.gmra.mrb[16].mxu0 %vm320_vm1, %v17662_v10  ;;  %v13436_v10 = vld [vmem:[%s17446_s21 + $0x160] sm:$0xf]  ;;  %v13456_v40 = vcombine.low %v5042_v17, %v5052_v16  ;;  %v5163_v56 = vshrl.u32 %v13442_v63, 16  ;;  %v5131_v36 = vrot.slane %v5129_v3, 5  ;;  %v5152_v46 = vrot.slane %v5150_v25, 4 }
  0xb6   : > { %14985 = vmatprep.mubr.msk.bf16.mxu0 %vm320_vm1, %v17674_v31  ;;  %v5105_v31 = vshll.u32 %v13435_v9, 16  ;;  %v5111_v38 = vshll.u32 %v13436_v10, 16  ;;  %v5115_v19 = vshrl.u32 %v13436_v10, 16  ;;  %v5139_v9 = vshrl.u32 %v13439_v51, 16 }
  0xb7   : > { %15280 = vmatmul.mubr.msk.bf16.gmra.mrb[8].mxu1 %vm320_vm1, %v13452_v23  ;;  %v5061_v23 = vrot.slane %v5060_v7, 4  ;;  %v5085_v58 = vrot.slane %v5084_v55, 4  ;;  %v5155_v48 = vrot.slane %v5153_v26, 5  ;;  %v5161_v61 = vrot.slane %v5159_v12, 5 }
  0xb8   : > { %15283 = vmatprep.mubr.msk.bf16.mxu1 %vm320_vm1, %v13453_v42  ;;  %v5107_v50 = vrot.slane %v5105_v31, 5  ;;  %v18004_v60 = vrot.slane %v5111_v38, 5  ;;  %v5117_v39 = vrot.slane %v5115_v19, 4  ;;  %v5071_v42 = vrot.slane %v5070_v44, 4  ;;  %v13440_v19 = vld [vmem:[%s17446_s21 + $0x170] sm:$0x1] }
  0xb9   : > { %v5066_v10 = vsel %vm17492_vm4, %v5061_v23, %v17982_v37  ;;  %v5141_v38 = vrot.slane %v5139_v9, 4  ;;  %v5165_v7 = vrot.slane %v5163_v56, 4  ;;  %v5132_v5 = vor.u32 %v5131_v36, %v5128_v32  ;;  %v13446_v23 = vld [vmem:[%s17446_s21 + $0x188] sm:$0x1] }
  0xba   : > { %v5108_v59 = vor.u32 %v5107_v50, %v5104_v49  ;;  %v5118_v30 = vor.u32 %v5117_v39, %v18004_v60  ;;  %v5076_v4 = vsel %vm17492_vm4, %v5071_v42, %v5075_v45  ;;  %v5183_v50 = vshll.u32 %v13445_v54, 16 }
  0xbb   : > { %v13457_v37 = vcombine.low %v5066_v10, %v5076_v4  ;;  %v5187_v39 = vshrl.u32 %v13445_v54, 16  ;;  %v5156_v18 = vor.u32 %v5155_v48, %v5152_v46  ;;  %v5169_v55 = vshll.u32 %v13443_v27, 16  ;;  %v18065_v4 = vld [vmem:[%s21223_s1 + $0x14] sm:$0xf]  ;;  %v18095_v54 = vld [vmem:[%s17446_s21 + $0x27c] sm:$0xff]   ;;  %v17231_v46 = vld [vmem:[%s17446_s21 + $0x1ec] sm:$0xff]  }
  0xbc   : > { %v5109_v34 = vrot.slane %v5108_v59, 4  ;;  %v5119_v29 = vrot.slane %v5118_v30, 4  ;;  %v17221_v59 = vld [vmem:[%s17446_s21 + $0x1a4] sm:$0xff]   ;;  %v18060_v10 = vsel %vm369_vm0, %v17838_v2, 0  ;;  %v17223_v2 = vld [vmem:[%s17446_s21 + $0x1bc] sm:$0xff]  }
  0xbd   : > { %14986 = vmatmul.mubr.msk.bf16.gmra.mrb[20].mxu0 %vm320_vm1, %v17690_v15  ;;  %v5094_v15 = vor.u32 %v5093_v57, %v17999_v24  ;;  %v5145_v57 = vshll.u32 %v13440_v19, 16  ;;  %v5189_v53 = vrot.slane %v5187_v39, 4  ;;  %v5157_v43 = vrot.slane %v5156_v18, 4  ;;  %21349 = vst [vmem:[#allocation7_spill] sm:$0xff] %v18060_v10  ;;  %v17230_v19 = vld [vmem:[%s17446_s21 + $0x1e0] sm:$0xff]   ;;  %v17234_v48 = vld [vmem:[%s17446_s21 + $0x1f8] sm:$0xff]  }
  0xbe   : > { %14989 = vmatprep.mubr.msk.bf16.mxu0 %vm320_vm1, %v17704_v11  ;;  %v5135_v11 = vshll.u32 %v13439_v51, 16  ;;  %v5124_v17 = vsel %vm17492_vm4, %v5119_v29, %v5123_v33  ;;  %v5133_v51 = vrot.slane %v5132_v5, 4  ;;  %v5171_v63 = vrot.slane %v5169_v55, 5  ;;  %v17226_v29 = vld [vmem:[%s17446_s21 + $0x1c8] sm:$0xff]   ;;  %v13075_v5 = vld [vmem:[%s17446_s21 + $0x198] sm:$0xf] }
  0xbf   : > { %15284 = vmatmul.mubr.msk.bf16.gmra.mrb[12].mxu1 %vm320_vm1, %v13454_v41  ;;  %v5095_v28 = vrot.slane %v5094_v15, 4  ;;  %v13444_v41 = vld [vmem:[%s17446_s21 + $0x180] sm:$0xf]  ;;  %v5185_v15 = vrot.slane %v5183_v50, 5  ;;  %v5162_v25 = vsel %vm17492_vm4, %v5157_v43, %v5161_v61  ;;  %v13076_v27 = vld [vmem:[%s17446_s21 + $0x19c] sm:$0xf] }
  0xc0   : > { %15287 = vmatprep.mubr.msk.bf16.mxu1 %vm320_vm1, %v13455_v52  ;;  %v5137_v31 = vrot.slane %v5135_v11, 5  ;;  %v5177_v49 = vshll.u32 %v13444_v41, 16  ;;  %v5166_v52 = vor.u32 %v5165_v7, %v5161_v61  ;;  %v18108_v61 = vld [vmem:[%s17446_s21 + $0x288] sm:$0xff]   ;;  %v18112_v7 = vld [vmem:[%s17446_s21 + $0x294] sm:$0xff]   ;;  %v17239_v50 = vld [vmem:[%s17446_s21 + $0x21c] sm:$0xff]  }
  0xc1   : > { %v5100_v44 = vsel %vm17492_vm4, %v5095_v28, %v5099_v13  ;;  %v5190_v9 = vor.u32 %v5189_v53, %v5185_v15  ;;  %v17222_v13 = vld [vmem:[%s17446_s21 + $0x1b0] sm:$0xff]   ;;  %v17242_v39 = vld [vmem:[%s17446_s21 + $0x228] sm:$0xff]   ;;  %v13077_v18 = vld [vmem:[%s17446_s21 + $0x1a0] sm:$0x1] }
  0xc2   : > { %v5142_v16 = vor.u32 %v5141_v38, %v5137_v31  ;;  %v5179_v45 = vrot.slane %v5177_v49, 5  ;;  %v5167_v3 = vrot.slane %v5166_v52, 4  ;;  %v18082_v38 = vld [vmem:[%s17446_s21 + $0x264] sm:$0xff]   ;;  %v18145_v53 = vld [vmem:[%s17446_s21 + $0x2b8] sm:$0xff]  }
  0xc3   : > { %v5191_v33 = vrot.slane %v5190_v9, 4  ;;  %v13078_v49 = vld [vmem:[%s17446_s21 + $0x1a4] sm:$0xf] }
  0xc4   : > { %v5143_v21 = vrot.slane %v5142_v16, 4  ;;  %v5172_v26 = vsel %vm17492_vm4, %v5167_v3, %v5171_v63  ;;  %v2325_v16 = vshll.u32 %v13075_v5, 16 }
  0xc5   : > { %14990 = vmatmul.mubr.msk.bf16.gmra.mrb[24].mxu0 %vm320_vm1, %v17714_v20  ;;  %v5090_v20 = vsel %vm17492_vm4, %v5085_v58, %v17999_v24  ;;  %v5174_v24 = vshrl.u32 %v13444_v41, 16  ;;  %v5193_v58 = vshll.u32 %v13446_v23, 16  ;;  %v13461_v56 = vcombine.low %v5162_v25, %v5172_v26  ;;  %v18091_v41 = vld [vmem:[%s17446_s21 + $0x270] sm:$0xff]  }
  0xc6   : > { %14993 = vmatprep.mubr.msk.bf16.mxu0 %vm320_vm1, %v17725_v62  ;;  %v5114_v62 = vsel %vm17492_vm4, %v5109_v34, %v18004_v60  ;;  %v13458_v0 = vcombine.low %v5090_v20, %v5100_v44  ;;  %v17235_v20 = vld [vmem:[%s17446_s21 + $0x204] sm:$0xff]   ;;  %v17238_v44 = vld [vmem:[%s17446_s21 + $0x210] sm:$0xff]   ;;  %v2327_v55 = vrot.slane %v2325_v16, 5 }
  0xc7   : > { %15288 = vmatmul.mubr.msk.bf16.gmra.mrb[16].mxu1 %vm320_vm1, %v13456_v40  ;;  %v13459_v60 = vcombine.low %v5114_v62, %v5124_v17  ;;  %v5147_v40 = vrot.slane %v5145_v57, 5  ;;  %v5176_v42 = vrot.slane %v5174_v24, 4  ;;  %v5195_v32 = vrot.slane %v5193_v58, 5  ;;  %v18124_v62 = vld [vmem:[%s17446_s21 + $0x2a0] sm:$0xff]   ;;  %v13081_v23 = vld [vmem:[%s17446_s21 + $0x1b0] sm:$0xf] }
  0xc8   : > { %15291 = vmatprep.mubr.msk.bf16.mxu1 %vm320_vm1, %v13457_v37  ;;  %v17227_v37 = vld [vmem:[%s17446_s21 + $0x1d4] sm:$0xff]   ;;  %v2322_v17 = vshrl.u32 %v13075_v5, 16  ;;  %v2331_v57 = vshll.u32 %v13076_v27, 16  ;;  %v2335_v24 = vshrl.u32 %v13076_v27, 16  ;;  %v2373_v9 = vshll.u32 %v13081_v23, 16 }
  0xc9   : > { %v5148_v30 = vsel %vm17492_vm4, %v5143_v21, %v5147_v40  ;;  %v5180_v11 = vor.u32 %v5179_v45, %v5176_v42  ;;  %v5196_v34 = vsel %vm17492_vm4, %v5191_v33, %v5195_v32  ;;  %v2349_v40 = vshll.u32 %v13078_v49, 16  ;;  %v17243_v58 = vld [vmem:[%s17446_s21 + $0x234] sm:$0xff]   ;;  %v13086_v5 = vld [vmem:[%s17446_s21 + $0x1c4] sm:$0x1] }
  0xca   : > { %v2324_v52 = vrot.slane %v2322_v17, 4  ;;  %v2337_v21 = vrot.slane %v2335_v24, 4  ;;  %v2341_v42 = vshll.u32 %v13077_v18, 16  ;;  %v18169_v16 = vld [vmem:[%s17446_s21 + $0x2d0] sm:$0xff]  }
  0xcb   : > { %v5181_v28 = vrot.slane %v5180_v11, 4  ;;  %v2370_v11 = vshrl.u32 %v13081_v23, 16 }
  0xcc   : > { %v2328_v43 = vor.u32 %v2327_v55, %v2324_v52  ;;  %v2343_v26 = vrot.slane %v2341_v42, 5  ;;  %v2413_v42 = vshll.u32 %v13086_v5, 16 }
  0xcd   : > { %14994 = vmatmul.mubr.msk.bf16.gmra.mrb[28].mxu0 %vm320_vm1, %v17738_v14  ;;  %v5138_v14 = vsel %vm17492_vm4, %v5133_v51, %v5137_v31  ;;  %v5186_v36 = vsel %vm17492_vm4, %v5181_v28, %v5185_v15  ;;  %v2346_v51 = vshrl.u32 %v13078_v49, 16  ;;  %v13082_v15 = vld [vmem:[%s17446_s21 + $0x1b4] sm:$0xf]  ;;  %v13084_v28 = vld [vmem:[%s17446_s21 + $0x1bc] sm:$0xf] }
  0xce   : > { %14999 = vmatprep.mubr.msk.bf16.mxu0 %vm320_vm1, %v17220_v22  ;;  %v13460_v12 = vcombine.low %v5138_v14, %v5148_v30  ;;  %v13462_v31 = vcombine.low %v5186_v36, %v5196_v34  ;;  %v18128_v22 = vld [vmem:[%s17446_s21 + $0x2ac] sm:$0xff]   ;;  %v18149_v14 = vld [vmem:[%s17446_s21 + $0x2c4] sm:$0xff]   ;;  %v2351_v30 = vrot.slane %v2349_v40, 5  ;;  %v2383_v25 = vshrl.u32 %v13082_v15, 16  ;;  %v13085_v36 = vld [vmem:[%s17446_s21 + $0x1c0] sm:$0xf] }
  0xcf   : > { %15292 = vmatmul.mubr.msk.bf16.gmra.mrb[20].mxu1 %vm320_vm1, %v13458_v0  ;;  %v18137_v0 = vrot.slane %v2331_v57, 5  ;;  %v2348_v3 = vrot.slane %v2346_v51, 4  ;;  %v2329_v33 = vrot.slane %v2328_v43, 4  ;;  %v17246_v34 = vld [vmem:[%s17446_s21 + $0x240] sm:$0xff]   ;;  %v2403_v27 = vshll.u32 %v13085_v36, 16 }
  0xd0   : > { %15295 = vmatprep.mubr.msk.bf16.mxu1 %vm320_vm1, %v13459_v60  ;;  %v13079_v60 = vld [vmem:[%s17446_s21 + $0x1a8] sm:$0xf]  ;;  %v2407_v17 = vshrl.u32 %v13085_v36, 16  ;;  %v18173_v57 = vld [vmem:[%s17446_s21 + $0x2dc] sm:$0xff]   ;;  %v13088_v51 = vld [vmem:[%s17446_s21 + $0x1cc] sm:$0xf] }
  0xd1   : > { %v2355_v45 = vshll.u32 %v13079_v60, 16  ;;  %v2359_v63 = vshrl.u32 %v13079_v60, 16  ;;  %v2334_v24 = vsel %vm17492_vm4, %v2329_v33, %v18137_v0  ;;  %v18221_v36 = vld [vmem:[%s17446_s21 + $0x2f4] sm:$0xff]  }
  0xd3   : > { %v2361_v32 = vrot.slane %v2359_v63, 4  ;;  %v18194_v63 = vsel %vm369_vm0, %v18065_v4, 0 }
  0xd4   : > { %21350 = vst [vmem:[#allocation8_spill] sm:$0xff] %v18194_v63 }
  0xd5   : > { %15000 = vmatmul.mubr.msk.bf16.vlgmr.msra.gmra.mrb[0].mxu0 %vm320_vm1, %v17221_v59  ;;  %v2338_v59 = vor.u32 %v2337_v21, %v18137_v0  ;;  %v17247_v21 = vld [vmem:[%s17446_s21 + $0x24c] sm:$0xff]  }
  0xd6   : > { %15003 = vmatprep.mubr.msk.bf16.mxu0 %vm320_vm1, %v17222_v13  ;;  %15032 = vmatpush3.bf16.msra.mxu0 %v18060_v10  ;;  %v2379_v13 = vshll.u32 %v13082_v15, 16  ;;  %v2409_v15 = vrot.slane %v2407_v17, 4 }
  0xd7   : > { %17148 = vmatprep.subr.msk.bf16.mxu0 %vm369_vm0, %v18065_v4  ;;  %15296 = vmatmul.mubr.msk.bf16.gmra.mrb[24].mxu1 %vm320_vm1, %v13460_v12  ;;  %v13080_v12 = vld [vmem:[%s17446_s21 + $0x1ac] sm:$0x1] }
  0xd8   : > { %15299 = vmatprep.mubr.msk.bf16.mxu1 %vm320_vm1, %v13461_v56  ;;  %v18155_v56 = vrot.slane %v2355_v45, 5  ;;  %v18188_v45 = vrot.slane %v2403_v27, 5 }
  0xda   : > { %v2362_v49 = vor.u32 %v2361_v32, %v18155_v56 }
  0xdd   : > { %15004 = vmatmul.mubr.msk.bf16.gmra.mrb[4].mxu0 %vm320_vm1, %v17223_v2  ;;  %v13083_v2 = vld [vmem:[%s17446_s21 + $0x1b8] sm:$0x1] }
  0xde   : > { %15007 = vmatprep.mubr.msk.bf16.mxu0 %vm320_vm1, %v17226_v29  ;;  %v2339_v29 = vrot.slane %v2338_v59, 4  ;;  %v2389_v60 = vshll.u32 %v13083_v2, 16  ;;  %v13093_v2 = vld [vmem:[%s17446_s21 + $0x1e0] sm:$0xf] }
  0xdf   : > { %15300 = vmatmul.mubr.msk.bf16.gmra.mrb[28].mxu1 %vm320_vm1, %v13462_v31  ;;  %v2352_v31 = vor.u32 %v2351_v30, %v2348_v3  ;;  %v2427_v30 = vshll.u32 %v13088_v51, 16 }
  0xe0   : > { %15305 = vmatprep.mubr.msk.bf16.mxu1 %vm320_vm1, %v18082_v38  ;;  %v2344_v18 = vsel %vm17492_vm4, %v2339_v29, %v2343_v26  ;;  %v13091_v26 = vld [vmem:[%s17446_s21 + $0x1d8] sm:$0xf]  ;;  %v18224_v29 = vrot.slane %v2413_v42, 5  ;;  %v13097_v42 = vld [vmem:[%s17446_s21 + $0x1f0] sm:$0xf] }
  0xe1   : > { %v18183_v52 = vrot.slane %v2352_v31, 4  ;;  %v2451_v27 = vshll.u32 %v13091_v26, 16  ;;  %v2455_v17 = vshrl.u32 %v13091_v26, 16 }
  0xe5   : > { %15008 = vmatmul.mubr.msk.bf16.gmra.mrb[8].mxu0 %vm320_vm1, %v17227_v37  ;;  %v2372_v37 = vrot.slane %v2370_v11, 4  ;;  %v2431_v11 = vshrl.u32 %v13088_v51, 16 }
  0xe6   : > { %15011 = vmatprep.mubr.msk.bf16.mxu0 %vm320_vm1, %v17230_v19  ;;  %v2375_v19 = vrot.slane %v2373_v9, 5  ;;  %v13090_v9 = vld [vmem:[%s17446_s21 + $0x1d4] sm:$0xf] }
  0xe7   : > { %15306 = vmatmul.mubr.msk.bf16.vlgmr.msra.gmra.mrb[0].mxu1 %vm320_vm1, %v18091_v41  ;;  %v2445_v5 = vshll.u32 %v13090_v9, 16 }
  0xe8   : > { %15338 = vmatpush3.bf16.msra.mxu1 %v18060_v10  ;;  %15309 = vmatprep.mubr.msk.bf16.mxu1 %vm320_vm1, %v18095_v54  ;;  %v2376_v55 = vor.u32 %v2375_v19, %v2372_v37  ;;  %v13094_v19 = vld [vmem:[%s17446_s21 + $0x1e4] sm:$0xf] }
  0xe9   : > { %17157 = vmatprep.subr.msk.bf16.mxu1 %vm369_vm0, %v18065_v4  ;;  %v18209_v4 = vld [vmem:[%s17446_s21 + $0x2e8] sm:$0xff]  }
  0xed   : > { %15012 = vmatmul.mubr.msk.bf16.gmra.mrb[12].mxu0 %vm320_vm1, %v17231_v46  ;;  %v18165_v46 = vrot.slane %v2379_v13, 5  ;;  %v18203_v13 = vrot.slane %v2362_v49, 4  ;;  %v2469_v49 = vshll.u32 %v13093_v2, 16 }
  0xee   : > { %15015 = vmatprep.mubr.msk.bf16.mxu0 %vm320_vm1, %v17234_v48  ;;  %v2385_v48 = vrot.slane %v2383_v25, 4  ;;  %v18205_v25 = vrot.slane %v2389_v60, 5 }
  0xef   : > { %15310 = vmatmul.mubr.msk.bf16.gmra.mrb[4].mxu1 %vm320_vm1, %v18108_v61 }
  0xf0   : > { %15313 = vmatprep.mubr.msk.bf16.mxu1 %vm320_vm1, %v18112_v7  ;;  %v2386_v40 = vor.u32 %v2385_v48, %v18165_v46  ;;  %v13089_v48 = vld [vmem:[%s17446_s21 + $0x1d0] sm:$0x1] }
  0xf2   : > { %v18217_v33 = vrot.slane %v2386_v40, 4  ;;  %v13092_v40 = vld [vmem:[%s17446_s21 + $0x1dc] sm:$0x1] }
  0xf5   : > { %15016 = vmatmul.mubr.msk.bf16.gmra.mrb[16].mxu0 %vm320_vm1, %v17235_v20  ;;  %v2394_v20 = vshrl.u32 %v13084_v28, 16 }
  0xf6   : > { %15019 = vmatprep.mubr.msk.bf16.mxu0 %vm320_vm1, %v17238_v44  ;;  %v2397_v44 = vshll.u32 %v13084_v28, 16  ;;  %v18215_v28 = vrot.slane %v2376_v55, 4  ;;  %v2479_v55 = vshrl.u32 %v13094_v19, 16 }
  0xf7   : > { %15314 = vmatmul.mubr.msk.bf16.gmra.mrb[8].mxu1 %vm320_vm1, %v18124_v62  ;;  %v2396_v23 = vrot.slane %v2394_v20, 4  ;;  %v2433_v20 = vrot.slane %v2431_v11, 4  ;;  %v2457_v11 = vrot.slane %v2455_v17, 4 }
  0xf8   : > { %15317 = vmatprep.mubr.msk.bf16.mxu1 %vm320_vm1, %v18128_v22  ;;  %v2399_v0 = vrot.slane %v2397_v44, 5  ;;  %v2442_v44 = vshrl.u32 %v13090_v9, 16  ;;  %v2481_v26 = vrot.slane %v2479_v55, 4 }
  0xfa   : > { %v2400_v32 = vor.u32 %v2399_v0, %v2396_v23 }
  0xfc   : > { %v18246_v60 = vrot.slane %v2400_v32, 4  ;;  %v2499_v32 = vshll.u32 %v13097_v42, 16 }
  0xfd   : > { %15020 = vmatmul.mubr.msk.bf16.gmra.mrb[20].mxu0 %vm320_vm1, %v17239_v50  ;;  %v2365_v50 = vshll.u32 %v13080_v12, 16  ;;  %v2358_v12 = vsel %vm17492_vm4, %v18183_v52, %v18155_v56  ;;  %v18229_v56 = vrot.slane %v2427_v30, 5  ;;  %v2475_v52 = vshll.u32 %v13094_v19, 16 }
  0xfe   : > { %15023 = vmatprep.mubr.msk.bf16.mxu0 %vm320_vm1, %v17242_v39  ;;  %v13087_v39 = vld [vmem:[%s17446_s21 + $0x1c8] sm:$0xf]  ;;  %v18258_v30 = vrot.slane %v2451_v27, 5  ;;  %v2461_v19 = vshll.u32 %v13092_v40, 16 }
  0xff   : > { %15318 = vmatmul.mubr.msk.bf16.gmra.mrb[12].mxu1 %vm320_vm1, %v18145_v53  ;;  %v2418_v43 = vshrl.u32 %v13087_v39, 16  ;;  %v2421_v3 = vshll.u32 %v13087_v39, 16  ;;  %v18196_v59 = vrot.slane %v2365_v50, 5  ;;  %v13096_v50 = vld [vmem:[%s17446_s21 + $0x1ec] sm:$0xf]  ;;  %v2434_v0 = vor.u32 %v2433_v20, %v18229_v56 }
 0x100   : > { %15321 = vmatprep.mubr.msk.bf16.mxu1 %vm320_vm1, %v18149_v14  ;;  %v2458_v17 = vor.u32 %v2457_v11, %v18258_v30 }
 0x101   : > { %v2420_v31 = vrot.slane %v2418_v43, 4  ;;  %v2423_v37 = vrot.slane %v2421_v3, 5  ;;  %v2368_v39 = vsel %vm17492_vm4, %v18203_v13, %v18196_v59  ;;  %v2493_v43 = vshll.u32 %v13096_v50, 16 }
 0x102   : > { %v2444_v3 = vrot.slane %v2442_v44, 4  ;;  %v2447_v59 = vrot.slane %v2445_v5, 5  ;;  %v2471_v13 = vrot.slane %v2469_v49, 5  ;;  %v18275_v44 = vld [vmem:[%s17446_s21 + $0x30c] sm:$0xff]   ;;  %v18280_v5 = vcombine.low %v2358_v12, %v2368_v39  ;;  %v13099_v12 = vld [vmem:[%s17446_s21 + $0x1f8] sm:$0xf] }
 0x103   : > { %v2424_v51 = vor.u32 %v2423_v37, %v2420_v31  ;;  %v18270_v31 = vld [vmem:[%s17446_s21 + $0x300] sm:$0xff]   ;;  %v2435_v37 = vrot.slane %v2434_v0, 4  ;;  %v2495_v20 = vrot.slane %v2493_v43, 5  ;;  %21352 = vst [vmem:[#allocation10_spill] sm:$0xff] %v18275_v44  ;;  %v13103_v0 = vld [vmem:[%s17446_s21 + $0x208] sm:$0xf] }
 0x104   : > { %v2448_v27 = vor.u32 %v2447_v59, %v2444_v3  ;;  %v2517_v59 = vshll.u32 %v13099_v12, 16 }
 0x105   : > { %15024 = vmatmul.mubr.msk.bf16.gmra.mrb[24].mxu0 %vm320_vm1, %v17243_v58  ;;  %v18201_v58 = vcombine.low %v2334_v24, %v2344_v18  ;;  %v2466_v24 = vshrl.u32 %v13093_v2, 16  ;;  %v2382_v18 = vsel %vm17492_vm4, %v18215_v28, %v18165_v46  ;;  %v13095_v46 = vld [vmem:[%s17446_s21 + $0x1e8] sm:$0x1]  ;;  %v18262_v28 = vrot.slane %v2424_v51, 4 }
 0x106   : > { %15027 = vmatprep.mubr.msk.bf16.mxu0 %vm320_vm1, %v17246_v34  ;;  %v2410_v34 = vor.u32 %v2409_v15, %v18188_v45  ;;  %v2490_v15 = vshrl.u32 %v13096_v50, 16  ;;  %v2503_v2 = vshrl.u32 %v13097_v42, 16  ;;  %v2406_v50 = vsel %vm17492_vm4, %v18246_v60, %v18188_v45  ;;  %v13102_v60 = vld [vmem:[%s17446_s21 + $0x204] sm:$0xf] }
 0x107   : > { %15322 = vmatmul.mubr.msk.bf16.gmra.mrb[16].mxu1 %vm320_vm1, %v18169_v16  ;;  %21351 = vst [vmem:[#allocation9_spill] sm:$0xff] %v18201_v58  ;;  %v2468_v9 = vrot.slane %v2466_v24, 4  ;;  %v13098_v24 = vld [vmem:[%s17446_s21 + $0x1f4] sm:$0x1]  ;;  %v18302_v45 = vrot.slane %v2499_v32, 5 }
 0x108   : > { %15325 = vmatprep.mubr.msk.bf16.mxu1 %vm320_vm1, %v18173_v57  ;;  %v18251_v23 = vrot.slane %v2410_v34, 4  ;;  %v18267_v34 = vld [vmem:[%s21223_s1 + $0x18] sm:$0xf]  ;;  %v2505_v55 = vrot.slane %v2503_v2, 4  ;;  %v2509_v40 = vshll.u32 %v13098_v24, 16 }
 0x109   : > { %v13105_v32 = vld [vmem:[%s17446_s21 + $0x210] sm:$0xf] }
 0x10a   : > { %v2416_v39 = vsel %vm17492_vm4, %v18251_v23, %v18224_v29  ;;  %v13101_v23 = vld [vmem:[%s17446_s21 + $0x200] sm:$0x1] }
 0x10d   : > { %15028 = vmatmul.mubr.msk.bf16.gmra.mrb[28].mxu0 %vm320_vm1, %v17247_v21  ;;  %v2437_v21 = vshll.u32 %v13089_v48, 16  ;;  %v2492_v48 = vrot.slane %v2490_v15, 4  ;;  %v2514_v15 = vshrl.u32 %v13099_v12, 16 }
 0x10e   : > { %15033 = vmatprep.mubr.msk.bf16.mxu0 %vm320_vm1, %v18082_v38  ;;  %v2392_v38 = vsel %vm17492_vm4, %v18217_v33, %v18205_v25  ;;  %v18260_v25 = vrot.slane %v2475_v52, 5 }
 0x10f   : > { %15326 = vmatmul.mubr.msk.bf16.gmra.mrb[20].mxu1 %vm320_vm1, %v18209_v4  ;;  %v2439_v33 = vrot.slane %v2437_v21, 5  ;;  %v18284_v49 = vcombine.low %v2382_v18, %v2392_v38  ;;  %v2430_v18 = vsel %vm17492_vm4, %v18262_v28, %v18229_v56  ;;  %v13100_v38 = vld [vmem:[%s17446_s21 + $0x1fc] sm:$0xf]  ;;  %v18310_v21 = vrot.slane %v2461_v19, 5  ;;  %v18338_v19 = vld [vmem:[%s17446_s21 + $0x20c] sm:$0x1] }
 0x110   : > { %15329 = vmatprep.mubr.msk.bf16.mxu1 %vm320_vm1, %v18221_v36  ;;  %v2482_v52 = vor.u32 %v2481_v26, %v18260_v25  ;;  %v2496_v29 = vor.u32 %v2495_v20, %v2492_v48  ;;  %v18316_v56 = vrot.slane %v2448_v27, 4  ;;  %v2523_v11 = vshll.u32 %v13100_v38, 16  ;;  %v13106_v27 = vld [vmem:[%s17446_s21 + $0x214] sm:$0xf] }
 0x111   : > { %v2440_v51 = vsel %vm17492_vm4, %v2435_v37, %v2439_v33  ;;  %v2527_v26 = vshrl.u32 %v13100_v38, 16  ;;  %v2533_v28 = vshll.u32 %v13101_v23, 16  ;;  %v2538_v33 = vshrl.u32 %v13102_v60, 16 }
 0x112   : > { %v18324_v3 = vrot.slane %v2482_v52, 4  ;;  %v18333_v2 = vrot.slane %v2496_v29, 4  ;;  %v18335_v37 = vrot.slane %v2509_v40, 5  ;;  %v2541_v48 = vshll.u32 %v13102_v60, 16  ;;  %v13109_v52 = vld [vmem:[%s17446_s21 + $0x220] sm:$0xf] }
 0x113   : > { %v2547_v20 = vshll.u32 %v13103_v0, 16  ;;  %v2516_v24 = vrot.slane %v2514_v15, 4  ;;  %v2529_v38 = vrot.slane %v2527_v26, 4  ;;  %v18362_v60 = vrot.slane %v2533_v28, 5  ;;  %v13112_v15 = vld [vmem:[%s17446_s21 + $0x22c] sm:$0xf] }
 0x114   : > { %v2543_v29 = vrot.slane %v2541_v48, 5  ;;  %v2562_v23 = vshrl.u32 %v13105_v32, 16  ;;  %v2575_v26 = vshrl.u32 %v13106_v27, 16  ;;  %v13114_v28 = vld [vmem:[%s17446_s21 + $0x234] sm:$0xf]  ;;  %v2599_v10 = vshrl.u32 %v13109_v52, 16 }
 0x115   : > { %15034 = vmatmul.mubr.msk.bf16.vlgmr.msra.gmra.mrb[0].mxu0 %vm320_vm1, %v18091_v41  ;;  %v2485_v41 = vshll.u32 %v13095_v46, 16  ;;  %v18318_v46 = vrot.slane %v2458_v17, 4  ;;  %v18343_v17 = vcombine.low %v2406_v50, %v2416_v39  ;;  %v18357_v50 = vrot.slane %v2523_v11, 5  ;;  %v13111_v39 = vld [vmem:[%s17446_s21 + $0x228] sm:$0xf] }
 0x116   : > { %15037 = vmatprep.mubr.msk.bf16.mxu0 %vm320_vm1, %v18095_v54  ;;  %15066 = vmatpush3.bf16.msra.mxu0 %v18194_v63  ;;  %v2472_v54 = vor.u32 %v2471_v13, %v2468_v9  ;;  %v18327_v9 = vld [vmem:[%s17446_s21 + $0x318] sm:$0xff]   ;;  %v2506_v13 = vor.u32 %v2505_v55, %v18302_v45  ;;  %v18366_v40 = vrot.slane %v2547_v20, 5  ;;  %v2557_v11 = vshll.u32 %v18338_v19, 16 }
 0x117   : > { %17149 = vmatprep.subr.msk.bf16.mxu0 %vm369_vm0, %v18267_v34  ;;  %15330 = vmatmul.mubr.msk.bf16.gmra.mrb[24].mxu1 %vm320_vm1, %v18270_v31  ;;  %v18320_v42 = vrot.slane %v2485_v41, 5  ;;  %21353 = vst [vmem:[#allocation11_spill] sm:$0xff] %v18327_v9  ;;  %v18345_v41 = vcombine.low %v2430_v18, %v2440_v51  ;;  %v2540_v51 = vrot.slane %v2538_v33, 4  ;;  %v2595_v55 = vshll.u32 %v13109_v52, 16 }
 0x118   : > { %15333 = vmatprep.mubr.msk.bf16.mxu1 %vm320_vm1, %v18275_v44  ;;  %v18322_v43 = vrot.slane %v2472_v54, 4  ;;  %v2551_v54 = vshrl.u32 %v13103_v0, 16  ;;  %v18360_v18 = vrot.slane %v2506_v13, 4  ;;  %v2565_v0 = vshll.u32 %v13105_v32, 16 }
 0x119   : > { %v2571_v13 = vshll.u32 %v13106_v27, 16  ;;  %v2530_v20 = vor.u32 %v2529_v38, %v18357_v50  ;;  %v2610_v32 = vshrl.u32 %v13111_v39, 16  ;;  %v2613_v47 = vshll.u32 %v13111_v39, 16 }
 0x11a   : > { %v2567_v19 = vrot.slane %v2565_v0, 5  ;;  %v2619_v6 = vshll.u32 %v13112_v15, 16  ;;  %v2623_v27 = vshrl.u32 %v13112_v15, 16  ;;  %v2634_v52 = vshrl.u32 %v13114_v28, 16  ;;  %v13113_v15 = vld [vmem:[%s17446_s21 + $0x230] sm:$0x1] }
 0x11b   : > { %v18380_v38 = vrot.slane %v2571_v13, 5  ;;  %v2577_v39 = vrot.slane %v2575_v26, 4  ;;  %v2601_v0 = vrot.slane %v2599_v10, 4  ;;  %v2615_v44 = vrot.slane %v2613_v47, 5 }
 0x11c   : > { %v2625_v13 = vrot.slane %v2623_v27, 4  ;;  %v18399_v10 = vrot.slane %v2557_v11, 5  ;;  %v2581_v47 = vshll.u32 %v13107_v8, 16 }
 0x11d   : > { %15038 = vmatmul.mubr.msk.bf16.gmra.mrb[4].mxu0 %vm320_vm1, %v18108_v61  ;;  %v13108_v61 = vld [vmem:[%s17446_s21 + $0x21c] sm:$0xf] }
 0x11e   : > { %15041 = vmatprep.mubr.msk.bf16.mxu0 %vm320_vm1, %v18112_v7  ;;  %v2519_v7 = vrot.slane %v2517_v59, 5  ;;  %v2553_v59 = vrot.slane %v2551_v54, 4  ;;  %v2586_v33 = vshrl.u32 %v13108_v61, 16  ;;  %v2589_v12 = vshll.u32 %v13108_v61, 16 }
 0x11f   : > { %15334 = vmatmul.mubr.msk.bf16.gmra.mrb[28].mxu1 %vm320_vm1, %v18327_v9  ;;  %v2564_v54 = vrot.slane %v2562_v23, 4  ;;  %v2544_v61 = vor.u32 %v2543_v29, %v2540_v51  ;;  %v2612_v9 = vrot.slane %v2610_v32, 4  ;;  %v18391_v29 = vrot.slane %v2530_v20, 4  ;;  %v13118_v32 = vld [vmem:[%s17446_s21 + $0x244] sm:$0xf] }
 0x120   : > { %15339 = vmatprep.mubr.msk.bf16.mxu1 %vm320_vm1, %v18201_v58  ;;  %v2520_v48 = vor.u32 %v2519_v7, %v2516_v24  ;;  %v2554_v24 = vor.u32 %v2553_v59, %v18366_v40  ;;  %v2637_v7 = vshll.u32 %v13114_v28, 16  ;;  %v2588_v1 = vrot.slane %v2586_v33, 4  ;;  %v13117_v28 = vld [vmem:[%s17446_s21 + $0x240] sm:$0xf] }
 0x121   : > { %v2591_v23 = vrot.slane %v2589_v12, 5  ;;  %v18383_v58 = vrot.slane %v2595_v55, 5  ;;  %v18393_v59 = vrot.slane %v2619_v6, 5  ;;  %v13116_v12 = vld [vmem:[%s17446_s21 + $0x23c] sm:$0x1]  ;;  %v2636_v55 = vrot.slane %v2634_v52, 4 }
 0x122   : > { %v18389_v51 = vrot.slane %v2520_v48, 4  ;;  %v2639_v26 = vrot.slane %v2637_v7, 5  ;;  %v18402_v33 = vrot.slane %v2544_v61, 4  ;;  %v18404_v48 = vrot.slane %v2554_v24, 4 }
 0x123   : > { %v2568_v20 = vor.u32 %v2567_v19, %v2564_v54  ;;  %v2578_v6 = vor.u32 %v2577_v39, %v18380_v38  ;;  %v2592_v27 = vor.u32 %v2591_v23, %v2588_v1  ;;  %v2616_v8 = vor.u32 %v2615_v44, %v2612_v9  ;;  %v13120_v23 = vld [vmem:[%s17446_s21 + $0x24c] sm:$0xf] }
 0x124   : > { %v2626_v61 = vor.u32 %v2625_v13, %v18393_v59  ;;  %v2629_v24 = vshll.u32 %v13113_v15, 16  ;;  %v18416_v19 = vrot.slane %v2581_v47, 5  ;;  %v2640_v7 = vor.u32 %v2639_v26, %v2636_v55  ;;  %v13119_v26 = vld [vmem:[%s17446_s21 + $0x248] sm:$0x1] }
 0x125   : > { %15042 = vmatmul.mubr.msk.bf16.gmra.mrb[8].mxu0 %vm320_vm1, %v18124_v62  ;;  %v13110_v62 = vld [vmem:[%s17446_s21 + $0x224] sm:$0x1]  ;;  %v2653_v1 = vshll.u32 %v13116_v12, 16  ;;  %v2658_v39 = vshrl.u32 %v13117_v28, 16  ;;  %v18420_v44 = vrot.slane %v2578_v6, 4  ;;  %v2661_v9 = vshll.u32 %v13117_v28, 16 }
 0x126   : > { %15045 = vmatprep.mubr.msk.bf16.mxu0 %vm320_vm1, %v18128_v22  ;;  %v13115_v22 = vld [vmem:[%s17446_s21 + $0x238] sm:$0xf]  ;;  %v2605_v11 = vshll.u32 %v13110_v62, 16  ;;  %v18418_v62 = vrot.slane %v2568_v20, 4  ;;  %v18433_v13 = vrot.slane %v2626_v61, 4  ;;  %v18435_v12 = vrot.slane %v2629_v24, 5 }
 0x127   : > { %15340 = vmatmul.mubr.msk.bf16.vlgmr.msra.gmra.mrb[0].mxu1 %vm320_vm1, %v18280_v5  ;;  %v2643_v52 = vshll.u32 %v13115_v22, 16  ;;  %v2647_v54 = vshrl.u32 %v13115_v22, 16  ;;  %v18444_v28 = vrot.slane %v2653_v1, 5  ;;  %v2660_v20 = vrot.slane %v2658_v39, 4 }
 0x128   : > { %15372 = vmatpush3.bf16.msra.mxu1 %v18194_v63  ;;  %15343 = vmatprep.mubr.msk.bf16.mxu1 %vm320_vm1, %v18284_v49  ;;  %v2602_v63 = vor.u32 %v2601_v0, %v18383_v58  ;;  %v18423_v0 = vrot.slane %v2592_v27, 4  ;;  %v18427_v22 = vrot.slane %v2605_v11, 5  ;;  %v2671_v6 = vshrl.u32 %v13118_v32, 16 }
 0x129   : > { %17158 = vmatprep.subr.msk.bf16.mxu1 %vm369_vm0, %v18267_v34  ;;  %v18437_v47 = vrot.slane %v2643_v52, 5  ;;  %v2649_v55 = vrot.slane %v2647_v54, 4  ;;  %v2478_v27 = vsel %vm17492_vm4, %v18322_v43, %v18260_v25  ;;  %v2488_v11 = vsel %vm17492_vm4, %v18324_v3, %v18320_v42  ;;  %v13121_v52 = vld [vmem:[%s17446_s21 + $0x250] sm:$0xf] }
 0x12a   : > { %v18425_v15 = vrot.slane %v2602_v63, 4  ;;  %v18442_v63 = vrot.slane %v2640_v7, 4  ;;  %v2677_v24 = vshll.u32 %v13119_v26, 16  ;;  %v2682_v54 = vshrl.u32 %v13120_v23, 16  ;;  %v13512_v26 = vld [vmem:[%s17446_s21 + $0x268] sm:$0xf] }
 0x12b   : > { %v21355_v25 = vsel %vm17492_vm4, %v18316_v56, %v18258_v30  ;;  %v2650_v42 = vor.u32 %v2649_v55, %v18437_v47  ;;  %v18472_v3 = vcombine.low %v2478_v27, %v2488_v11  ;;  %v2673_v7 = vrot.slane %v2671_v6, 4 }
 0x12c   : > { %v2685_v1 = vshll.u32 %v13120_v23, 16  ;;  %v18480_v30 = vrot.slane %v2677_v24, 5  ;;  %v18482_v56 = vrot.slane %v2682_v54, 4  ;;  %v2536_v23 = vsel %vm17492_vm4, %v18391_v29, %v18362_v60  ;;  %v13513_v54 = vld [vmem:[%s17446_s21 + $0x26c] sm:$0x1] }
 0x12d   : > { %15046 = vmatmul.mubr.msk.bf16.gmra.mrb[12].mxu0 %vm320_vm1, %v18145_v53  ;;  %v2667_v53 = vshll.u32 %v13118_v32, 16  ;;  %v21354_v32 = vsel %vm17492_vm4, %v18318_v46, %v18310_v21  ;;  %v18478_v21 = vrot.slane %v2650_v42, 4  ;;  %v2512_v46 = vsel %vm17492_vm4, %v18360_v18, %v18335_v37  ;;  %v13511_v37 = vld [vmem:[%s17446_s21 + $0x264] sm:$0xf] }
 0x12e   : > { %15049 = vmatprep.mubr.msk.bf16.mxu0 %vm320_vm1, %v18149_v14  ;;  %v18429_v14 = vrot.slane %v2616_v8, 4  ;;  %v2663_v8 = vrot.slane %v2661_v9, 5  ;;  %v18467_v43 = vcombine.low %v21355_v25, %v21354_v32  ;;  %v2687_v39 = vrot.slane %v2685_v1, 5 }
 0x12f   : > { %15344 = vmatmul.mubr.msk.bf16.gmra.mrb[4].mxu1 %vm320_vm1, %v18343_v17  ;;  %v18454_v61 = vrot.slane %v2667_v53, 5  ;;  %v2695_v9 = vshrl.u32 %v13121_v52, 16  ;;  %v2526_v53 = vsel %vm17492_vm4, %v18389_v51, %v18357_v50  ;;  %v5924_v6 = vshll.u32 %v13511_v37, 16 }
 0x130   : > { %15347 = vmatprep.mubr.msk.bf16.mxu1 %vm320_vm1, %v18345_v41  ;;  %v18508_v18 = vcombine.low %v2526_v53, %v2536_v23  ;;  %v2574_v27 = vsel %vm17492_vm4, %v18418_v62, %v18380_v38  ;;  %v2584_v11 = vsel %vm17492_vm4, %v18420_v44, %v18416_v19  ;;  %v21359_v38 = vld [vmem:[#allocation10_spill] sm:$0xff]  ;;  %v2608_v19 = vsel %vm17492_vm4, %v18425_v15, %v18427_v22  ;;  %v13515_v22 = vld [vmem:[%s17446_s21 + $0x274] sm:$0xf]  ;;  %v13520_v53 = vld [vmem:[%s17446_s21 + $0x288] sm:$0xf] }
 0x131   : > { %v2697_v29 = vrot.slane %v2695_v9, 4  ;;  %v5930_v62 = vshll.u32 %v13512_v26, 16  ;;  %v5934_v44 = vshrl.u32 %v13512_v26, 16  ;;  %v2656_v15 = vsel %vm17492_vm4, %v18478_v21, %v18444_v28  ;;  %v21366_v23 = vld [vmem:[#allocation9_spill] sm:$0xff] }
 0x132   : > { %21356 = vst [vmem:[#allocation12_spill] sm:$0xff] %v18508_v18  ;;  %v5926_v28 = vrot.slane %v5924_v6, 5  ;;  %v5954_v25 = vshll.u32 %v13515_v22, 16  ;;  %v5958_v21 = vshrl.u32 %v13515_v22, 16  ;;  %v18603_v9 = vsel %vm369_vm0, %v18267_v34, 0 }
 0x133   : > { %v18583_v32 = vrot.slane %v5930_v62, 5  ;;  %21365 = vst [vmem:[#allocation17_spill] sm:$0xff] %v18603_v9 }
 0x134   : > { %v5960_v6 = vrot.slane %v5958_v21, 4 }
 0x135   : > { %15050 = vmatmul.mubr.msk.bf16.gmra.mrb[16].mxu0 %vm320_vm1, %v18169_v16  ;;  %v2691_v16 = vshll.u32 %v13121_v52, 16 }
 0x136   : > { %15053 = vmatprep.mubr.msk.bf16.mxu0 %vm320_vm1, %v18173_v57  ;;  %v2502_v57 = vsel %vm17492_vm4, %v18333_v2, %v18302_v45  ;;  %v2664_v45 = vor.u32 %v2663_v8, %v2660_v20  ;;  %v2674_v2 = vor.u32 %v2673_v7, %v18454_v61  ;;  %v5921_v20 = vshrl.u32 %v13511_v37, 16  ;;  %v13514_v8 = vld [vmem:[%s17446_s21 + $0x270] sm:$0xf] }
 0x137   : > { %15348 = vmatmul.mubr.msk.bf16.gmra.mrb[8].mxu1 %vm320_vm1, %v18467_v43  ;;  %v18502_v55 = vcombine.low %v2502_v57, %v2512_v46  ;;  %v18514_v51 = vrot.slane %v2691_v16, 5  ;;  %v5945_v24 = vshrl.u32 %v13514_v8, 16  ;;  %v5948_v52 = vshll.u32 %v13514_v8, 16  ;;  %v21363_v16 = vld [vmem:[#allocation11_spill] sm:$0xff] }
 0x138   : > { %15351 = vmatprep.mubr.msk.bf16.mxu1 %vm320_vm1, %v18472_v3  ;;  %v2665_v50 = vrot.slane %v2664_v45, 4  ;;  %v2675_v60 = vrot.slane %v2674_v2, 4 }
 0x139   : > { %v5947_v37 = vrot.slane %v5945_v24, 4 }
 0x13d   : > { %15054 = vmatmul.mubr.msk.bf16.gmra.mrb[20].mxu0 %vm320_vm1, %v18209_v4  ;;  %v2550_v4 = vsel %vm17492_vm4, %v18402_v33, %v18366_v40  ;;  %v13122_v40 = vld [vmem:[%s17446_s21 + $0x254] sm:$0x1] }
 0x13e   : > { %15057 = vmatprep.mubr.msk.bf16.mxu0 %vm320_vm1, %v18221_v36  ;;  %v2560_v36 = vsel %vm17492_vm4, %v18404_v48, %v18399_v10  ;;  %v18540_v10 = vcombine.low %v2574_v27, %v2584_v11  ;;  %v2598_v48 = vsel %vm17492_vm4, %v18423_v0, %v18383_v58  ;;  %v2632_v58 = vsel %vm17492_vm4, %v18433_v13, %v18435_v12 }
 0x13f   : > { %15352 = vmatmul.mubr.msk.bf16.gmra.mrb[12].mxu1 %vm320_vm1, %v18502_v55  ;;  %v18536_v33 = vcombine.low %v2550_v4, %v2560_v36  ;;  %v2646_v0 = vsel %vm17492_vm4, %v18442_v63, %v18437_v47  ;;  %v2680_v13 = vsel %vm17492_vm4, %v2675_v60, %v18480_v30  ;;  %v2698_v12 = vor.u32 %v2697_v29, %v18514_v51  ;;  %v13517_v30 = vld [vmem:[%s17446_s21 + $0x27c] sm:$0xf]  ;;  %v13521_v60 = vld [vmem:[%s17446_s21 + $0x28c] sm:$0xf] }
 0x140   : > { %15355 = vmatprep.mubr.msk.bf16.mxu1 %vm320_vm1, %v18508_v18  ;;  %21358 = vst [vmem:[#allocation14_spill] sm:$0xff] %v18540_v10  ;;  %v2701_v47 = vshll.u32 %v13122_v40, 16  ;;  %v5923_v63 = vrot.slane %v5921_v20, 4  ;;  %v18585_v42 = vcombine.low %v2598_v48, %v2608_v19  ;;  %v18589_v1 = vcombine.low %v2646_v0, %v2656_v15  ;;  %v13516_v20 = vld [vmem:[%s17446_s21 + $0x278] sm:$0x1] }
 0x141   : > { %21357 = vst [vmem:[#allocation13_spill] sm:$0xff] %v18536_v33  ;;  %v2699_v45 = vrot.slane %v2698_v12, 4  ;;  %v5940_v4 = vshll.u32 %v13513_v54, 16  ;;  %v18610_v36 = vrot.slane %v5954_v25, 5  ;;  %v5969_v26 = vshrl.u32 %v13517_v30, 16 }
 0x142   : > { %21360 = vst [vmem:[#allocation10_spill] sm:$0xff] %v18585_v42  ;;  %21362 = vst [vmem:[#allocation16_spill] sm:$0xff] %v18589_v1  ;;  %v5927_v2 = vor.u32 %v5926_v28, %v5923_v63  ;;  %v5972_v34 = vshll.u32 %v13517_v30, 16  ;;  %v5993_v40 = vshrl.u32 %v13520_v53, 16  ;;  %v5996_v48 = vshll.u32 %v13520_v53, 16 }
 0x143   : > { %v6006_v19 = vshrl.u32 %v13521_v60, 16  ;;  %v5942_v15 = vrot.slane %v5940_v4, 5  ;;  %v5971_v22 = vrot.slane %v5969_v26, 4  ;;  %v18632_v63 = vld [vmem:[%s21223_s1 + $0x1c] sm:$0xf] }
 0x144   : > { %v5974_v12 = vrot.slane %v5972_v34, 5  ;;  %v13519_v28 = vld [vmem:[%s17446_s21 + $0x284] sm:$0x1]  ;;  %v5995_v24 = vrot.slane %v5993_v40, 4  ;;  %v13522_v30 = vld [vmem:[%s17446_s21 + $0x290] sm:$0x1] }
 0x145   : > { %15058 = vmatmul.mubr.msk.bf16.gmra.mrb[24].mxu0 %vm320_vm1, %v18270_v31  ;;  %v2622_v31 = vsel %vm17492_vm4, %v18429_v14, %v18393_v59  ;;  %v2688_v59 = vor.u32 %v2687_v39, %v18482_v56  ;;  %v2670_v14 = vsel %vm17492_vm4, %v2665_v50, %v18454_v61  ;;  %v5936_v61 = vrot.slane %v5934_v44, 4  ;;  %v13518_v56 = vld [vmem:[%s17446_s21 + $0x280] sm:$0xf] }
 0x146   : > { %15061 = vmatprep.mubr.msk.bf16.mxu0 %vm320_vm1, %v21359_v38  ;;  %v18587_v7 = vcombine.low %v2622_v31, %v2632_v58  ;;  %v18595_v57 = vcombine.low %v2670_v14, %v2680_v13  ;;  %v18599_v39 = vrot.slane %v2701_v47, 5  ;;  %v5950_v50 = vrot.slane %v5948_v52, 5  ;;  %v13523_v58 = vld [vmem:[%s17446_s21 + $0x294] sm:$0xf]  ;;  %v13524_v14 = vld [vmem:[%s17446_s21 + $0x298] sm:$0xf] }
 0x147   : > { %15356 = vmatmul.mubr.msk.bf16.gmra.mrb[16].mxu1 %vm320_vm1, %v18536_v33  ;;  %v18597_v46 = vrot.slane %v2688_v59, 4  ;;  %v5937_v29 = vor.u32 %v5936_v61, %v18583_v32  ;;  %v5978_v27 = vshll.u32 %v13518_v56, 16  ;;  %v5982_v11 = vshrl.u32 %v13518_v56, 16 }
 0x148   : > { %15359 = vmatprep.mubr.msk.bf16.mxu1 %vm320_vm1, %v18540_v10  ;;  %21361 = vst [vmem:[#allocation15_spill] sm:$0xff] %v18587_v7  ;;  %21364 = vst [vmem:[#allocation11_spill] sm:$0xff] %v18595_v57  ;;  %v6002_v38 = vshll.u32 %v13521_v60, 16  ;;  %v2704_v62 = vsel %vm17492_vm4, %v2699_v45, %v18599_v39  ;;  %v5928_v44 = vrot.slane %v5927_v2, 4  ;;  %v5951_v8 = vor.u32 %v5950_v50, %v5947_v37  ;;  %v13526_v60 = vld [vmem:[%s17446_s21 + $0x2a0] sm:$0xf] }
 0x149   : > { %v2694_v31 = vsel %vm17492_vm4, %v18597_v46, %v18514_v51  ;;  %v5938_v0 = vrot.slane %v5937_v29, 4  ;;  %v5964_v59 = vshll.u32 %v13516_v20, 16  ;;  %v5961_v13 = vor.u32 %v5960_v6, %v18610_v36  ;;  %v21401_v35 = vld [vmem:[#allocation16_spill] sm:$0xff] }
 0x14a   : > { %v18627_v47 = vrot.slane %v5978_v27, 5  ;;  %v5984_v51 = vrot.slane %v5982_v11, 4  ;;  %v5998_v52 = vrot.slane %v5996_v48, 5  ;;  %v18637_v54 = vrot.slane %v6002_v38, 5  ;;  %v13525_v27 = vld [vmem:[%s17446_s21 + $0x29c] sm:$0x1] }
 0x14b   : > { %v6008_v61 = vrot.slane %v6006_v19, 4  ;;  %v5933_v25 = vsel %vm17492_vm4, %v5928_v44, %v18583_v32  ;;  %v5952_v21 = vrot.slane %v5951_v8, 4  ;;  %v6017_v56 = vshrl.u32 %v13523_v58, 16  ;;  %v13527_v48 = vld [vmem:[%s17446_s21 + $0x2a4] sm:$0xf] }
 0x14c   : > { %v5943_v46 = vsel %vm17492_vm4, %v5938_v0, %v5942_v15  ;;  %v5966_v39 = vrot.slane %v5964_v59, 5  ;;  %v6026_v53 = vshll.u32 %v13524_v14, 16  ;;  %v6030_v45 = vshrl.u32 %v13524_v14, 16  ;;  %v13529_v44 = vld [vmem:[%s17446_s21 + $0x2ac] sm:$0xf] }
 0x14d   : > { %15062 = vmatmul.mubr.msk.bf16.gmra.mrb[28].mxu0 %vm320_vm1, %v21363_v16  ;;  %v6020_v16 = vshll.u32 %v13523_v58, 16  ;;  %v5962_v2 = vrot.slane %v5961_v13, 4  ;;  %v5975_v37 = vor.u32 %v5974_v12, %v5971_v22  ;;  %v5985_v50 = vor.u32 %v5984_v51, %v18627_v47  ;;  %v13530_v13 = vld [vmem:[%s17446_s21 + $0x2b0] sm:$0xf] }
 0x14e   : > { %15067 = vmatprep.mubr.msk.bf16.mxu0 %vm320_vm1, %v21366_v23  ;;  %v5988_v32 = vshll.u32 %v13519_v28, 16  ;;  %v18654_v29 = vcombine.low %v2694_v31, %v2704_v62  ;;  %v5999_v4 = vor.u32 %v5998_v52, %v5995_v24  ;;  %v6009_v26 = vor.u32 %v6008_v61, %v18637_v54 }
 0x14f   : > { %15360 = vmatmul.mubr.msk.bf16.gmra.mrb[20].mxu1 %vm320_vm1, %v18585_v42  ;;  %v6012_v20 = vshll.u32 %v13522_v30, 16  ;;  %v18659_v6 = vcombine.low %v5933_v25, %v5943_v46  ;;  %v5957_v34 = vsel %vm17492_vm4, %v5952_v21, %v18610_v36  ;;  %v6019_v11 = vrot.slane %v6017_v56, 4 }
 0x150   : > { %15363 = vmatprep.mubr.msk.bf16.mxu1 %vm320_vm1, %v18587_v7  ;;  %21367 = vst [vmem:[#allocation9_spill] sm:$0xff] %v18654_v29  ;;  %v6022_v40 = vrot.slane %v6020_v16, 5  ;;  %v18666_v38 = vrot.slane %v6026_v53, 5  ;;  %v6032_v19 = vrot.slane %v6030_v45, 4  ;;  %v6041_v31 = vshrl.u32 %v13526_v60, 16 }
 0x151   : > { %21368 = vst [vmem:[#allocation18_spill] sm:$0xff] %v18659_v6  ;;  %v6044_v62 = vshll.u32 %v13526_v60, 16  ;;  %v5967_v8 = vsel %vm17492_vm4, %v5962_v2, %v5966_v39  ;;  %v5976_v58 = vrot.slane %v5975_v37, 4  ;;  %v5986_v0 = vrot.slane %v5985_v50, 4  ;;  %v13528_v16 = vld [vmem:[%s17446_s21 + $0x2a8] sm:$0x1] }
 0x152   : > { %v5990_v15 = vrot.slane %v5988_v32, 5  ;;  %v6000_v36 = vrot.slane %v5999_v4, 4  ;;  %v6010_v59 = vrot.slane %v6009_v26, 4  ;;  %v6014_v22 = vrot.slane %v6012_v20, 5  ;;  %v13532_v50 = vld [vmem:[%s17446_s21 + $0x2b8] sm:$0xf] }
 0x153   : > { %v6036_v14 = vshll.u32 %v13525_v27, 16  ;;  %v6050_v12 = vshll.u32 %v13527_v48, 16  ;;  %v6054_v51 = vshrl.u32 %v13527_v48, 16  ;;  %v6065_v28 = vshrl.u32 %v13529_v44, 16  ;;  %v13533_v26 = vld [vmem:[%s17446_s21 + $0x2bc] sm:$0xf] }
 0x154   : > { %v6068_v24 = vshll.u32 %v13529_v44, 16  ;;  %v6023_v52 = vor.u32 %v6022_v40, %v6019_v11  ;;  %v6033_v61 = vor.u32 %v6032_v19, %v18666_v38  ;;  %v6043_v25 = vrot.slane %v6041_v31, 4  ;;  %v13535_v11 = vld [vmem:[%s17446_s21 + $0x2c4] sm:$0xf] }
 0x155   : > { %15068 = vmatmul.mubr.msk.bf16.vlgmr.msra.gmra.mrb[0].mxu0 %vm320_vm1, %v18280_v5  ;;  %v6046_v21 = vrot.slane %v6044_v62, 5  ;;  %v18677_v30 = vcombine.low %v5957_v34, %v5967_v8  ;;  %v5981_v56 = vsel %vm17492_vm4, %v5976_v58, %v18627_v47  ;;  %v6074_v46 = vshll.u32 %v13530_v13, 16  ;;  %v13531_v8 = vld [vmem:[%s17446_s21 + $0x2b4] sm:$0x1] }
 0x156   : > { %15071 = vmatprep.mubr.msk.bf16.mxu0 %vm320_vm1, %v18284_v49  ;;  %15100 = vmatpush3.bf16.msra.mxu0 %v18603_v9  ;;  %v6078_v39 = vshrl.u32 %v13530_v13, 16  ;;  %v5991_v53 = vsel %vm17492_vm4, %v5986_v0, %v5990_v15  ;;  %v6005_v45 = vsel %vm17492_vm4, %v6000_v36, %v18637_v54  ;;  %v6015_v2 = vsel %vm17492_vm4, %v6010_v59, %v6014_v22  ;;  %v13536_v59 = vld [vmem:[%s17446_s21 + $0x2c8] sm:$0xf] }
 0x157   : > { %17150 = vmatprep.subr.msk.bf16.mxu0 %vm369_vm0, %v18632_v63  ;;  %15364 = vmatmul.mubr.msk.bf16.gmra.mrb[24].mxu1 %vm320_vm1, %v18589_v1  ;;  %21369 = vst [vmem:[#allocation19_spill] sm:$0xff] %v18677_v30  ;;  %v6038_v37 = vrot.slane %v6036_v14, 5  ;;  %v18695_v47 = vrot.slane %v6050_v12, 5  ;;  %v6056_v32 = vrot.slane %v6054_v51, 4  ;;  %v6067_v60 = vrot.slane %v6065_v28, 4 }
 0x158   : > { %15367 = vmatprep.mubr.msk.bf16.mxu1 %vm320_vm1, %v18595_v57  ;;  %v6070_v4 = vrot.slane %v6068_v24, 5  ;;  %v6024_v20 = vrot.slane %v6023_v52, 4  ;;  %v6034_v34 = vrot.slane %v6033_v61, 4  ;;  %v6047_v27 = vor.u32 %v6046_v21, %v6043_v25  ;;  %v13538_v24 = vld [vmem:[%s17446_s21 + $0x2d0] sm:$0xf] }
 0x159   : > { %v6060_v54 = vshll.u32 %v13528_v16, 16  ;;  %v18699_v40 = vrot.slane %v6074_v46, 5  ;;  %v6080_v48 = vrot.slane %v6078_v39, 4  ;;  %v6089_v19 = vshrl.u32 %v13532_v50, 16  ;;  %v13534_v16 = vld [vmem:[%s17446_s21 + $0x2c0] sm:$0x1] }
 0x15a   : > { %v6092_v31 = vshll.u32 %v13532_v50, 16  ;;  %v18703_v62 = vcombine.low %v5981_v56, %v5991_v53  ;;  %v18705_v44 = vcombine.low %v6005_v45, %v6015_v2  ;;  %v6098_v58 = vshll.u32 %v13533_v26, 16  ;;  %v13539_v56 = vld [vmem:[%s17446_s21 + $0x2d4] sm:$0xf] }
 0x15b   : > { %v6102_v0 = vshrl.u32 %v13533_v26, 16  ;;  %v6057_v15 = vor.u32 %v6056_v32, %v18695_v47  ;;  %v6071_v36 = vor.u32 %v6070_v4, %v6067_v60  ;;  %v6113_v22 = vshrl.u32 %v13535_v11, 16 }
 0x15c   : > { %21370 = vst [vmem:[#allocation20_spill] sm:$0xff] %v18703_v62  ;;  %21371 = vst [vmem:[#allocation21_spill] sm:$0xff] %v18705_v44  ;;  %v6116_v14 = vshll.u32 %v13535_v11, 16  ;;  %v6029_v13 = vsel %vm17492_vm4, %v6024_v20, %v18666_v38  ;;  %v6039_v12 = vsel %vm17492_vm4, %v6034_v34, %v6038_v37  ;;  %v18717_v51 = vrot.slane %v6047_v27, 4 }
 0x15d   : > { %15072 = vmatmul.mubr.msk.bf16.gmra.mrb[4].mxu0 %vm320_vm1, %v18343_v17  ;;  %v18719_v28 = vrot.slane %v6060_v54, 5  ;;  %v6081_v52 = vor.u32 %v6080_v48, %v18699_v40  ;;  %v6084_v61 = vshll.u32 %v13531_v8, 16  ;;  %v6091_v25 = vrot.slane %v6089_v19, 4  ;;  %v13537_v19 = vld [vmem:[%s17446_s21 + $0x2cc] sm:$0x1] }
 0x15e   : > { %15075 = vmatprep.mubr.msk.bf16.mxu0 %vm320_vm1, %v18345_v41  ;;  %v6094_v21 = vrot.slane %v6092_v31, 5  ;;  %v18727_v46 = vrot.slane %v6098_v58, 5  ;;  %v6104_v38 = vrot.slane %v6102_v0, 4  ;;  %v6122_v39 = vshll.u32 %v13536_v59, 16 }
 0x15f   : > { %15368 = vmatmul.mubr.msk.bf16.gmra.mrb[28].mxu1 %vm320_vm1, %v18654_v29  ;;  %v6126_v53 = vshrl.u32 %v13536_v59, 16  ;;  %v6058_v45 = vrot.slane %v6057_v15, 4  ;;  %v6072_v2 = vrot.slane %v6071_v36, 4  ;;  %v6115_v37 = vrot.slane %v6113_v22, 4  ;;  %v13541_v59 = vld [vmem:[%s17446_s21 + $0x2dc] sm:$0xf] }
 0x160   : > { %15373 = vmatprep.mubr.msk.bf16.mxu1 %vm320_vm1, %v18659_v6  ;;  %v6118_v50 = vrot.slane %v6116_v14, 5  ;;  %v6137_v32 = vshrl.u32 %v13538_v24, 16  ;;  %v6140_v60 = vshll.u32 %v13538_v24, 16  ;;  %v6146_v4 = vshll.u32 %v13539_v56, 16  ;;  %v13542_v24 = vld [vmem:[%s17446_s21 + $0x2e0] sm:$0xf] }
 0x161   : > { %v6150_v26 = vshrl.u32 %v13539_v56, 16  ;;  %v6082_v20 = vrot.slane %v6081_v52, 4  ;;  %v6086_v34 = vrot.slane %v6084_v61, 5  ;;  %v6095_v27 = vor.u32 %v6094_v21, %v6091_v25  ;;  %v13540_v61 = vld [vmem:[%s17446_s21 + $0x2d8] sm:$0x1] }
 0x162   : > { %v6108_v54 = vshll.u32 %v13534_v16, 16  ;;  %v18736_v11 = vcombine.low %v6029_v13, %v6039_v12  ;;  %v6105_v48 = vor.u32 %v6104_v38, %v18727_v46  ;;  %v18740_v31 = vrot.slane %v6122_v39, 5 }
 0x163   : > { %v6128_v8 = vrot.slane %v6126_v53, 4  ;;  %v6053_v58 = vsel %vm17492_vm4, %v18717_v51, %v18695_v47  ;;  %v6063_v0 = vsel %vm17492_vm4, %v6058_v45, %v18719_v28  ;;  %v6077_v15 = vsel %vm17492_vm4, %v6072_v2, %v18699_v40 }
 0x164   : > { %21372 = vst [vmem:[#allocation22_spill] sm:$0xff] %v18736_v11  ;;  %v6119_v36 = vor.u32 %v6118_v50, %v6115_v37  ;;  %v6139_v22 = vrot.slane %v6137_v32, 4  ;;  %v6142_v14 = vrot.slane %v6140_v60, 5  ;;  %v18755_v13 = vrot.slane %v6146_v4, 5  ;;  %v13544_v37 = vld [vmem:[%s17446_s21 + $0x2e8] sm:$0xf] }
 0x165   : > { %15076 = vmatmul.mubr.msk.bf16.gmra.mrb[8].mxu0 %vm320_vm1, %v18467_v43  ;;  %v6152_v12 = vrot.slane %v6150_v26, 4  ;;  %v6087_v47 = vsel %vm17492_vm4, %v6082_v20, %v6086_v34  ;;  %v6096_v51 = vrot.slane %v6095_v27, 4  ;;  %v6110_v28 = vrot.slane %v6108_v54, 5  ;;  %v13545_v26 = vld [vmem:[%s17446_s21 + $0x2ec] sm:$0xf] }
 0x166   : > { %15079 = vmatprep.mubr.msk.bf16.mxu0 %vm320_vm1, %v18472_v3  ;;  %v6132_v52 = vshll.u32 %v13537_v19, 16  ;;  %v6106_v40 = vrot.slane %v6105_v48, 4  ;;  %v6129_v25 = vor.u32 %v6128_v8, %v18740_v31  ;;  %v6161_v21 = vshrl.u32 %v13541_v59, 16  ;;  %v13547_v48 = vld [vmem:[%s17446_s21 + $0x2f4] sm:$0xf] }
 0x167   : > { %15374 = vmatmul.mubr.msk.bf16.vlgmr.msra.gmra.mrb[0].mxu1 %vm320_vm1, %v18677_v30  ;;  %v6164_v56 = vshll.u32 %v13541_v59, 16  ;;  %v6170_v16 = vshll.u32 %v13542_v24, 16  ;;  %v6174_v38 = vshrl.u32 %v13542_v24, 16  ;;  %v6120_v39 = vrot.slane %v6119_v36, 4 }
 0x168   : > { %15406 = vmatpush3.bf16.msra.mxu1 %v18603_v9  ;;  %15377 = vmatprep.mubr.msk.bf16.mxu1 %vm320_vm1, %v18703_v62  ;;  %v6143_v53 = vor.u32 %v6142_v14, %v6139_v22  ;;  %v6153_v45 = vor.u32 %v6152_v12, %v18755_v13  ;;  %v6156_v2 = vshll.u32 %v13540_v61, 16  ;;  %v18768_v50 = vcombine.low %v6053_v58, %v6063_v0  ;;  %v13548_v0 = vld [vmem:[%s17446_s21 + $0x2f8] sm:$0xf]  ;;  %v13543_v14 = vld [vmem:[%s17446_s21 + $0x2e4] sm:$0x1] }
 0x169   : > { %17159 = vmatprep.subr.msk.bf16.mxu1 %vm369_vm0, %v18632_v63  ;;  %v18770_v32 = vcombine.low %v6077_v15, %v6087_v47  ;;  %v6101_v60 = vsel %vm17492_vm4, %v6096_v51, %v18727_v46  ;;  %v6134_v4 = vrot.slane %v6132_v52, 5  ;;  %v6111_v20 = vsel %vm17492_vm4, %v6106_v40, %v6110_v28  ;;  %v19047_v62 = vld [vmem:[%s17446_s21 + $0x174] sm:$0xff]  }
 0x16a   : > { %21373 = vst [vmem:[#allocation23_spill] sm:$0xff] %v18768_v50  ;;  %v6130_v34 = vrot.slane %v6129_v25, 4  ;;  %v6163_v27 = vrot.slane %v6161_v21, 4  ;;  %v6166_v54 = vrot.slane %v6164_v56, 5  ;;  %v18783_v19 = vrot.slane %v6170_v16, 5 }
 0x16b   : > { %21374 = vst [vmem:[#allocation24_spill] sm:$0xff] %v18770_v32  ;;  %v6176_v8 = vrot.slane %v6174_v38, 4  ;;  %v6185_v46 = vshrl.u32 %v13544_v37, 16  ;;  %v6188_v58 = vshll.u32 %v13544_v37, 16  ;;  %v6125_v15 = vsel %vm17492_vm4, %v6120_v39, %v18740_v31 }
 0x16c   : > { %v6144_v36 = vrot.slane %v6143_v53, 4  ;;  %v6154_v59 = vrot.slane %v6153_v45, 4  ;;  %v6158_v22 = vrot.slane %v6156_v2, 5  ;;  %v6194_v12 = vshll.u32 %v13545_v26, 16  ;;  %v13546_v53 = vld [vmem:[%s17446_s21 + $0x2f0] sm:$0x1] }
 0x16d   : > { %15080 = vmatmul.mubr.msk.bf16.gmra.mrb[12].mxu0 %vm320_vm1, %v18502_v55  ;;  %v6198_v24 = vshrl.u32 %v13545_v26, 16  ;;  %v6209_v47 = vshrl.u32 %v13547_v48, 16  ;;  %v6212_v51 = vshll.u32 %v13547_v48, 16  ;;  %v6135_v28 = vsel %vm17492_vm4, %v6130_v34, %v6134_v4  ;;  %v13550_v26 = vld [vmem:[%s17446_s21 + $0x300] sm:$0xf] }
 0x16e   : > { %15083 = vmatprep.mubr.msk.bf16.mxu0 %vm320_vm1, %v18508_v18  ;;  %v6167_v52 = vor.u32 %v6166_v54, %v6163_v27  ;;  %v6218_v61 = vshll.u32 %v13548_v0, 16  ;;  %v6222_v40 = vshrl.u32 %v13548_v0, 16  ;;  %v6177_v31 = vor.u32 %v6176_v8, %v18783_v19 }
 0x16f   : > { %15378 = vmatmul.mubr.msk.bf16.gmra.mrb[4].mxu1 %vm320_vm1, %v18705_v44  ;;  %v6180_v25 = vshll.u32 %v13543_v14, 16  ;;  %v6187_v21 = vrot.slane %v6185_v46, 4  ;;  %v6190_v56 = vrot.slane %v6188_v58, 5  ;;  %v18797_v16 = vcombine.low %v6101_v60, %v6111_v20  ;;  %v13551_v58 = vld [vmem:[%s17446_s21 + $0x304] sm:$0xf] }
 0x170   : > { %15381 = vmatprep.mubr.msk.bf16.mxu1 %vm320_vm1, %v18736_v11  ;;  %v6149_v38 = vsel %vm17492_vm4, %v6144_v36, %v18755_v13  ;;  %v6159_v39 = vsel %vm17492_vm4, %v6154_v59, %v6158_v22  ;;  %v18805_v45 = vrot.slane %v6194_v12, 5  ;;  %v6200_v2 = vrot.slane %v6198_v24, 4  ;;  %v13549_v13 = vld [vmem:[%s17446_s21 + $0x2fc] sm:$0x1]  ;;  %v13553_v14 = vld [vmem:[%s17446_s21 + $0x30c] sm:$0xf] }
 0x171   : > { %21375 = vst [vmem:[#allocation25_spill] sm:$0xff] %v18797_v16  ;;  %v6211_v37 = vrot.slane %v6209_v47, 4  ;;  %v6214_v4 = vrot.slane %v6212_v51, 5  ;;  %v18810_v60 = vcombine.low %v6125_v15, %v6135_v28  ;;  %v6168_v20 = vrot.slane %v6167_v52, 4  ;;  %v13554_v12 = vld [vmem:[%s17446_s21 + $0x310] sm:$0xf] }
 0x172   : > { %v18813_v34 = vrot.slane %v6218_v61, 5  ;;  %v6224_v27 = vrot.slane %v6222_v40, 4  ;;  %v6178_v54 = vrot.slane %v6177_v31, 4  ;;  %v6182_v48 = vrot.slane %v6180_v25, 5 }
 0x173   : > { %21376 = vst [vmem:[#allocation26_spill] sm:$0xff] %v18810_v60  ;;  %v6191_v8 = vor.u32 %v6190_v56, %v6187_v21  ;;  %v6204_v46 = vshll.u32 %v13546_v53, 16  ;;  %v18818_v0 = vcombine.low %v6149_v38, %v6159_v39  ;;  %v6201_v15 = vor.u32 %v6200_v2, %v18805_v45 }
 0x174   : > { %v6215_v36 = vor.u32 %v6214_v4, %v6211_v37  ;;  %v6228_v59 = vshll.u32 %v13549_v13, 16  ;;  %v6233_v22 = vshrl.u32 %v13550_v26, 16  ;;  %v6225_v24 = vor.u32 %v6224_v27, %v18813_v34 }
 0x175   : > { %15084 = vmatmul.mubr.msk.bf16.gmra.mrb[16].mxu0 %vm320_vm1, %v18536_v33  ;;  %21377 = vst [vmem:[#allocation27_spill] sm:$0xff] %v18818_v0  ;;  %v6236_v47 = vshll.u32 %v13550_v26, 16  ;;  %v6242_v51 = vshll.u32 %v13551_v58, 16  ;;  %v6246_v28 = vshrl.u32 %v13551_v58, 16  ;;  %v6173_v52 = vsel %vm17492_vm4, %v6168_v20, %v18783_v19  ;;  %v13552_v19 = vld [vmem:[%s17446_s21 + $0x308] sm:$0x1] }
 0x176   : > { %15087 = vmatprep.mubr.msk.bf16.mxu0 %vm320_vm1, %v18540_v10  ;;  %v6183_v61 = vsel %vm17492_vm4, %v6178_v54, %v6182_v48  ;;  %v6192_v40 = vrot.slane %v6191_v8, 4  ;;  %v6206_v31 = vrot.slane %v6204_v46, 5  ;;  %v6257_v25 = vshrl.u32 %v13553_v14, 16  ;;  %v13556_v54 = vld [vmem:[%s17446_s21 + $0x318] sm:$0xf] }
 0x177   : > { %15382 = vmatmul.mubr.msk.bf16.gmra.mrb[8].mxu1 %vm320_vm1, %v18768_v50  ;;  %v6260_v21 = vshll.u32 %v13553_v14, 16  ;;  %v6266_v56 = vshll.u32 %v13554_v12, 16  ;;  %v6270_v38 = vshrl.u32 %v13554_v12, 16  ;;  %v6202_v39 = vrot.slane %v6201_v15, 4  ;;  %v13557_v15 = vld [vmem:[%s17446_s21 + $0x31c] sm:$0xf] }
 0x178   : > { %15385 = vmatprep.mubr.msk.bf16.mxu1 %vm320_vm1, %v18770_v32  ;;  %v6216_v53 = vrot.slane %v6215_v36, 4  ;;  %v6230_v2 = vrot.slane %v6228_v59, 5  ;;  %v6235_v37 = vrot.slane %v6233_v22, 4  ;;  %v6226_v4 = vrot.slane %v6225_v24, 4  ;;  %v13555_v14 = vld [vmem:[%s17446_s21 + $0x314] sm:$0x1] }
 0x179   : > { %v6238_v26 = vrot.slane %v6236_v47, 5  ;;  %v6244_v20 = vrot.slane %v6242_v51, 5  ;;  %v6248_v13 = vrot.slane %v6246_v28, 4  ;;  %v18836_v27 = vcombine.low %v6173_v52, %v6183_v61  ;;  %v13308_v10 = vld [vmem:[%s17446_s21 + $0x64] sm:$0xf] }
 0x17a   : > { %v6259_v48 = vrot.slane %v6257_v25, 4  ;;  %v6262_v8 = vrot.slane %v6260_v21, 5  ;;  %v6268_v46 = vrot.slane %v6266_v56, 5  ;;  %v6272_v58 = vrot.slane %v6270_v38, 4 }
 0x17b   : > { %21378 = vst [vmem:[#allocation28_spill] sm:$0xff] %v18836_v27  ;;  %v6197_v36 = vsel %vm17492_vm4, %v6192_v40, %v18805_v45  ;;  %v6207_v59 = vsel %vm17492_vm4, %v6202_v39, %v6206_v31  ;;  %v6252_v22 = vshll.u32 %v13552_v19, 16  ;;  %v6221_v12 = vsel %vm17492_vm4, %v6216_v53, %v18813_v34  ;;  %v17252_v45 = vld [vmem:[%s17446_s21 + $0xc] sm:$0xff]  }
 0x17c   : > { %v6231_v24 = vsel %vm17492_vm4, %v6226_v4, %v6230_v2  ;;  %v6239_v47 = vor.u32 %v6238_v26, %v6235_v37  ;;  %v6249_v51 = vor.u32 %v6248_v13, %v6244_v20  ;;  %v6281_v28 = vshrl.u32 %v13556_v54, 16 }
 0x17d   : > { %15088 = vmatmul.mubr.msk.bf16.gmra.mrb[20].mxu0 %vm320_vm1, %v18585_v42  ;;  %v6284_v52 = vshll.u32 %v13556_v54, 16  ;;  %v6290_v61 = vshll.u32 %v13557_v15, 16  ;;  %v6294_v40 = vshrl.u32 %v13557_v15, 16  ;;  %v6263_v31 = vor.u32 %v6262_v8, %v6259_v48  ;;  %v13558_v48 = vld [vmem:[%s17446_s21 + $0x320] sm:$0x1] }
 0x17e   : > { %15091 = vmatprep.mubr.msk.bf16.mxu0 %vm320_vm1, %v18587_v7  ;;  %v6273_v25 = vor.u32 %v6272_v58, %v6268_v46  ;;  %v6276_v21 = vshll.u32 %v13555_v14, 16  ;;  %v18858_v56 = vcombine.low %v6197_v36, %v6207_v59  ;;  %v18862_v34 = vcombine.low %v6221_v12, %v6231_v24  ;;  %v17253_v58 = vld [vmem:[%s17446_s21 + $0x18] sm:$0xff]   ;;  %v17254_v14 = vld [vmem:[%s17446_s21 + $0x24] sm:$0xff]  }
 0x17f   : > { %15386 = vmatmul.mubr.msk.bf16.gmra.mrb[12].mxu1 %vm320_vm1, %v18797_v16  ;;  %v6240_v38 = vrot.slane %v6239_v47, 4  ;;  %v6250_v39 = vrot.slane %v6249_v51, 4  ;;  %v6254_v53 = vrot.slane %v6252_v22, 5  ;;  %v6283_v2 = vrot.slane %v6281_v28, 4  ;;  %v18887_v47 = vld [vmem:[%s21223_s1 + $0x20] sm:$0xf] }
 0x180   : > { %15389 = vmatprep.mubr.msk.bf16.mxu1 %vm320_vm1, %v18810_v60  ;;  %21379 = vst [vmem:[#allocation29_spill] sm:$0xff] %v18858_v56  ;;  %21380 = vst [vmem:[#allocation30_spill] sm:$0xff] %v18862_v34  ;;  %v6286_v37 = vrot.slane %v6284_v52, 5  ;;  %v6292_v4 = vrot.slane %v6290_v61, 5  ;;  %v6296_v19 = vrot.slane %v6294_v40, 4  ;;  %v6264_v26 = vrot.slane %v6263_v31, 4 }
 0x181   : > { %v6274_v13 = vrot.slane %v6273_v25, 4  ;;  %v6278_v54 = vrot.slane %v6276_v21, 5  ;;  %v6245_v8 = vsel %vm17492_vm4, %v6240_v38, %v6244_v20  ;;  %v6255_v15 = vsel %vm17492_vm4, %v6250_v39, %v6254_v53  ;;  %v17258_v31 = vld [vmem:[%s17446_s21 + $0x3c] sm:$0xff]   ;;  %v17259_v38 = vld [vmem:[%s17446_s21 + $0x48] sm:$0xff]   ;;  %v17262_v39 = vld [vmem:[%s17446_s21 + $0x54] sm:$0xff]  }
 0x182   : > { %v6287_v36 = vor.u32 %v6286_v37, %v6283_v2  ;;  %v6297_v59 = vor.u32 %v6296_v19, %v6292_v4  ;;  %v6300_v22 = vshll.u32 %v13558_v48, 16  ;;  %v6269_v12 = vsel %vm17492_vm4, %v6264_v26, %v6268_v46  ;;  %v18912_v21 = vld [vmem:[%s17446_s21 + $0xd8] sm:$0xff]   ;;  %v18922_v53 = vld [vmem:[%s17446_s21 + $0xe4] sm:$0xff]   ;;  %v18926_v2 = vld [vmem:[%s17446_s21 + $0xf0] sm:$0xff]  }
 0x183   : > { %v6279_v24 = vsel %vm17492_vm4, %v6274_v13, %v6278_v54  ;;  %v18882_v20 = vsel %vm369_vm0, %v18632_v63, 0  ;;  %v18889_v51 = vcombine.low %v6245_v8, %v6255_v15  ;;  %v17255_v63 = vld [vmem:[%s17446_s21 + $0x30] sm:$0xff]   ;;  %v17263_v37 = vld [vmem:[%s17446_s21 + $0x60] sm:$0xff]   ;;  %v18943_v26 = vld [vmem:[%s17446_s21 + $0x108] sm:$0xff]  }
 0x184   : > { %21381 = vst [vmem:[#allocation31_spill] sm:$0xff] %v18882_v20  ;;  %v6288_v46 = vrot.slane %v6287_v36, 4  ;;  %v6298_v28 = vrot.slane %v6297_v59, 4  ;;  %v6302_v52 = vrot.slane %v6300_v22, 5  ;;  %v18939_v19 = vld [vmem:[%s17446_s21 + $0xfc] sm:$0xff]   ;;  %v17270_v54 = vld [vmem:[%s17446_s21 + $0x84] sm:$0xff]  }
 0x185   : > { %15092 = vmatmul.mubr.msk.bf16.gmra.mrb[24].mxu0 %vm320_vm1, %v18589_v1  ;;  %21382 = vst [vmem:[#allocation32_spill] sm:$0xff] %v18889_v51  ;;  %v17267_v13 = vld [vmem:[%s17446_s21 + $0x78] sm:$0xff]   ;;  %v18957_v8 = vld [vmem:[%s17446_s21 + $0x120] sm:$0xff]   ;;  %v13287_v15 = vld [vmem:[%s17446_s21 + $0x10] sm:$0xf] }
 0x186   : > { %15095 = vmatprep.mubr.msk.bf16.mxu0 %vm320_vm1, %v18595_v57  ;;  %v6293_v61 = vsel %vm17492_vm4, %v6288_v46, %v6292_v4  ;;  %v6303_v40 = vsel %vm17492_vm4, %v6298_v28, %v6302_v52  ;;  %v17266_v4 = vld [vmem:[%s17446_s21 + $0x6c] sm:$0xff]   ;;  %v18953_v48 = vld [vmem:[%s17446_s21 + $0x114] sm:$0xff]   ;;  %v17274_v59 = vld [vmem:[%s17446_s21 + $0x9c] sm:$0xff]  }
 0x187   : > { %15390 = vmatmul.mubr.msk.bf16.gmra.mrb[16].mxu1 %vm320_vm1, %v18818_v0  ;;  %v18908_v25 = vcombine.low %v6293_v61, %v6303_v40  ;;  %v17271_v36 = vld [vmem:[%s17446_s21 + $0x90] sm:$0xff]   ;;  %v13289_v28 = vld [vmem:[%s17446_s21 + $0x18] sm:$0xf]  ;;  %v13302_v0 = vld [vmem:[%s17446_s21 + $0x4c] sm:$0xf] }
 0x188   : > { %15393 = vmatprep.mubr.msk.bf16.mxu1 %vm320_vm1, %v18836_v27  ;;  %v18969_v46 = vld [vmem:[%s17446_s21 + $0x12c] sm:$0xff]   ;;  %v18974_v52 = vld [vmem:[%s17446_s21 + $0x138] sm:$0xff]   ;;  %v19061_v42 = vld [vmem:[%s17446_s21 + $0x180] sm:$0xff]  }
 0x189   : > { %21384 = vst [vmem:[#allocation34_spill] sm:$0xff] %v18908_v25  ;;  %v13294_v60 = vld [vmem:[%s17446_s21 + $0x2c] sm:$0x1] }
 0x18d   : > { %15096 = vmatmul.mubr.msk.bf16.gmra.mrb[28].mxu0 %vm320_vm1, %v18654_v29  ;;  %v13300_v29 = vld [vmem:[%s17446_s21 + $0x44] sm:$0x1] }
 0x18e   : > { %15101 = vmatprep.mubr.msk.bf16.mxu0 %vm320_vm1, %v17252_v45  ;;  %v18892_v45 = vcombine.low %v6269_v12, %v6279_v24  ;;  %v3775_v12 = vshll.u32 %v13287_v15, 16  ;;  %v3779_v24 = vshrl.u32 %v13287_v15, 16 }
 0x18f   : > { %15394 = vmatmul.mubr.msk.bf16.gmra.mrb[20].mxu1 %vm320_vm1, %v18858_v56 }
 0x190   : > { %15397 = vmatprep.mubr.msk.bf16.mxu1 %vm320_vm1, %v18862_v34  ;;  %21383 = vst [vmem:[#allocation33_spill] sm:$0xff] %v18892_v45  ;;  %v3777_v40 = vrot.slane %v3775_v12, 5  ;;  %v13291_v12 = vld [vmem:[%s17446_s21 + $0x20] sm:$0x1]  ;;  %v13301_v34 = vld [vmem:[%s17446_s21 + $0x48] sm:$0xf] }
 0x191   : > { %v3886_v32 = vshrl.u32 %v13301_v34, 16  ;;  %v3889_v50 = vshll.u32 %v13301_v34, 16  ;;  %v13297_v34 = vld [vmem:[%s17446_s21 + $0x38] sm:$0x1] }
 0x193   : > { %v3888_v1 = vrot.slane %v3886_v32, 4 }
 0x195   : > { %15102 = vmatmul.mubr.msk.bf16.vlgmr.msra.gmra.mrb[0].mxu0 %vm320_vm1, %v17253_v58  ;;  %v13286_v58 = vld [vmem:[%s17446_s21 + $0xc] sm:$0xf] }
 0x196   : > { %15105 = vmatprep.mubr.msk.bf16.mxu0 %vm320_vm1, %v17254_v14  ;;  %15134 = vmatpush3.bf16.msra.mxu0 %v18882_v20  ;;  %v3766_v22 = vshrl.u32 %v13286_v58, 16  ;;  %v3769_v14 = vshll.u32 %v13286_v58, 16 }
 0x197   : > { %17151 = vmatprep.subr.msk.bf16.mxu0 %vm369_vm0, %v18887_v47  ;;  %15398 = vmatmul.mubr.msk.bf16.gmra.mrb[24].mxu1 %vm320_vm1, %v18889_v51  ;;  %v13299_v51 = vld [vmem:[%s17446_s21 + $0x40] sm:$0xf] }
 0x198   : > { %15401 = vmatprep.mubr.msk.bf16.mxu1 %vm320_vm1, %v18892_v45  ;;  %v3771_v61 = vrot.slane %v3769_v14, 5  ;;  %v18986_v14 = vld [vmem:[%s17446_s21 + $0x144] sm:$0xff]  }
 0x19d   : > { %15106 = vmatmul.mubr.msk.bf16.gmra.mrb[4].mxu0 %vm320_vm1, %v17255_v63  ;;  %v3768_v63 = vrot.slane %v3766_v22, 4 }
 0x19e   : > { %15109 = vmatprep.mubr.msk.bf16.mxu0 %vm320_vm1, %v17258_v31  ;;  %v3781_v31 = vrot.slane %v3779_v24, 4 }
 0x19f   : > { %15402 = vmatmul.mubr.msk.bf16.gmra.mrb[28].mxu1 %vm320_vm1, %v18908_v25 }
 0x1a0   : > { %15407 = vmatprep.mubr.msk.bf16.mxu1 %vm320_vm1, %v18912_v21  ;;  %v3782_v58 = vor.u32 %v3781_v31, %v3777_v40 }
 0x1a5   : > { %15110 = vmatmul.mubr.msk.bf16.gmra.mrb[8].mxu0 %vm320_vm1, %v17259_v38  ;;  %v13288_v38 = vld [vmem:[%s17446_s21 + $0x14] sm:$0x1] }
 0x1a6   : > { %15113 = vmatprep.mubr.msk.bf16.mxu0 %vm320_vm1, %v17262_v39  ;;  %v3790_v39 = vshrl.u32 %v13289_v28, 16  ;;  %v3785_v15 = vshll.u32 %v13288_v38, 16  ;;  %v13292_v38 = vld [vmem:[%s17446_s21 + $0x24] sm:$0xf] }
 0x1a7   : > { %15408 = vmatmul.mubr.msk.bf16.vlgmr.msra.gmra.mrb[0].mxu1 %vm320_vm1, %v18922_v53 }
 0x1a8   : > { %15440 = vmatpush3.bf16.msra.mxu1 %v18882_v20  ;;  %15411 = vmatprep.mubr.msk.bf16.mxu1 %vm320_vm1, %v18926_v2  ;;  %v18991_v20 = vld [vmem:[%s17446_s21 + $0x150] sm:$0xff]   ;;  %v3787_v31 = vrot.slane %v3785_v15, 5  ;;  %v3814_v15 = vshrl.u32 %v13292_v38, 16 }
 0x1a9   : > { %17160 = vmatprep.subr.msk.bf16.mxu1 %vm369_vm0, %v18887_v47 }
 0x1ad   : > { %15114 = vmatmul.mubr.msk.bf16.gmra.mrb[12].mxu0 %vm320_vm1, %v17263_v37  ;;  %v3793_v37 = vshll.u32 %v13289_v28, 16 }
 0x1ae   : > { %15117 = vmatprep.mubr.msk.bf16.mxu0 %vm320_vm1, %v17266_v4  ;;  %v17275_v4 = vld [vmem:[%s17446_s21 + $0xa8] sm:$0xff]  }
 0x1af   : > { %15412 = vmatmul.mubr.msk.bf16.gmra.mrb[4].mxu1 %vm320_vm1, %v18939_v19  ;;  %v3795_v22 = vrot.slane %v3793_v37, 5  ;;  %v3809_v37 = vshll.u32 %v13291_v12, 16  ;;  %v13295_v12 = vld [vmem:[%s17446_s21 + $0x30] sm:$0xf] }
 0x1b0   : > { %15415 = vmatprep.mubr.msk.bf16.mxu1 %vm320_vm1, %v18943_v26  ;;  %v3838_v56 = vshrl.u32 %v13295_v12, 16  ;;  %v3841_v27 = vshll.u32 %v13295_v12, 16  ;;  %v3899_v12 = vshrl.u32 %v13302_v0, 16 }
 0x1b2   : > { %v3840_v11 = vrot.slane %v3838_v56, 4  ;;  %v3843_v44 = vrot.slane %v3841_v27, 5  ;;  %v3901_v56 = vrot.slane %v3899_v12, 4 }
 0x1b5   : > { %15118 = vmatmul.mubr.msk.bf16.gmra.mrb[16].mxu0 %vm320_vm1, %v17267_v13  ;;  %v17278_v13 = vld [vmem:[%s17446_s21 + $0xb4] sm:$0xff]  }
 0x1b6   : > { %15121 = vmatprep.mubr.msk.bf16.mxu0 %vm320_vm1, %v17270_v54  ;;  %v3772_v54 = vor.u32 %v3771_v61, %v3768_v63  ;;  %v3783_v61 = vrot.slane %v3782_v58, 4  ;;  %v13293_v58 = vld [vmem:[%s17446_s21 + $0x28] sm:$0xf] }
 0x1b7   : > { %15416 = vmatmul.mubr.msk.bf16.gmra.mrb[8].mxu1 %vm320_vm1, %v18953_v48  ;;  %v3823_v45 = vshll.u32 %v13293_v58, 16 }
 0x1b8   : > { %15419 = vmatprep.mubr.msk.bf16.mxu1 %vm320_vm1, %v18957_v8  ;;  %v3773_v63 = vrot.slane %v3772_v54, 4  ;;  %v3788_v54 = vsel %vm17492_vm4, %v3783_v61, %v3787_v31  ;;  %v13298_v61 = vld [vmem:[%s17446_s21 + $0x3c] sm:$0xf] }
 0x1b9   : > { %v3865_v16 = vshll.u32 %v13298_v61, 16 }
 0x1bb   : > { %v3867_v6 = vrot.slane %v3865_v16, 5 }
 0x1bd   : > { %15122 = vmatmul.mubr.msk.bf16.gmra.mrb[20].mxu0 %vm320_vm1, %v17271_v36  ;;  %v13290_v36 = vld [vmem:[%s17446_s21 + $0x1c] sm:$0xf] }
 0x1be   : > { %15125 = vmatprep.mubr.msk.bf16.mxu0 %vm320_vm1, %v17274_v59  ;;  %v3792_v59 = vrot.slane %v3790_v39, 4  ;;  %v3799_v24 = vshll.u32 %v13290_v36, 16  ;;  %v3803_v28 = vshrl.u32 %v13290_v36, 16 }
 0x1bf   : > { %15420 = vmatmul.mubr.msk.bf16.gmra.mrb[12].mxu1 %vm320_vm1, %v18969_v46 }
 0x1c0   : > { %15423 = vmatprep.mubr.msk.bf16.mxu1 %vm320_vm1, %v18974_v52  ;;  %v3796_v39 = vor.u32 %v3795_v22, %v3792_v59  ;;  %v18998_v36 = vrot.slane %v3799_v24, 5  ;;  %v19000_v9 = vrot.slane %v3803_v28, 4  ;;  %v19010_v59 = vld [vmem:[%s17446_s21 + $0x15c] sm:$0xff]   ;;  %v19014_v22 = vsel %vm369_vm0, %v18887_v47, 0  ;;  %v19018_v24 = vld [vmem:[%s17446_s21 + $0x168] sm:$0xff]  }
 0x1c1   : > { %21385 = vst [vmem:[#allocation35_spill] sm:$0xff] %v19014_v22  ;;  %v3817_v47 = vshll.u32 %v13292_v38, 16  ;;  %v3875_v38 = vshrl.u32 %v13299_v51, 16 }
 0x1c2   : > { %v19020_v28 = vrot.slane %v3796_v39, 4  ;;  %v3806_v25 = vor.u32 %v19000_v9, %v18998_v36  ;;  %v19035_v39 = vrot.slane %v3814_v15, 4  ;;  %v3871_v9 = vshll.u32 %v13299_v51, 16  ;;  %v13304_v51 = vld [vmem:[%s17446_s21 + $0x54] sm:$0xf] }
 0x1c3   : > { %v3895_v15 = vshll.u32 %v13302_v0, 16  ;;  %v3877_v57 = vrot.slane %v3875_v38, 4  ;;  %v3910_v7 = vshrl.u32 %v13304_v51, 16 }
 0x1c4   : > { %v19053_v0 = vrot.slane %v3871_v9, 5  ;;  %v19070_v32 = vrot.slane %v3806_v25, 4  ;;  %v3857_v9 = vshll.u32 %v13297_v34, 16 }
 0x1c5   : > { %15126 = vmatmul.mubr.msk.bf16.gmra.mrb[24].mxu0 %vm320_vm1, %v17275_v4  ;;  %v17279_v4 = vld [vmem:[%s17446_s21 + $0xc0] sm:$0xff]   ;;  %v19058_v27 = vrot.slane %v3895_v15, 5  ;;  %v13305_v15 = vld [vmem:[%s17446_s21 + $0x58] sm:$0xf] }
 0x1c6   : > { %15129 = vmatprep.mubr.msk.bf16.mxu0 %vm320_vm1, %v17278_v13  ;;  %v3778_v13 = vsel %vm17492_vm4, %v3773_v63, %v3777_v40  ;;  %v19022_v40 = vrot.slane %v3809_v37, 5  ;;  %v13296_v63 = vld [vmem:[%s17446_s21 + $0x34] sm:$0xf]  ;;  %v3827_v37 = vshrl.u32 %v13293_v58, 16  ;;  %v19041_v58 = vrot.slane %v3823_v45, 5 }
 0x1c7   : > { %15424 = vmatmul.mubr.msk.bf16.gmra.mrb[16].mxu1 %vm320_vm1, %v18986_v14  ;;  %v19027_v31 = vcombine.low %v3778_v13, %v3788_v54  ;;  %v3851_v13 = vshrl.u32 %v13296_v63, 16  ;;  %v3862_v54 = vshrl.u32 %v13298_v61, 16  ;;  %v3833_v61 = vshll.u32 %v13294_v60, 16  ;;  %v13303_v60 = vld [vmem:[%s17446_s21 + $0x50] sm:$0x1] }
 0x1c8   : > { %15427 = vmatprep.mubr.msk.bf16.mxu1 %vm320_vm1, %v18991_v20  ;;  %v3878_v25 = vor.u32 %v3877_v57, %v19053_v0  ;;  %v3905_v12 = vshll.u32 %v13303_v60, 16  ;;  %v3919_v57 = vshll.u32 %v13305_v15, 16 }
 0x1c9   : > { %v3864_v45 = vrot.slane %v3862_v54, 4 }
 0x1cb   : > { %v3868_v38 = vor.u32 %v3867_v6, %v3864_v45  ;;  %v3902_v6 = vor.u32 %v3901_v56, %v19058_v27 }
 0x1cd   : > { %15130 = vmatmul.mubr.msk.bf16.gmra.mrb[28].mxu0 %vm320_vm1, %v17279_v4  ;;  %v3847_v4 = vshll.u32 %v13296_v63, 16  ;;  %v3829_v63 = vrot.slane %v3827_v37, 4  ;;  %v3891_v37 = vrot.slane %v3889_v50, 5  ;;  %v3869_v60 = vrot.slane %v3868_v38, 4 }
 0x1ce   : > { %15135 = vmatprep.mubr.msk.bf16.mxu0 %vm320_vm1, %v18912_v21  ;;  %v3819_v21 = vrot.slane %v3817_v47, 5  ;;  %v3853_v47 = vrot.slane %v3851_v13, 4  ;;  %v3844_v13 = vor.u32 %v3843_v44, %v3840_v11  ;;  %v3835_v44 = vrot.slane %v3833_v61, 5 }
 0x1cf   : > { %15428 = vmatmul.mubr.msk.bf16.gmra.mrb[20].mxu1 %vm320_vm1, %v19010_v59  ;;  %v19050_v30 = vrot.slane %v3847_v4, 5  ;;  %v3913_v4 = vshll.u32 %v13304_v51, 16  ;;  %v3912_v11 = vrot.slane %v3910_v7, 4  ;;  %v3879_v61 = vrot.slane %v3878_v25, 4 }
 0x1d0   : > { %15431 = vmatprep.mubr.msk.bf16.mxu1 %vm320_vm1, %v19018_v24  ;;  %v3820_v16 = vor.u32 %v3819_v21, %v19035_v39  ;;  %v3881_v39 = vshll.u32 %v13300_v29, 16  ;;  %v3892_v21 = vor.u32 %v3891_v37, %v3888_v1  ;;  %v3923_v29 = vshrl.u32 %v13305_v15, 16  ;;  %v13307_v1 = vld [vmem:[%s17446_s21 + $0x60] sm:$0xf] }
 0x1d1   : > { %v3854_v54 = vor.u32 %v3853_v47, %v19050_v30  ;;  %v3845_v47 = vrot.slane %v3844_v13, 4  ;;  %v3859_v37 = vrot.slane %v3857_v9, 5  ;;  %v3907_v7 = vrot.slane %v3905_v12, 5 }
 0x1d2   : > { %v3821_v51 = vrot.slane %v3820_v16, 4  ;;  %v3883_v50 = vrot.slane %v3881_v39, 5  ;;  %v3893_v56 = vrot.slane %v3892_v21, 4  ;;  %v3903_v16 = vrot.slane %v3902_v6, 4  ;;  %v13309_v21 = vld [vmem:[%s17446_s21 + $0x68] sm:$0x1] }
 0x1d3   : > { %v3855_v45 = vrot.slane %v3854_v54, 4  ;;  %v3934_v15 = vshrl.u32 %v13307_v1, 16  ;;  %v3937_v18 = vshll.u32 %v13307_v1, 16  ;;  %v3812_v13 = vsel %vm17492_vm4, %v19070_v32, %v19022_v40 }
 0x1d4   : > { %v3826_v54 = vsel %vm17492_vm4, %v3821_v51, %v19041_v58  ;;  %v19106_v9 = vrot.slane %v3919_v57, 5  ;;  %v3850_v25 = vsel %vm17492_vm4, %v3845_v47, %v19050_v30  ;;  %v3898_v32 = vsel %vm17492_vm4, %v3893_v56, %v19058_v27  ;;  %v13313_v47 = vld [vmem:[%s17446_s21 + $0x78] sm:$0xf] }
 0x1d5   : > { %15136 = vmatmul.mubr.msk.bf16.vlgmr.msra.gmra.mrb[0].mxu0 %vm320_vm1, %v18922_v53  ;;  %v3830_v53 = vor.u32 %v3829_v63, %v19041_v58  ;;  %v3915_v63 = vrot.slane %v3913_v4, 5  ;;  %v19092_v4 = vld [vmem:[%s17446_s21 + $0x18c] sm:$0xff]   ;;  %v3860_v40 = vsel %vm17492_vm4, %v3855_v45, %v3859_v37  ;;  %v3884_v58 = vsel %vm17492_vm4, %v3879_v61, %v3883_v50  ;;  %v13316_v61 = vld [vmem:[%s17446_s21 + $0x84] sm:$0xf] }
 0x1d6   : > { %15139 = vmatprep.mubr.msk.bf16.mxu0 %vm320_vm1, %v18926_v2  ;;  %15168 = vmatpush3.bf16.msra.mxu0 %v19014_v22  ;;  %v19079_v2 = vld [vmem:[%s21223_s1 + $0x4] sm:$0xf]  ;;  %v3943_v12 = vshll.u32 %v13308_v10, 16  ;;  %v3908_v30 = vsel %vm17492_vm4, %v3903_v16, %v3907_v7  ;;  %v3939_v6 = vrot.slane %v3937_v18, 5  ;;  %v3947_v50 = vshrl.u32 %v13308_v10, 16 }
 0x1d7   : > { %17161 = vmatprep.subr.msk.bf16.mxu0 %vm369_vm0, %v19079_v2  ;;  %15432 = vmatmul.mubr.msk.bf16.gmra.mrb[24].mxu1 %vm320_vm1, %v19047_v62  ;;  %v3831_v34 = vrot.slane %v3830_v53, 4  ;;  %v13306_v53 = vld [vmem:[%s17446_s21 + $0x5c] sm:$0x1]  ;;  %v3916_v33 = vor.u32 %v3915_v63, %v3912_v11  ;;  %v13310_v11 = vld [vmem:[%s17446_s21 + $0x6c] sm:$0xf]  ;;  %v21386_v63 = vsel %vm17492_vm4, %v19020_v28, %v18998_v36  ;;  %v19144_v57 = vcombine.low %v3850_v25, %v3860_v40 }
 0x1d8   : > { %15435 = vmatprep.mubr.msk.bf16.mxu1 %vm320_vm1, %v19061_v42  ;;  %v3929_v39 = vshll.u32 %v13306_v53, 16  ;;  %v19139_v51 = vcombine.low %v21386_v63, %v3812_v13  ;;  %v13311_v18 = vld [vmem:[%s17446_s21 + $0x70] sm:$0xf]  ;;  %v19148_v10 = vcombine.low %v3898_v32, %v3908_v30  ;;  %v19157_v45 = vrot.slane %v3943_v12, 5  ;;  %v13320_v63 = vld [vmem:[%s17446_s21 + $0x94] sm:$0xf] }
 0x1d9   : > { %v3836_v38 = vsel %vm17492_vm4, %v3831_v34, %v3835_v44  ;;  %v19128_v44 = vrot.slane %v3916_v33, 4  ;;  %v3953_v34 = vshll.u32 %v13309_v21, 16  ;;  %v3958_v37 = vshrl.u32 %v13310_v11, 16 }
 0x1da   : > { %v19141_v33 = vcombine.low %v3826_v54, %v3836_v38  ;;  %v3931_v1 = vrot.slane %v3929_v39, 5  ;;  %v3949_v7 = vrot.slane %v3947_v50, 4  ;;  %v3961_v16 = vshll.u32 %v13310_v11, 16 }
 0x1db   : > { %v3922_v36 = vsel %vm17492_vm4, %v19128_v44, %v19106_v9  ;;  %v3967_v53 = vshll.u32 %v13311_v18, 16  ;;  %v3971_v13 = vshrl.u32 %v13311_v18, 16  ;;  %v3982_v54 = vshrl.u32 %v13313_v47, 16 }
 0x1dc   : > { %v4006_v40 = vshrl.u32 %v13316_v61, 16  ;;  %v3950_v12 = vor.u32 %v3949_v7, %v19157_v45  ;;  %v3963_v30 = vrot.slane %v3961_v16, 5 }
 0x1dd   : > { %15140 = vmatmul.mubr.msk.bf16.gmra.mrb[4].mxu0 %vm320_vm1, %v18939_v19  ;;  %v3925_v19 = vrot.slane %v3923_v29, 4  ;;  %v19177_v44 = vrot.slane %v3967_v53, 5  ;;  %v3984_v50 = vrot.slane %v3982_v54, 4  ;;  %v4039_v53 = vshll.u32 %v13320_v63, 16 }
 0x1de   : > { %15143 = vmatprep.mubr.msk.bf16.mxu0 %vm320_vm1, %v18943_v26  ;;  %v3874_v26 = vsel %vm17492_vm4, %v3869_v60, %v19053_v0  ;;  %v3936_v0 = vrot.slane %v3934_v15, 4  ;;  %v13314_v60 = vld [vmem:[%s17446_s21 + $0x7c] sm:$0xf]  ;;  %v19164_v15 = vrot.slane %v3953_v34, 5  ;;  %v13315_v34 = vld [vmem:[%s17446_s21 + $0x80] sm:$0x1] }
 0x1df   : > { %15436 = vmatmul.mubr.msk.bf16.gmra.mrb[28].mxu1 %vm320_vm1, %v19092_v4  ;;  %v3926_v27 = vor.u32 %v3925_v19, %v19106_v9  ;;  %v19146_v29 = vcombine.low %v3874_v26, %v3884_v58  ;;  %v3985_v9 = vshll.u32 %v13313_v47, 16  ;;  %v13312_v19 = vld [vmem:[%s17446_s21 + $0x74] sm:$0x1]  ;;  %v3991_v38 = vshll.u32 %v13314_v60, 16 }
 0x1e0   : > { %15441 = vmatprep.mubr.msk.bf16.mxu1 %vm320_vm1, %v19027_v31  ;;  %v3940_v28 = vor.u32 %v3939_v6, %v3936_v0  ;;  %v3995_v25 = vshrl.u32 %v13314_v60, 16  ;;  %v4009_v26 = vshll.u32 %v13316_v61, 16  ;;  %v3960_v58 = vrot.slane %v3958_v37, 4  ;;  %v13319_v0 = vld [vmem:[%s17446_s21 + $0x90] sm:$0xf] }
 0x1e1   : > { %v3927_v56 = vrot.slane %v3926_v27, 4  ;;  %v3973_v6 = vrot.slane %v3971_v13, 4  ;;  %v3977_v27 = vshll.u32 %v13312_v19, 16  ;;  %v3987_v11 = vrot.slane %v3985_v9, 5  ;;  %v13318_v37 = vld [vmem:[%s17446_s21 + $0x8c] sm:$0x1] }
 0x1e2   : > { %v19184_v18 = vrot.slane %v3991_v38, 5  ;;  %v3997_v47 = vrot.slane %v3995_v25, 4  ;;  %v4033_v7 = vshll.u32 %v13319_v0, 16  ;;  %v3964_v13 = vor.u32 %v3963_v30, %v3960_v58  ;;  %v13322_v19 = vld [vmem:[%s17446_s21 + $0x9c] sm:$0xf] }
 0x1e3   : > { %v3932_v21 = vsel %vm17492_vm4, %v3927_v56, %v3931_v1  ;;  %v4008_v1 = vrot.slane %v4006_v40, 4  ;;  %v4030_v56 = vshrl.u32 %v13319_v0, 16  ;;  %v3974_v54 = vor.u32 %v3973_v6, %v19177_v44  ;;  %v13323_v40 = vld [vmem:[%s17446_s21 + $0xa0] sm:$0xf] }
 0x1e4   : > { %v19202_v9 = vrot.slane %v3977_v27, 5  ;;  %v3988_v38 = vor.u32 %v3987_v11, %v3984_v50  ;;  %v4025_v25 = vshll.u32 %v13318_v37, 16  ;;  %v4035_v58 = vrot.slane %v4033_v7, 5  ;;  %v13325_v37 = vld [vmem:[%s17446_s21 + $0xa8] sm:$0xf] }
 0x1e5   : > { %15144 = vmatmul.mubr.msk.bf16.gmra.mrb[8].mxu0 %vm320_vm1, %v18953_v48  ;;  %v13317_v48 = vld [vmem:[%s17446_s21 + $0x88] sm:$0xf]  ;;  %v4054_v0 = vshrl.u32 %v13322_v19, 16  ;;  %v4057_v6 = vshll.u32 %v13322_v19, 16  ;;  %v3965_v50 = vrot.slane %v3964_v13, 4  ;;  %v4063_v11 = vshll.u32 %v13323_v40, 16 }
 0x1e6   : > { %15147 = vmatprep.mubr.msk.bf16.mxu0 %vm320_vm1, %v18957_v8  ;;  %v19169_v8 = vrot.slane %v3940_v28, 4  ;;  %v4015_v32 = vshll.u32 %v13317_v48, 16  ;;  %v4019_v39 = vshrl.u32 %v13317_v48, 16  ;;  %v4011_v28 = vrot.slane %v4009_v26, 5  ;;  %v13324_v19 = vld [vmem:[%s17446_s21 + $0xa4] sm:$0x1] }
 0x1e7   : > { %15442 = vmatmul.mubr.msk.bf16.vlgmr.msra.gmra.mrb[0].mxu1 %vm320_vm1, %v19139_v51  ;;  %v4043_v48 = vshrl.u32 %v13320_v63, 16  ;;  %v4067_v63 = vshrl.u32 %v13323_v40, 16  ;;  %v4027_v7 = vrot.slane %v4025_v25, 5  ;;  %v4056_v13 = vrot.slane %v4054_v0, 4 }
 0x1e8   : > { %15474 = vmatpush3.bf16.msra.mxu1 %v19014_v22  ;;  %15445 = vmatprep.mubr.msk.bf16.mxu1 %vm320_vm1, %v19141_v33  ;;  %v19189_v60 = vrot.slane %v4015_v32, 5  ;;  %v4021_v61 = vrot.slane %v4019_v39, 4  ;;  %v3946_v16 = vsel %vm17492_vm4, %v19169_v8, %v19157_v45  ;;  %v4012_v26 = vor.u32 %v4011_v28, %v4008_v1 }
 0x1e9   : > { %17170 = vmatprep.subr.msk.bf16.mxu1 %vm369_vm0, %v19079_v2  ;;  %v19193_v2 = vcombine.low %v3922_v36, %v3932_v21  ;;  %v4001_v36 = vshll.u32 %v13315_v34, 16  ;;  %v4032_v39 = vrot.slane %v4030_v56, 4  ;;  %v13321_v21 = vld [vmem:[%s17446_s21 + $0x98] sm:$0x1]  ;;  %v4045_v30 = vrot.slane %v4043_v48, 4 }
 0x1ea   : > { %v4022_v32 = vor.u32 %v4021_v61, %v19189_v60  ;;  %v3975_v34 = vrot.slane %v3974_v54, 4  ;;  %v4013_v61 = vrot.slane %v4012_v26, 4  ;;  %v13326_v48 = vld [vmem:[%s17446_s21 + $0xac] sm:$0xf]  ;;  %v4059_v54 = vrot.slane %v4057_v6, 5 }
 0x1eb   : > { %v4003_v28 = vrot.slane %v4001_v36, 5  ;;  %v4078_v36 = vshrl.u32 %v13325_v37, 16  ;;  %v3970_v25 = vsel %vm17492_vm4, %v3965_v50, %v19177_v44  ;;  %v4087_v40 = vshll.u32 %v13326_v48, 16  ;;  %v13329_v6 = vld [vmem:[%s17446_s21 + $0xb8] sm:$0xf] }
 0x1ec   : > { %v4023_v56 = vrot.slane %v4022_v32, 4  ;;  %v4091_v26 = vshrl.u32 %v13326_v48, 16  ;;  %v4018_v44 = vsel %vm17492_vm4, %v4013_v61, %v19189_v60  ;;  %v4060_v0 = vor.u32 %v4059_v54, %v4056_v13  ;;  %v13327_v60 = vld [vmem:[%s17446_s21 + $0xb0] sm:$0x1]  ;;  %v13332_v54 = vld [vmem:[%s17446_s21 + $0xc4] sm:$0xf] }
 0x1ed   : > { %15148 = vmatmul.mubr.msk.bf16.gmra.mrb[12].mxu0 %vm320_vm1, %v18969_v46  ;;  %v19199_v46 = vrot.slane %v3950_v12, 4  ;;  %v19213_v12 = vrot.slane %v4039_v53, 5  ;;  %v4049_v53 = vshll.u32 %v13321_v21, 16  ;;  %v4097_v13 = vshll.u32 %v13327_v60, 16 }
 0x1ee   : > { %15151 = vmatprep.mubr.msk.bf16.mxu0 %vm320_vm1, %v18974_v52  ;;  %v3998_v52 = vor.u32 %v3997_v47, %v19184_v18  ;;  %v3989_v47 = vrot.slane %v3988_v38, 4  ;;  %v19227_v38 = vrot.slane %v4063_v11, 5  ;;  %v4028_v21 = vsel %vm17492_vm4, %v4023_v56, %v4027_v7 }
 0x1ef   : > { %15446 = vmatmul.mubr.msk.bf16.gmra.mrb[4].mxu1 %vm320_vm1, %v19144_v57  ;;  %v3956_v27 = vsel %vm17492_vm4, %v19199_v46, %v19164_v15  ;;  %v4036_v15 = vor.u32 %v4035_v58, %v4032_v39  ;;  %v4046_v46 = vor.u32 %v4045_v30, %v19213_v12  ;;  %v19245_v58 = vrot.slane %v4049_v53, 5 }
 0x1f0   : > { %15449 = vmatprep.mubr.msk.bf16.mxu1 %vm320_vm1, %v19146_v29  ;;  %v3999_v1 = vrot.slane %v3998_v52, 4  ;;  %v4069_v52 = vrot.slane %v4067_v63, 4  ;;  %v3994_v32 = vsel %vm17492_vm4, %v3989_v47, %v19184_v18  ;;  %v4073_v18 = vshll.u32 %v13324_v19, 16  ;;  %v13623_v19 = vld [vmem:[%s17446_s21 + $0xd8] sm:$0xf] }
 0x1f1   : > { %v19252_v30 = vrot.slane %v4036_v15, 4  ;;  %v4047_v50 = vrot.slane %v4046_v46, 4  ;;  %v4080_v63 = vrot.slane %v4078_v36, 4  ;;  %v19257_v47 = vrot.slane %v4087_v40, 5  ;;  %v13330_v36 = vld [vmem:[%s17446_s21 + $0xbc] sm:$0x1] }
 0x1f2   : > { %v4004_v39 = vsel %vm17492_vm4, %v3999_v1, %v4003_v28  ;;  %v4070_v11 = vor.u32 %v4069_v52, %v19227_v38  ;;  %v4093_v1 = vrot.slane %v4091_v26, 4  ;;  %v19264_v61 = vcombine.low %v3946_v16, %v3956_v27  ;;  %v13331_v16 = vld [vmem:[%s17446_s21 + $0xc0] sm:$0xf] }
 0x1f3   : > { %v4111_v7 = vshll.u32 %v13329_v6, 16  ;;  %v4115_v53 = vshrl.u32 %v13329_v6, 16  ;;  %v19270_v48 = vcombine.low %v3994_v32, %v4004_v39  ;;  %v19274_v15 = vcombine.low %v4018_v44, %v4028_v21  ;;  %v13624_v32 = vld [vmem:[%s17446_s21 + $0xdc] sm:$0xf] }
 0x1f4   : > { %v4061_v45 = vrot.slane %v4060_v0, 4  ;;  %v4075_v8 = vrot.slane %v4073_v18, 5  ;;  %v4071_v27 = vrot.slane %v4070_v11, 4  ;;  %v4094_v52 = vor.u32 %v4093_v1, %v19257_v47 }
 0x1f5   : > { %15152 = vmatmul.mubr.msk.bf16.gmra.mrb[16].mxu0 %vm320_vm1, %v18986_v14  ;;  %v4081_v14 = vshll.u32 %v13325_v37, 16  ;;  %v4126_v40 = vshrl.u32 %v13331_v16, 16  ;;  %v4129_v26 = vshll.u32 %v13331_v16, 16  ;;  %v4135_v39 = vshll.u32 %v13332_v54, 16  ;;  %v13626_v16 = vld [vmem:[%s17446_s21 + $0xe4] sm:$0xf] }
 0x1f6   : > { %15155 = vmatprep.mubr.msk.bf16.mxu0 %vm320_vm1, %v18991_v20  ;;  %v3980_v20 = vsel %vm17492_vm4, %v3975_v34, %v19202_v9  ;;  %v13328_v9 = vld [vmem:[%s17446_s21 + $0xb4] sm:$0xf]  ;;  %v4139_v44 = vshrl.u32 %v13332_v54, 16  ;;  %v4066_v21 = vsel %vm17492_vm4, %v4061_v45, %v19227_v38  ;;  %v19302_v18 = vrot.slane %v4097_v13, 5  ;;  %v13627_v54 = vld [vmem:[%s17446_s21 + $0xe8] sm:$0xf] }
 0x1f7   : > { %15450 = vmatmul.mubr.msk.bf16.gmra.mrb[8].mxu1 %vm320_vm1, %v19148_v10  ;;  %v4083_v34 = vrot.slane %v4081_v14, 5  ;;  %v4102_v28 = vshrl.u32 %v13328_v9, 16  ;;  %v4105_v37 = vshll.u32 %v13328_v9, 16  ;;  %v19268_v56 = vcombine.low %v3970_v25, %v3980_v20 }
 0x1f8   : > { %15453 = vmatprep.mubr.msk.bf16.mxu1 %vm320_vm1, %v19193_v2  ;;  %v19290_v20 = vrot.slane %v4111_v7, 5  ;;  %v7031_v9 = vshll.u32 %v13623_v19, 16  ;;  %v19304_v6 = vrot.slane %v4094_v52, 4  ;;  %v7037_v11 = vshll.u32 %v13624_v32, 16 }
 0x1f9   : > { %v4084_v46 = vor.u32 %v4083_v34, %v4080_v63  ;;  %v4104_v14 = vrot.slane %v4102_v28, 4  ;;  %v4107_v25 = vrot.slane %v4105_v37, 5  ;;  %v7041_v63 = vshrl.u32 %v13624_v32, 16  ;;  %v13333_v28 = vld [vmem:[%s17446_s21 + $0xc8] sm:$0x1] }
 0x1fa   : > { %v4128_v60 = vrot.slane %v4126_v40, 4  ;;  %v4131_v1 = vrot.slane %v4129_v26, 5  ;;  %v19312_v37 = vrot.slane %v4135_v39, 5  ;;  %v4141_v7 = vrot.slane %v4139_v44, 4  ;;  %v13630_v40 = vld [vmem:[%s17446_s21 + $0xf4] sm:$0xf] }
 0x1fb   : > { %v19300_v0 = vrot.slane %v4084_v46, 4  ;;  %v4108_v34 = vor.u32 %v4107_v25, %v4104_v14  ;;  %v7033_v45 = vrot.slane %v7031_v9, 5  ;;  %v13625_v46 = vld [vmem:[%s17446_s21 + $0xe0] sm:$0x1]  ;;  %v7043_v13 = vrot.slane %v7041_v63, 4 }
 0x1fc   : > { %v4145_v52 = vshll.u32 %v13333_v28, 16  ;;  %v4132_v14 = vor.u32 %v4131_v1, %v4128_v60  ;;  %v4142_v25 = vor.u32 %v4141_v7, %v19312_v37  ;;  %v7047_v26 = vshll.u32 %v13625_v46, 16  ;;  %v13632_v60 = vld [vmem:[%s17446_s21 + $0xfc] sm:$0xf] }
 0x1fd   : > { %15156 = vmatmul.mubr.msk.bf16.gmra.mrb[20].mxu0 %vm320_vm1, %v19010_v59  ;;  %v4042_v59 = vsel %vm17492_vm4, %v19252_v30, %v19213_v12  ;;  %v4117_v12 = vrot.slane %v4115_v53, 4  ;;  %v4076_v30 = vsel %vm17492_vm4, %v4071_v27, %v4075_v8  ;;  %v4090_v27 = vsel %vm17492_vm4, %v19300_v0, %v19257_v47 }
 0x1fe   : > { %15159 = vmatprep.mubr.msk.bf16.mxu0 %vm320_vm1, %v19018_v24  ;;  %v4052_v24 = vsel %vm17492_vm4, %v4047_v50, %v19245_v58  ;;  %v7028_v58 = vshrl.u32 %v13623_v19, 16  ;;  %v4121_v50 = vshll.u32 %v13330_v36, 16  ;;  %v4109_v19 = vrot.slane %v4108_v34, 4  ;;  %v13629_v36 = vld [vmem:[%s17446_s21 + $0xf0] sm:$0xf] }
 0x1ff   : > { %15454 = vmatmul.mubr.msk.bf16.gmra.mrb[12].mxu1 %vm320_vm1, %v19264_v61  ;;  %v4118_v38 = vor.u32 %v4117_v12, %v19290_v20  ;;  %v19314_v8 = vcombine.low %v4042_v59, %v4052_v24  ;;  %v4100_v59 = vsel %vm17492_vm4, %v19304_v6, %v19302_v18  ;;  %v7052_v32 = vshrl.u32 %v13626_v16, 16 }
 0x200   : > { %15457 = vmatprep.mubr.msk.bf16.mxu1 %vm320_vm1, %v19268_v56  ;;  %v7030_v53 = vrot.slane %v7028_v58, 4  ;;  %v4123_v24 = vrot.slane %v4121_v50, 5  ;;  %v7055_v39 = vshll.u32 %v13626_v16, 16  ;;  %v7061_v44 = vshll.u32 %v13627_v54, 16 }
 0x201   : > { %v4119_v47 = vrot.slane %v4118_v38, 4  ;;  %v7065_v9 = vshrl.u32 %v13627_v54, 16  ;;  %v4114_v0 = vsel %vm17492_vm4, %v4109_v19, %v19290_v20  ;;  %v4147_v18 = vrot.slane %v4145_v52, 5  ;;  %v13633_v20 = vld [vmem:[%s17446_s21 + $0x100] sm:$0xf] }
 0x202   : > { %v7034_v12 = vor.u32 %v7033_v45, %v7030_v53  ;;  %v7085_v6 = vshll.u32 %v13630_v40, 16  ;;  %v7089_v50 = vshrl.u32 %v13630_v40, 16  ;;  %v4133_v63 = vrot.slane %v4132_v14, 4  ;;  %v13628_v45 = vld [vmem:[%s17446_s21 + $0xec] sm:$0x1] }
 0x203   : > { %v4143_v34 = vrot.slane %v4142_v25, 4  ;;  %v7054_v1 = vrot.slane %v7052_v32, 4  ;;  %v7057_v28 = vrot.slane %v7055_v39, 5  ;;  %v19349_v7 = vrot.slane %v7061_v44, 5  ;;  %v13631_v54 = vld [vmem:[%s17446_s21 + $0xf8] sm:$0x1] }
 0x204   : > { %v7035_v38 = vrot.slane %v7034_v12, 4  ;;  %v7067_v16 = vrot.slane %v7065_v9, 4  ;;  %v19356_v19 = vrot.slane %v7085_v6, 5  ;;  %v7100_v52 = vshrl.u32 %v13632_v60, 16  ;;  %v13635_v44 = vld [vmem:[%s17446_s21 + $0x108] sm:$0xf] }
 0x205   : > { %15160 = vmatmul.mubr.msk.bf16.gmra.mrb[24].mxu0 %vm320_vm1, %v19047_v62  ;;  %v19317_v62 = vcombine.low %v4066_v21, %v4076_v30  ;;  %v7076_v21 = vshrl.u32 %v13629_v36, 16  ;;  %v7079_v30 = vshll.u32 %v13629_v36, 16  ;;  %v7103_v36 = vshll.u32 %v13632_v60, 16  ;;  %v13634_v6 = vld [vmem:[%s17446_s21 + $0x104] sm:$0x1] }
 0x206   : > { %15163 = vmatprep.mubr.msk.bf16.mxu0 %vm320_vm1, %v19061_v42  ;;  %v19324_v42 = vrot.slane %v7037_v11, 5  ;;  %v4124_v11 = vsel %vm17492_vm4, %v4119_v47, %v4123_v24  ;;  %v7091_v24 = vrot.slane %v7089_v50, 4  ;;  %v19360_v47 = vcombine.low %v4090_v27, %v4100_v59 }
 0x207   : > { %15458 = vmatmul.mubr.msk.bf16.gmra.mrb[16].mxu1 %vm320_vm1, %v19270_v48  ;;  %v7078_v46 = vrot.slane %v7076_v21, 4  ;;  %v19362_v14 = vcombine.low %v4114_v0, %v4124_v11  ;;  %v7109_v25 = vshll.u32 %v13633_v20, 16  ;;  %v7113_v12 = vshrl.u32 %v13633_v20, 16  ;;  %v13636_v21 = vld [vmem:[%s17446_s21 + $0x10c] sm:$0xf] }
 0x208   : > { %15461 = vmatprep.mubr.msk.bf16.mxu1 %vm320_vm1, %v19274_v15  ;;  %v7044_v58 = vor.u32 %v7043_v13, %v19324_v42  ;;  %v7081_v13 = vrot.slane %v7079_v30, 5  ;;  %v4138_v40 = vsel %vm17492_vm4, %v4133_v63, %v19312_v37  ;;  %v7040_v32 = vsel %vm17492_vm4, %v7035_v38, %v19324_v42  ;;  %v21387_v42 = vld [vmem:[#allocation2_spill] sm:$0xff] }
 0x209   : > { %v7071_v39 = vshll.u32 %v13628_v45, 16  ;;  %v7058_v59 = vor.u32 %v7057_v28, %v7054_v1  ;;  %v7095_v9 = vshll.u32 %v13631_v54, 16  ;;  %v7092_v30 = vor.u32 %v7091_v24, %v19356_v19  ;;  %v19391_v1 = vld [vmem:[%s21223_s1] sm:$0xf] }
 0x20a   : > { %v7045_v53 = vrot.slane %v7044_v58, 4  ;;  %v7068_v58 = vor.u32 %v7067_v16, %v19349_v7  ;;  %v7082_v37 = vor.u32 %v7081_v13, %v7078_v46  ;;  %v7102_v0 = vrot.slane %v7100_v52, 4  ;;  %v13638_v16 = vld [vmem:[%s17446_s21 + $0x114] sm:$0xf]  ;;  %v13639_v52 = vld [vmem:[%s17446_s21 + $0x118] sm:$0xf] }
 0x20b   : > { %v19384_v50 = vrot.slane %v7109_v25, 5  ;;  %v7115_v11 = vrot.slane %v7113_v12, 4  ;;  %v7124_v63 = vshrl.u32 %v13635_v44, 16  ;;  %v7133_v60 = vshll.u32 %v13636_v21, 16  ;;  %v13637_v12 = vld [vmem:[%s17446_s21 + $0x110] sm:$0x1] }
 0x20c   : > { %v7059_v20 = vrot.slane %v7058_v59, 4  ;;  %v7073_v45 = vrot.slane %v7071_v39, 5  ;;  %v7083_v46 = vrot.slane %v7082_v37, 4  ;;  %v7093_v13 = vrot.slane %v7092_v30, 4  ;;  %v13641_v59 = vld [vmem:[%s17446_s21 + $0x120] sm:$0xf] }
 0x20d   : > { %15164 = vmatmul.mubr.msk.bf16.gmra.mrb[28].mxu0 %vm320_vm1, %v19092_v4  ;;  %v7049_v4 = vrot.slane %v7047_v26, 5  ;;  %v4148_v26 = vsel %vm17492_vm4, %v4143_v34, %v4147_v18  ;;  %v7105_v18 = vrot.slane %v7103_v36, 5  ;;  %v7127_v34 = vshll.u32 %v13635_v44, 16 }
 0x20e   : > { %15169 = vmatprep.mubr.msk.bf16.mxu0 %vm320_vm1, %v19027_v31  ;;  %v19386_v38 = vcombine.low %v4138_v40, %v4148_v26  ;;  %v7097_v54 = vrot.slane %v7095_v9, 5  ;;  %v7119_v24 = vshll.u32 %v13634_v6, 16  ;;  %v7116_v25 = vor.u32 %v7115_v11, %v19384_v50 }
 0x20f   : > { %15462 = vmatmul.mubr.msk.bf16.gmra.mrb[20].mxu1 %vm320_vm1, %v19314_v8  ;;  %v7050_v27 = vsel %vm17492_vm4, %v7045_v53, %v7049_v4  ;;  %v7137_v4 = vshrl.u32 %v13636_v21, 16  ;;  %v7069_v53 = vrot.slane %v7068_v58, 4  ;;  %v7106_v36 = vor.u32 %v7105_v18, %v7102_v0 }
 0x210   : > { %15465 = vmatprep.mubr.msk.bf16.mxu1 %vm320_vm1, %v19317_v62  ;;  %v19395_v28 = vcombine.low %v7040_v32, %v7050_v27  ;;  %v7126_v40 = vrot.slane %v7124_v63, 4  ;;  %v7129_v26 = vrot.slane %v7127_v34, 5  ;;  %v19405_v32 = vrot.slane %v7133_v60, 5 }
 0x211   : > { %v7139_v39 = vrot.slane %v7137_v4, 4  ;;  %v7148_v44 = vshrl.u32 %v13638_v16, 16  ;;  %v7151_v27 = vshll.u32 %v13638_v16, 16  ;;  %v7064_v58 = vsel %vm17492_vm4, %v7059_v20, %v19349_v7  ;;  %v13642_v7 = vld [vmem:[%s17446_s21 + $0x124] sm:$0xf] }
 0x212   : > { %v7074_v9 = vsel %vm17492_vm4, %v7069_v53, %v7073_v45  ;;  %v7157_v21 = vshll.u32 %v13639_v52, 16  ;;  %v7161_v37 = vshrl.u32 %v13639_v52, 16  ;;  %v7088_v30 = vsel %vm17492_vm4, %v7083_v46, %v19356_v19  ;;  %v13640_v45 = vld [vmem:[%s17446_s21 + $0x11c] sm:$0x1] }
 0x213   : > { %v7098_v0 = vsel %vm17492_vm4, %v7093_v13, %v7097_v54  ;;  %v19420_v18 = vrot.slane %v7119_v24, 5  ;;  %v7143_v6 = vshll.u32 %v13637_v12, 16  ;;  %v19425_v11 = vrot.slane %v7106_v36, 4 }
 0x214   : > { %v19427_v63 = vrot.slane %v7116_v25, 4  ;;  %v7172_v34 = vshrl.u32 %v13641_v59, 16  ;;  %v7175_v60 = vshll.u32 %v13641_v59, 16  ;;  %v7130_v4 = vor.u32 %v7129_v26, %v7126_v40  ;;  %v13644_v26 = vld [vmem:[%s17446_s21 + $0x12c] sm:$0xf] }
 0x215   : > { %15170 = vmatmul.mubr.msk.bf16.vlgmr.msra.gmra.mrb[0].mxu0 %vm320_vm1, %v19139_v51  ;;  %v7140_v20 = vor.u32 %v7139_v39, %v19405_v32  ;;  %v7150_v19 = vrot.slane %v7148_v44, 4  ;;  %v7153_v53 = vrot.slane %v7151_v27, 5  ;;  %v19431_v16 = vrot.slane %v7157_v21, 5  ;;  %v13645_v39 = vld [vmem:[%s17446_s21 + $0x130] sm:$0xf] }
 0x216   : > { %15173 = vmatprep.mubr.msk.bf16.mxu0 %vm320_vm1, %v19141_v33  ;;  %15508 = vmatpush3.bf16.msra.mxu0 %v21387_v42  ;;  %v7163_v46 = vrot.slane %v7161_v37, 4  ;;  %v7181_v13 = vshll.u32 %v13642_v7, 16  ;;  %v7185_v54 = vshrl.u32 %v13642_v7, 16  ;;  %v19435_v24 = vcombine.low %v7064_v58, %v7074_v9  ;;  %v13643_v9 = vld [vmem:[%s17446_s21 + $0x128] sm:$0x1] }
 0x217   : > { %17162 = vmatprep.subr.msk.bf16.mxu0 %vm369_vm0, %v19391_v1  ;;  %15466 = vmatmul.mubr.msk.bf16.gmra.mrb[24].mxu1 %vm320_vm1, %v19360_v47  ;;  %v19437_v52 = vrot.slane %v7143_v6, 5  ;;  %v19441_v36 = vcombine.low %v7088_v30, %v7098_v0  ;;  %v7112_v25 = vsel %vm17492_vm4, %v19425_v11, %v19384_v50  ;;  %v7174_v12 = vrot.slane %v7172_v34, 4  ;;  %v13647_v21 = vld [vmem:[%s17446_s21 + $0x138] sm:$0xf]  ;;  %v13648_v6 = vld [vmem:[%s17446_s21 + $0x13c] sm:$0xf] }
 0x218   : > { %15469 = vmatprep.mubr.msk.bf16.mxu1 %vm320_vm1, %v19362_v14  ;;  %21388 = vst [vmem:[#allocation2_spill] sm:$0xff] %v19435_v24  ;;  %v7177_v40 = vrot.slane %v7175_v60, 5  ;;  %v7122_v44 = vsel %vm17492_vm4, %v19427_v63, %v19420_v18  ;;  %v7131_v27 = vrot.slane %v7130_v4, 4  ;;  %v7154_v59 = vor.u32 %v7153_v53, %v7150_v19 }
 0x219   : > { %21389 = vst [vmem:[#allocation36_spill] sm:$0xff] %v19441_v36  ;;  %v7167_v58 = vshll.u32 %v13640_v45, 16  ;;  %v7141_v37 = vrot.slane %v7140_v20, 4  ;;  %v7164_v30 = vor.u32 %v7163_v46, %v19431_v16  ;;  %v19456_v0 = vrot.slane %v7181_v13, 5 }
 0x21a   : > { %v7187_v50 = vrot.slane %v7185_v54, 4  ;;  %v7196_v7 = vshrl.u32 %v13644_v26, 16  ;;  %v7199_v11 = vshll.u32 %v13644_v26, 16  ;;  %v7205_v34 = vshll.u32 %v13645_v39, 16 }
 0x21b   : > { %v7209_v18 = vshrl.u32 %v13645_v39, 16  ;;  %v7178_v63 = vor.u32 %v7177_v40, %v7174_v12  ;;  %v7191_v60 = vshll.u32 %v13643_v9, 16  ;;  %v7220_v4 = vshrl.u32 %v13647_v21, 16  ;;  %v13646_v40 = vld [vmem:[%s17446_s21 + $0x134] sm:$0x1] }
 0x21c   : > { %v7223_v20 = vshll.u32 %v13647_v21, 16  ;;  %v7136_v19 = vsel %vm17492_vm4, %v7131_v27, %v19405_v32  ;;  %v19466_v53 = vrot.slane %v7154_v59, 4  ;;  %v7229_v45 = vshll.u32 %v13648_v6, 16  ;;  %v13650_v39 = vld [vmem:[%s17446_s21 + $0x144] sm:$0xf] }
 0x21d   : > { %15174 = vmatmul.mubr.msk.bf16.gmra.mrb[4].mxu0 %vm320_vm1, %v19144_v57  ;;  %v7233_v46 = vshrl.u32 %v13648_v6, 16  ;;  %v7146_v13 = vsel %vm17492_vm4, %v7141_v37, %v19437_v52  ;;  %v19471_v54 = vrot.slane %v7164_v30, 4  ;;  %v7169_v26 = vrot.slane %v7167_v58, 5  ;;  %v13651_v21 = vld [vmem:[%s17446_s21 + $0x148] sm:$0xf] }
 0x21e   : > { %15177 = vmatprep.mubr.msk.bf16.mxu0 %vm320_vm1, %v19146_v29  ;;  %v7188_v12 = vor.u32 %v7187_v50, %v19456_v0  ;;  %v7198_v9 = vrot.slane %v7196_v7, 4  ;;  %v7201_v32 = vrot.slane %v7199_v11, 5  ;;  %v19478_v27 = vrot.slane %v7205_v34, 5 }
 0x21f   : > { %15470 = vmatmul.mubr.msk.bf16.gmra.mrb[28].mxu1 %vm320_vm1, %v19386_v38  ;;  %v7211_v59 = vrot.slane %v7209_v18, 4  ;;  %v7179_v52 = vrot.slane %v7178_v63, 4  ;;  %v7193_v58 = vrot.slane %v7191_v60, 5  ;;  %v7222_v37 = vrot.slane %v7220_v4, 4  ;;  %v13649_v18 = vld [vmem:[%s17446_s21 + $0x140] sm:$0x1] }
 0x220   : > { %15475 = vmatprep.mubr.msk.bf16.mxu1 %vm320_vm1, %v19395_v28  ;;  %v7225_v30 = vrot.slane %v7223_v20, 5  ;;  %v19484_v50 = vrot.slane %v7229_v45, 5  ;;  %v7235_v6 = vrot.slane %v7233_v46, 4  ;;  %v7244_v22 = vshrl.u32 %v13650_v39, 16 }
 0x221   : > { %v7247_v7 = vshll.u32 %v13650_v39, 16  ;;  %v7189_v11 = vrot.slane %v7188_v12, 4  ;;  %v7215_v34 = vshll.u32 %v13646_v40, 16  ;;  %v19493_v63 = vcombine.low %v7136_v19, %v7146_v13  ;;  %v13653_v19 = vld [vmem:[%s17446_s21 + $0x150] sm:$0xf] }
 0x222   : > { %v7202_v60 = vor.u32 %v7201_v32, %v7198_v9  ;;  %v7212_v4 = vor.u32 %v7211_v59, %v19478_v27  ;;  %v7170_v20 = vsel %vm17492_vm4, %v19471_v54, %v7169_v26  ;;  %v7236_v45 = vor.u32 %v7235_v6, %v19484_v50  ;;  %v13654_v40 = vld [vmem:[%s17446_s21 + $0x154] sm:$0xf]  ;;  %v13652_v54 = vld [vmem:[%s17446_s21 + $0x14c] sm:$0x1]  ;;  %v13656_v6 = vld [vmem:[%s17446_s21 + $0x15c] sm:$0xf] }
 0x223   : > { %v7239_v46 = vshll.u32 %v13649_v18, 16  ;;  %v7246_v13 = vrot.slane %v7244_v22, 4  ;;  %v7249_v12 = vrot.slane %v7247_v7, 5  ;;  %v7268_v32 = vshrl.u32 %v13653_v19, 16  ;;  %v13657_v18 = vld [vmem:[%s17446_s21 + $0x160] sm:$0xf] }
 0x224   : > { %v7213_v9 = vrot.slane %v7212_v4, 4  ;;  %v7271_v59 = vshll.u32 %v13653_v19, 16  ;;  %v13655_v4 = vld [vmem:[%s17446_s21 + $0x158] sm:$0x1] }
 0x225   : > { %15178 = vmatmul.mubr.msk.bf16.gmra.mrb[8].mxu0 %vm320_vm1, %v19148_v10 }
 0x226   : > { %15181 = vmatprep.mubr.msk.bf16.mxu0 %vm320_vm1, %v19193_v2 }
 0x227   : > { %15476 = vmatmul.mubr.msk.bf16.vlgmr.msra.gmra.mrb[0].mxu1 %vm320_vm1, %v19435_v24  ;;  %v7257_v24 = vshrl.u32 %v13651_v21, 16 }
 0x228   : > { %15814 = vmatpush3.bf16.msra.mxu1 %v21387_v42  ;;  %15479 = vmatprep.mubr.msk.bf16.mxu1 %vm320_vm1, %v19441_v36  ;;  %v7253_v42 = vshll.u32 %v13651_v21, 16  ;;  %v19489_v36 = vcombine.low %v7112_v25, %v7122_v44  ;;  %v7184_v25 = vsel %vm17492_vm4, %v7179_v52, %v19456_v0  ;;  %v7226_v44 = vor.u32 %v7225_v30, %v7222_v37 }
 0x229   : > { %17171 = vmatprep.subr.msk.bf16.mxu1 %vm369_vm0, %v19391_v1  ;;  %v7160_v1 = vsel %vm17492_vm4, %v19466_v53, %v19431_v16  ;;  %v7194_v16 = vsel %vm17492_vm4, %v7189_v11, %v7193_v58  ;;  %v7217_v53 = vrot.slane %v7215_v34, 5  ;;  %v7259_v39 = vrot.slane %v7257_v24, 4 }
 0x22a   : > { %v19514_v26 = vrot.slane %v7253_v42, 5  ;;  %v7203_v0 = vrot.slane %v7202_v60, 4  ;;  %v7227_v22 = vrot.slane %v7226_v44, 4  ;;  %v7277_v21 = vshll.u32 %v13654_v40, 16 }
 0x22b   : > { %v7281_v52 = vshrl.u32 %v13654_v40, 16  ;;  %v7237_v58 = vrot.slane %v7236_v45, 4  ;;  %v7241_v37 = vrot.slane %v7239_v46, 5  ;;  %v7250_v30 = vor.u32 %v7249_v12, %v7246_v13  ;;  %v13660_v13 = vld [vmem:[%s17446_s21 + $0x16c] sm:$0xf] }
 0x22c   : > { %v7263_v24 = vshll.u32 %v13652_v54, 16  ;;  %v19521_v7 = vcombine.low %v7160_v1, %v7170_v20  ;;  %v19523_v11 = vcombine.low %v7184_v25, %v7194_v16  ;;  %v7260_v34 = vor.u32 %v7259_v39, %v19514_v26  ;;  %v13659_v20 = vld [vmem:[%s17446_s21 + $0x168] sm:$0xf] }
 0x22d   : > { %15182 = vmatmul.mubr.msk.bf16.gmra.mrb[12].mxu0 %vm320_vm1, %v19264_v61  ;;  %v7208_v42 = vsel %vm17492_vm4, %v7203_v0, %v19478_v27  ;;  %v7218_v60 = vsel %vm17492_vm4, %v7213_v9, %v7217_v53  ;;  %v7270_v44 = vrot.slane %v7268_v32, 4  ;;  %v7273_v1 = vrot.slane %v7271_v59, 5 }
 0x22e   : > { %15185 = vmatprep.mubr.msk.bf16.mxu0 %vm320_vm1, %v19268_v56  ;;  %v19538_v25 = vrot.slane %v7277_v21, 5  ;;  %v7283_v19 = vrot.slane %v7281_v52, 4  ;;  %v7292_v45 = vshrl.u32 %v13656_v6, 16  ;;  %v7295_v46 = vshll.u32 %v13656_v6, 16  ;;  %v13658_v6 = vld [vmem:[%s17446_s21 + $0x164] sm:$0x1] }
 0x22f   : > { %15480 = vmatmul.mubr.msk.bf16.gmra.mrb[4].mxu1 %vm320_vm1, %v19489_v36  ;;  %v7232_v27 = vsel %vm17492_vm4, %v7227_v22, %v19484_v50  ;;  %v7242_v12 = vsel %vm17492_vm4, %v7237_v58, %v7241_v37  ;;  %v7251_v40 = vrot.slane %v7250_v30, 4  ;;  %v7265_v16 = vrot.slane %v7263_v24, 5 }
 0x230   : > { %15483 = vmatprep.mubr.msk.bf16.mxu1 %vm320_vm1, %v19493_v63  ;;  %v7261_v53 = vrot.slane %v7260_v34, 4  ;;  %v7287_v54 = vshll.u32 %v13655_v4, 16  ;;  %v7301_v39 = vshll.u32 %v13657_v18, 16  ;;  %v7305_v0 = vshrl.u32 %v13657_v18, 16 }
 0x231   : > { %v7316_v9 = vshrl.u32 %v13659_v20, 16  ;;  %v7319_v32 = vshll.u32 %v13659_v20, 16  ;;  %v7325_v59 = vshll.u32 %v13660_v13, 16  ;;  %v7329_v21 = vshrl.u32 %v13660_v13, 16 }
 0x232   : > { %v7274_v50 = vor.u32 %v7273_v1, %v7270_v44  ;;  %v7284_v22 = vor.u32 %v7283_v19, %v19538_v25  ;;  %v7294_v52 = vrot.slane %v7292_v45, 4  ;;  %v7297_v58 = vrot.slane %v7295_v46, 5  ;;  %v13662_v1 = vld [vmem:[%s17446_s21 + $0x174] sm:$0xf] }
 0x233   : > { %v19551_v37 = vcombine.low %v7208_v42, %v7218_v60  ;;  %v19553_v30 = vcombine.low %v7232_v27, %v7242_v12  ;;  %v7256_v24 = vsel %vm17492_vm4, %v7251_v40, %v19514_v26  ;;  %v7266_v34 = vsel %vm17492_vm4, %v7261_v53, %v7265_v16  ;;  %v13661_v42 = vld [vmem:[%s17446_s21 + $0x170] sm:$0x1]  ;;  %v13663_v12 = vld [vmem:[%s17446_s21 + $0x178] sm:$0xf]  ;;  %v13665_v16 = vld [vmem:[%s17446_s21 + $0x180] sm:$0xf] }
 0x234   : > { %v7289_v18 = vrot.slane %v7287_v54, 5  ;;  %v19561_v4 = vrot.slane %v7301_v39, 5  ;;  %v7307_v44 = vrot.slane %v7305_v0, 4  ;;  %v7318_v60 = vrot.slane %v7316_v9, 4  ;;  %v13666_v9 = vld [vmem:[%s17446_s21 + $0x184] sm:$0xf] }
 0x235   : > { %15186 = vmatmul.mubr.msk.bf16.gmra.mrb[16].mxu0 %vm320_vm1, %v19270_v48  ;;  %v7321_v20 = vrot.slane %v7319_v32, 5  ;;  %v19567_v19 = vrot.slane %v7325_v59, 5  ;;  %v7331_v26 = vrot.slane %v7329_v21, 4  ;;  %v7275_v45 = vrot.slane %v7274_v50, 4 }
 0x236   : > { %15189 = vmatprep.mubr.msk.bf16.mxu0 %vm320_vm1, %v19274_v15  ;;  %v7285_v46 = vrot.slane %v7284_v22, 4  ;;  %v7298_v13 = vor.u32 %v7297_v58, %v7294_v52  ;;  %v7311_v27 = vshll.u32 %v13658_v6, 16  ;;  %v19572_v40 = vcombine.low %v7256_v24, %v7266_v34 }
 0x237   : > { %15484 = vmatmul.mubr.msk.bf16.gmra.mrb[8].mxu1 %vm320_vm1, %v19521_v7  ;;  %v7308_v53 = vor.u32 %v7307_v44, %v19561_v4  ;;  %v7335_v54 = vshll.u32 %v13661_v42, 16  ;;  %v7340_v39 = vshrl.u32 %v13662_v1, 16  ;;  %v7343_v0 = vshll.u32 %v13662_v1, 16 }
 0x238   : > { %15487 = vmatprep.mubr.msk.bf16.mxu1 %vm320_vm1, %v19523_v11  ;;  %v7322_v32 = vor.u32 %v7321_v20, %v7318_v60  ;;  %v7332_v59 = vor.u32 %v7331_v26, %v19567_v19  ;;  %v7349_v21 = vshll.u32 %v13663_v12, 16  ;;  %v7353_v50 = vshrl.u32 %v13663_v12, 16  ;;  %v13668_v12 = vld [vmem:[%s17446_s21 + $0x18c] sm:$0xf] }
 0x239   : > { %v7280_v22 = vsel %vm17492_vm4, %v7275_v45, %v19538_v25  ;;  %v7290_v52 = vsel %vm17492_vm4, %v7285_v46, %v7289_v18  ;;  %v7299_v58 = vrot.slane %v7298_v13, 4  ;;  %v7313_v24 = vrot.slane %v7311_v27, 5  ;;  %v13664_v27 = vld [vmem:[%s17446_s21 + $0x17c] sm:$0x1] }
 0x23a   : > { %v7364_v6 = vshrl.u32 %v13665_v16, 16  ;;  %v7367_v34 = vshll.u32 %v13665_v16, 16  ;;  %v7373_v44 = vshll.u32 %v13666_v9, 16  ;;  %v7377_v1 = vshrl.u32 %v13666_v9, 16 }
 0x23b   : > { %v7309_v42 = vrot.slane %v7308_v53, 4  ;;  %v7337_v60 = vrot.slane %v7335_v54, 5  ;;  %v7342_v20 = vrot.slane %v7340_v39, 4  ;;  %v7345_v26 = vrot.slane %v7343_v0, 5  ;;  %v13669_v0 = vld [vmem:[%s17446_s21 + $0x190] sm:$0xf] }
 0x23c   : > { %v7323_v25 = vrot.slane %v7322_v32, 4  ;;  %v7333_v45 = vrot.slane %v7332_v59, 4  ;;  %v7351_v18 = vrot.slane %v7349_v21, 5  ;;  %v7355_v46 = vrot.slane %v7353_v50, 4  ;;  %v13667_v21 = vld [vmem:[%s17446_s21 + $0x188] sm:$0x1] }
 0x23d   : > { %15190 = vmatmul.mubr.msk.bf16.gmra.mrb[20].mxu0 %vm320_vm1, %v19314_v8  ;;  %v19589_v13 = vcombine.low %v7280_v22, %v7290_v52  ;;  %v7366_v16 = vrot.slane %v7364_v6, 4  ;;  %v7369_v53 = vrot.slane %v7367_v34, 5  ;;  %v7375_v54 = vrot.slane %v7373_v44, 5 }
 0x23e   : > { %15193 = vmatprep.mubr.msk.bf16.mxu0 %vm320_vm1, %v19317_v62  ;;  %v7379_v39 = vrot.slane %v7377_v1, 4  ;;  %v7304_v9 = vsel %vm17492_vm4, %v7299_v58, %v19561_v4  ;;  %v7314_v32 = vsel %vm17492_vm4, %v7309_v42, %v7313_v24  ;;  %v7346_v59 = vor.u32 %v7345_v26, %v7342_v20 }
 0x23f   : > { %15488 = vmatmul.mubr.msk.bf16.gmra.mrb[12].mxu1 %vm320_vm1, %v19551_v37  ;;  %v7328_v50 = vsel %vm17492_vm4, %v7323_v25, %v19567_v19  ;;  %v7338_v22 = vsel %vm17492_vm4, %v7333_v45, %v7337_v60  ;;  %v7356_v52 = vor.u32 %v7355_v46, %v7351_v18  ;;  %v7359_v6 = vshll.u32 %v13664_v27, 16  ;;  %v19618_v45 = vld [vmem:[%s17446_s21 + $0x264] sm:$0xff]  }
 0x240   : > { %15491 = vmatprep.mubr.msk.bf16.mxu1 %vm320_vm1, %v19553_v30  ;;  %v7388_v4 = vshrl.u32 %v13668_v12, 16  ;;  %v7391_v58 = vshll.u32 %v13668_v12, 16  ;;  %v7397_v24 = vshll.u32 %v13669_v0, 16  ;;  %v7401_v34 = vshrl.u32 %v13669_v0, 16 }
 0x241   : > { %v7370_v44 = vor.u32 %v7369_v53, %v7366_v16  ;;  %v7380_v1 = vor.u32 %v7379_v39, %v7375_v54  ;;  %v7383_v42 = vshll.u32 %v13667_v21, 16  ;;  %v19611_v20 = vcombine.low %v7304_v9, %v7314_v32  ;;  %v13670_v9 = vld [vmem:[%s17446_s21 + $0x194] sm:$0x1] }
 0x242   : > { %v19615_v19 = vcombine.low %v7328_v50, %v7338_v22  ;;  %v7347_v60 = vrot.slane %v7346_v59, 4  ;;  %v7357_v26 = vrot.slane %v7356_v52, 4  ;;  %v7361_v25 = vrot.slane %v7359_v6, 5 }
 0x243   : > { %v7390_v46 = vrot.slane %v7388_v4, 4  ;;  %v7393_v27 = vrot.slane %v7391_v58, 5  ;;  %v7399_v12 = vrot.slane %v7397_v24, 5  ;;  %v7403_v16 = vrot.slane %v7401_v34, 4  ;;  %v19638_v58 = vld [vmem:[%s17446_s21 + $0x270] sm:$0xff]  }
 0x244   : > { %21390 = vst [vmem:[#allocation37_spill] sm:$0xff] %v19615_v19  ;;  %v7371_v53 = vrot.slane %v7370_v44, 4  ;;  %v7381_v39 = vrot.slane %v7380_v1, 4  ;;  %v7385_v0 = vrot.slane %v7383_v42, 5  ;;  %v7352_v32 = vsel %vm17492_vm4, %v7347_v60, %v7351_v18  ;;  %v19645_v1 = vld [vmem:[%s17446_s21 + $0x27c] sm:$0xff]  }
 0x245   : > { %15194 = vmatmul.mubr.msk.bf16.gmra.mrb[24].mxu0 %vm320_vm1, %v19360_v47  ;;  %v7362_v59 = vsel %vm17492_vm4, %v7357_v26, %v7361_v25  ;;  %v7394_v21 = vor.u32 %v7393_v27, %v7390_v46  ;;  %v7404_v50 = vor.u32 %v7403_v16, %v7399_v12  ;;  %v7407_v22 = vshll.u32 %v13670_v9, 16  ;;  %v17321_v42 = vld [vmem:[%s21223_s1 + $0x8] sm:$0xf]  ;;  %v19670_v27 = vld [vmem:[%s17446_s21 + $0x294] sm:$0xff]   ;;  %v19684_v16 = vld [vmem:[%s17446_s21 + $0x2ac] sm:$0xff]  }
 0x246   : > { %15197 = vmatprep.mubr.msk.bf16.mxu0 %vm320_vm1, %v19362_v14  ;;  %v7376_v52 = vsel %vm17492_vm4, %v7371_v53, %v7375_v54  ;;  %v7386_v6 = vsel %vm17492_vm4, %v7381_v39, %v7385_v0  ;;  %v19635_v4 = vcombine.low %v7352_v32, %v7362_v59  ;;  %v21393_v54 = vld [vmem:[#allocation3_spill] sm:$0xff]  ;;  %v19695_v53 = vld [vmem:[%s17446_s21 + $0x2b8] sm:$0xff]   ;;  %v19709_v0 = vld [vmem:[%s17446_s21 + $0x2d0] sm:$0xff]  }
 0x247   : > { %15492 = vmatmul.mubr.msk.bf16.gmra.mrb[16].mxu1 %vm320_vm1, %v19572_v40  ;;  %v19642_v18 = vcombine.low %v7376_v52, %v7386_v6  ;;  %v7395_v24 = vrot.slane %v7394_v21, 4  ;;  %v7405_v34 = vrot.slane %v7404_v50, 4  ;;  %v7409_v44 = vrot.slane %v7407_v22, 5  ;;  %v19665_v46 = vld [vmem:[%s17446_s21 + $0x288] sm:$0xff]   ;;  %v19714_v9 = vld [vmem:[%s17446_s21 + $0x2dc] sm:$0xff]   ;;  %v19728_v59 = vld [vmem:[%s17446_s21 + $0x2f4] sm:$0xff]  }
 0x248   : > { %15495 = vmatprep.mubr.msk.bf16.mxu1 %vm320_vm1, %v19589_v13  ;;  %21391 = vst [vmem:[#allocation38_spill] sm:$0xff] %v19635_v4  ;;  %v19700_v39 = vld [vmem:[%s17446_s21 + $0x2c4] sm:$0xff]   ;;  %v21395_v21 = vld [vmem:[#allocation12_spill] sm:$0xff]  ;;  %v21396_v52 = vld [vmem:[#allocation13_spill] sm:$0xff] }
 0x249   : > { %21392 = vst [vmem:[#allocation39_spill] sm:$0xff] %v19642_v18  ;;  %v7400_v60 = vsel %vm17492_vm4, %v7395_v24, %v7399_v12  ;;  %v7410_v26 = vsel %vm17492_vm4, %v7405_v34, %v7409_v44  ;;  %v19679_v12 = vld [vmem:[%s17446_s21 + $0x2a0] sm:$0xff]   ;;  %v19723_v32 = vld [vmem:[%s17446_s21 + $0x2e8] sm:$0xff]   ;;  %v19751_v24 = vld [vmem:[%s17446_s21 + $0x318] sm:$0xff]  }
 0x24a   : > { %v19662_v25 = vcombine.low %v7400_v60, %v7410_v26  ;;  %v19737_v50 = vld [vmem:[%s17446_s21 + $0x300] sm:$0xff]   ;;  %v19742_v22 = vld [vmem:[%s17446_s21 + $0x30c] sm:$0xff]   ;;  %v17335_v34 = vld [vmem:[%s17446_s21 + $0x198] sm:$0xff]  }
 0x24b   : > { %v21397_v6 = vld [vmem:[#allocation14_spill] sm:$0xff]  ;;  %v17337_v60 = vld [vmem:[%s17446_s21 + $0x1b0] sm:$0xff]  }
 0x24c   : > { %21394 = vst [vmem:[#allocation3_spill] sm:$0xff] %v19662_v25  ;;  %v21398_v44 = vld [vmem:[#allocation10_spill] sm:$0xff]  ;;  %v21400_v26 = vld [vmem:[#allocation4_spill] sm:$0xff] }
 0x24d   : > { %15198 = vmatmul.mubr.msk.bf16.gmra.mrb[28].mxu0 %vm320_vm1, %v19386_v38 }
 0x24e   : > { %15509 = vmatprep.mubr.msk.bf16.mxu0 %vm320_vm1, %v19618_v45 }
 0x24f   : > { %15496 = vmatmul.mubr.msk.bf16.gmra.mrb[20].mxu1 %vm320_vm1, %v19611_v20 }
 0x250   : > { %15499 = vmatprep.mubr.msk.bf16.mxu1 %vm320_vm1, %v19615_v19  ;;  %v17342_v19 = vld [vmem:[%s17446_s21 + $0x1e0] sm:$0xff]  }
 0x255   : > { %15510 = vmatmul.mubr.msk.bf16.vlgmr.msra.gmra.mrb[32].mxu0 %vm320_vm1, %v19638_v58 }
 0x256   : > { %15513 = vmatprep.mubr.msk.bf16.mxu0 %vm320_vm1, %v19645_v1  ;;  %15542 = vmatpush3.bf16.msra.mxu0 %v21393_v54 }
 0x257   : > { %17163 = vmatprep.subr.msk.bf16.mxu0 %vm369_vm0, %v17321_v42  ;;  %15500 = vmatmul.mubr.msk.bf16.gmra.mrb[24].mxu1 %vm320_vm1, %v19635_v4  ;;  %v17341_v4 = vld [vmem:[%s17446_s21 + $0x1d4] sm:$0xff]  }
 0x258   : > { %15503 = vmatprep.mubr.msk.bf16.mxu1 %vm320_vm1, %v19642_v18  ;;  %v21403_v18 = vld [vmem:[#allocation9_spill] sm:$0xff] }
 0x25d   : > { %15514 = vmatmul.mubr.msk.bf16.gmra.mrb[36].mxu0 %vm320_vm1, %v19665_v46 }
 0x25e   : > { %15517 = vmatprep.mubr.msk.bf16.mxu0 %vm320_vm1, %v19670_v27 }
 0x25f   : > { %15504 = vmatmul.mubr.msk.bf16.gmra.mrb[28].mxu1 %vm320_vm1, %v19662_v25  ;;  %v21402_v25 = vld [vmem:[#allocation11_spill] sm:$0xff] }
 0x260   : > { %15815 = vmatprep.mubr.msk.bf16.mxu1 %vm320_vm1, %v21366_v23 }
 0x265   : > { %15518 = vmatmul.mubr.msk.bf16.gmra.mrb[40].mxu0 %vm320_vm1, %v19679_v12 }
 0x266   : > { %15521 = vmatprep.mubr.msk.bf16.mxu0 %vm320_vm1, %v19684_v16 }
 0x267   : > { %15816 = vmatmul.mubr.msk.bf16.vlgmr.msra.gmra.mrb[32].mxu1 %vm320_vm1, %v18280_v5 }
 0x268   : > { %15848 = vmatpush3.bf16.msra.mxu1 %v21393_v54  ;;  %15819 = vmatprep.mubr.msk.bf16.mxu1 %vm320_vm1, %v18284_v49  ;;  %v21399_v54 = vld [vmem:[#allocation15_spill] sm:$0xff] }
 0x269   : > { %17172 = vmatprep.subr.msk.bf16.mxu1 %vm369_vm0, %v17321_v42  ;;  %v17336_v42 = vld [vmem:[%s17446_s21 + $0x1a4] sm:$0xff]  }
 0x26d   : > { %15522 = vmatmul.mubr.msk.bf16.gmra.mrb[44].mxu0 %vm320_vm1, %v19695_v53 }
 0x26e   : > { %15525 = vmatprep.mubr.msk.bf16.mxu0 %vm320_vm1, %v19700_v39 }
 0x26f   : > { %15820 = vmatmul.mubr.msk.bf16.gmra.mrb[36].mxu1 %vm320_vm1, %v18343_v17 }
 0x270   : > { %15823 = vmatprep.mubr.msk.bf16.mxu1 %vm320_vm1, %v18345_v41 }
 0x275   : > { %15526 = vmatmul.mubr.msk.bf16.gmra.mrb[48].mxu0 %vm320_vm1, %v19709_v0 }
 0x276   : > { %15529 = vmatprep.mubr.msk.bf16.mxu0 %vm320_vm1, %v19714_v9 }
 0x277   : > { %15824 = vmatmul.mubr.msk.bf16.gmra.mrb[40].mxu1 %vm320_vm1, %v18467_v43 }
 0x278   : > { %15827 = vmatprep.mubr.msk.bf16.mxu1 %vm320_vm1, %v18472_v3 }
 0x27d   : > { %15530 = vmatmul.mubr.msk.bf16.gmra.mrb[52].mxu0 %vm320_vm1, %v19723_v32 }
 0x27e   : > { %15533 = vmatprep.mubr.msk.bf16.mxu0 %vm320_vm1, %v19728_v59 }
 0x27f   : > { %15828 = vmatmul.mubr.msk.bf16.gmra.mrb[44].mxu1 %vm320_vm1, %v18502_v55 }
 0x280   : > { %15831 = vmatprep.mubr.msk.bf16.mxu1 %vm320_vm1, %v21395_v21 }
 0x285   : > { %15534 = vmatmul.mubr.msk.bf16.gmra.mrb[56].mxu0 %vm320_vm1, %v19737_v50 }
 0x286   : > { %15537 = vmatprep.mubr.msk.bf16.mxu0 %vm320_vm1, %v19742_v22 }
 0x287   : > { %15832 = vmatmul.mubr.msk.bf16.gmra.mrb[48].mxu1 %vm320_vm1, %v21396_v52 }
 0x288   : > { %15835 = vmatprep.mubr.msk.bf16.mxu1 %vm320_vm1, %v21397_v6 }
 0x28d   : > { %15538 = vmatmul.mubr.msk.bf16.gmra.mrb[60].mxu0 %vm320_vm1, %v19751_v24 }
 0x28e   : > { %15543 = vmatprep.mubr.msk.bf16.mxu0 %vm320_vm1, %v17335_v34  ;;  %v17338_v34 = vld [vmem:[%s21223_s1 + $0xc] sm:$0xf] }
 0x28f   : > { %15836 = vmatmul.mubr.msk.bf16.gmra.mrb[52].mxu1 %vm320_vm1, %v21398_v44 }
 0x290   : > { %15839 = vmatprep.mubr.msk.bf16.mxu1 %vm320_vm1, %v21399_v54 }
 0x295   : > { %15544 = vmatmul.mubr.msk.bf16.vlgmr.msra.gmra.mrb[32].mxu0 %vm320_vm1, %v17336_v42  ;;  %v17339_v42 = vld [vmem:[%s17446_s21 + $0x1bc] sm:$0xff]  }
 0x296   : > { %15547 = vmatprep.mubr.msk.bf16.mxu0 %vm320_vm1, %v17337_v60  ;;  %15576 = vmatpush3.bf16.msra.mxu0 %v21400_v26  ;;  %v17340_v60 = vld [vmem:[%s17446_s21 + $0x1c8] sm:$0xff]  }
 0x297   : > { %17164 = vmatprep.subr.msk.bf16.mxu0 %vm369_vm0, %v17338_v34  ;;  %15840 = vmatmul.mubr.msk.bf16.gmra.mrb[56].mxu1 %vm320_vm1, %v21401_v35 }
 0x298   : > { %15843 = vmatprep.mubr.msk.bf16.mxu1 %vm320_vm1, %v21402_v25 }
 0x29d   : > { %15548 = vmatmul.mubr.msk.bf16.gmra.mrb[36].mxu0 %vm320_vm1, %v17339_v42  ;;  %v17344_v42 = vld [vmem:[%s17446_s21 + $0x1f8] sm:$0xff]  }
 0x29e   : > { %15551 = vmatprep.mubr.msk.bf16.mxu0 %vm320_vm1, %v17340_v60 }
 0x29f   : > { %15844 = vmatmul.mubr.msk.bf16.gmra.mrb[60].mxu1 %vm320_vm1, %v21403_v18 }
 0x2a0   : > { %15849 = vmatprep.mubr.msk.bf16.mxu1 %vm320_vm1, %v19618_v45  ;;  %v17343_v45 = vld [vmem:[%s17446_s21 + $0x1ec] sm:$0xff]  }
 0x2a5   : > { %15552 = vmatmul.mubr.msk.bf16.gmra.mrb[40].mxu0 %vm320_vm1, %v17341_v4  ;;  %v17346_v4 = vld [vmem:[%s17446_s21 + $0x210] sm:$0xff]  }
 0x2a6   : > { %15555 = vmatprep.mubr.msk.bf16.mxu0 %vm320_vm1, %v17342_v19  ;;  %v17345_v19 = vld [vmem:[%s17446_s21 + $0x204] sm:$0xff]  }
 0x2a7   : > { %15850 = vmatmul.mubr.msk.bf16.vlgmr.msra.gmra.mrb[32].mxu1 %vm320_vm1, %v19638_v58  ;;  %v17347_v58 = vld [vmem:[%s17446_s21 + $0x21c] sm:$0xff]  }
 0x2a8   : > { %15882 = vmatpush3.bf16.msra.mxu1 %v21400_v26  ;;  %15853 = vmatprep.mubr.msk.bf16.mxu1 %vm320_vm1, %v19645_v1  ;;  %v17348_v1 = vld [vmem:[%s17446_s21 + $0x228] sm:$0xff]  }
 0x2a9   : > { %17173 = vmatprep.subr.msk.bf16.mxu1 %vm369_vm0, %v17338_v34 }
 0x2ad   : > { %15556 = vmatmul.mubr.msk.bf16.gmra.mrb[44].mxu0 %vm320_vm1, %v17343_v45 }
 0x2ae   : > { %15559 = vmatprep.mubr.msk.bf16.mxu0 %vm320_vm1, %v17344_v42 }
 0x2af   : > { %15854 = vmatmul.mubr.msk.bf16.gmra.mrb[36].mxu1 %vm320_vm1, %v19665_v46  ;;  %v17349_v46 = vld [vmem:[%s17446_s21 + $0x234] sm:$0xff]  }
 0x2b0   : > { %15857 = vmatprep.mubr.msk.bf16.mxu1 %vm320_vm1, %v19670_v27  ;;  %v17350_v27 = vld [vmem:[%s17446_s21 + $0x240] sm:$0xff]  }
 0x2b5   : > { %15560 = vmatmul.mubr.msk.bf16.gmra.mrb[48].mxu0 %vm320_vm1, %v17345_v19 }
 0x2b6   : > { %15563 = vmatprep.mubr.msk.bf16.mxu0 %vm320_vm1, %v17346_v4 }
 0x2b7   : > { %15858 = vmatmul.mubr.msk.bf16.gmra.mrb[40].mxu1 %vm320_vm1, %v19679_v12  ;;  %v17351_v12 = vld [vmem:[%s17446_s21 + $0x24c] sm:$0xff]  }
 0x2b8   : > { %15861 = vmatprep.mubr.msk.bf16.mxu1 %vm320_vm1, %v19684_v16  ;;  %v21404_v16 = vld [vmem:[#allocation6_spill] sm:$0xff] }
 0x2bd   : > { %15564 = vmatmul.mubr.msk.bf16.gmra.mrb[52].mxu0 %vm320_vm1, %v17347_v58 }
 0x2be   : > { %15567 = vmatprep.mubr.msk.bf16.mxu0 %vm320_vm1, %v17348_v1 }
 0x2bf   : > { %15862 = vmatmul.mubr.msk.bf16.gmra.mrb[44].mxu1 %vm320_vm1, %v19695_v53  ;;  %v17352_v53 = vld [vmem:[%s21223_s1 + $0x10] sm:$0xf] }
 0x2c0   : > { %15865 = vmatprep.mubr.msk.bf16.mxu1 %vm320_vm1, %v19700_v39 }
 0x2c5   : > { %15568 = vmatmul.mubr.msk.bf16.gmra.mrb[56].mxu0 %vm320_vm1, %v17349_v46  ;;  %v21420_v46 = vld [vmem:[#allocation25_spill] sm:$0xff] }
 0x2c6   : > { %15571 = vmatprep.mubr.msk.bf16.mxu0 %vm320_vm1, %v17350_v27  ;;  %v21422_v27 = vld [vmem:[#allocation26_spill] sm:$0xff] }
 0x2c7   : > { %15866 = vmatmul.mubr.msk.bf16.gmra.mrb[48].mxu1 %vm320_vm1, %v19709_v0 }
 0x2c8   : > { %15869 = vmatprep.mubr.msk.bf16.mxu1 %vm320_vm1, %v19714_v9 }
 0x2cd   : > { %15572 = vmatmul.mubr.msk.bf16.gmra.mrb[60].mxu0 %vm320_vm1, %v17351_v12 }
 0x2ce   : > { %15577 = vmatprep.mubr.msk.bf16.mxu0 %vm320_vm1, %v21366_v23  ;;  %v21406_v23 = vld [vmem:[#allocation19_spill] sm:$0xff] }
 0x2cf   : > { %15870 = vmatmul.mubr.msk.bf16.gmra.mrb[52].mxu1 %vm320_vm1, %v19723_v32  ;;  %v21410_v32 = vld [vmem:[#allocation22_spill] sm:$0xff] }
 0x2d0   : > { %15873 = vmatprep.mubr.msk.bf16.mxu1 %vm320_vm1, %v19728_v59 }
 0x2d5   : > { %15578 = vmatmul.mubr.msk.bf16.vlgmr.msra.gmra.mrb[32].mxu0 %vm320_vm1, %v18280_v5  ;;  %v21405_v5 = vld [vmem:[#allocation18_spill] sm:$0xff] }
 0x2d6   : > { %15581 = vmatprep.mubr.msk.bf16.mxu0 %vm320_vm1, %v18284_v49  ;;  %15610 = vmatpush3.bf16.msra.mxu0 %v21404_v16 }
 0x2d7   : > { %17165 = vmatprep.subr.msk.bf16.mxu0 %vm369_vm0, %v17352_v53  ;;  %15874 = vmatmul.mubr.msk.bf16.gmra.mrb[56].mxu1 %vm320_vm1, %v19737_v50 }
 0x2d8   : > { %15877 = vmatprep.mubr.msk.bf16.mxu1 %vm320_vm1, %v19742_v22 }
 0x2dd   : > { %15582 = vmatmul.mubr.msk.bf16.gmra.mrb[36].mxu0 %vm320_vm1, %v18343_v17 }
 0x2de   : > { %15585 = vmatprep.mubr.msk.bf16.mxu0 %vm320_vm1, %v18345_v41  ;;  %v21407_v41 = vld [vmem:[#allocation20_spill] sm:$0xff] }
 0x2df   : > { %15878 = vmatmul.mubr.msk.bf16.gmra.mrb[60].mxu1 %vm320_vm1, %v19751_v24  ;;  %v21416_v24 = vld [vmem:[#allocation24_spill] sm:$0xff] }
 0x2e0   : > { %15883 = vmatprep.mubr.msk.bf16.mxu1 %vm320_vm1, %v21405_v5 }
 0x2e5   : > { %15586 = vmatmul.mubr.msk.bf16.gmra.mrb[40].mxu0 %vm320_vm1, %v18467_v43 }
 0x2e6   : > { %15589 = vmatprep.mubr.msk.bf16.mxu0 %vm320_vm1, %v18472_v3  ;;  %v21408_v3 = vld [vmem:[#allocation21_spill] sm:$0xff] }
 0x2e7   : > { %15884 = vmatmul.mubr.msk.bf16.vlgmr.msra.gmra.mrb[32].mxu1 %vm320_vm1, %v21406_v23 }
 0x2e8   : > { %v19857_v49 = vpop.f32.mrb[0].mxu0  ;;  %15916 = vmatpush3.bf16.msra.mxu1 %v21404_v16  ;;  %15887 = vmatprep.mubr.msk.bf16.mxu1 %vm320_vm1, %v21407_v41 }
 0x2e9   : > { %v19861_v17 = vpop.f32.mrb[1].mxu0  ;;  %17174 = vmatprep.subr.msk.bf16.mxu1 %vm369_vm0, %v17352_v53 }
 0x2ea   : > { %v19866_v39 = vpop.f32.mrb[2].mxu0 }
 0x2eb   : > { %v19868_v0 = vpop.f32.mrb[3].mxu0 }
 0x2ed   : > { %15590 = vmatmul.mubr.msk.bf16.gmra.mrb[44].mxu0 %vm320_vm1, %v18502_v55 }
 0x2ee   : > { %15593 = vmatprep.mubr.msk.bf16.mxu0 %vm320_vm1, %v21395_v21  ;;  %v21414_v21 = vld [vmem:[#allocation23_spill] sm:$0xff] }
 0x2ef   : > { %15888 = vmatmul.mubr.msk.bf16.gmra.mrb[36].mxu1 %vm320_vm1, %v21408_v3 }
 0x2f0   : > { %v19875_v43 = vpop.f32.mrb[4].mxu0  ;;  %15891 = vmatprep.mubr.msk.bf16.mxu1 %vm320_vm1, %v21410_v32 }
 0x2f1   : > { %v19879_v9 = vpop.f32.mrb[5].mxu0 }
 0x2f2   : > { %21409 = vst [vmem:[#allocation12_spill] sm:$0xff] %v19879_v9  ;;  %v19883_v59 = vpop.f32.mrb[6].mxu0 }
 0x2f3   : > { %21411 = vst [vmem:[#allocation13_spill] sm:$0xff] %v19883_v59  ;;  %v19885_v50 = vpop.f32.mrb[7].mxu0 }
 0x2f4   : > { %21412 = vst [vmem:[#allocation14_spill] sm:$0xff] %v19885_v50 }
 0x2f5   : > { %15594 = vmatmul.mubr.msk.bf16.gmra.mrb[48].mxu0 %vm320_vm1, %v21396_v52 }
 0x2f6   : > { %15597 = vmatprep.mubr.msk.bf16.mxu0 %vm320_vm1, %v21397_v6 }
 0x2f7   : > { %15892 = vmatmul.mubr.msk.bf16.gmra.mrb[40].mxu1 %vm320_vm1, %v21414_v21 }
 0x2f8   : > { %v19891_v55 = vpop.f32.mrb[8].mxu0  ;;  %15895 = vmatprep.mubr.msk.bf16.mxu1 %vm320_vm1, %v21416_v24 }
 0x2f9   : > { %21413 = vst [vmem:[#allocation10_spill] sm:$0xff] %v19891_v55  ;;  %v19895_v22 = vpop.f32.mrb[9].mxu0 }
 0x2fa   : > { %21415 = vst [vmem:[#allocation15_spill] sm:$0xff] %v19895_v22  ;;  %v19899_v26 = vpop.f32.mrb[10].mxu0  ;;  %v19903_v60 = vpop.f32.mrb[0].mxu1 }
 0x2fb   : > { %21417 = vst [vmem:[#allocation4_spill] sm:$0xff] %v19899_v26  ;;  %v19901_v34 = vpop.f32.mrb[11].mxu0  ;;  %v19907_v6 = vpop.f32.mrb[1].mxu1  ;;  %v21447_v26 = vld [vmem:[#allocation7_spill] sm:$0xff] }
 0x2fc   : > { %21418 = vst [vmem:[#allocation16_spill] sm:$0xff] %v19901_v34  ;;  %v19913_v42 = vpop.f32.mrb[2].mxu1 }
 0x2fd   : > { %15598 = vmatmul.mubr.msk.bf16.gmra.mrb[52].mxu0 %vm320_vm1, %v21398_v44  ;;  %v19919_v4 = vpop.f32.mrb[3].mxu1 }
 0x2fe   : > { %15601 = vmatprep.mubr.msk.bf16.mxu0 %vm320_vm1, %v21399_v54 }
 0x2ff   : > { %15896 = vmatmul.mubr.msk.bf16.gmra.mrb[44].mxu1 %vm320_vm1, %v21420_v46 }
 0x300   : > { %v19923_v1 = vpop.f32.mrb[12].mxu0  ;;  %15899 = vmatprep.mubr.msk.bf16.mxu1 %vm320_vm1, %v21422_v27  ;;  %v21431_v27 = vld [vmem:[#allocation28_spill] sm:$0xff] }
 0x301   : > { %21419 = vst [vmem:[#allocation11_spill] sm:$0xff] %v19923_v1  ;;  %v19927_v44 = vpop.f32.mrb[13].mxu0 }
 0x302   : > { %21421 = vst [vmem:[#allocation9_spill] sm:$0xff] %v19927_v44  ;;  %v19931_v12 = vpop.f32.mrb[14].mxu0  ;;  %v19935_v16 = vpop.f32.mrb[4].mxu1 }
 0x303   : > { %21423 = vst [vmem:[#allocation6_spill] sm:$0xff] %v19931_v12  ;;  %v19933_v54 = vpop.f32.mrb[15].mxu0  ;;  %v19939_v5 = vpop.f32.mrb[5].mxu1 }
 0x304   : > { %21424 = vst [vmem:[#allocation18_spill] sm:$0xff] %v19933_v54  ;;  %21425 = vst [vmem:[#allocation19_spill] sm:$0xff] %v19939_v5  ;;  %v19945_v41 = vpop.f32.mrb[6].mxu1  ;;  %v17357_v54 = vld [vmem:[%s17446_s21 + $0x30] sm:$0xff]  }
 0x305   : > { %15602 = vmatmul.mubr.msk.bf16.gmra.mrb[56].mxu0 %vm320_vm1, %v21401_v35  ;;  %21426 = vst [vmem:[#allocation20_spill] sm:$0xff] %v19945_v41  ;;  %v19951_v32 = vpop.f32.mrb[7].mxu1  ;;  %v21429_v35 = vld [vmem:[#allocation27_spill] sm:$0xff] }
 0x306   : > { %15605 = vmatprep.mubr.msk.bf16.mxu0 %vm320_vm1, %v21402_v25  ;;  %21427 = vst [vmem:[#allocation21_spill] sm:$0xff] %v19951_v32 }
 0x307   : > { %15900 = vmatmul.mubr.msk.bf16.gmra.mrb[48].mxu1 %vm320_vm1, %v21429_v35 }
 0x308   : > { %v19955_v24 = vpop.f32.mrb[16].mxu0  ;;  %15903 = vmatprep.mubr.msk.bf16.mxu1 %vm320_vm1, %v21431_v27  ;;  %v17353_v27 = vld [vmem:[%s17446_s21 + $0xc] sm:$0xff]  }
 0x309   : > { %21428 = vst [vmem:[#allocation22_spill] sm:$0xff] %v19955_v24  ;;  %v19959_v46 = vpop.f32.mrb[17].mxu0  ;;  %v17371_v24 = vld [vmem:[%s17446_s21 + $0x120] sm:$0xff]  }
 0x30a   : > { %21430 = vst [vmem:[#allocation23_spill] sm:$0xff] %v19959_v46  ;;  %v19963_v25 = vpop.f32.mrb[18].mxu0  ;;  %v19967_v3 = vpop.f32.mrb[8].mxu1  ;;  %v17361_v46 = vld [vmem:[%s17446_s21 + $0x54] sm:$0xff]  }
 0x30b   : > { %21432 = vst [vmem:[#allocation24_spill] sm:$0xff] %v19963_v25  ;;  %v19965_v23 = vpop.f32.mrb[19].mxu0  ;;  %21434 = vst [vmem:[#allocation26_spill] sm:$0xff] %v19967_v3  ;;  %v19971_v21 = vpop.f32.mrb[9].mxu1  ;;  %v21452_v3 = vld [vmem:[#allocation33_spill] sm:$0xff] }
 0x30c   : > { %21433 = vst [vmem:[#allocation25_spill] sm:$0xff] %v19965_v23  ;;  %21435 = vst [vmem:[#allocation27_spill] sm:$0xff] %v19971_v21  ;;  %v19977_v58 = vpop.f32.mrb[10].mxu1  ;;  %v21441_v21 = vld [vmem:[#allocation30_spill] sm:$0xff] }
 0x30d   : > { %15606 = vmatmul.mubr.msk.bf16.gmra.mrb[60].mxu0 %vm320_vm1, %v21403_v18  ;;  %21436 = vst [vmem:[#allocation28_spill] sm:$0xff] %v19977_v58  ;;  %v19983_v45 = vpop.f32.mrb[11].mxu1  ;;  %v21439_v18 = vld [vmem:[#allocation29_spill] sm:$0xff] }
 0x30e   : > { %15611 = vmatprep.mubr.msk.bf16.mxu0 %vm320_vm1, %v17353_v27  ;;  %21437 = vst [vmem:[#allocation40_spill] sm:$0xff] %v19983_v45  ;;  %v17354_v45 = vld [vmem:[%s17446_s21 + $0x18] sm:$0xff]  }
 0x30f   : > { %15904 = vmatmul.mubr.msk.bf16.gmra.mrb[52].mxu1 %vm320_vm1, %v21439_v18  ;;  %v17364_v18 = vld [vmem:[%s17446_s21 + $0x60] sm:$0xff]  }
 0x310   : > { %v19987_v52 = vpop.f32.mrb[20].mxu0  ;;  %15907 = vmatprep.mubr.msk.bf16.mxu1 %vm320_vm1, %v21441_v21  ;;  %v17355_v21 = vld [vmem:[%s17446_s21 + $0x24] sm:$0xff]  }
 0x311   : > { %21438 = vst [vmem:[#allocation41_spill] sm:$0xff] %v19987_v52  ;;  %v19991_v35 = vpop.f32.mrb[21].mxu0 }
 0x312   : > { %21440 = vst [vmem:[#allocation29_spill] sm:$0xff] %v19991_v35  ;;  %v19995_v27 = vpop.f32.mrb[22].mxu0  ;;  %v19999_v19 = vpop.f32.mrb[12].mxu1  ;;  %v13950_v35 = vld [vmem:[%s17446_s21 + $0x200] sm:$0x1] }
 0x313   : > { %21442 = vst [vmem:[#allocation30_spill] sm:$0xff] %v19995_v27  ;;  %v19997_v22 = vpop.f32.mrb[23].mxu0  ;;  %21444 = vst [vmem:[#allocation43_spill] sm:$0xff] %v19999_v19  ;;  %v20003_v53 = vpop.f32.mrb[13].mxu1  ;;  %v20443_v27 = vld [vmem:[%s17446_s21 + $0x318] sm:$0xff]  }
 0x314   : > { %21443 = vst [vmem:[#allocation42_spill] sm:$0xff] %v19997_v22  ;;  %21445 = vst [vmem:[#allocation44_spill] sm:$0xff] %v20003_v53  ;;  %v20009_v34 = vpop.f32.mrb[14].mxu1  ;;  %v17365_v22 = vld [vmem:[%s17446_s21 + $0x6c] sm:$0xff]  }
 0x315   : > { %15612 = vmatmul.mubr.msk.bf16.vlgmr.msra.gmra.mrb[32].mxu0 %vm320_vm1, %v17354_v45  ;;  %21446 = vst [vmem:[#allocation45_spill] sm:$0xff] %v20009_v34  ;;  %v20016_v58 = vpop.f32.mrb[15].mxu1  ;;  %v17356_v45 = vld [vmem:[%s21223_s1 + $0x14] sm:$0xf] }
 0x316   : > { %15615 = vmatprep.mubr.msk.bf16.mxu0 %vm320_vm1, %v17355_v21  ;;  %15644 = vmatpush3.bf16.msra.mxu0 %v21447_v26  ;;  %21448 = vst [vmem:[#allocation7_spill] sm:$0xff] %v20016_v58  ;;  %v21450_v21 = vld [vmem:[#allocation32_spill] sm:$0xff] }
 0x317   : > { %17166 = vmatprep.subr.msk.bf16.mxu0 %vm369_vm0, %v17356_v45  ;;  %15908 = vmatmul.mubr.msk.bf16.gmra.mrb[56].mxu1 %vm320_vm1, %v21450_v21 }
 0x318   : > { %v20024_v53 = vpop.f32.mrb[24].mxu0  ;;  %15911 = vmatprep.mubr.msk.bf16.mxu1 %vm320_vm1, %v21452_v3  ;;  %v17358_v3 = vld [vmem:[%s17446_s21 + $0x3c] sm:$0xff]  }
 0x319   : > { %21449 = vst [vmem:[#allocation46_spill] sm:$0xff] %v20024_v53  ;;  %v20028_v44 = vpop.f32.mrb[25].mxu0 }
 0x31a   : > { %21451 = vst [vmem:[#allocation32_spill] sm:$0xff] %v20028_v44  ;;  %v20032_v34 = vpop.f32.mrb[26].mxu0  ;;  %v20036_v19 = vpop.f32.mrb[16].mxu1 }
 0x31b   : > { %21453 = vst [vmem:[#allocation33_spill] sm:$0xff] %v20032_v34  ;;  %v20034_v12 = vpop.f32.mrb[27].mxu0  ;;  %21455 = vst [vmem:[#allocation48_spill] sm:$0xff] %v20036_v19  ;;  %v20040_v58 = vpop.f32.mrb[17].mxu1 }
 0x31c   : > { %21454 = vst [vmem:[#allocation47_spill] sm:$0xff] %v20034_v12  ;;  %21456 = vst [vmem:[#allocation49_spill] sm:$0xff] %v20040_v58  ;;  %v20046_v1 = vpop.f32.mrb[18].mxu1  ;;  %v20063_v58 = vld [vmem:[%s17446_s21 + $0xd8] sm:$0xff]   ;;  %v17369_v12 = vld [vmem:[%s17446_s21 + $0x84] sm:$0xff]  }
 0x31d   : > { %15616 = vmatmul.mubr.msk.bf16.gmra.mrb[36].mxu0 %vm320_vm1, %v17357_v54  ;;  %21457 = vst [vmem:[#allocation50_spill] sm:$0xff] %v20046_v1  ;;  %v20052_v32 = vpop.f32.mrb[19].mxu1  ;;  %v21460_v54 = vld [vmem:[#allocation34_spill] sm:$0xff] }
 0x31e   : > { %15619 = vmatprep.mubr.msk.bf16.mxu0 %vm320_vm1, %v17358_v3  ;;  %21458 = vst [vmem:[#allocation51_spill] sm:$0xff] %v20052_v32 }
 0x31f   : > { %15912 = vmatmul.mubr.msk.bf16.gmra.mrb[60].mxu1 %vm320_vm1, %v21460_v54  ;;  %v17360_v54 = vld [vmem:[%s17446_s21 + $0x48] sm:$0xff]  }
 0x320   : > { %v20056_v19 = vpop.f32.mrb[28].mxu0  ;;  %15917 = vmatprep.mubr.msk.bf16.mxu1 %vm320_vm1, %v20063_v58 }
 0x321   : > { %21459 = vst [vmem:[#allocation52_spill] sm:$0xff] %v20056_v19  ;;  %v20060_v21 = vpop.f32.mrb[29].mxu0  ;;  %v17370_v19 = vld [vmem:[%s17446_s21 + $0x114] sm:$0xff]  }
 0x322   : > { %21461 = vst [vmem:[#allocation34_spill] sm:$0xff] %v20060_v21  ;;  %v20067_v3 = vpop.f32.mrb[30].mxu0  ;;  %v20071_v1 = vpop.f32.mrb[20].mxu1  ;;  %v17385_v21 = vld [vmem:[%s17446_s21 + $0x180] sm:$0xff]  }
 0x323   : > { %21462 = vst [vmem:[#allocation53_spill] sm:$0xff] %v20067_v3  ;;  %v20069_v55 = vpop.f32.mrb[31].mxu0  ;;  %21464 = vst [vmem:[#allocation55_spill] sm:$0xff] %v20071_v1  ;;  %v20075_v32 = vpop.f32.mrb[21].mxu1  ;;  %v17362_v1 = vld [vmem:[%s17446_s21 + $0xe4] sm:$0xff]   ;;  %v17381_v3 = vld [vmem:[%s17446_s21 + $0x15c] sm:$0xff]  }
 0x324   : > { %21463 = vst [vmem:[#allocation54_spill] sm:$0xff] %v20069_v55  ;;  %21465 = vst [vmem:[#allocation56_spill] sm:$0xff] %v20075_v32  ;;  %v20081_v25 = vpop.f32.mrb[22].mxu1  ;;  %v17377_v55 = vld [vmem:[%s17446_s21 + $0xb4] sm:$0xff]  }
 0x325   : > { %15620 = vmatmul.mubr.msk.bf16.gmra.mrb[40].mxu0 %vm320_vm1, %v17360_v54  ;;  %21466 = vst [vmem:[#allocation57_spill] sm:$0xff] %v20081_v25  ;;  %v20087_v50 = vpop.f32.mrb[23].mxu1  ;;  %v17363_v54 = vld [vmem:[%s17446_s21 + $0xf0] sm:$0xff]  }
 0x326   : > { %15623 = vmatprep.mubr.msk.bf16.mxu0 %vm320_vm1, %v17361_v46  ;;  %21467 = vst [vmem:[#allocation58_spill] sm:$0xff] %v20087_v50  ;;  %v13955_v32 = vld [vmem:[%s17446_s21 + $0x214] sm:$0xf] }
 0x327   : > { %15918 = vmatmul.mubr.msk.bf16.vlgmr.msra.gmra.mrb[32].mxu1 %vm320_vm1, %v17362_v1 }
 0x328   : > { %15950 = vmatpush3.bf16.msra.mxu1 %v21447_v26  ;;  %15921 = vmatprep.mubr.msk.bf16.mxu1 %vm320_vm1, %v17363_v54 }
 0x329   : > { %17175 = vmatprep.subr.msk.bf16.mxu1 %vm369_vm0, %v17356_v45 }
 0x32a   : > { %v20097_v46 = vpop.f32.mrb[24].mxu1 }
 0x32b   : > { %21468 = vst [vmem:[#allocation59_spill] sm:$0xff] %v20097_v46  ;;  %v20101_v23 = vpop.f32.mrb[25].mxu1  ;;  %v17366_v46 = vld [vmem:[%s17446_s21 + $0xfc] sm:$0xff]  }
 0x32c   : > { %21469 = vst [vmem:[#allocation60_spill] sm:$0xff] %v20101_v23  ;;  %v20107_v50 = vpop.f32.mrb[26].mxu1 }
 0x32d   : > { %15624 = vmatmul.mubr.msk.bf16.gmra.mrb[44].mxu0 %vm320_vm1, %v17364_v18  ;;  %21470 = vst [vmem:[#allocation61_spill] sm:$0xff] %v20107_v50  ;;  %v20113_v25 = vpop.f32.mrb[27].mxu1  ;;  %v17367_v18 = vld [vmem:[%s17446_s21 + $0x108] sm:$0xff]   ;;  %v17368_v50 = vld [vmem:[%s17446_s21 + $0x78] sm:$0xff]  }
 0x32e   : > { %15627 = vmatprep.mubr.msk.bf16.mxu0 %vm320_vm1, %v17365_v22  ;;  %21471 = vst [vmem:[#allocation62_spill] sm:$0xff] %v20113_v25  ;;  %v17374_v22 = vld [vmem:[%s17446_s21 + $0x12c] sm:$0xff]  }
 0x32f   : > { %15922 = vmatmul.mubr.msk.bf16.gmra.mrb[36].mxu1 %vm320_vm1, %v17366_v46 }
 0x330   : > { %15925 = vmatprep.mubr.msk.bf16.mxu1 %vm320_vm1, %v17367_v18 }
 0x332   : > { %v20121_v26 = vpop.f32.mrb[28].mxu1 }
 0x333   : > { %21472 = vst [vmem:[#allocation63_spill] sm:$0xff] %v20121_v26  ;;  %v20125_v45 = vpop.f32.mrb[29].mxu1 }
 0x334   : > { %21473 = vst [vmem:[#allocation64_spill] sm:$0xff] %v20125_v45  ;;  %v20131_v25 = vpop.f32.mrb[30].mxu1  ;;  %v17372_v45 = vld [vmem:[%s17446_s21 + $0x90] sm:$0xff]  }
 0x335   : > { %15628 = vmatmul.mubr.msk.bf16.gmra.mrb[48].mxu0 %vm320_vm1, %v17368_v50  ;;  %21474 = vst [vmem:[#allocation65_spill] sm:$0xff] %v20131_v25  ;;  %v20137_v26 = vpop.f32.mrb[31].mxu1  ;;  %v17375_v50 = vld [vmem:[%s17446_s21 + $0x138] sm:$0xff]   ;;  %v17378_v25 = vld [vmem:[%s17446_s21 + $0x144] sm:$0xff]  }
 0x336   : > { %15631 = vmatprep.mubr.msk.bf16.mxu0 %vm320_vm1, %v17369_v12  ;;  %21475 = vst [vmem:[#allocation66_spill] sm:$0xff] %v20137_v26  ;;  %v17373_v12 = vld [vmem:[%s17446_s21 + $0x9c] sm:$0xff]   ;;  %v17376_v26 = vld [vmem:[%s17446_s21 + $0xa8] sm:$0xff]  }
 0x337   : > { %15926 = vmatmul.mubr.msk.bf16.gmra.mrb[40].mxu1 %vm320_vm1, %v17370_v19 }
 0x338   : > { %15929 = vmatprep.mubr.msk.bf16.mxu1 %vm320_vm1, %v17371_v24 }
 0x33d   : > { %15632 = vmatmul.mubr.msk.bf16.gmra.mrb[52].mxu0 %vm320_vm1, %v17372_v45  ;;  %v17379_v45 = vld [vmem:[%s17446_s21 + $0x150] sm:$0xff]  }
 0x33e   : > { %15635 = vmatprep.mubr.msk.bf16.mxu0 %vm320_vm1, %v17373_v12  ;;  %v17380_v12 = vld [vmem:[%s17446_s21 + $0xc0] sm:$0xff]  }
 0x33f   : > { %15930 = vmatmul.mubr.msk.bf16.gmra.mrb[44].mxu1 %vm320_vm1, %v17374_v22 }
 0x340   : > { %15933 = vmatprep.mubr.msk.bf16.mxu1 %vm320_vm1, %v17375_v50 }
 0x345   : > { %15636 = vmatmul.mubr.msk.bf16.gmra.mrb[56].mxu0 %vm320_vm1, %v17376_v26  ;;  %v17382_v26 = vld [vmem:[%s17446_s21 + $0x168] sm:$0xff]  }
 0x346   : > { %15639 = vmatprep.mubr.msk.bf16.mxu0 %vm320_vm1, %v17377_v55  ;;  %v21476_v55 = vld [vmem:[#allocation8_spill] sm:$0xff] }
 0x347   : > { %15934 = vmatmul.mubr.msk.bf16.gmra.mrb[48].mxu1 %vm320_vm1, %v17378_v25 }
 0x348   : > { %15937 = vmatprep.mubr.msk.bf16.mxu1 %vm320_vm1, %v17379_v45 }
 0x34d   : > { %15640 = vmatmul.mubr.msk.bf16.gmra.mrb[60].mxu0 %vm320_vm1, %v17380_v12  ;;  %v17383_v12 = vld [vmem:[%s21223_s1 + $0x18] sm:$0xf] }
 0x34e   : > { %15645 = vmatprep.mubr.msk.bf16.mxu0 %vm320_vm1, %v20063_v58  ;;  %v17384_v58 = vld [vmem:[%s17446_s21 + $0x174] sm:$0xff]  }
 0x34f   : > { %15938 = vmatmul.mubr.msk.bf16.gmra.mrb[52].mxu1 %vm320_vm1, %v17381_v3 }
 0x350   : > { %15941 = vmatprep.mubr.msk.bf16.mxu1 %vm320_vm1, %v17382_v26 }
 0x355   : > { %15646 = vmatmul.mubr.msk.bf16.vlgmr.msra.gmra.mrb[32].mxu0 %vm320_vm1, %v17362_v1  ;;  %v17386_v1 = vld [vmem:[%s17446_s21 + $0x18c] sm:$0xff]  }
 0x356   : > { %15649 = vmatprep.mubr.msk.bf16.mxu0 %vm320_vm1, %v17363_v54  ;;  %15678 = vmatpush3.bf16.msra.mxu0 %v21476_v55  ;;  %v20371_v54 = vld [vmem:[%s17446_s21 + $0x2d0] sm:$0xff]  }
 0x357   : > { %17167 = vmatprep.subr.msk.bf16.mxu0 %vm369_vm0, %v17383_v12  ;;  %15942 = vmatmul.mubr.msk.bf16.gmra.mrb[56].mxu1 %vm320_vm1, %v17384_v58 }
 0x358   : > { %15945 = vmatprep.mubr.msk.bf16.mxu1 %vm320_vm1, %v17385_v21 }
 0x35d   : > { %15650 = vmatmul.mubr.msk.bf16.gmra.mrb[36].mxu0 %vm320_vm1, %v17366_v46  ;;  %v13927_v46 = vld [vmem:[%s17446_s21 + $0x1a4] sm:$0xf] }
 0x35e   : > { %15653 = vmatprep.mubr.msk.bf16.mxu0 %vm320_vm1, %v17367_v18  ;;  %v13928_v18 = vld [vmem:[%s17446_s21 + $0x1a8] sm:$0xf] }
 0x35f   : > { %15946 = vmatmul.mubr.msk.bf16.gmra.mrb[60].mxu1 %vm320_vm1, %v17386_v1 }
 0x360   : > { %15951 = vmatprep.mubr.msk.bf16.mxu1 %vm320_vm1, %v19027_v31 }
 0x365   : > { %15654 = vmatmul.mubr.msk.bf16.gmra.mrb[40].mxu0 %vm320_vm1, %v17370_v19  ;;  %v21477_v19 = vld [vmem:[#allocation17_spill] sm:$0xff] }
 0x366   : > { %15657 = vmatprep.mubr.msk.bf16.mxu0 %vm320_vm1, %v17371_v24  ;;  %v17387_v24 = vld [vmem:[%s21223_s1 + $0x1c] sm:$0xf] }
 0x367   : > { %15952 = vmatmul.mubr.msk.bf16.vlgmr.msra.gmra.mrb[32].mxu1 %vm320_vm1, %v19139_v51 }
 0x368   : > { %15984 = vmatpush3.bf16.msra.mxu1 %v21476_v55  ;;  %15955 = vmatprep.mubr.msk.bf16.mxu1 %vm320_vm1, %v19141_v33  ;;  %v13930_v55 = vld [vmem:[%s17446_s21 + $0x1b0] sm:$0xf] }
 0x369   : > { %17176 = vmatprep.subr.msk.bf16.mxu1 %vm369_vm0, %v17383_v12  ;;  %v9592_v12 = vshll.u32 %v13928_v18, 16 }
 0x36d   : > { %15658 = vmatmul.mubr.msk.bf16.gmra.mrb[44].mxu0 %vm320_vm1, %v17374_v22  ;;  %v17307_v22 = vld [vmem:[%s17446_s21 + $0x240] sm:$0xff]  }
 0x36e   : > { %15661 = vmatprep.mubr.msk.bf16.mxu0 %vm320_vm1, %v17375_v50  ;;  %v9583_v50 = vshrl.u32 %v13927_v46, 16 }
 0x36f   : > { %15956 = vmatmul.mubr.msk.bf16.gmra.mrb[36].mxu1 %vm320_vm1, %v19144_v57 }
 0x370   : > { %15959 = vmatprep.mubr.msk.bf16.mxu1 %vm320_vm1, %v19146_v29 }
 0x375   : > { %15662 = vmatmul.mubr.msk.bf16.gmra.mrb[48].mxu0 %vm320_vm1, %v17378_v25  ;;  %v17303_v25 = vld [vmem:[%s17446_s21 + $0x228] sm:$0xff]  }
 0x376   : > { %15665 = vmatprep.mubr.msk.bf16.mxu0 %vm320_vm1, %v17379_v45  ;;  %v9586_v45 = vshll.u32 %v13927_v46, 16 }
 0x377   : > { %15960 = vmatmul.mubr.msk.bf16.gmra.mrb[40].mxu1 %vm320_vm1, %v19148_v10 }
 0x378   : > { %15963 = vmatprep.mubr.msk.bf16.mxu1 %vm320_vm1, %v19193_v2 }
 0x37d   : > { %15666 = vmatmul.mubr.msk.bf16.gmra.mrb[52].mxu0 %vm320_vm1, %v17381_v3  ;;  %v20367_v3 = vld [vmem:[%s17446_s21 + $0x2c4] sm:$0xff]  }
 0x37e   : > { %15669 = vmatprep.mubr.msk.bf16.mxu0 %vm320_vm1, %v17382_v26  ;;  %v17310_v26 = vld [vmem:[%s17446_s21 + $0x24c] sm:$0xff]  }
 0x37f   : > { %15964 = vmatmul.mubr.msk.bf16.gmra.mrb[44].mxu1 %vm320_vm1, %v19264_v61 }
 0x380   : > { %15967 = vmatprep.mubr.msk.bf16.mxu1 %vm320_vm1, %v19268_v56 }
 0x385   : > { %15670 = vmatmul.mubr.msk.bf16.gmra.mrb[56].mxu0 %vm320_vm1, %v17384_v58  ;;  %v9596_v58 = vshrl.u32 %v13928_v18, 16 }
 0x386   : > { %15673 = vmatprep.mubr.msk.bf16.mxu0 %vm320_vm1, %v17385_v21  ;;  %v17306_v21 = vld [vmem:[%s17446_s21 + $0x234] sm:$0xff]  }
 0x387   : > { %15968 = vmatmul.mubr.msk.bf16.gmra.mrb[48].mxu1 %vm320_vm1, %v19270_v48 }
 0x388   : > { %15971 = vmatprep.mubr.msk.bf16.mxu1 %vm320_vm1, %v19274_v15 }
 0x38d   : > { %15674 = vmatmul.mubr.msk.bf16.gmra.mrb[60].mxu0 %vm320_vm1, %v17386_v1  ;;  %v13931_v1 = vld [vmem:[%s17446_s21 + $0x1b4] sm:$0xf] }
 0x38e   : > { %15679 = vmatprep.mubr.msk.bf16.mxu0 %vm320_vm1, %v19027_v31  ;;  %v21478_v31 = vld [vmem:[#allocation2_spill] sm:$0xff] }
 0x38f   : > { %15972 = vmatmul.mubr.msk.bf16.gmra.mrb[52].mxu1 %vm320_vm1, %v19314_v8 }
 0x390   : > { %15975 = vmatprep.mubr.msk.bf16.mxu1 %vm320_vm1, %v19317_v62 }
 0x395   : > { %15680 = vmatmul.mubr.msk.bf16.vlgmr.msra.gmra.mrb[32].mxu0 %vm320_vm1, %v19139_v51  ;;  %v21479_v51 = vld [vmem:[#allocation36_spill] sm:$0xff] }
 0x396   : > { %15683 = vmatprep.mubr.msk.bf16.mxu0 %vm320_vm1, %v19141_v33  ;;  %15712 = vmatpush3.bf16.msra.mxu0 %v21477_v19  ;;  %v17284_v33 = vld [vmem:[%s17446_s21 + $0x1a4] sm:$0xff]  }
 0x397   : > { %17168 = vmatprep.subr.msk.bf16.mxu0 %vm369_vm0, %v17387_v24  ;;  %15976 = vmatmul.mubr.msk.bf16.gmra.mrb[56].mxu1 %vm320_vm1, %v19360_v47 }
 0x398   : > { %15979 = vmatprep.mubr.msk.bf16.mxu1 %vm320_vm1, %v19362_v14 }
 0x39d   : > { %15684 = vmatmul.mubr.msk.bf16.gmra.mrb[36].mxu0 %vm320_vm1, %v19144_v57  ;;  %v17285_v57 = vld [vmem:[%s17446_s21 + $0x1b0] sm:$0xff]  }
 0x39e   : > { %15687 = vmatprep.mubr.msk.bf16.mxu0 %vm320_vm1, %v19146_v29  ;;  %v21480_v29 = vld [vmem:[#allocation37_spill] sm:$0xff] }
 0x39f   : > { %15980 = vmatmul.mubr.msk.bf16.gmra.mrb[60].mxu1 %vm320_vm1, %v19386_v38 }
 0x3a0   : > { %15985 = vmatprep.mubr.msk.bf16.mxu1 %vm320_vm1, %v19395_v28  ;;  %v20323_v28 = vld [vmem:[%s17446_s21 + $0x27c] sm:$0xff]  }
 0x3a5   : > { %15688 = vmatmul.mubr.msk.bf16.gmra.mrb[40].mxu0 %vm320_vm1, %v19148_v10  ;;  %v17286_v10 = vld [vmem:[%s17446_s21 + $0x1bc] sm:$0xff]  }
 0x3a6   : > { %15691 = vmatprep.mubr.msk.bf16.mxu0 %vm320_vm1, %v19193_v2  ;;  %v21481_v2 = vld [vmem:[#allocation31_spill] sm:$0xff] }
 0x3a7   : > { %15986 = vmatmul.mubr.msk.bf16.vlgmr.msra.gmra.mrb[32].mxu1 %vm320_vm1, %v21478_v31  ;;  %v13933_v31 = vld [vmem:[%s17446_s21 + $0x1bc] sm:$0xf] }
 0x3a8   : > { %16018 = vmatpush3.bf16.msra.mxu1 %v21477_v19  ;;  %15989 = vmatprep.mubr.msk.bf16.mxu1 %vm320_vm1, %v21479_v51  ;;  %v20385_v19 = vld [vmem:[%s17446_s21 + $0x2dc] sm:$0xff]   ;;  %v9585_v51 = vrot.slane %v9583_v50, 4 }
 0x3a9   : > { %17177 = vmatprep.subr.msk.bf16.mxu1 %vm369_vm0, %v17387_v24  ;;  %v20388_v24 = vld [vmem:[%s17446_s21 + $0x2e8] sm:$0xff]  }
 0x3ad   : > { %15692 = vmatmul.mubr.msk.bf16.gmra.mrb[44].mxu0 %vm320_vm1, %v19264_v61  ;;  %v17388_v61 = vld [vmem:[%s21223_s1 + $0x20] sm:$0xf] }
 0x3ae   : > { %15695 = vmatprep.mubr.msk.bf16.mxu0 %vm320_vm1, %v19268_v56  ;;  %v21482_v56 = vld [vmem:[#allocation38_spill] sm:$0xff] }
 0x3af   : > { %15990 = vmatmul.mubr.msk.bf16.gmra.mrb[36].mxu1 %vm320_vm1, %v19489_v36  ;;  %v20327_v36 = vld [vmem:[%s17446_s21 + $0x288] sm:$0xff]  }
 0x3b0   : > { %15993 = vmatprep.mubr.msk.bf16.mxu1 %vm320_vm1, %v19493_v63  ;;  %v17295_v63 = vld [vmem:[%s17446_s21 + $0x1f8] sm:$0xff]  }
 0x3b5   : > { %15696 = vmatmul.mubr.msk.bf16.gmra.mrb[48].mxu0 %vm320_vm1, %v19270_v48  ;;  %v17287_v48 = vld [vmem:[%s17446_s21 + $0x1c8] sm:$0xff]  }
 0x3b6   : > { %15699 = vmatprep.mubr.msk.bf16.mxu0 %vm320_vm1, %v19274_v15  ;;  %v21483_v15 = vld [vmem:[#allocation39_spill] sm:$0xff] }
 0x3b7   : > { %15994 = vmatmul.mubr.msk.bf16.gmra.mrb[40].mxu1 %vm320_vm1, %v19521_v7  ;;  %v17298_v7 = vld [vmem:[%s17446_s21 + $0x204] sm:$0xff]  }
 0x3b8   : > { %15997 = vmatprep.mubr.msk.bf16.mxu1 %vm320_vm1, %v19523_v11  ;;  %v20339_v11 = vld [vmem:[%s17446_s21 + $0x294] sm:$0xff]  }
 0x3bd   : > { %15700 = vmatmul.mubr.msk.bf16.gmra.mrb[52].mxu0 %vm320_vm1, %v19314_v8  ;;  %v17290_v8 = vld [vmem:[%s17446_s21 + $0x1d4] sm:$0xff]  }
 0x3be   : > { %15703 = vmatprep.mubr.msk.bf16.mxu0 %vm320_vm1, %v19317_v62  ;;  %v20313_v62 = vld [vmem:[%s17446_s21 + $0x270] sm:$0xff]  }
 0x3bf   : > { %15998 = vmatmul.mubr.msk.bf16.gmra.mrb[44].mxu1 %vm320_vm1, %v19551_v37  ;;  %v20343_v37 = vld [vmem:[%s17446_s21 + $0x2a0] sm:$0xff]  }
 0x3c0   : > { %16001 = vmatprep.mubr.msk.bf16.mxu1 %vm320_vm1, %v19553_v30  ;;  %v17299_v30 = vld [vmem:[%s17446_s21 + $0x210] sm:$0xff]  }
 0x3c5   : > { %15704 = vmatmul.mubr.msk.bf16.gmra.mrb[56].mxu0 %vm320_vm1, %v19360_v47  ;;  %v21484_v47 = vld [vmem:[#allocation3_spill] sm:$0xff] }
 0x3c6   : > { %15707 = vmatprep.mubr.msk.bf16.mxu0 %vm320_vm1, %v19362_v14  ;;  %v17291_v14 = vld [vmem:[%s17446_s21 + $0x1e0] sm:$0xff]  }
 0x3c7   : > { %16002 = vmatmul.mubr.msk.bf16.gmra.mrb[48].mxu1 %vm320_vm1, %v19572_v40  ;;  %v17302_v40 = vld [vmem:[%s17446_s21 + $0x21c] sm:$0xff]  }
 0x3c8   : > { %16005 = vmatprep.mubr.msk.bf16.mxu1 %vm320_vm1, %v19589_v13  ;;  %v20353_v13 = vld [vmem:[%s17446_s21 + $0x2ac] sm:$0xff]  }
 0x3cd   : > { %15708 = vmatmul.mubr.msk.bf16.gmra.mrb[60].mxu0 %vm320_vm1, %v19386_v38  ;;  %v17294_v38 = vld [vmem:[%s17446_s21 + $0x1ec] sm:$0xff]  }
 0x3ce   : > { %15713 = vmatprep.mubr.msk.bf16.mxu0 %vm320_vm1, %v17284_v33  ;;  %v9588_v33 = vrot.slane %v9586_v45, 5  ;;  %v20406_v45 = vld [vmem:[%s17446_s21 + $0x2f4] sm:$0xff]  }
 0x3cf   : > { %16006 = vmatmul.mubr.msk.bf16.gmra.mrb[52].mxu1 %vm320_vm1, %v19611_v20  ;;  %v20357_v20 = vld [vmem:[%s17446_s21 + $0x2b8] sm:$0xff]  }
 0x3d0   : > { %16009 = vmatprep.mubr.msk.bf16.mxu1 %vm320_vm1, %v21480_v29  ;;  %v9610_v29 = vshll.u32 %v13930_v55, 16 }
 0x3d2   : > { %v9612_v18 = vrot.slane %v9610_v29, 5  ;;  %v13938_v29 = vld [vmem:[%s17446_s21 + $0x1d0] sm:$0x1] }
 0x3d3   : > { %v9674_v53 = vshll.u32 %v13938_v29, 16 }
 0x3d5   : > { %15714 = vmatmul.mubr.msk.bf16.vlgmr.msra.gmra.mrb[32].mxu0 %vm320_vm1, %v17285_v57  ;;  %v9607_v57 = vshrl.u32 %v13930_v55, 16  ;;  %v9589_v55 = vor.u32 %v9588_v33, %v9585_v51  ;;  %v20420_v51 = vld [vmem:[%s17446_s21 + $0x300] sm:$0xff]  }
 0x3d6   : > { %15717 = vmatprep.mubr.msk.bf16.mxu0 %vm320_vm1, %v17286_v10  ;;  %15746 = vmatpush3.bf16.msra.mxu0 %v21481_v2  ;;  %v13934_v10 = vld [vmem:[%s17446_s21 + $0x1c0] sm:$0xf] }
 0x3d7   : > { %17169 = vmatprep.subr.msk.bf16.mxu0 %vm369_vm0, %v17388_v61  ;;  %16010 = vmatmul.mubr.msk.bf16.gmra.mrb[56].mxu1 %vm320_vm1, %v21482_v56  ;;  %v13936_v56 = vld [vmem:[%s17446_s21 + $0x1c8] sm:$0xf]  ;;  %v9609_v46 = vrot.slane %v9607_v57, 4 }
 0x3d8   : > { %16013 = vmatprep.mubr.msk.bf16.mxu1 %vm320_vm1, %v21483_v15  ;;  %v20396_v15 = vrot.slane %v9592_v12, 5 }
 0x3dd   : > { %15718 = vmatmul.mubr.msk.bf16.gmra.mrb[36].mxu0 %vm320_vm1, %v17287_v48  ;;  %v13937_v48 = vld [vmem:[%s17446_s21 + $0x1cc] sm:$0xf] }
 0x3de   : > { %15721 = vmatprep.mubr.msk.bf16.mxu0 %vm320_vm1, %v17290_v8  ;;  %v9598_v8 = vrot.slane %v9596_v58, 4  ;;  %v13932_v58 = vld [vmem:[%s17446_s21 + $0x1b8] sm:$0x1] }
 0x3df   : > { %16014 = vmatmul.mubr.msk.bf16.gmra.mrb[60].mxu1 %vm320_vm1, %v21484_v47  ;;  %v9631_v47 = vshrl.u32 %v13933_v31, 16 }
 0x3e0   : > { %16019 = vmatprep.mubr.msk.bf16.mxu1 %vm320_vm1, %v20313_v62  ;;  %v9599_v12 = vor.u32 %v9598_v8, %v20396_v15  ;;  %v9613_v8 = vor.u32 %v9612_v18, %v9609_v46 }
 0x3e2   : > { %v9600_v44 = vrot.slane %v9599_v12, 4 }
 0x3e5   : > { %15722 = vmatmul.mubr.msk.bf16.gmra.mrb[40].mxu0 %vm320_vm1, %v17291_v14  ;;  %v9634_v14 = vshll.u32 %v13933_v31, 16 }
 0x3e6   : > { %15725 = vmatprep.mubr.msk.bf16.mxu0 %vm320_vm1, %v17294_v38  ;;  %v9640_v38 = vshll.u32 %v13934_v10, 16 }
 0x3e7   : > { %16020 = vmatmul.mubr.msk.bf16.vlgmr.msra.gmra.mrb[32].mxu1 %vm320_vm1, %v20323_v28  ;;  %v9636_v31 = vrot.slane %v9634_v14, 5  ;;  %v9626_v14 = vshll.u32 %v13932_v58, 16 }
 0x3e8   : > { %16052 = vmatpush3.bf16.msra.mxu1 %v21481_v2  ;;  %16023 = vmatprep.mubr.msk.bf16.mxu1 %vm320_vm1, %v20327_v36  ;;  %v9616_v2 = vshll.u32 %v13931_v1, 16 }
 0x3e9   : > { %17178 = vmatprep.subr.msk.bf16.mxu1 %vm369_vm0, %v17388_v61  ;;  %v9620_v61 = vshrl.u32 %v13931_v1, 16  ;;  %v9633_v1 = vrot.slane %v9631_v47, 4  ;;  %v9628_v58 = vrot.slane %v9626_v14, 5  ;;  %v13943_v14 = vld [vmem:[%s17446_s21 + $0x1e4] sm:$0xf] }
 0x3eb   : > { %v9622_v50 = vrot.slane %v9620_v61, 4 }
 0x3ed   : > { %15726 = vmatmul.mubr.msk.bf16.gmra.mrb[44].mxu0 %vm320_vm1, %v17295_v63  ;;  %v9644_v63 = vshrl.u32 %v13934_v10, 16  ;;  %v13935_v10 = vld [vmem:[%s17446_s21 + $0x1c4] sm:$0x1] }
 0x3ee   : > { %15729 = vmatprep.mubr.msk.bf16.mxu0 %vm320_vm1, %v17298_v7  ;;  %v17311_v7 = vld [vmem:[%s17446_s21 + $0x258] sm:$0xff]  }
 0x3ef   : > { %16024 = vmatmul.mubr.msk.bf16.gmra.mrb[36].mxu1 %vm320_vm1, %v20339_v11  ;;  %v9646_v57 = vrot.slane %v9644_v63, 4  ;;  %v9590_v63 = vrot.slane %v9589_v55, 4  ;;  %v9614_v55 = vrot.slane %v9613_v8, 4 }
 0x3f0   : > { %16027 = vmatprep.mubr.msk.bf16.mxu1 %vm320_vm1, %v20343_v37 }
 0x3f5   : > { %15730 = vmatmul.mubr.msk.bf16.gmra.mrb[48].mxu0 %vm320_vm1, %v17299_v30  ;;  %v9655_v30 = vshrl.u32 %v13936_v56, 16 }
 0x3f6   : > { %15733 = vmatprep.mubr.msk.bf16.mxu0 %vm320_vm1, %v17302_v40  ;;  %v9658_v40 = vshll.u32 %v13936_v56, 16  ;;  %v20412_v56 = vrot.slane %v9640_v38, 5  ;;  %v13940_v38 = vld [vmem:[%s17446_s21 + $0x1d8] sm:$0xf] }
 0x3f7   : > { %16028 = vmatmul.mubr.msk.bf16.gmra.mrb[40].mxu1 %vm320_vm1, %v20353_v13  ;;  %v9688_v18 = vshll.u32 %v13940_v38, 16 }
 0x3f8   : > { %16031 = vmatprep.mubr.msk.bf16.mxu1 %vm320_vm1, %v20357_v20  ;;  %v9660_v61 = vrot.slane %v9658_v40, 5  ;;  %v9637_v40 = vor.u32 %v9636_v31, %v9633_v1  ;;  %v13941_v1 = vld [vmem:[%s17446_s21 + $0x1dc] sm:$0x1] }
 0x3f9   : > { %v20439_v8 = vrot.slane %v9688_v18, 5 }
 0x3fa   : > { %v9638_v29 = vrot.slane %v9637_v40, 4 }
 0x3fd   : > { %15734 = vmatmul.mubr.msk.bf16.gmra.mrb[52].mxu0 %vm320_vm1, %v17303_v25  ;;  %v9664_v25 = vshll.u32 %v13937_v48, 16 }
 0x3fe   : > { %15737 = vmatprep.mubr.msk.bf16.mxu0 %vm320_vm1, %v17306_v21  ;;  %v9668_v21 = vshrl.u32 %v13937_v48, 16  ;;  %v13939_v48 = vld [vmem:[%s17446_s21 + $0x1d4] sm:$0xf] }
 0x3ff   : > { %16032 = vmatmul.mubr.msk.bf16.gmra.mrb[44].mxu1 %vm320_vm1, %v20367_v3  ;;  %v20417_v34 = vrot.slane %v9664_v25, 5  ;;  %v9647_v25 = vor.u32 %v9646_v57, %v20412_v56  ;;  %v13942_v57 = vld [vmem:[%s17446_s21 + $0x1e0] sm:$0xf] }
 0x400   : > { %16035 = vmatprep.mubr.msk.bf16.mxu1 %vm320_vm1, %v20371_v54  ;;  %v9670_v23 = vrot.slane %v9668_v21, 4  ;;  %v9650_v21 = vshll.u32 %v13935_v10, 16  ;;  %v9703_v40 = vshrl.u32 %v13942_v57, 16  ;;  %v9706_v18 = vshll.u32 %v13942_v57, 16  ;;  %v13946_v57 = vld [vmem:[%s17446_s21 + $0x1f0] sm:$0xf] }
 0x402   : > { %v9671_v46 = vor.u32 %v9670_v23, %v20417_v34  ;;  %v9652_v23 = vrot.slane %v9650_v21, 5 }
 0x405   : > { %15738 = vmatmul.mubr.msk.bf16.gmra.mrb[56].mxu0 %vm320_vm1, %v17307_v22  ;;  %v20403_v22 = vrot.slane %v9616_v2, 5  ;;  %v9657_v2 = vrot.slane %v9655_v30, 4  ;;  %v9682_v30 = vshll.u32 %v13939_v48, 16 }
 0x406   : > { %15741 = vmatprep.mubr.msk.bf16.mxu0 %vm320_vm1, %v17310_v26  ;;  %v13929_v26 = vld [vmem:[%s17446_s21 + $0x1ac] sm:$0x1] }
 0x407   : > { %16036 = vmatmul.mubr.msk.bf16.gmra.mrb[48].mxu1 %vm320_vm1, %v20385_v19  ;;  %v9602_v33 = vshll.u32 %v13929_v26, 16  ;;  %v9623_v47 = vor.u32 %v9622_v50, %v20403_v22  ;;  %v9692_v50 = vshrl.u32 %v13940_v38, 16  ;;  %v9684_v10 = vrot.slane %v9682_v30, 5 }
 0x408   : > { %16039 = vmatprep.mubr.msk.bf16.mxu1 %vm320_vm1, %v20388_v24  ;;  %v9698_v30 = vshll.u32 %v13941_v1, 16  ;;  %v9619_v21 = vsel %vm17492_vm4, %v9614_v55, %v20403_v22  ;;  %v20476_v55 = vrot.slane %v9703_v40, 4 }
 0x409   : > { %v9604_v26 = vrot.slane %v9602_v33, 5  ;;  %v9624_v12 = vrot.slane %v9623_v47, 4  ;;  %v9672_v33 = vrot.slane %v9671_v46, 4  ;;  %v9694_v47 = vrot.slane %v9692_v50, 4 }
 0x40a   : > { %v9643_v46 = vsel %vm17492_vm4, %v9638_v29, %v20412_v56  ;;  %v9712_v50 = vshll.u32 %v13943_v14, 16  ;;  %v20473_v56 = vrot.slane %v9698_v30, 5  ;;  %v13948_v29 = vld [vmem:[%s17446_s21 + $0x1f8] sm:$0xf] }
 0x40d   : > { %15742 = vmatmul.mubr.msk.bf16.gmra.mrb[60].mxu0 %vm320_vm1, %v17311_v7  ;;  %v9679_v7 = vshrl.u32 %v13939_v48, 16  ;;  %v20435_v48 = vld [vmem:[%s17446_s21 + $0x30c] sm:$0xff]  }
 0x40e   : > { %15747 = vmatprep.mubr.msk.bf16.mxu0 %vm320_vm1, %v20313_v62  ;;  %v9661_v62 = vor.u32 %v9660_v61, %v9657_v2  ;;  %v9648_v2 = vrot.slane %v9647_v25, 4  ;;  %v9676_v61 = vrot.slane %v9674_v53, 5  ;;  %v9605_v25 = vsel %vm17492_vm4, %v9600_v44, %v9604_v26  ;;  %v13944_v26 = vld [vmem:[%s17446_s21 + $0x1e8] sm:$0x1] }
 0x40f   : > { %16040 = vmatmul.mubr.msk.bf16.gmra.mrb[52].mxu1 %vm320_vm1, %v20406_v45  ;;  %v9681_v31 = vrot.slane %v9679_v7, 4  ;;  %v21485_v7 = vld [vmem:[#allocation35_spill] sm:$0xff]  ;;  %v9722_v40 = vshll.u32 %v13944_v26, 16 }
 0x410   : > { %16043 = vmatprep.mubr.msk.bf16.mxu1 %vm320_vm1, %v20420_v51  ;;  %v9662_v38 = vrot.slane %v9661_v62, 4  ;;  %v9653_v44 = vsel %vm17492_vm4, %v9648_v2, %v9652_v23  ;;  %v9677_v22 = vsel %vm17492_vm4, %v9672_v33, %v9676_v61  ;;  %v20492_v61 = vrot.slane %v9706_v18, 5  ;;  %v13949_v33 = vld [vmem:[%s17446_s21 + $0x1fc] sm:$0xf] }
 0x411   : > { %v9685_v62 = vor.u32 %v9684_v10, %v9681_v31  ;;  %v9716_v10 = vshrl.u32 %v13943_v14, 16  ;;  %v20488_v2 = vcombine.low %v9643_v46, %v9653_v44  ;;  %v13952_v14 = vld [vmem:[%s17446_s21 + $0x208] sm:$0xf]  ;;  %v9754_v46 = vshll.u32 %v13948_v29, 16 }
 0x412   : > { %v9760_v18 = vshll.u32 %v13949_v33, 16  ;;  %v9788_v26 = vshrl.u32 %v13952_v14, 16 }
 0x413   : > { %v9686_v31 = vrot.slane %v9685_v62, 4  ;;  %v9740_v62 = vshrl.u32 %v13946_v57, 16 }
 0x414   : > { %v20521_v52 = vrot.slane %v9760_v18, 5 }
 0x415   : > { %15748 = vmatmul.mubr.msk.bf16.vlgmr.msra.gmra.mrb[32].mxu0 %vm320_vm1, %v20323_v28  ;;  %v9595_v28 = vsel %vm17492_vm4, %v9590_v63, %v20396_v15  ;;  %v9667_v15 = vsel %vm17492_vm4, %v9662_v38, %v20417_v34  ;;  %v9695_v63 = vor.u32 %v9694_v47, %v20439_v8  ;;  %v20494_v38 = vrot.slane %v9712_v50, 5  ;;  %v13951_v47 = vld [vmem:[%s17446_s21 + $0x204] sm:$0xf] }
 0x416   : > { %15751 = vmatprep.mubr.msk.bf16.mxu0 %vm320_vm1, %v20327_v36  ;;  %15780 = vmatpush3.bf16.msra.mxu0 %v21485_v7  ;;  %v9629_v36 = vsel %vm17492_vm4, %v9624_v12, %v9628_v58  ;;  %v13945_v12 = vld [vmem:[%s17446_s21 + $0x1ec] sm:$0xf]  ;;  %v20480_v58 = vld [vmem:[%s17446_s21 + $0x324] sm:$0xff]   ;;  %v20482_v1 = vcombine.low %v9595_v28, %v9605_v25  ;;  %v20490_v23 = vcombine.low %v9667_v15, %v9677_v22  ;;  %v9764_v50 = vshrl.u32 %v13949_v33, 16 }
 0x417   : > { %16044 = vmatmul.mubr.msk.bf16.gmra.mrb[56].mxu1 %vm320_vm1, %v20435_v48  ;;  %v20484_v34 = vcombine.low %v9619_v21, %v9629_v36  ;;  %v9696_v30 = vrot.slane %v9695_v63, 4  ;;  %v9727_v28 = vshrl.u32 %v13945_v12, 16  ;;  %v9730_v25 = vshll.u32 %v13945_v12, 16 }
 0x418   : > { %16047 = vmatprep.mubr.msk.bf16.mxu1 %vm320_vm1, %v20443_v27  ;;  %v9736_v21 = vshll.u32 %v13946_v57, 16  ;;  %v9751_v36 = vshrl.u32 %v13948_v29, 16  ;;  %v9775_v44 = vshrl.u32 %v13951_v47, 16  ;;  %v9778_v15 = vshll.u32 %v13951_v47, 16  ;;  %v13947_v57 = vld [vmem:[%s17446_s21 + $0x1f4] sm:$0x1] }
 0x419   : > { %v9718_v22 = vrot.slane %v9716_v10, 4  ;;  %v9784_v63 = vshll.u32 %v13952_v14, 16  ;;  %v9709_v12 = vor.u32 %v20492_v61, %v20476_v55  ;;  %v9729_v29 = vrot.slane %v9727_v28, 4  ;;  %v13953_v61 = vld [vmem:[%s17446_s21 + $0x20c] sm:$0x1] }
 0x41a   : > { %v9732_v33 = vrot.slane %v9730_v25, 5  ;;  %v9742_v10 = vrot.slane %v9740_v62, 4  ;;  %v9753_v47 = vrot.slane %v9751_v36, 4  ;;  %v9756_v14 = vrot.slane %v9754_v46, 5 }
 0x41b   : > { %v9780_v55 = vrot.slane %v9778_v15, 5  ;;  %v20524_v28 = vrot.slane %v9784_v63, 5  ;;  %v9790_v25 = vrot.slane %v9788_v26, 4  ;;  %v20529_v62 = vrot.slane %v9722_v40, 5  ;;  %v13957_v63 = vld [vmem:[%s17446_s21 + $0x21c] sm:$0xf] }
 0x41c   : > { %v9808_v36 = vshll.u32 %v13955_v32, 16  ;;  %v9812_v46 = vshrl.u32 %v13955_v32, 16  ;;  %v9746_v15 = vshll.u32 %v13947_v57, 16  ;;  %v9757_v26 = vor.u32 %v9756_v14, %v9753_v47 }
 0x41d   : > { %15752 = vmatmul.mubr.msk.bf16.gmra.mrb[36].mxu0 %vm320_vm1, %v20339_v11  ;;  %v9691_v11 = vsel %vm17492_vm4, %v9686_v31, %v20439_v8  ;;  %v13954_v8 = vld [vmem:[%s17446_s21 + $0x210] sm:$0xf]  ;;  %v20517_v31 = vrot.slane %v9736_v21, 5  ;;  %v9719_v21 = vor.u32 %v9718_v22, %v20494_v38  ;;  %v9794_v22 = vshll.u32 %v13953_v61, 16 }
 0x41e   : > { %15755 = vmatprep.mubr.msk.bf16.mxu0 %vm320_vm1, %v20343_v37  ;;  %v9701_v37 = vsel %vm17492_vm4, %v9696_v30, %v20473_v56  ;;  %v9766_v56 = vrot.slane %v9764_v50, 4  ;;  %v9777_v30 = vrot.slane %v9775_v44, 4  ;;  %v9799_v41 = vshrl.u32 %v13954_v8, 16 }
 0x41f   : > { %16048 = vmatmul.mubr.msk.bf16.gmra.mrb[60].mxu1 %vm320_vm1, %v20480_v58  ;;  %v9802_v59 = vshll.u32 %v13954_v8, 16  ;;  %v20533_v18 = vcombine.low %v9691_v11, %v9701_v37  ;;  %v9733_v50 = vor.u32 %v9732_v33, %v9729_v29  ;;  %v9743_v44 = vor.u32 %v9742_v10, %v20517_v31 }
 0x420   : > { %16053 = vmatprep.mubr.msk.bf16.mxu1 %vm320_vm1, %v20482_v1  ;;  %v9770_v8 = vshll.u32 %v13950_v35, 16  ;;  %v9781_v40 = vor.u32 %v9780_v55, %v9777_v30  ;;  %v9791_v5 = vor.u32 %v9790_v25, %v20524_v28  ;;  %v9801_v32 = vrot.slane %v9799_v41, 4  ;;  %v13958_v30 = vld [vmem:[%s17446_s21 + $0x220] sm:$0xf] }
 0x421   : > { %v9804_v9 = vrot.slane %v9802_v59, 5  ;;  %v20542_v11 = vrot.slane %v9808_v36, 5  ;;  %v9814_v37 = vrot.slane %v9812_v46, 4  ;;  %v9823_v57 = vshrl.u32 %v13957_v63, 16  ;;  %v13959_v46 = vld [vmem:[%s17446_s21 + $0x224] sm:$0x1] }
 0x422   : > { %v9826_v29 = vshll.u32 %v13957_v63, 16  ;;  %v9710_v35 = vrot.slane %v9709_v12, 4  ;;  %v9720_v33 = vrot.slane %v9719_v21, 4  ;;  %v9734_v41 = vrot.slane %v9733_v50, 4 }
 0x423   : > { %v9748_v59 = vrot.slane %v9746_v15, 5  ;;  %v9744_v10 = vrot.slane %v9743_v44, 4  ;;  %v9758_v47 = vrot.slane %v9757_v26, 4  ;;  %v9782_v55 = vrot.slane %v9781_v40, 4  ;;  %v13960_v15 = vld [vmem:[%s17446_s21 + $0x228] sm:$0xf] }
 0x424   : > { %v9792_v61 = vrot.slane %v9791_v5, 4  ;;  %v9796_v25 = vrot.slane %v9794_v22, 5  ;;  %v9815_v12 = vor.u32 %v9814_v37, %v20542_v11  ;;  %v9825_v21 = vrot.slane %v9823_v57, 4 }
 0x425   : > { %15756 = vmatmul.mubr.msk.bf16.gmra.mrb[40].mxu0 %vm320_vm1, %v20353_v13  ;;  %v9767_v13 = vor.u32 %v9766_v56, %v20521_v52  ;;  %v9772_v56 = vrot.slane %v9770_v8, 5  ;;  %v9828_v50 = vrot.slane %v9826_v29, 5  ;;  %v9715_v44 = vsel %vm17492_vm4, %v9710_v35, %v20494_v38 }
 0x426   : > { %15759 = vmatprep.mubr.msk.bf16.mxu0 %vm320_vm1, %v20357_v20  ;;  %v13956_v20 = vld [vmem:[%s17446_s21 + $0x218] sm:$0x1]  ;;  %v9725_v5 = vsel %vm17492_vm4, %v9720_v33, %v20529_v62  ;;  %v9832_v63 = vshll.u32 %v13958_v30, 16  ;;  %v9749_v26 = vsel %vm17492_vm4, %v9744_v10, %v9748_v59  ;;  %v9763_v38 = vsel %vm17492_vm4, %v9758_v47, %v20521_v52 }
 0x427   : > { %16054 = vmatmul.mubr.msk.bf16.vlgmr.msra.gmra.mrb[32].mxu1 %vm320_vm1, %v20484_v34  ;;  %v9768_v14 = vrot.slane %v9767_v13, 4  ;;  %v9818_v36 = vshll.u32 %v13956_v20, 16  ;;  %v9842_v13 = vshll.u32 %v13959_v46, 16  ;;  %v9797_v8 = vsel %vm17492_vm4, %v9792_v61, %v9796_v25  ;;  %v13961_v20 = vld [vmem:[%s17446_s21 + $0x22c] sm:$0xf] }
 0x428   : > { %16086 = vmatpush3.bf16.msra.mxu1 %v21485_v7  ;;  %16057 = vmatprep.mubr.msk.bf16.mxu1 %vm320_vm1, %v20488_v2  ;;  %v9805_v7 = vor.u32 %v9804_v9, %v9801_v32  ;;  %v9739_v9 = vsel %vm17492_vm4, %v9734_v41, %v20517_v31  ;;  %v9847_v31 = vshrl.u32 %v13960_v15, 16  ;;  %v9816_v40 = vrot.slane %v9815_v12, 4  ;;  %v13963_v41 = vld [vmem:[%s17446_s21 + $0x234] sm:$0xf]  ;;  %v13967_v46 = vld [vmem:[%s17446_s21 + $0x244] sm:$0xf] }
 0x429   : > { %v9773_v62 = vsel %vm17492_vm4, %v9768_v14, %v9772_v56  ;;  %v9820_v52 = vrot.slane %v9818_v36, 5  ;;  %v9829_v32 = vor.u32 %v9828_v50, %v9825_v21  ;;  %v9850_v57 = vshll.u32 %v13960_v15, 16  ;;  %v13964_v56 = vld [vmem:[%s17446_s21 + $0x238] sm:$0xf]  ;;  %v13970_v15 = vld [vmem:[%s17446_s21 + $0x250] sm:$0xf] }
 0x42a   : > { %v20578_v22 = vrot.slane %v9805_v7, 4  ;;  %v20585_v29 = vcombine.low %v9715_v44, %v9725_v5  ;;  %v20587_v35 = vcombine.low %v9739_v9, %v9749_v26  ;;  %v20589_v33 = vrot.slane %v9842_v13, 5  ;;  %v13969_v7 = vld [vmem:[%s17446_s21 + $0x24c] sm:$0xf]  ;;  %v13962_v44 = vld [vmem:[%s17446_s21 + $0x230] sm:$0x1] }
 0x42b   : > { %v20592_v59 = vcombine.low %v9763_v38, %v9773_v62  ;;  %v20596_v47 = vrot.slane %v9847_v31, 4  ;;  %v9856_v14 = vshll.u32 %v13961_v20, 16  ;;  %v9821_v61 = vsel %vm17492_vm4, %v9816_v40, %v9820_v52 }
 0x42c   : > { %v20608_v25 = vrot.slane %v9829_v32, 4  ;;  %v9860_v36 = vshrl.u32 %v13961_v20, 16  ;;  %v9852_v21 = vrot.slane %v9850_v57, 5  ;;  %v9874_v50 = vshll.u32 %v13963_v41, 16  ;;  %v13965_v32 = vld [vmem:[%s17446_s21 + $0x23c] sm:$0x1] }
 0x42d   : > { %15760 = vmatmul.mubr.msk.bf16.gmra.mrb[44].mxu0 %vm320_vm1, %v20367_v3  ;;  %v9836_v3 = vshrl.u32 %v13958_v30, 16  ;;  %v13966_v30 = vld [vmem:[%s17446_s21 + $0x240] sm:$0xf]  ;;  %v9880_v5 = vshll.u32 %v13964_v56, 16  ;;  %v9904_v9 = vshll.u32 %v13967_v46, 16  ;;  %v9908_v26 = vshrl.u32 %v13967_v46, 16 }
 0x42e   : > { %15763 = vmatprep.mubr.msk.bf16.mxu0 %vm320_vm1, %v20371_v54  ;;  %v9787_v54 = vsel %vm17492_vm4, %v9782_v55, %v20524_v28  ;;  %v20583_v28 = vrot.slane %v9832_v63, 5  ;;  %v9811_v55 = vsel %vm17492_vm4, %v20578_v22, %v20542_v11  ;;  %v9884_v11 = vshrl.u32 %v13964_v56, 16 }
 0x42f   : > { %16058 = vmatmul.mubr.msk.bf16.gmra.mrb[36].mxu1 %vm320_vm1, %v20490_v23  ;;  %v9838_v37 = vrot.slane %v9836_v3, 4  ;;  %v20594_v10 = vcombine.low %v9787_v54, %v9797_v8  ;;  %v9895_v63 = vshrl.u32 %v13966_v30, 16  ;;  %v9898_v3 = vshll.u32 %v13966_v30, 16 }
 0x430   : > { %16061 = vmatprep.mubr.msk.bf16.mxu1 %vm320_vm1, %v20533_v18  ;;  %v9919_v38 = vshrl.u32 %v13969_v7, 16  ;;  %v9922_v13 = vshll.u32 %v13969_v7, 16  ;;  %v9862_v62 = vrot.slane %v9860_v36, 4  ;;  %v9928_v54 = vshll.u32 %v13970_v15, 16 }
 0x431   : > { %v9839_v12 = vor.u32 %v9838_v37, %v20583_v28  ;;  %v9932_v8 = vshrl.u32 %v13970_v15, 16  ;;  %v9866_v22 = vshll.u32 %v13962_v44, 16  ;;  %v9876_v52 = vrot.slane %v9874_v50, 5  ;;  %v13972_v44 = vld [vmem:[%s17446_s21 + $0x258] sm:$0xf] }
 0x432   : > { %v20624_v20 = vrot.slane %v9880_v5, 5  ;;  %v9886_v37 = vrot.slane %v9884_v11, 4  ;;  %v9897_v57 = vrot.slane %v9895_v63, 4  ;;  %v20627_v56 = vrot.slane %v9904_v9, 5 }
 0x433   : > { %v9840_v31 = vrot.slane %v9839_v12, 4  ;;  %v9910_v30 = vrot.slane %v9908_v26, 4  ;;  %v9921_v36 = vrot.slane %v9919_v38, 4  ;;  %v9924_v46 = vrot.slane %v9922_v13, 5 }
 0x434   : > { %v20631_v7 = vcombine.low %v9811_v55, %v9821_v61  ;;  %v9835_v12 = vsel %vm17492_vm4, %v20608_v25, %v20583_v28  ;;  %v20638_v50 = vrot.slane %v9928_v54, 5  ;;  %v9934_v15 = vrot.slane %v9932_v8, 4  ;;  %v13973_v61 = vld [vmem:[%s17446_s21 + $0x25c] sm:$0xf] }
 0x435   : > { %15764 = vmatmul.mubr.msk.bf16.gmra.mrb[48].mxu0 %vm320_vm1, %v20385_v19  ;;  %v9871_v19 = vshrl.u32 %v13963_v41, 16  ;;  %v9900_v41 = vrot.slane %v9898_v3, 5  ;;  %v9853_v5 = vor.u32 %v9852_v21, %v20596_v47  ;;  %v9890_v55 = vshll.u32 %v13965_v32, 16 }
 0x436   : > { %15767 = vmatprep.mubr.msk.bf16.mxu0 %vm320_vm1, %v20388_v24  ;;  %v20619_v24 = vrot.slane %v9856_v14, 5  ;;  %v13968_v14 = vld [vmem:[%s17446_s21 + $0x248] sm:$0x1]  ;;  %v9887_v3 = vor.u32 %v9886_v37, %v20624_v20  ;;  %v9911_v9 = vor.u32 %v9910_v30, %v20627_v56  ;;  %v9925_v26 = vor.u32 %v9924_v46, %v9921_v36 }
 0x437   : > { %16062 = vmatmul.mubr.msk.bf16.gmra.mrb[40].mxu1 %vm320_vm1, %v20585_v29  ;;  %v9873_v40 = vrot.slane %v9871_v19, 4  ;;  %v13971_v19 = vld [vmem:[%s17446_s21 + $0x254] sm:$0x1]  ;;  %v9901_v28 = vor.u32 %v9900_v41, %v9897_v57  ;;  %v9914_v25 = vshll.u32 %v13968_v14, 16  ;;  %v9943_v13 = vshrl.u32 %v13972_v44, 16 }
 0x438   : > { %16065 = vmatprep.mubr.msk.bf16.mxu1 %vm320_vm1, %v20587_v35  ;;  %v9863_v11 = vor.u32 %v9862_v62, %v20619_v24  ;;  %v9938_v38 = vshll.u32 %v13971_v19, 16  ;;  %v9946_v47 = vshll.u32 %v13972_v44, 16  ;;  %v9952_v21 = vshll.u32 %v13973_v61, 16  ;;  %v14135_v41 = vld [vmem:[%s17446_s21 + $0x270] sm:$0xf] }
 0x439   : > { %v9877_v63 = vor.u32 %v9876_v52, %v9873_v40  ;;  %v9956_v62 = vshrl.u32 %v13973_v61, 16  ;;  %v9845_v54 = vsel %vm17492_vm4, %v9840_v31, %v20589_v33  ;;  %v9854_v8 = vrot.slane %v9853_v5, 4  ;;  %v14136_v19 = vld [vmem:[%s17446_s21 + $0x274] sm:$0xf]  ;;  %v13974_v33 = vld [vmem:[%s17446_s21 + $0x260] sm:$0x1] }
 0x43a   : > { %v9892_v40 = vrot.slane %v9890_v55, 5  ;;  %v9888_v32 = vrot.slane %v9887_v3, 4  ;;  %v9902_v37 = vrot.slane %v9901_v28, 4  ;;  %v9916_v57 = vrot.slane %v9914_v25, 5  ;;  %v14138_v25 = vld [vmem:[%s17446_s21 + $0x27c] sm:$0xf] }
 0x43b   : > { %v9878_v52 = vrot.slane %v9877_v63, 4  ;;  %v9912_v14 = vrot.slane %v9911_v9, 4  ;;  %v9926_v30 = vrot.slane %v9925_v26, 4  ;;  %v9940_v36 = vrot.slane %v9938_v38, 5 }
 0x43c   : > { %v9945_v46 = vrot.slane %v9943_v13, 4  ;;  %v9948_v31 = vrot.slane %v9946_v47, 5  ;;  %v20663_v44 = vrot.slane %v9952_v21, 5  ;;  %v9958_v5 = vrot.slane %v9956_v62, 4 }
 0x43d   : > { %15768 = vmatmul.mubr.msk.bf16.gmra.mrb[52].mxu0 %vm320_vm1, %v20406_v45  ;;  %v20645_v45 = vrot.slane %v9866_v22, 5  ;;  %v9864_v22 = vrot.slane %v9863_v11, 4  ;;  %v20665_v11 = vcombine.low %v9835_v12, %v9845_v54  ;;  %v9859_v55 = vsel %vm17492_vm4, %v9854_v8, %v20619_v24 }
 0x43e   : > { %15771 = vmatprep.mubr.msk.bf16.mxu0 %vm320_vm1, %v20420_v51  ;;  %v9935_v51 = vor.u32 %v9934_v15, %v20638_v50  ;;  %v11816_v61 = vshrl.u32 %v14135_v41, 16  ;;  %v11819_v63 = vshll.u32 %v14135_v41, 16  ;;  %v9883_v3 = vsel %vm17492_vm4, %v9878_v52, %v20624_v20 }
 0x43f   : > { %16066 = vmatmul.mubr.msk.bf16.gmra.mrb[44].mxu1 %vm320_vm1, %v20592_v59  ;;  %v11825_v12 = vshll.u32 %v14136_v19, 16  ;;  %v11829_v28 = vshrl.u32 %v14136_v19, 16  ;;  %v9893_v24 = vsel %vm17492_vm4, %v9888_v32, %v9892_v40  ;;  %v9917_v9 = vsel %vm17492_vm4, %v9912_v14, %v9916_v57 }
 0x440   : > { %16069 = vmatprep.mubr.msk.bf16.mxu1 %vm320_vm1, %v20594_v10  ;;  %v9936_v15 = vrot.slane %v9935_v51, 4  ;;  %v9962_v26 = vshll.u32 %v13974_v33, 16  ;;  %v9931_v20 = vsel %vm17492_vm4, %v9926_v30, %v20638_v50  ;;  %v9949_v13 = vor.u32 %v9948_v31, %v9945_v46  ;;  %v14141_v30 = vld [vmem:[%s17446_s21 + $0x288] sm:$0xf]  ;;  %v14144_v31 = vld [vmem:[%s17446_s21 + $0x294] sm:$0xf] }
 0x441   : > { %v9959_v51 = vor.u32 %v9958_v5, %v20663_v44  ;;  %v11818_v47 = vrot.slane %v11816_v61, 4  ;;  %v11821_v21 = vrot.slane %v11819_v63, 5  ;;  %v11840_v62 = vshrl.u32 %v14138_v25, 16 }
 0x442   : > { %v9941_v38 = vsel %vm17492_vm4, %v9936_v15, %v9940_v36  ;;  %v11843_v54 = vshll.u32 %v14138_v25, 16  ;;  %v20698_v8 = vrot.slane %v11825_v12, 5  ;;  %v20702_v32 = vrot.slane %v9962_v26, 5  ;;  %v14142_v36 = vld [vmem:[%s17446_s21 + $0x28c] sm:$0xf] }
 0x443   : > { %v20710_v41 = vrot.slane %v9949_v13, 4  ;;  %v20716_v46 = vcombine.low %v9931_v20, %v9941_v38  ;;  %v11822_v19 = vor.u32 %v11821_v21, %v11818_v47  ;;  %v11842_v15 = vrot.slane %v11840_v62, 4  ;;  %v14147_v21 = vld [vmem:[%s17446_s21 + $0x2a0] sm:$0xf] }
 0x444   : > { %v11845_v33 = vrot.slane %v11843_v54, 5  ;;  %v9960_v5 = vrot.slane %v9959_v51, 4  ;;  %v11867_v12 = vshll.u32 %v14141_v30, 16  ;;  %v11877_v25 = vshrl.u32 %v14142_v36, 16 }
 0x445   : > { %15772 = vmatmul.mubr.msk.bf16.gmra.mrb[56].mxu0 %vm320_vm1, %v20435_v48  ;;  %v9869_v48 = vsel %vm17492_vm4, %v9864_v22, %v20645_v45  ;;  %v14139_v45 = vld [vmem:[%s17446_s21 + $0x280] sm:$0xf]  ;;  %v11831_v22 = vrot.slane %v11829_v28, 4  ;;  %v11873_v28 = vshll.u32 %v14142_v36, 16  ;;  %v9955_v26 = vsel %vm17492_vm4, %v20710_v41, %v20663_v44  ;;  %v14143_v44 = vld [vmem:[%s17446_s21 + $0x290] sm:$0x1] }
 0x446   : > { %15775 = vmatprep.mubr.msk.bf16.mxu0 %vm320_vm1, %v20443_v27  ;;  %v9907_v27 = vsel %vm17492_vm4, %v9902_v37, %v20627_v56  ;;  %v14137_v56 = vld [vmem:[%s17446_s21 + $0x278] sm:$0x1]  ;;  %v11849_v50 = vshll.u32 %v14139_v45, 16  ;;  %v11853_v40 = vshrl.u32 %v14139_v45, 16  ;;  %v20700_v52 = vcombine.low %v9859_v55, %v9869_v48  ;;  %v14140_v48 = vld [vmem:[%s17446_s21 + $0x284] sm:$0x1] }
 0x447   : > { %16070 = vmatmul.mubr.msk.bf16.gmra.mrb[48].mxu1 %vm320_vm1, %v20631_v7  ;;  %v20706_v37 = vcombine.low %v9883_v3, %v9893_v24  ;;  %v20708_v57 = vcombine.low %v9907_v27, %v9917_v9  ;;  %v11835_v14 = vshll.u32 %v14137_v56, 16  ;;  %v11832_v55 = vor.u32 %v11831_v22, %v20698_v8 }
 0x448   : > { %16073 = vmatprep.mubr.msk.bf16.mxu1 %vm320_vm1, %v20665_v11  ;;  %v20721_v61 = vrot.slane %v11849_v50, 5  ;;  %v11855_v63 = vrot.slane %v11853_v40, 4  ;;  %v11864_v3 = vshrl.u32 %v14141_v30, 16  ;;  %v11891_v24 = vshll.u32 %v14144_v31, 16  ;;  %v14148_v40 = vld [vmem:[%s17446_s21 + $0x2a4] sm:$0xf] }
 0x449   : > { %v11823_v45 = vrot.slane %v11822_v19, 4  ;;  %v11837_v20 = vrot.slane %v11835_v14, 5  ;;  %v11846_v38 = vor.u32 %v11845_v33, %v11842_v15  ;;  %v9965_v13 = vsel %vm17492_vm4, %v9960_v5, %v20702_v32  ;;  %v14146_v15 = vld [vmem:[%s17446_s21 + $0x29c] sm:$0x1] }
 0x44a   : > { %v11833_v51 = vrot.slane %v11832_v55, 4  ;;  %v11856_v56 = vor.u32 %v11855_v63, %v20721_v61  ;;  %v11859_v47 = vshll.u32 %v14140_v48, 16  ;;  %v11866_v62 = vrot.slane %v11864_v3, 4 }
 0x44b   : > { %v11869_v54 = vrot.slane %v11867_v12, 5  ;;  %v20737_v22 = vrot.slane %v11873_v28, 5  ;;  %v11879_v50 = vrot.slane %v11877_v25, 4  ;;  %v11893_v14 = vrot.slane %v11891_v24, 5  ;;  %v14150_v12 = vld [vmem:[%s17446_s21 + $0x2ac] sm:$0xf] }
 0x44c   : > { %v11828_v36 = vsel %vm17492_vm4, %v11823_v45, %v20698_v8  ;;  %v11847_v19 = vrot.slane %v11846_v38, 4  ;;  %v11912_v33 = vshrl.u32 %v14147_v21, 16  ;;  %v11921_v5 = vshll.u32 %v14148_v40, 16  ;;  %v14151_v38 = vld [vmem:[%s17446_s21 + $0x2b0] sm:$0xf] }
 0x44d   : > { %15776 = vmatmul.mubr.msk.bf16.gmra.mrb[60].mxu0 %vm320_vm1, %v20480_v58  ;;  %v14145_v58 = vld [vmem:[%s17446_s21 + $0x298] sm:$0xf]  ;;  %v11925_v55 = vshrl.u32 %v14148_v40, 16  ;;  %v11857_v63 = vrot.slane %v11856_v56, 4  ;;  %v11870_v48 = vor.u32 %v11869_v54, %v11866_v62  ;;  %v11883_v3 = vshll.u32 %v14143_v44, 16 }
 0x44e   : > { %15781 = vmatprep.mubr.msk.bf16.mxu0 %vm320_vm1, %v20482_v1  ;;  %v11888_v1 = vshrl.u32 %v14144_v31, 16  ;;  %v11897_v27 = vshll.u32 %v14145_v58, 16  ;;  %v11901_v9 = vshrl.u32 %v14145_v58, 16  ;;  %v11915_v31 = vshll.u32 %v14147_v21, 16 }
 0x44f   : > { %16074 = vmatmul.mubr.msk.bf16.gmra.mrb[52].mxu1 %vm320_vm1, %v20700_v52  ;;  %v11861_v58 = vrot.slane %v11859_v47, 5  ;;  %v20757_v8 = vcombine.low %v9955_v26, %v9965_v13  ;;  %v11914_v45 = vrot.slane %v11912_v33, 4  ;;  %v11927_v26 = vrot.slane %v11925_v55, 4  ;;  %v14153_v47 = vld [vmem:[%s17446_s21 + $0x2b8] sm:$0xf] }
 0x450   : > { %16077 = vmatprep.mubr.msk.bf16.mxu1 %vm320_vm1, %v20706_v37  ;;  %v11890_v41 = vrot.slane %v11888_v1, 4  ;;  %v20743_v30 = vrot.slane %v11897_v27, 5  ;;  %v11903_v32 = vrot.slane %v11901_v9, 4  ;;  %v11907_v1 = vshll.u32 %v14146_v15, 16  ;;  %v14149_v9 = vld [vmem:[%s17446_s21 + $0x2a8] sm:$0x1] }
 0x451   : > { %v11852_v27 = vsel %vm17492_vm4, %v11847_v19, %v20721_v61  ;;  %v11936_v13 = vshrl.u32 %v14150_v12, 16  ;;  %v11939_v56 = vshll.u32 %v14150_v12, 16  ;;  %v11862_v21 = vsel %vm17492_vm4, %v11857_v63, %v11861_v58  ;;  %v14152_v55 = vld [vmem:[%s17446_s21 + $0x2b4] sm:$0x1] }
 0x452   : > { %v11894_v28 = vor.u32 %v11893_v14, %v11890_v41  ;;  %v11904_v25 = vor.u32 %v11903_v32, %v20743_v30  ;;  %v11871_v62 = vrot.slane %v11870_v48, 4  ;;  %v11909_v44 = vrot.slane %v11907_v1, 5  ;;  %v14154_v14 = vld [vmem:[%s17446_s21 + $0x2bc] sm:$0xf] }
 0x453   : > { %v11931_v41 = vshll.u32 %v14149_v9, 16  ;;  %v11945_v32 = vshll.u32 %v14151_v38, 16  ;;  %v11960_v19 = vshrl.u32 %v14153_v47, 16  ;;  %v11963_v15 = vshll.u32 %v14153_v47, 16  ;;  %v14157_v9 = vld [vmem:[%s17446_s21 + $0x2c8] sm:$0xf] }
 0x454   : > { %v11895_v61 = vrot.slane %v11894_v28, 4  ;;  %v11905_v40 = vrot.slane %v11904_v25, 4  ;;  %v11941_v58 = vrot.slane %v11939_v56, 5  ;;  %v11969_v63 = vshll.u32 %v14154_v14, 16 }
 0x455   : > { %15782 = vmatmul.mubr.msk.bf16.vlgmr.msra.gmra.mrb[32].mxu0 %vm320_vm1, %v20484_v34  ;;  %v11838_v34 = vsel %vm17492_vm4, %v11833_v51, %v11837_v20  ;;  %v11917_v20 = vrot.slane %v11915_v31, 5  ;;  %v20767_v51 = vrot.slane %v11921_v5, 5  ;;  %v11876_v5 = vsel %vm17492_vm4, %v11871_v62, %v20737_v22 }
 0x456   : > { %15785 = vmatprep.mubr.msk.bf16.mxu0 %vm320_vm1, %v20488_v2  ;;  %v11880_v2 = vor.u32 %v11879_v50, %v20737_v22  ;;  %v14183_v24 = vcombine.low %v11828_v36, %v11838_v34  ;;  %v11885_v50 = vrot.slane %v11883_v3, 5  ;;  %v11949_v36 = vshrl.u32 %v14151_v38, 16  ;;  %v14156_v22 = vld [vmem:[%s17446_s21 + $0x2c4] sm:$0xf] }
 0x457   : > { %16078 = vmatmul.mubr.msk.bf16.gmra.mrb[56].mxu1 %vm320_vm1, %v20708_v57  ;;  %v11918_v33 = vor.u32 %v11917_v20, %v11914_v45  ;;  %v11928_v31 = vor.u32 %v11927_v26, %v20767_v51  ;;  %v11938_v34 = vrot.slane %v11936_v13, 4  ;;  %v11973_v48 = vshrl.u32 %v14154_v14, 16  ;;  %v14159_v13 = vld [vmem:[%s17446_s21 + $0x2d0] sm:$0xf] }
 0x458   : > { %16081 = vmatprep.mubr.msk.bf16.mxu1 %vm320_vm1, %v20716_v46  ;;  %v11881_v54 = vrot.slane %v11880_v2, 4  ;;  %v11900_v2 = vsel %vm17492_vm4, %v11895_v61, %v20743_v30  ;;  %v11910_v3 = vsel %vm17492_vm4, %v11905_v40, %v11909_v44  ;;  %v11933_v12 = vrot.slane %v11931_v41, 5  ;;  %v14155_v30 = vld [vmem:[%s17446_s21 + $0x2c0] sm:$0x1]  ;;  %v14160_v41 = vld [vmem:[%s17446_s21 + $0x2d4] sm:$0xf] }
 0x459   : > { %v20793_v28 = vrot.slane %v11945_v32, 5  ;;  %v11951_v25 = vrot.slane %v11949_v36, 4  ;;  %v11962_v1 = vrot.slane %v11960_v19, 4  ;;  %v11919_v45 = vrot.slane %v11918_v33, 4 }
 0x45a   : > { %v11929_v20 = vrot.slane %v11928_v31, 4  ;;  %v11942_v38 = vor.u32 %v11941_v58, %v11938_v34  ;;  %v11955_v26 = vshll.u32 %v14152_v55, 16  ;;  %v20798_v56 = vrot.slane %v11969_v63, 5  ;;  %v14162_v58 = vld [vmem:[%s17446_s21 + $0x2dc] sm:$0xf] }
 0x45b   : > { %v11975_v47 = vrot.slane %v11973_v48, 4  ;;  %v11987_v62 = vshll.u32 %v14156_v22, 16  ;;  %v11997_v61 = vshrl.u32 %v14157_v9, 16  ;;  %v11952_v40 = vor.u32 %v11951_v25, %v20793_v28  ;;  %v14158_v55 = vld [vmem:[%s17446_s21 + $0x2cc] sm:$0x1] }
 0x45c   : > { %v12008_v14 = vshrl.u32 %v14159_v13, 16  ;;  %v12011_v32 = vshll.u32 %v14159_v13, 16  ;;  %v20809_v36 = vrot.slane %v11942_v38, 4  ;;  %v20811_v19 = vrot.slane %v11955_v26, 5 }
 0x45d   : > { %15786 = vmatmul.mubr.msk.bf16.gmra.mrb[36].mxu0 %vm320_vm1, %v20490_v23  ;;  %v14184_v23 = vcombine.low %v11852_v27, %v11862_v21  ;;  %v11965_v27 = vrot.slane %v11963_v15, 5  ;;  %v11984_v21 = vshrl.u32 %v14156_v22, 16  ;;  %v11979_v15 = vshll.u32 %v14155_v30, 16  ;;  %v14161_v30 = vld [vmem:[%s17446_s21 + $0x2d8] sm:$0x1] }
 0x45e   : > { %15789 = vmatprep.mubr.msk.bf16.mxu0 %vm320_vm1, %v20533_v18  ;;  %v11886_v18 = vsel %vm17492_vm4, %v11881_v54, %v11885_v50  ;;  %v14186_v54 = vcombine.low %v11900_v2, %v11910_v3  ;;  %v11993_v50 = vshll.u32 %v14157_v9, 16  ;;  %v11934_v33 = vsel %vm17492_vm4, %v11929_v20, %v11933_v12 }
 0x45f   : > { %16082 = vmatmul.mubr.msk.bf16.gmra.mrb[60].mxu1 %vm320_vm1, %v20757_v8  ;;  %v11966_v44 = vor.u32 %v11965_v27, %v11962_v1  ;;  %v11986_v31 = vrot.slane %v11984_v21, 4  ;;  %v11989_v34 = vrot.slane %v11987_v62, 5  ;;  %v12017_v48 = vshll.u32 %v14160_v41, 16 }
 0x460   : > { %16087 = vmatprep.mubr.msk.bf16.mxu1 %vm320_vm1, %v14183_v24  ;;  %v14185_v24 = vcombine.low %v11876_v5, %v11886_v18  ;;  %v14163_v5 = vld [vmem:[%s17446_s21 + $0x2e0] sm:$0xf]  ;;  %v20820_v63 = vrot.slane %v11993_v50, 5  ;;  %v12021_v18 = vshrl.u32 %v14160_v41, 16  ;;  %v11953_v2 = vrot.slane %v11952_v40, 4 }
 0x461   : > { %v11967_v3 = vrot.slane %v11966_v44, 4  ;;  %v12010_v12 = vrot.slane %v12008_v14, 4  ;;  %v12013_v22 = vrot.slane %v12011_v32, 5  ;;  %v12032_v25 = vshrl.u32 %v14162_v58, 16  ;;  %v14166_v32 = vld [vmem:[%s17446_s21 + $0x2ec] sm:$0xf] }
 0x462   : > { %v12035_v1 = vshll.u32 %v14162_v58, 16  ;;  %v12041_v27 = vshll.u32 %v14163_v5, 16  ;;  %v12045_v9 = vshrl.u32 %v14163_v5, 16  ;;  %v11990_v20 = vor.u32 %v11989_v34, %v11986_v31 }
 0x463   : > { %v12003_v38 = vshll.u32 %v14158_v55, 16  ;;  %v12023_v21 = vrot.slane %v12021_v18, 4  ;;  %v11948_v62 = vsel %vm17492_vm4, %v20809_v36, %v20793_v28  ;;  %v12014_v50 = vor.u32 %v12013_v22, %v12010_v12  ;;  %v14167_v12 = vld [vmem:[%s17446_s21 + $0x2f0] sm:$0x1]  ;;  %v14169_v22 = vld [vmem:[%s17446_s21 + $0x2f8] sm:$0xf] }
 0x464   : > { %v12034_v40 = vrot.slane %v12032_v25, 4  ;;  %v12037_v44 = vrot.slane %v12035_v1, 5  ;;  %v20842_v41 = vrot.slane %v12041_v27, 5  ;;  %v12047_v14 = vrot.slane %v12045_v9, 4 }
 0x465   : > { %15790 = vmatmul.mubr.msk.bf16.gmra.mrb[40].mxu0 %vm320_vm1, %v20585_v29  ;;  %v11924_v29 = vsel %vm17492_vm4, %v11919_v45, %v20767_v51  ;;  %v11999_v51 = vrot.slane %v11997_v61, 4  ;;  %v14165_v61 = vld [vmem:[%s17446_s21 + $0x2e8] sm:$0xf]  ;;  %v12005_v36 = vrot.slane %v12003_v38, 5  ;;  %v12065_v31 = vshll.u32 %v14166_v32, 16 }
 0x466   : > { %15793 = vmatprep.mubr.msk.bf16.mxu0 %vm320_vm1, %v20587_v35  ;;  %v11976_v35 = vor.u32 %v11975_v47, %v20798_v56  ;;  %v14187_v26 = vcombine.low %v11924_v29, %v11934_v33  ;;  %v20827_v47 = vrot.slane %v12017_v48, 5  ;;  %v11991_v29 = vrot.slane %v11990_v20, 4  ;;  %v14168_v48 = vld [vmem:[%s17446_s21 + $0x2f4] sm:$0xf] }
 0x467   : > { %16088 = vmatmul.mubr.msk.bf16.vlgmr.msra.gmra.mrb[32].mxu1 %vm320_vm1, %v14184_v23  ;;  %v11981_v23 = vrot.slane %v11979_v15, 5  ;;  %v12000_v13 = vor.u32 %v11999_v51, %v20820_v63  ;;  %v12056_v33 = vshrl.u32 %v14165_v61, 16  ;;  %v12069_v34 = vshrl.u32 %v14166_v32, 16 }
 0x468   : > { %16091 = vmatprep.mubr.msk.bf16.mxu1 %vm320_vm1, %v14185_v24  ;;  %v11977_v45 = vrot.slane %v11976_v35, 4  ;;  %v11958_v24 = vsel %vm17492_vm4, %v11953_v2, %v20811_v19  ;;  %v12027_v19 = vshll.u32 %v14161_v30, 16  ;;  %v12059_v35 = vshll.u32 %v14165_v61, 16 }
 0x469   : > { %v12001_v15 = vrot.slane %v12000_v13, 4  ;;  %v12015_v58 = vrot.slane %v12014_v50, 4  ;;  %v12038_v5 = vor.u32 %v12037_v44, %v12034_v40  ;;  %v12048_v55 = vor.u32 %v12047_v14, %v20842_v41 }
 0x46a   : > { %v11982_v28 = vsel %vm17492_vm4, %v11977_v45, %v11981_v23  ;;  %v14188_v18 = vcombine.low %v11948_v62, %v11958_v24  ;;  %v11996_v2 = vsel %vm17492_vm4, %v11991_v29, %v20820_v63  ;;  %v12058_v27 = vrot.slane %v12056_v33, 4  ;;  %v14171_v45 = vld [vmem:[%s17446_s21 + $0x300] sm:$0xf] }
 0x46b   : > { %v12006_v25 = vsel %vm17492_vm4, %v12001_v15, %v12005_v36  ;;  %v12061_v9 = vrot.slane %v12059_v35, 5  ;;  %v20865_v23 = vrot.slane %v12065_v31, 5  ;;  %v12071_v20 = vrot.slane %v12069_v34, 4  ;;  %v14174_v31 = vld [vmem:[%s17446_s21 + $0x30c] sm:$0xf] }
 0x46c   : > { %v12080_v63 = vshrl.u32 %v14168_v48, 16  ;;  %v12083_v38 = vshll.u32 %v14168_v48, 16  ;;  %v12039_v13 = vrot.slane %v12038_v5, 4  ;;  %v12049_v30 = vrot.slane %v12048_v55, 4  ;;  %v14173_v5 = vld [vmem:[%s17446_s21 + $0x308] sm:$0x1] }
 0x46d   : > { %15794 = vmatmul.mubr.msk.bf16.gmra.mrb[44].mxu0 %vm320_vm1, %v20592_v59  ;;  %v11972_v59 = vsel %vm17492_vm4, %v11967_v3, %v20798_v56  ;;  %v12024_v56 = vor.u32 %v12023_v21, %v20827_v47  ;;  %v12029_v3 = vrot.slane %v12027_v19, 5  ;;  %v12089_v62 = vshll.u32 %v14169_v22, 16 }
 0x46e   : > { %15797 = vmatprep.mubr.msk.bf16.mxu0 %vm320_vm1, %v20594_v10  ;;  %v14164_v10 = vld [vmem:[%s17446_s21 + $0x2e4] sm:$0x1]  ;;  %v12093_v24 = vshrl.u32 %v14169_v22, 16  ;;  %v12107_v50 = vshll.u32 %v14171_v45, 16  ;;  %v12075_v61 = vshll.u32 %v14167_v12, 16  ;;  %v12072_v14 = vor.u32 %v12071_v20, %v20865_v23 }
 0x46f   : > { %16092 = vmatmul.mubr.msk.bf16.gmra.mrb[36].mxu1 %vm320_vm1, %v14186_v54  ;;  %v12051_v51 = vshll.u32 %v14164_v10, 16  ;;  %v14189_v54 = vcombine.low %v11972_v59, %v11982_v28  ;;  %v12025_v1 = vrot.slane %v12024_v56, 4  ;;  %v12104_v59 = vshrl.u32 %v14171_v45, 16  ;;  %v14170_v10 = vld [vmem:[%s17446_s21 + $0x2fc] sm:$0x1] }
 0x470   : > { %16095 = vmatprep.mubr.msk.bf16.mxu1 %vm320_vm1, %v14187_v26  ;;  %v14172_v26 = vld [vmem:[%s17446_s21 + $0x304] sm:$0xf]  ;;  %v12082_v32 = vrot.slane %v12080_v63, 4  ;;  %v12085_v28 = vrot.slane %v12083_v38, 5  ;;  %v14190_v29 = vcombine.low %v11996_v2, %v12006_v25  ;;  %v12044_v36 = vsel %vm17492_vm4, %v12039_v13, %v20842_v41  ;;  %v14175_v2 = vld [vmem:[%s17446_s21 + $0x310] sm:$0xf] }
 0x471   : > { %v12053_v21 = vrot.slane %v12051_v51, 5  ;;  %v12113_v40 = vshll.u32 %v14172_v26, 16  ;;  %v12117_v44 = vshrl.u32 %v14172_v26, 16  ;;  %v20882_v15 = vrot.slane %v12089_v62, 5 }
 0x472   : > { %v12095_v56 = vrot.slane %v12093_v24, 4  ;;  %v12106_v33 = vrot.slane %v12104_v59, 4  ;;  %v12109_v35 = vrot.slane %v12107_v50, 5  ;;  %v12073_v48 = vrot.slane %v12072_v14, 4 }
 0x473   : > { %v12054_v19 = vsel %vm17492_vm4, %v12049_v30, %v12053_v21  ;;  %v20888_v41 = vrot.slane %v12113_v40, 5  ;;  %v12119_v55 = vrot.slane %v12117_v44, 4  ;;  %v12123_v22 = vshll.u32 %v14173_v5, 16 }
 0x474   : > { %v12096_v12 = vor.u32 %v12095_v56, %v20882_v15  ;;  %v12128_v25 = vshrl.u32 %v14174_v31, 16  ;;  %v12131_v45 = vshll.u32 %v14174_v31, 16  ;;  %v12137_v20 = vshll.u32 %v14175_v2, 16 }
 0x475   : > { %15798 = vmatmul.mubr.msk.bf16.gmra.mrb[48].mxu0 %vm320_vm1, %v20631_v7  ;;  %v12020_v7 = vsel %vm17492_vm4, %v12015_v58, %v20827_v47  ;;  %v12062_v47 = vor.u32 %v12061_v9, %v12058_v27  ;;  %v12077_v58 = vrot.slane %v12075_v61, 5  ;;  %v14178_v27 = vld [vmem:[%s17446_s21 + $0x31c] sm:$0xf]  ;;  %v12120_v9 = vor.u32 %v12119_v55, %v20888_v41 }
 0x476   : > { %15801 = vmatprep.mubr.msk.bf16.mxu0 %vm320_vm1, %v20665_v11  ;;  %v12030_v11 = vsel %vm17492_vm4, %v12025_v1, %v12029_v3  ;;  %v14192_v3 = vcombine.low %v12044_v36, %v12054_v19  ;;  %v14177_v1 = vld [vmem:[%s17446_s21 + $0x318] sm:$0xf]  ;;  %v12161_v21 = vshll.u32 %v14178_v27, 16  ;;  %v12165_v62 = vshrl.u32 %v14178_v27, 16 }
 0x477   : > { %16096 = vmatmul.mubr.msk.bf16.gmra.mrb[40].mxu1 %vm320_vm1, %v14188_v18  ;;  %v14191_v34 = vcombine.low %v12020_v7, %v12030_v11  ;;  %v12063_v51 = vrot.slane %v12062_v47, 4  ;;  %v12086_v18 = vor.u32 %v12085_v28, %v12082_v32  ;;  %v12078_v38 = vsel %vm17492_vm4, %v12073_v48, %v12077_v58  ;;  %v14180_v32 = vld [vmem:[%s17446_s21 + $0x324] sm:$0xf] }
 0x478   : > { %16099 = vmatprep.mubr.msk.bf16.mxu1 %vm320_vm1, %v14189_v54  ;;  %v12099_v54 = vshll.u32 %v14170_v10, 16  ;;  %v12152_v13 = vshrl.u32 %v14177_v1, 16  ;;  %v12155_v30 = vshll.u32 %v14177_v1, 16  ;;  %v12097_v24 = vrot.slane %v12096_v12, 4  ;;  %v14181_v10 = vld [vmem:[%s17446_s21 + $0x328] sm:$0xf] }
 0x479   : > { %v12068_v63 = vsel %vm17492_vm4, %v12063_v51, %v20865_v23  ;;  %v12087_v26 = vrot.slane %v12086_v18, 4  ;;  %v12125_v50 = vrot.slane %v12123_v22, 5  ;;  %v12130_v11 = vrot.slane %v12128_v25, 4  ;;  %v14176_v23 = vld [vmem:[%s17446_s21 + $0x314] sm:$0x1] }
 0x47a   : > { %v12101_v7 = vrot.slane %v12099_v54, 5  ;;  %v12121_v61 = vrot.slane %v12120_v9, 4  ;;  %v12133_v40 = vrot.slane %v12131_v45, 5  ;;  %v12139_v44 = vrot.slane %v12137_v20, 5 }
 0x47b   : > { %v14193_v14 = vcombine.low %v12068_v63, %v12078_v38  ;;  %v12154_v28 = vrot.slane %v12152_v13, 4  ;;  %v12163_v36 = vrot.slane %v12161_v21, 5  ;;  %v12167_v19 = vrot.slane %v12165_v62, 4 }
 0x47c   : > { %v12102_v56 = vsel %vm17492_vm4, %v12097_v24, %v12101_v7  ;;  %v12126_v31 = vsel %vm17492_vm4, %v12121_v61, %v12125_v50  ;;  %v12176_v5 = vshrl.u32 %v14180_v32, 16  ;;  %v12185_v55 = vshll.u32 %v14181_v10, 16 }
 0x47d   : > { %15802 = vmatmul.mubr.msk.bf16.gmra.mrb[52].mxu0 %vm320_vm1, %v20700_v52  ;;  %v12110_v52 = vor.u32 %v12109_v35, %v12106_v33  ;;  %v12147_v33 = vshll.u32 %v14176_v23, 16  ;;  %v14179_v35 = vld [vmem:[%s17446_s21 + $0x320] sm:$0x1]  ;;  %v12189_v51 = vshrl.u32 %v14181_v10, 16  ;;  %v12168_v18 = vor.u32 %v12167_v19, %v12163_v36 }
 0x47e   : > { %15805 = vmatprep.mubr.msk.bf16.mxu0 %vm320_vm1, %v20706_v37  ;;  %v12141_v37 = vshrl.u32 %v14175_v2, 16  ;;  %v12171_v54 = vshll.u32 %v14179_v35, 16  ;;  %v12178_v22 = vrot.slane %v12176_v5, 4  ;;  %v12187_v1 = vrot.slane %v12185_v55, 5  ;;  %v21492_v35 = vld [vmem:[#allocation12_spill] sm:$0xff]  ;;  %v21499_v55 = vld [vmem:[#allocation21_spill] sm:$0xff] }
 0x47f   : > { %16100 = vmatmul.mubr.msk.bf16.gmra.mrb[44].mxu1 %vm320_vm1, %v14190_v29  ;;  %v12111_v59 = vrot.slane %v12110_v52, 4  ;;  %v12157_v29 = vrot.slane %v12155_v30, 5  ;;  %v12149_v52 = vrot.slane %v12147_v33, 5  ;;  %v12191_v27 = vrot.slane %v12189_v51, 4 }
 0x480   : > { %16103 = vmatprep.mubr.msk.bf16.mxu1 %vm320_vm1, %v14191_v34  ;;  %v12143_v47 = vrot.slane %v12141_v37, 4  ;;  %v12134_v34 = vor.u32 %v12133_v40, %v12130_v11  ;;  %v12169_v45 = vrot.slane %v12168_v18, 4  ;;  %v12173_v20 = vrot.slane %v12171_v54, 5  ;;  %v14182_v37 = vld [vmem:[%s17446_s21 + $0x32c] sm:$0x1] }
 0x481   : > { %v12158_v48 = vor.u32 %v12157_v29, %v12154_v28  ;;  %v12195_v7 = vshll.u32 %v14182_v37, 16  ;;  %v21490_v10 = vmax.f32 %v19868_v0, %v19919_v4  ;;  %v21510_v37 = vld [vmem:[#allocation16_spill] sm:$0xff] }
 0x482   : > { %v12144_v58 = vor.u32 %v12143_v47, %v12139_v44  ;;  %v12174_v30 = vsel %vm17492_vm4, %v12169_v45, %v12173_v20  ;;  %v20986_v20 = vld [vmem:[%s21224_s2] ss:$0 sm:$0xff] }
 0x483   : > { %v12159_v9 = vrot.slane %v12158_v48, 4  ;;  %v12197_v50 = vrot.slane %v12195_v7, 5  ;;  %v21501_v48 = vld [vmem:[#allocation10_spill] sm:$0xff] }
 0x484   : > { %v12145_v12 = vrot.slane %v12144_v58, 4  ;;  %v21496_v58 = vld [vmem:[#allocation20_spill] sm:$0xff] }
 0x485   : > { %15806 = vmatmul.mubr.msk.bf16.gmra.mrb[56].mxu0 %vm320_vm1, %v20708_v57  ;;  %v12092_v57 = vsel %vm17492_vm4, %v12087_v26, %v20882_v15  ;;  %v12179_v15 = vshll.u32 %v14180_v32, 16  ;;  %v12192_v26 = vor.u32 %v12191_v27, %v12187_v1  ;;  %v12164_v13 = vsel %vm17492_vm4, %v12159_v9, %v12163_v36 }
 0x486   : > { %15809 = vmatprep.mubr.msk.bf16.mxu0 %vm320_vm1, %v20716_v46  ;;  %v12116_v46 = vsel %vm17492_vm4, %v12111_v59, %v20888_v41  ;;  %v14194_v2 = vcombine.low %v12092_v57, %v12102_v56  ;;  %v14197_v62 = vcombine.low %v12164_v13, %v12174_v30  ;;  %v21488_v32 = vmax.f32 %v19861_v17, %v19907_v6 }
 0x487   : > { %16104 = vmatmul.mubr.msk.bf16.gmra.mrb[48].mxu1 %vm320_vm1, %v14192_v3  ;;  %v14195_v41 = vcombine.low %v12116_v46, %v12126_v31  ;;  %v12135_v3 = vrot.slane %v12134_v34, 4  ;;  %v12181_v25 = vrot.slane %v12179_v15, 5  ;;  %v12193_v59 = vrot.slane %v12192_v26, 4  ;;  %v21493_v46 = vld [vmem:[#allocation19_spill] sm:$0xff]  ;;  %v21495_v34 = vld [vmem:[#allocation13_spill] sm:$0xff]  ;;  %v21498_v15 = vld [vmem:[#allocation14_spill] sm:$0xff] }
 0x488   : > { %16107 = vmatprep.mubr.msk.bf16.mxu1 %vm320_vm1, %v14193_v14  ;;  %v21489_v36 = vmax.f32 %v19866_v39, %v19913_v42  ;;  %v21494_v17 = vmax.f32 %v21492_v35, %v21493_v46  ;;  %v21497_v39 = vmax.f32 %v21495_v34, %v21496_v58  ;;  %v21500_v0 = vmax.f32 %v21498_v15, %v21499_v55  ;;  %v21520_v35 = vld [vmem:[#allocation45_spill] sm:$0xff]  ;;  %v21523_v15 = vld [vmem:[#allocation7_spill] sm:$0xff] }
 0x489   : > { %v12140_v63 = vsel %vm17492_vm4, %v12135_v3, %v12139_v44  ;;  %v12182_v38 = vor.u32 %v12181_v25, %v12178_v22  ;;  %v12198_v61 = vsel %vm17492_vm4, %v12193_v59, %v12197_v50  ;;  %v21487_v44 = vmax.f32 %v19857_v49, %v19903_v60  ;;  %v21507_v22 = vld [vmem:[#allocation4_spill] sm:$0xff] }
 0x48a   : > { %v21491_v49 = vmax.f32 %v19875_v43, %v19935_v16  ;;  %v21502_v43 = vld [vmem:[#allocation26_spill] sm:$0xff]  ;;  %v21508_v25 = vld [vmem:[#allocation28_spill] sm:$0xff] }
 0x48b   : > { %v12183_v24 = vrot.slane %v12182_v38, 4  ;;  %v21503_v16 = vmax.f32 %v21501_v48, %v21502_v43 }
 0x48d   : > { %15810 = vmatmul.mubr.msk.bf16.gmra.mrb[60].mxu0 %vm320_vm1, %v20757_v8  ;;  %v12150_v8 = vsel %vm17492_vm4, %v12145_v12, %v12149_v52  ;;  %v12188_v11 = vsel %vm17492_vm4, %v12183_v24, %v12187_v1  ;;  %v21509_v1 = vmax.f32 %v21507_v22, %v21508_v25 }
 0x48e   : > { %v14196_v21 = vcombine.low %v12140_v63, %v12150_v8  ;;  %v14198_v23 = vcombine.low %v12188_v11, %v12198_v61  ;;  %v21511_v63 = vld [vmem:[#allocation40_spill] sm:$0xff] }
 0x48f   : > { %16108 = vmatmul.mubr.msk.bf16.gmra.mrb[52].mxu1 %vm320_vm1, %v14194_v2  ;;  %v21504_v2 = vld [vmem:[#allocation15_spill] sm:$0xff]  ;;  %v21512_v8 = vmax.f32 %v21510_v37, %v21511_v63  ;;  %v21526_v37 = vld [vmem:[#allocation48_spill] sm:$0xff] }
 0x490   : > { %16111 = vmatprep.mubr.msk.bf16.mxu1 %vm320_vm1, %v14195_v41  ;;  %v21505_v41 = vld [vmem:[#allocation27_spill] sm:$0xff] }
 0x491   : > { %v21506_v3 = vmax.f32 %v21504_v2, %v21505_v41 }
 0x497   : > { %16112 = vmatmul.mubr.msk.bf16.gmra.mrb[56].mxu1 %vm320_vm1, %v14196_v21 }
 0x498   : > { %16115 = vmatprep.mubr.msk.bf16.mxu1 %vm320_vm1, %v14197_v62 }
 0x49f   : > { %16116 = vmatmul.mubr.msk.bf16.gmra.mrb[60].mxu1 %vm320_vm1, %v14198_v23 }
 0x528   : > { %v15783_v40 = vpop.f32.mrb[32].mxu0 }
 0x529   : > { %v10257_v47 = vmax.f32 %v21487_v44, %v15783_v40  ;;  %v10096_v14 = vpop.f32.mrb[33].mxu0  ;;  %v21513_v40 = vld [vmem:[#allocation11_spill] sm:$0xff] }
 0x52a   : > { %v10255_v28 = vmax.f32 %v21488_v32, %v10096_v14  ;;  %v15784_v29 = vpop.f32.mrb[34].mxu0  ;;  %v21514_v44 = vld [vmem:[#allocation43_spill] sm:$0xff] }
 0x52b   : > { %v10258_v19 = vmax.f32 %v21489_v36, %v15784_v29  ;;  %v10099_v53 = vpop.f32.mrb[35].mxu0  ;;  %v21515_v14 = vmax.f32 %v21513_v40, %v21514_v44  ;;  %v21516_v36 = vld [vmem:[#allocation9_spill] sm:$0xff] }
 0x52c   : > { %v10256_v57 = vmax.f32 %v21490_v10, %v10099_v53 }
 0x530   : > { %v15787_v56 = vpop.f32.mrb[36].mxu0 }
 0x531   : > { %v10261_v60 = vmax.f32 %v21491_v49, %v15787_v56  ;;  %v10112_v33 = vpop.f32.mrb[37].mxu0 }
 0x532   : > { %v10259_v6 = vmax.f32 %v21494_v17, %v10112_v33  ;;  %v15788_v31 = vpop.f32.mrb[38].mxu0  ;;  %v21519_v33 = vld [vmem:[#allocation6_spill] sm:$0xff] }
 0x533   : > { %v10262_v42 = vmax.f32 %v21497_v39, %v15788_v31  ;;  %v10115_v5 = vpop.f32.mrb[39].mxu0  ;;  %v21521_v46 = vmax.f32 %v21519_v33, %v21520_v35 }
 0x534   : > { %v10260_v4 = vmax.f32 %v21500_v0, %v10115_v5  ;;  %v21522_v5 = vld [vmem:[#allocation18_spill] sm:$0xff] }
 0x535   : > { %v21524_v55 = vmax.f32 %v21522_v5, %v21523_v15  ;;  %v21538_v15 = vld [vmem:[#allocation55_spill] sm:$0xff] }
 0x538   : > { %v15791_v51 = vpop.f32.mrb[40].mxu0 }
 0x539   : > { %v20971_v18 = vmax.f32 %v21503_v16, %v15791_v51  ;;  %v10128_v54 = vpop.f32.mrb[41].mxu0 }
 0x53a   : > { %v20976_v12 = vmax.f32 %v21506_v3, %v10128_v54  ;;  %v15792_v52 = vpop.f32.mrb[42].mxu0  ;;  %v16089_v45 = vpop.f32.mrb[32].mxu1 }
 0x53b   : > { %v20981_v27 = vmax.f32 %v21509_v1, %v15792_v52  ;;  %v10131_v9 = vpop.f32.mrb[43].mxu0  ;;  %v12490_v26 = vmax.f32 %v10257_v47, %v16089_v45  ;;  %v12329_v7 = vpop.f32.mrb[33].mxu1  ;;  %v21525_v45 = vld [vmem:[#allocation22_spill] sm:$0xff] }
 0x53c   : > { %v20991_v38 = vmax.f32 %v21512_v8, %v10131_v9  ;;  %v12488_v13 = vmax.f32 %v10255_v28, %v12329_v7  ;;  %v16090_v30 = vpop.f32.mrb[34].mxu1  ;;  %v21528_v7 = vld [vmem:[#allocation23_spill] sm:$0xff] }
 0x53d   : > { %v12529_v21 = vadd.f32 %v20986_v20, %v12490_v26  ;;  %v12491_v62 = vmax.f32 %v10258_v19, %v16090_v30  ;;  %v12332_v24 = vpop.f32.mrb[35].mxu1  ;;  %v21517_v19 = vld [vmem:[#allocation44_spill] sm:$0xff] }
 0x53e   : > { %v12527_v59 = vadd.f32 %v20986_v20, %v12488_v13  ;;  %v12489_v50 = vmax.f32 %v10256_v57, %v12332_v24  ;;  %v21518_v53 = vmax.f32 %v21516_v36, %v21517_v19  ;;  %v21529_v13 = vld [vmem:[#allocation49_spill] sm:$0xff] }
 0x53f   : > { %v12561_v61 = vmax.f32 %v12529_v21, 0.0  ;;  %v12530_v23 = vadd.f32 %v20986_v20, %v12491_v62  ;;  %v21530_v30 = vmax.f32 %v21528_v7, %v21529_v13 }
 0x540   : > { %v15795_v11 = vpop.f32.mrb[44].mxu0  ;;  %v12559_v28 = vmax.f32 %v12527_v59, 0.0  ;;  %v12528_v29 = vadd.f32 %v20986_v20, %v12489_v50  ;;  %v21531_v59 = vld [vmem:[#allocation24_spill] sm:$0xff]  ;;  %v21532_v50 = vld [vmem:[#allocation50_spill] sm:$0xff] }
 0x541   : > { %v21000_v32 = vmax.f32 %v21515_v14, %v15795_v11  ;;  %v10144_v47 = vpop.f32.mrb[45].mxu0  ;;  %v14253_v56 = vpack.c.bf16 %v12561_v61, %v12561_v61  ;;  %v12562_v49 = vmax.f32 %v12530_v23, 0.0  ;;  %v21533_v11 = vmax.f32 %v21531_v59, %v21532_v50 }
 0x542   : > { %v21011_v10 = vmax.f32 %v21518_v53, %v10144_v47  ;;  %v15796_v57 = vpop.f32.mrb[46].mxu0  ;;  %v14251_v34 = vpack.c.bf16 %v12559_v28, %v12559_v28  ;;  %v12560_v58 = vmax.f32 %v12528_v29, 0.0  ;;  %v16093_v39 = vpop.f32.mrb[36].mxu1  ;;  %v21534_v47 = vld [vmem:[#allocation25_spill] sm:$0xff]  ;;  %v21535_v28 = vld [vmem:[#allocation51_spill] sm:$0xff] }
 0x543   : > { %v21016_v17 = vmax.f32 %v21521_v46, %v15796_v57  ;;  %v10147_v31 = vpop.f32.mrb[47].mxu0  ;;  %12722 = vst.msk [vmem:[%s21005_s13 + $0x8] sm:$0xf] %vm12719_vm5, %v14253_v56  ;;  %v14254_v51 = vpack.c.bf16 %v12562_v49, %v12562_v49  ;;  %v12494_v48 = vmax.f32 %v10261_v60, %v16093_v39  ;;  %v12345_v43 = vpop.f32.mrb[37].mxu1  ;;  %v21536_v29 = vmax.f32 %v21534_v47, %v21535_v28  ;;  %v21550_v28 = vld [vmem:[#allocation59_spill] sm:$0xff] }
 0x544   : > { %v21021_v0 = vmax.f32 %v21524_v55, %v10147_v31  ;;  %12720 = vst.msk [vmem:[%s21005_s13] sm:$0xf] %vm12719_vm5, %v14251_v34  ;;  %v14252_v16 = vpack.c.bf16 %v12560_v58, %v12560_v58  ;;  %v12492_v54 = vmax.f32 %v10259_v6, %v12345_v43  ;;  %v16094_v2 = vpop.f32.mrb[38].mxu1  ;;  %v21527_v6 = vmax.f32 %v21525_v45, %v21526_v37 }
 0x545   : > { %12723 = vst.msk [vmem:[%s21005_s13 + $0xc] sm:$0xf] %vm12719_vm5, %v14254_v51  ;;  %v12533_v41 = vadd.f32 %v20986_v20, %v12494_v48  ;;  %v12495_v3 = vmax.f32 %v10262_v42, %v16094_v2  ;;  %v12348_v52 = vpop.f32.mrb[39].mxu1 }
 0x546   : > { %12721 = vst.msk [vmem:[%s21005_s13 + $0x4] sm:$0xf] %vm12719_vm5, %v14252_v16  ;;  %v12531_v22 = vadd.f32 %v20986_v20, %v12492_v54  ;;  %v12493_v25 = vmax.f32 %v10260_v4, %v12348_v52  ;;  %v21540_v16 = vld [vmem:[#allocation29_spill] sm:$0xff]  ;;  %v21541_v54 = vld [vmem:[#allocation56_spill] sm:$0xff] }
 0x547   : > { %v12565_v9 = vmax.f32 %v12533_v41, 0.0  ;;  %v12534_v60 = vadd.f32 %v20986_v20, %v12495_v3  ;;  %v21542_v2 = vmax.f32 %v21540_v16, %v21541_v54 }
 0x548   : > { %v15799_v1 = vpop.f32.mrb[48].mxu0  ;;  %v12563_v26 = vmax.f32 %v12531_v22, 0.0  ;;  %v12532_v42 = vadd.f32 %v20986_v20, %v12493_v25  ;;  %v21543_v22 = vld [vmem:[#allocation30_spill] sm:$0xff]  ;;  %v21544_v25 = vld [vmem:[#allocation57_spill] sm:$0xff] }
 0x549   : > { %v21037_v63 = vmax.f32 %v21527_v6, %v15799_v1  ;;  %v10160_v8 = vpop.f32.mrb[49].mxu0  ;;  %v14257_v62 = vpack.c.bf16 %v12565_v9, %v12565_v9  ;;  %v12566_v24 = vmax.f32 %v12534_v60, 0.0  ;;  %v21545_v1 = vmax.f32 %v21543_v22, %v21544_v25 }
 0x54a   : > { %v21043_v21 = vmax.f32 %v21530_v30, %v10160_v8  ;;  %v15800_v4 = vpop.f32.mrb[50].mxu0  ;;  %v14255_v40 = vpack.c.bf16 %v12563_v26, %v12563_v26  ;;  %v12564_v44 = vmax.f32 %v12532_v42, 0.0  ;;  %v16097_v14 = vpop.f32.mrb[40].mxu1  ;;  %v21546_v8 = vld [vmem:[#allocation42_spill] sm:$0xff] }
 0x54b   : > { %v21048_v61 = vmax.f32 %v21533_v11, %v15800_v4  ;;  %v10163_v23 = vpop.f32.mrb[51].mxu0  ;;  %12726 = vst.msk [vmem:[%s21005_s13 + $0x18] sm:$0xf] %vm12719_vm5, %v14257_v62  ;;  %v14258_v19 = vpack.c.bf16 %v12566_v24, %v12566_v24  ;;  %v12498_v53 = vmax.f32 %v20971_v18, %v16097_v14  ;;  %v12361_v57 = vpop.f32.mrb[41].mxu1  ;;  %v21547_v26 = vld [vmem:[#allocation58_spill] sm:$0xff] }
 0x54c   : > { %v21053_v36 = vmax.f32 %v21536_v29, %v10163_v23  ;;  %12724 = vst.msk [vmem:[%s21005_s13 + $0x10] sm:$0xf] %vm12719_vm5, %v14255_v40  ;;  %v14256_v56 = vpack.c.bf16 %v12564_v44, %v12564_v44  ;;  %v12496_v49 = vmax.f32 %v20976_v12, %v12361_v57  ;;  %v16098_v33 = vpop.f32.mrb[42].mxu1  ;;  %v21537_v12 = vld [vmem:[#allocation41_spill] sm:$0xff]  ;;  %v21548_v42 = vmax.f32 %v21546_v8, %v21547_v26  ;;  %v21562_v26 = vld [vmem:[#allocation63_spill] sm:$0xff] }
 0x54d   : > { %12727 = vst.msk [vmem:[%s21005_s13 + $0x1c] sm:$0xf] %vm12719_vm5, %v14258_v19  ;;  %v12537_v35 = vadd.f32 %v20986_v20, %v12498_v53  ;;  %v12499_v46 = vmax.f32 %v20981_v27, %v16098_v33  ;;  %v12364_v31 = vpop.f32.mrb[43].mxu1  ;;  %v21539_v55 = vmax.f32 %v21537_v12, %v21538_v15 }
 0x54e   : > { %12725 = vst.msk [vmem:[%s21005_s13 + $0x14] sm:$0xf] %vm12719_vm5, %v14256_v56  ;;  %v12535_v34 = vadd.f32 %v20986_v20, %v12496_v49  ;;  %v12497_v18 = vmax.f32 %v20991_v38, %v12364_v31  ;;  %v21552_v56 = vld [vmem:[#allocation32_spill] sm:$0xff] }
 0x54f   : > { %v12569_v39 = vmax.f32 %v12537_v35, 0.0  ;;  %v12538_v5 = vadd.f32 %v20986_v20, %v12499_v46  ;;  %v21553_v49 = vld [vmem:[#allocation60_spill] sm:$0xff] }
 0x550   : > { %v15803_v58 = vpop.f32.mrb[52].mxu0  ;;  %v12567_v43 = vmax.f32 %v12535_v34, 0.0  ;;  %v12536_v27 = vadd.f32 %v20986_v20, %v12497_v18  ;;  %v21554_v33 = vmax.f32 %v21552_v56, %v21553_v49  ;;  %v21555_v34 = vld [vmem:[#allocation33_spill] sm:$0xff] }
 0x551   : > { %v21073_v51 = vmax.f32 %v21539_v55, %v15803_v58  ;;  %v10176_v48 = vpop.f32.mrb[53].mxu0  ;;  %v14261_v3 = vpack.c.bf16 %v12569_v39, %v12569_v39  ;;  %v12570_v52 = vmax.f32 %v12538_v5, 0.0  ;;  %v21556_v18 = vld [vmem:[#allocation61_spill] sm:$0xff] }
 0x552   : > { %v21079_v41 = vmax.f32 %v21542_v2, %v10176_v48  ;;  %v15804_v38 = vpop.f32.mrb[54].mxu0  ;;  %v14259_v45 = vpack.c.bf16 %v12567_v43, %v12567_v43  ;;  %v12568_v37 = vmax.f32 %v12536_v27, 0.0  ;;  %v16101_v6 = vpop.f32.mrb[44].mxu1  ;;  %v21557_v58 = vmax.f32 %v21555_v34, %v21556_v18  ;;  %v21558_v48 = vld [vmem:[#allocation47_spill] sm:$0xff]  ;;  %v21559_v43 = vld [vmem:[#allocation62_spill] sm:$0xff] }
 0x553   : > { %v21084_v9 = vmax.f32 %v21545_v1, %v15804_v38  ;;  %v10179_v60 = vpop.f32.mrb[55].mxu0  ;;  %12730 = vst.msk [vmem:[%s21005_s13 + $0x28] sm:$0xf] %vm12719_vm5, %v14261_v3  ;;  %v14262_v13 = vpack.c.bf16 %v12570_v52, %v12570_v52  ;;  %v12502_v30 = vmax.f32 %v21000_v32, %v16101_v6  ;;  %v12377_v4 = vpop.f32.mrb[45].mxu1  ;;  %v21560_v27 = vmax.f32 %v21558_v48, %v21559_v43 }
 0x554   : > { %v21089_v7 = vmax.f32 %v21548_v42, %v10179_v60  ;;  %12728 = vst.msk [vmem:[%s21005_s13 + $0x20] sm:$0xf] %vm12719_vm5, %v14259_v45  ;;  %v14260_v62 = vpack.c.bf16 %v12568_v37, %v12568_v37  ;;  %v12500_v24 = vmax.f32 %v21011_v10, %v12377_v4  ;;  %v16102_v59 = vpop.f32.mrb[46].mxu1  ;;  %v21549_v10 = vld [vmem:[#allocation46_spill] sm:$0xff] }
 0x555   : > { %12731 = vst.msk [vmem:[%s21005_s13 + $0x2c] sm:$0xf] %vm12719_vm5, %v14262_v13  ;;  %v12541_v50 = vadd.f32 %v20986_v20, %v12502_v30  ;;  %v12503_v11 = vmax.f32 %v21016_v17, %v16102_v59  ;;  %v12380_v23 = vpop.f32.mrb[47].mxu1  ;;  %v21551_v29 = vmax.f32 %v21549_v10, %v21550_v28 }
 0x556   : > { %12729 = vst.msk [vmem:[%s21005_s13 + $0x24] sm:$0xf] %vm12719_vm5, %v14260_v62  ;;  %v12539_v40 = vadd.f32 %v20986_v20, %v12500_v24  ;;  %v12501_v32 = vmax.f32 %v21021_v0, %v12380_v23  ;;  %v21564_v62 = vld [vmem:[#allocation34_spill] sm:$0xff]  ;;  %v21565_v24 = vld [vmem:[#allocation64_spill] sm:$0xff] }
 0x557   : > { %v12573_v14 = vmax.f32 %v12541_v50, 0.0  ;;  %v12542_v47 = vadd.f32 %v20986_v20, %v12503_v11  ;;  %v21566_v59 = vmax.f32 %v21564_v62, %v21565_v24 }
 0x558   : > { %v15807_v44 = vpop.f32.mrb[56].mxu0  ;;  %v12571_v57 = vmax.f32 %v12539_v40, 0.0  ;;  %v12540_v17 = vadd.f32 %v20986_v20, %v12501_v32  ;;  %v21567_v40 = vld [vmem:[#allocation53_spill] sm:$0xff] }
 0x559   : > { %v21109_v19 = vmax.f32 %v21551_v29, %v15807_v44  ;;  %v10192_v53 = vpop.f32.mrb[57].mxu0  ;;  %v14265_v46 = vpack.c.bf16 %v12573_v14, %v12573_v14  ;;  %v12574_v31 = vmax.f32 %v12542_v47, 0.0  ;;  %v21568_v32 = vld [vmem:[#allocation65_spill] sm:$0xff] }
 0x55a   : > { %v21115_v35 = vmax.f32 %v21554_v33, %v10192_v53  ;;  %v15808_v0 = vpop.f32.mrb[58].mxu0  ;;  %v14263_v12 = vpack.c.bf16 %v12571_v57, %v12571_v57  ;;  %v12572_v15 = vmax.f32 %v12540_v17, 0.0  ;;  %v16105_v55 = vpop.f32.mrb[48].mxu1  ;;  %v21569_v44 = vmax.f32 %v21567_v40, %v21568_v32  ;;  %v21570_v53 = vld [vmem:[#allocation54_spill] sm:$0xff] }
 0x55b   : > { %v21120_v39 = vmax.f32 %v21557_v58, %v15808_v0  ;;  %v10195_v5 = vpop.f32.mrb[59].mxu0  ;;  %12734 = vst.msk [vmem:[%s21005_s13 + $0x38] sm:$0xf] %vm12719_vm5, %v14265_v46  ;;  %v14266_v54 = vpack.c.bf16 %v12574_v31, %v12574_v31  ;;  %v12506_v2 = vmax.f32 %v21037_v63, %v16105_v55  ;;  %v12393_v38 = vpop.f32.mrb[49].mxu1  ;;  %v21571_v57 = vld [vmem:[#allocation66_spill] sm:$0xff] }
 0x55c   : > { %v21125_v16 = vmax.f32 %v21560_v27, %v10195_v5  ;;  %12732 = vst.msk [vmem:[%s21005_s13 + $0x30] sm:$0xf] %vm12719_vm5, %v14263_v12  ;;  %v14264_v3 = vpack.c.bf16 %v12572_v15, %v12572_v15  ;;  %v12504_v52 = vmax.f32 %v21043_v21, %v12393_v38  ;;  %v16106_v22 = vpop.f32.mrb[50].mxu1  ;;  %v21561_v21 = vld [vmem:[#allocation52_spill] sm:$0xff]  ;;  %v21572_v17 = vmax.f32 %v21570_v53, %v21571_v57 }
 0x55d   : > { %12735 = vst.msk [vmem:[%s21005_s13 + $0x3c] sm:$0xf] %vm12719_vm5, %v14266_v54  ;;  %v12545_v25 = vadd.f32 %v20986_v20, %v12506_v2  ;;  %v12507_v1 = vmax.f32 %v21048_v61, %v16106_v22  ;;  %v12396_v60 = vpop.f32.mrb[51].mxu1  ;;  %v21563_v42 = vmax.f32 %v21561_v21, %v21562_v26 }
 0x55e   : > { %12733 = vst.msk [vmem:[%s21005_s13 + $0x34] sm:$0xf] %vm12719_vm5, %v14264_v3  ;;  %v12543_v45 = vadd.f32 %v20986_v20, %v12504_v52  ;;  %v12505_v63 = vmax.f32 %v21053_v36, %v12396_v60 }
 0x55f   : > { %v12577_v6 = vmax.f32 %v12545_v25, 0.0  ;;  %v12546_v8 = vadd.f32 %v20986_v20, %v12507_v1 }
 0x560   : > { %v15811_v37 = vpop.f32.mrb[60].mxu0  ;;  %v12575_v4 = vmax.f32 %v12543_v45, 0.0  ;;  %v12544_v61 = vadd.f32 %v20986_v20, %v12505_v63 }
 0x561   : > { %v21145_v13 = vmax.f32 %v21563_v42, %v15811_v37  ;;  %v10208_v30 = vpop.f32.mrb[61].mxu0  ;;  %v14269_v11 = vpack.c.bf16 %v12577_v6, %v12577_v6  ;;  %v12578_v23 = vmax.f32 %v12546_v8, 0.0 }
 0x562   : > { %v21151_v50 = vmax.f32 %v21566_v59, %v10208_v30  ;;  %v15812_v36 = vpop.f32.mrb[62].mxu0  ;;  %v14267_v10 = vpack.c.bf16 %v12575_v4, %v12575_v4  ;;  %v12576_v28 = vmax.f32 %v12544_v61, 0.0  ;;  %v16109_v29 = vpop.f32.mrb[52].mxu1 }
 0x563   : > { %v21156_v14 = vmax.f32 %v21569_v44, %v15812_v36  ;;  %v10211_v47 = vpop.f32.mrb[63].mxu0  ;;  %12738 = vst.msk [vmem:[%s21005_s13 + $0x48] sm:$0xf] %vm12719_vm5, %v14269_v11  ;;  %v14270_v49 = vpack.c.bf16 %v12578_v23, %v12578_v23  ;;  %v12510_v33 = vmax.f32 %v21073_v51, %v16109_v29  ;;  %v12409_v0 = vpop.f32.mrb[53].mxu1 }
 0x564   : > { %v21161_v56 = vmax.f32 %v21572_v17, %v10211_v47  ;;  %12736 = vst.msk [vmem:[%s21005_s13 + $0x40] sm:$0xf] %vm12719_vm5, %v14267_v10  ;;  %v14268_v46 = vpack.c.bf16 %v12576_v28, %v12576_v28  ;;  %v12508_v31 = vmax.f32 %v21079_v41, %v12409_v0  ;;  %v16110_v34 = vpop.f32.mrb[54].mxu1 }
 0x565   : > { %12739 = vst.msk [vmem:[%s21005_s13 + $0x4c] sm:$0xf] %vm12719_vm5, %v14270_v49  ;;  %v12549_v18 = vadd.f32 %v20986_v20, %v12510_v33  ;;  %v12511_v58 = vmax.f32 %v21084_v9, %v16110_v34  ;;  %v12412_v5 = vpop.f32.mrb[55].mxu1 }
 0x566   : > { %12737 = vst.msk [vmem:[%s21005_s13 + $0x44] sm:$0xf] %vm12719_vm5, %v14268_v46  ;;  %v12547_v51 = vadd.f32 %v20986_v20, %v12508_v31  ;;  %v12509_v12 = vmax.f32 %v21089_v7, %v12412_v5 }
 0x567   : > { %v12581_v15 = vmax.f32 %v12549_v18, 0.0  ;;  %v12550_v55 = vadd.f32 %v20986_v20, %v12511_v58 }
 0x568   : > { %v12579_v41 = vmax.f32 %v12547_v51, 0.0  ;;  %v12548_v48 = vadd.f32 %v20986_v20, %v12509_v12 }
 0x569   : > { %v14273_v43 = vpack.c.bf16 %v12581_v15, %v12581_v15  ;;  %v12582_v27 = vmax.f32 %v12550_v55, 0.0 }
 0x56a   : > { %v14271_v54 = vpack.c.bf16 %v12579_v41, %v12579_v41  ;;  %v12580_v9 = vmax.f32 %v12548_v48, 0.0  ;;  %v16113_v2 = vpop.f32.mrb[56].mxu1 }
 0x56b   : > { %12742 = vst.msk [vmem:[%s21005_s13 + $0x58] sm:$0xf] %vm12719_vm5, %v14273_v43  ;;  %v14274_v38 = vpack.c.bf16 %v12582_v27, %v12582_v27  ;;  %v12514_v3 = vmax.f32 %v21109_v19, %v16113_v2  ;;  %v12425_v52 = vpop.f32.mrb[57].mxu1 }
 0x56c   : > { %12740 = vst.msk [vmem:[%s21005_s13 + $0x50] sm:$0xf] %vm12719_vm5, %v14271_v54  ;;  %v14272_v7 = vpack.c.bf16 %v12580_v9, %v12580_v9  ;;  %v12512_v22 = vmax.f32 %v21115_v35, %v12425_v52  ;;  %v16114_v25 = vpop.f32.mrb[58].mxu1 }
 0x56d   : > { %12743 = vst.msk [vmem:[%s21005_s13 + $0x5c] sm:$0xf] %vm12719_vm5, %v14274_v38  ;;  %v12553_v1 = vadd.f32 %v20986_v20, %v12514_v3  ;;  %v12515_v60 = vmax.f32 %v21120_v39, %v16114_v25  ;;  %v12428_v45 = vpop.f32.mrb[59].mxu1 }
 0x56e   : > { %12741 = vst.msk [vmem:[%s21005_s13 + $0x54] sm:$0xf] %vm12719_vm5, %v14272_v7  ;;  %v12551_v19 = vadd.f32 %v20986_v20, %v12512_v22  ;;  %v12513_v63 = vmax.f32 %v21125_v16, %v12428_v45 }
 0x56f   : > { %v12585_v37 = vmax.f32 %v12553_v1, 0.0  ;;  %v12554_v6 = vadd.f32 %v20986_v20, %v12515_v60 }
 0x570   : > { %v12583_v35 = vmax.f32 %v12551_v19, 0.0  ;;  %v12552_v8 = vadd.f32 %v20986_v20, %v12513_v63 }
 0x571   : > { %v14277_v21 = vpack.c.bf16 %v12585_v37, %v12585_v37  ;;  %v12586_v26 = vmax.f32 %v12554_v6, 0.0 }
 0x572   : > { %v14275_v42 = vpack.c.bf16 %v12583_v35, %v12583_v35  ;;  %v12584_v39 = vmax.f32 %v12552_v8, 0.0  ;;  %v16117_v30 = vpop.f32.mrb[60].mxu1 }
 0x573   : > { %12746 = vst.msk [vmem:[%s21005_s13 + $0x68] sm:$0xf] %vm12719_vm5, %v14277_v21  ;;  %v14278_v4 = vpack.c.bf16 %v12586_v26, %v12586_v26  ;;  %v12518_v61 = vmax.f32 %v21145_v13, %v16117_v30  ;;  %v12441_v62 = vpop.f32.mrb[61].mxu1 }
 0x574   : > { %12744 = vst.msk [vmem:[%s21005_s13 + $0x60] sm:$0xf] %vm12719_vm5, %v14275_v42  ;;  %v14276_v16 = vpack.c.bf16 %v12584_v39, %v12584_v39  ;;  %v12516_v24 = vmax.f32 %v21151_v50, %v12441_v62  ;;  %v16118_v59 = vpop.f32.mrb[62].mxu1 }
 0x575   : > { %12747 = vst.msk [vmem:[%s21005_s13 + $0x6c] sm:$0xf] %vm12719_vm5, %v14278_v4  ;;  %v12557_v36 = vadd.f32 %v20986_v20, %v12518_v61  ;;  %v12519_v11 = vmax.f32 %v21156_v14, %v16118_v59  ;;  %v12444_v23 = vpop.f32.mrb[63].mxu1 }
 0x576   : > { %12745 = vst.msk [vmem:[%s21005_s13 + $0x64] sm:$0xf] %vm12719_vm5, %v14276_v16  ;;  %v12555_v13 = vadd.f32 %v20986_v20, %v12516_v24  ;;  %v12517_v40 = vmax.f32 %v21161_v56, %v12444_v23 }
 0x577   : > { %v12589_v32 = vmax.f32 %v12557_v36, 0.0  ;;  %v12558_v50 = vadd.f32 %v20986_v20, %v12519_v11 }
 0x578   : > { %v12587_v44 = vmax.f32 %v12555_v13, 0.0  ;;  %v12556_v47 = vadd.f32 %v20986_v20, %v12517_v40 }
 0x579   : > { %v14281_v10 = vpack.c.bf16 %v12589_v32, %v12589_v32  ;;  %v12590_v28 = vmax.f32 %v12558_v50, 0.0 }
 0x57a   : > { %v14279_v29 = vpack.c.bf16 %v12587_v44, %v12587_v44  ;;  %v12588_v53 = vmax.f32 %v12556_v47, 0.0 }
 0x57b   : > { %12750 = vst.msk [vmem:[%s21005_s13 + $0x78] sm:$0xf] %vm12719_vm5, %v14281_v10  ;;  %v14282_v14 = vpack.c.bf16 %v12590_v28, %v12590_v28 }
 0x57c   : > { %12748 = vst.msk [vmem:[%s21005_s13 + $0x70] sm:$0xf] %vm12719_vm5, %v14279_v29  ;;  %v14280_v57 = vpack.c.bf16 %v12588_v53, %v12588_v53 }
 0x57d   : > { %12751 = vst.msk [vmem:[%s21005_s13 + $0x7c] sm:$0xf] %vm12719_vm5, %v14282_v14 }
 0x57e   : > { %12749 = vst.msk [vmem:[%s21005_s13 + $0x74] sm:$0xf] %vm12719_vm5, %v14280_v57 }
 0x57f PF: > { %s13_s12 = sadd.s32 1, %s17395_s12  }
 0x580   : > { %p10_p4 = scmp.ge.s32.totalorder %s13_s12, 4  }
 0x582   :  { %12 = sbr.rel (!%p10_p4) target bundleno = 1 (0x1), region = 77 }

</bundles_post_ra>
